<compile_context>
chip_gen: v7x
topology: tpu7x:2x2x1
jax: 0.10.0
libtpu: 0.0.40
codegen_flags: <defaults>
</compile_context>

<pallas_src>
import functools

import numpy as np
import jax
import jax.numpy as jnp
from jax.experimental import pallas as pl
from jax.experimental.pallas import tpu as pltpu


# Per-step blocks here are < 1 MiB; 32 MiB leaves ample headroom on v5e/v6e/v7x.
_VMEM_LIMIT = 32 * 1024 * 1024


def _cparams(grid_rank):
    return pltpu.CompilerParams(
        dimension_semantics=("parallel",) * grid_rank,
        vmem_limit_bytes=_VMEM_LIMIT,
    )


# ----------------------- host-side constant helpers ------------------------

def _bilinear_matrix(in_size, out_size):
    """Dense (out, in) 1-D interpolation matrix, torch bilinear align_corners=False."""
    A = np.zeros((out_size, in_size), np.float32)
    scale = in_size / out_size
    for i in range(out_size):
        src = max((i + 0.5) * scale - 0.5, 0.0)   # torch clamps negative src index
        i0 = int(np.floor(src))
        lam = src - i0
        i1 = min(i0 + 1, in_size - 1)
        i0 = min(i0, in_size - 1)
        A[i, i0] += 1.0 - lam
        A[i, i1] += lam
    return A


def _kron_upsample_matrix(hw):
    """2x bilinear upsample of an (hw, hw) plane as one ((2hw)^2, hw^2) matrix.

    All entries are exact in bf16 (products of {0.25, 0.75, 1.0}).
    """
    a = _bilinear_matrix(hw, 2 * hw)
    return jnp.asarray(np.kron(a, a), jnp.bfloat16)


# ----------------------------- Pallas kernels ------------------------------

def _linear_kernel(x_ref, w_ref, b_ref, o_ref):
    """Single-step Linear: o = x @ w + b (bf16 operands, f32 acc/out)."""
    y = jnp.dot(x_ref[...], w_ref[...], preferred_element_type=jnp.float32)
    o_ref[...] = (y + b_ref[...]).astype(o_ref.dtype)


def _bn1_up_pad_kernel(x_ref, g_ref, b_ref, u_ref, o_ref, *, eps, out_hw):
    """Whole-batch BN1 (batch stats + affine) -> 2x bilinear up -> padded write.

    x_ref: (B, P, C) f32 pixel-major linear output (P = s*s)
    u_ref: (4P, P) bf16 kron upsample matrix
    o_ref: (B, 2s+2, 2s+2, C) bf16 zero-padded conv input
    """
    B, P, C = x_ref.shape
    x = x_ref[...].astype(jnp.float32)
    cnt = float(B * P)
    s1 = jnp.sum(jnp.sum(x, axis=0), axis=0, keepdims=True)            # (1, C)
    s2 = jnp.sum(jnp.sum(x * x, axis=0), axis=0, keepdims=True)        # (1, C)
    mean = s1 / cnt
    var = jnp.maximum(s2 / cnt - mean * mean, 0.0)                     # biased var
    scale = g_ref[...] * jax.lax.rsqrt(var + eps)
    shift = b_ref[...] - mean * scale

    u = u_ref[...]
    o_ref[...] = jnp.zeros_like(o_ref)                                  # zero border
    for bb in range(B):                                                 # B is tiny/static
        z = (x[bb] * scale + shift).astype(jnp.bfloat16)                # (P, C)
        up = jnp.dot(u, z, preferred_element_type=jnp.float32)          # (4P, C)
        o_ref[bb, 1:out_hw + 1, 1:out_hw + 1, :] = (
            up.reshape(out_hw, out_hw, C).astype(o_ref.dtype))


def _conv3x3_kernel(x_ref, w_ref, b_ref, *o_refs, act, with_stats):
    """3x3 conv (stride 1) on one zero-padded NHWC image via 9 whole-plane matmuls.

    x_ref: (1, H+2, W+2, Cin) bf16,  w_ref: (9, Cin, Cout) bf16,  b_ref: (1, Cout) f32
    o_refs[0]: (1, H, W, Cout) conv (+bias, +act) output
    o_refs[1]: (1, 2, Cout) f32 per-image [sum, sumsq] over pixels (if with_stats)
    """
    y_ref = o_refs[0]
    _, H, W, Cout = y_ref.shape
    Cin = x_ref.shape[-1]

    acc = jnp.zeros((H * W, Cout), jnp.float32)
    for dh in range(3):
        for dw in range(3):
            xs = x_ref[0, dh:dh + H, dw:dw + W, :].reshape(H * W, Cin)
            acc = acc + jnp.dot(xs, w_ref[3 * dh + dw],
                                preferred_element_type=jnp.float32)
    acc = acc + b_ref[...].astype(jnp.float32)

    if act == "relu":
        acc = jnp.maximum(acc, 0.0)
    elif act == "tanh":
        acc = jnp.tanh(acc)

    y_ref[0] = acc.reshape(H, W, Cout).astype(y_ref.dtype)
    if with_stats:
        s = jnp.sum(acc, axis=0, keepdims=True)
        ss = jnp.sum(acc * acc, axis=0, keepdims=True)
        o_refs[1][0] = jnp.concatenate([s, ss], axis=0)


def _bn_act_pad_kernel(x_ref, sc_ref, sh_ref, *rest, has_up):
    """Per image: BN affine (precomputed scale/shift) + ReLU [+ 2x upsample] + padded write."""
    if has_up:
        u_ref, o_ref = rest
    else:
        (o_ref,) = rest
    _, Hp, Wp, C = o_ref.shape
    Ho, Wo = Hp - 2, Wp - 2
    _, H, W, _ = x_ref.shape

    z = x_ref[0].astype(jnp.float32) * sc_ref[...] + sh_ref[...]
    z = jnp.maximum(z, 0.0)
    if has_up:
        zz = z.reshape(H * W, C).astype(jnp.bfloat16)
        up = jnp.dot(u_ref[...], zz, preferred_element_type=jnp.float32)  # (Ho*Wo, C)
        interior = up.reshape(Ho, Wo, C)
    else:
        interior = z

    o_ref[...] = jnp.zeros_like(o_ref)                                    # zero border
    o_ref[0, 1:Ho + 1, 1:Wo + 1, :] = interior.astype(o_ref.dtype)


# ----------------------------- wrappers ------------------------------------

def pallas_linear(x, w, b):
    """x: (B, K) bf16, w: (K, N) bf16, b: (1, N) f32 -> (B, N) f32 (single grid step)."""
    B, K = x.shape
    N = w.shape[1]
    return pl.pallas_call(
        _linear_kernel,
        grid=(1,),
        out_shape=jax.ShapeDtypeStruct((B, N), jnp.float32),
        in_specs=[
            pl.BlockSpec((B, K), lambda i: (0, 0)),
            pl.BlockSpec((K, N), lambda i: (0, 0)),
            pl.BlockSpec((1, N), lambda i: (0, 0)),
        ],
        out_specs=pl.BlockSpec((B, N), lambda i: (0, 0)),
        compiler_params=_cparams(1),
    )(x, w, b)


def pallas_bn1_up_pad(x, gamma, beta, u, *, eps):
    """x: (B, s*s, 128) f32 -> (B, 2s+2, 2s+2, 128) bf16 (BN1 + up + padded)."""
    B, P, C = x.shape
    P2 = u.shape[0]
    out_hw = int(round(P2 ** 0.5))
    kern = functools.partial(_bn1_up_pad_kernel, eps=eps, out_hw=out_hw)
    return pl.pallas_call(
        kern,
        grid=(1,),
        out_shape=jax.ShapeDtypeStruct((B, out_hw + 2, out_hw + 2, C), jnp.bfloat16),
        in_specs=[
            pl.BlockSpec((B, P, C), lambda i: (0, 0, 0)),
            pl.BlockSpec((1, C), lambda i: (0, 0)),
            pl.BlockSpec((1, C), lambda i: (0, 0)),
            pl.BlockSpec((P2, P), lambda i: (0, 0)),
        ],
        out_specs=pl.BlockSpec((B, out_hw + 2, out_hw + 2, C), lambda i: (0, 0, 0, 0)),
        compiler_params=_cparams(1),
    )(x, gamma, beta, u)


def pallas_conv3x3(xp, w, b, *, act, with_stats, out_dtype):
    """xp: (B, H+2, W+2, Cin) bf16 pre-padded, w: (9, Cin, Cout) bf16, b: (1, Cout) f32."""
    B, Hp, Wp, Cin = xp.shape
    H, W = Hp - 2, Wp - 2
    Cout = w.shape[2]
    kern = functools.partial(_conv3x3_kernel, act=act, with_stats=with_stats)
    in_specs = [
        pl.BlockSpec((1, Hp, Wp, Cin), lambda bb: (bb, 0, 0, 0)),
        pl.BlockSpec((9, Cin, Cout), lambda bb: (0, 0, 0)),
        pl.BlockSpec((1, Cout), lambda bb: (0, 0)),
    ]
    if with_stats:
        out_shape = (jax.ShapeDtypeStruct((B, H, W, Cout), out_dtype),
                     jax.ShapeDtypeStruct((B, 2, Cout), jnp.float32))
        out_specs = (pl.BlockSpec((1, H, W, Cout), lambda bb: (bb, 0, 0, 0)),
                     pl.BlockSpec((1, 2, Cout), lambda bb: (bb, 0, 0)))
    else:
        out_shape = jax.ShapeDtypeStruct((B, H, W, Cout), out_dtype)
        out_specs = pl.BlockSpec((1, H, W, Cout), lambda bb: (bb, 0, 0, 0))
    return pl.pallas_call(
        kern,
        grid=(B,),
        out_shape=out_shape,
        in_specs=in_specs,
        out_specs=out_specs,
        compiler_params=_cparams(1),
    )(xp, w, b)


def pallas_bn_relu_pad(x, scale, shift, u=None):
    """x: (B, H, W, C) bf16 -> (B, Ho+2, Wo+2, C) bf16 (BN affine + ReLU [+2x up], padded)."""
    B, H, W, C = x.shape
    if u is None:
        Ho, Wo = H, W
        args = (x, scale, shift)
        in_specs = [
            pl.BlockSpec((1, H, W, C), lambda bb: (bb, 0, 0, 0)),
            pl.BlockSpec((1, C), lambda bb: (0, 0)),
            pl.BlockSpec((1, C), lambda bb: (0, 0)),
        ]
    else:
        Ho, Wo = 2 * H, 2 * W
        args = (x, scale, shift, u)
        in_specs = [
            pl.BlockSpec((1, H, W, C), lambda bb: (bb, 0, 0, 0)),
            pl.BlockSpec((1, C), lambda bb: (0, 0)),
            pl.BlockSpec((1, C), lambda bb: (0, 0)),
            pl.BlockSpec((Ho * Wo, H * W), lambda bb: (0, 0)),
        ]
    kern = functools.partial(_bn_act_pad_kernel, has_up=u is not None)
    return pl.pallas_call(
        kern,
        grid=(B,),
        out_shape=jax.ShapeDtypeStruct((B, Ho + 2, Wo + 2, C), jnp.bfloat16),
        in_specs=in_specs,
        out_specs=pl.BlockSpec((1, Ho + 2, Wo + 2, C), lambda bb: (bb, 0, 0, 0)),
        compiler_params=_cparams(1),
    )(*args)


def _bn_scale_shift(stats, gamma, beta, *, eps, count):
    """Finalize full-batch biased BN from per-image [sum, sumsq]; tiny per-channel glue."""
    tot = jnp.sum(stats, axis=0)                              # (2, C) f32
    mean = tot[0] / count
    var = jnp.maximum(tot[1] / count - mean * mean, 0.0)      # guard vs cancellation
    scale = gamma[0] * jax.lax.rsqrt(var + eps)
    shift = beta[0] - mean * scale
    return scale[None, :], shift[None, :]                     # (1, C) each, f32


# ----------------------------- Generator -----------------------------------

def init_params(key, latent_dim, n_classes, cont_dim, img_size):
    input_dim = latent_dim + n_classes + cont_dim
    s = img_size // 4
    ks = jax.random.split(key, 8)

    def w(k, shape, scale=0.05, dtype=jnp.bfloat16):
        return (scale * jax.random.normal(k, shape, dtype=jnp.float32)).astype(dtype)

    return {
        # Linear(input_dim, 128*s*s); columns pre-permuted to NHWC pixel-major order.
        "l1_w": w(ks[0], (input_dim, 128 * s * s)),
        "l1_b": w(ks[1], (1, 128 * s * s), dtype=jnp.float32),
        # BatchNorm affine params (torch default init: weight=1, bias=0).
        "bn1_g": jnp.ones((1, 128), jnp.float32),
        "bn1_b": jnp.zeros((1, 128), jnp.float32),
        # Conv 3x3 128->128, tap-major (9, Cin, Cout).
        "c1_w": w(ks[2], (9, 128, 128)),
        "c1_b": w(ks[3], (1, 128), dtype=jnp.float32),
        "bn2_g": jnp.ones((1, 128), jnp.float32),
        "bn2_b": jnp.zeros((1, 128), jnp.float32),
        # Conv 3x3 128->64, output channels zero-padded to 128 (lane-dense stores).
        "c2_w": jnp.zeros((9, 128, 128), jnp.bfloat16).at[:, :, :64].set(
            w(ks[4], (9, 128, 64))),
        "c2_b": jnp.zeros((1, 128), jnp.float32).at[:, :64].set(
            w(ks[5], (1, 64), dtype=jnp.float32)),
        "bn3_g": jnp.ones((1, 128), jnp.float32),   # only [:64] are "real" channels
        "bn3_b": jnp.zeros((1, 128), jnp.float32),
        # Conv 3x3 64->3; input channels 64..127 and output channels 3..127 are zero.
        "c3_w": jnp.zeros((9, 128, 128), jnp.bfloat16).at[:, :64, :3].set(
            w(ks[6], (9, 64, 3))),
        "c3_b": jnp.zeros((1, 128), jnp.float32).at[:, :3].set(
            w(ks[7], (1, 3), dtype=jnp.float32)),
    }


@jax.jit
def generator_forward(params, noise, labels, cont):
    B = noise.shape[0]
    N = params["l1_w"].shape[1]
    s = int(round((N // 128) ** 0.5))          # init_size (static from weight shape)

    gen_input = jnp.concatenate([noise, labels, cont], axis=-1).astype(jnp.bfloat16)

    # l1: Linear (single-step Pallas matmul); output already in NHWC pixel order.
    out = pallas_linear(gen_input, params["l1_w"], params["l1_b"])     # (B, N) f32
    x = out.reshape(B, s * s, 128)             # free metadata reshape, no transpose

    # BN1 (eps=1e-5, train-mode batch stats) + bilinear x2 + padded write.
    u1 = _kron_upsample_matrix(s)
    xp = pallas_bn1_up_pad(x, params["bn1_g"], params["bn1_b"], u1, eps=1e-5)
    # xp: (B, 2s+2, 2s+2, 128) bf16

    # Conv(128->128) with per-image stats; bf16 writeback.
    y, st = pallas_conv3x3(xp, params["c1_w"], params["c1_b"],
                           act="none", with_stats=True, out_dtype=jnp.bfloat16)
    sc2, sh2 = _bn_scale_shift(st, params["bn2_g"], params["bn2_b"],
                               eps=0.8, count=float(B * (2 * s) * (2 * s)))

    # BN2 + ReLU + bilinear x2 + padded write.
    u2 = _kron_upsample_matrix(2 * s)
    xp = pallas_bn_relu_pad(y, sc2, sh2, u2)                  # (B, 4s+2, 4s+2, 128)

    # Conv(128->64, lane-padded to 128) with per-image stats; bf16 writeback.
    y, st = pallas_conv3x3(xp, params["c2_w"], params["c2_b"],
                           act="none", with_stats=True, out_dtype=jnp.bfloat16)
    sc3, sh3 = _bn_scale_shift(st, params["bn3_g"], params["bn3_b"],
                               eps=0.8, count=float(B * (4 * s) * (4 * s)))

    # BN3 + ReLU + padded write (no upsample).
    xp = pallas_bn_relu_pad(y, sc3, sh3, None)                # (B, 4s+2, 4s+2, 128)

    # Conv(->3, lane-padded to 128 outputs) -> Tanh; slice real channels after.
    img = pallas_conv3x3(xp, params["c3_w"], params["c3_b"],
                         act="tanh", with_stats=False, out_dtype=jnp.float32)
    img = img[..., :3]

    # back to torch NCHW convention
    return img.transpose(0, 3, 1, 2)


if __name__ == "__main__":
    latent_dim, n_classes, cont_dim, img_size = 16, 8, 2, 16
    B = 2

    key = jax.random.PRNGKey(0)
    k_p, k_n, k_l, k_c = jax.random.split(key, 4)

    params = init_params(k_p, latent_dim, n_classes, cont_dim, img_size)

    noise = jax.random.normal(k_n, (B, latent_dim), dtype=jnp.float32)
    label_ids = jax.random.randint(k_l, (B,), 0, n_classes)
    labels = jax.nn.one_hot(label_ids, n_classes, dtype=jnp.float32)
    cont = jax.random.uniform(k_c, (B, cont_dim), dtype=jnp.float32,
                              minval=-1.0, maxval=1.0)

    img = generator_forward(params, noise, labels, cont)
    img = jax.block_until_ready(img)

    assert img.shape == (B, 3, img_size, img_size), img.shape
    assert bool(jnp.all(jnp.isfinite(img)))
    print("KERNEL_OK")
</pallas_src>

<mosaic_0001>
module attributes {stable_mosaic.version = 11 : i64} {
  func.func @_bn1_up_pad_kernel(%arg0: i32, %arg1: memref<2x16x128xf32, #tpu.memory_space<vmem>>, %arg2: memref<1x128xf32, #tpu.memory_space<vmem>>, %arg3: memref<1x128xf32, #tpu.memory_space<vmem>>, %arg4: memref<64x16xbf16, #tpu.memory_space<vmem>>, %arg5: memref<2x10x10x128xbf16, #tpu.memory_space<vmem>>) attributes {dimension_semantics = [#tpu.dimension_semantics<parallel>], iteration_bounds = array<i64: 1>, scalar_prefetch = 0 : i64, scratch_operands = 0 : i64, tpu.core_type = #tpu.core_type<tc>, window_params = [{pipeline_mode = #tpu.pipeline_mode<synchronous>, transform_indices = @transform_0, window_bounds = array<i64: 2, 16, 128>}, {pipeline_mode = #tpu.pipeline_mode<synchronous>, transform_indices = @transform_1, window_bounds = array<i64: 1, 128>}, {pipeline_mode = #tpu.pipeline_mode<synchronous>, transform_indices = @transform_2, window_bounds = array<i64: 1, 128>}, {pipeline_mode = #tpu.pipeline_mode<synchronous>, transform_indices = @transform_3, window_bounds = array<i64: 64, 16>}, {pipeline_mode = #tpu.pipeline_mode<synchronous>, transform_indices = @transform_4, window_bounds = array<i64: 2, 10, 10, 128>}]} {
    %c0 = arith.constant 0 : index
    %c0_0 = arith.constant 0 : index
    %c0_1 = arith.constant 0 : index
    %0 = vector.load %arg1[%c0, %c0_0, %c0_1] : memref<2x16x128xf32, #tpu.memory_space<vmem>>, vector<2x16x128xf32>
    %cst = arith.constant dense<0.000000e+00> : vector<16x128xf32>
    %1 = vector.multi_reduction <add>, %0, %cst [0] : vector<2x16x128xf32> to vector<16x128xf32>
    %cst_2 = arith.constant dense<0.000000e+00> : vector<128xf32>
    %2 = vector.multi_reduction <add>, %1, %cst_2 [0] : vector<16x128xf32> to vector<128xf32>
    %3 = vector.shape_cast %2 : vector<128xf32> to vector<1x128xf32>
    %4 = arith.mulf %0, %0 : vector<2x16x128xf32>
    %cst_3 = arith.constant dense<0.000000e+00> : vector<16x128xf32>
    %5 = vector.multi_reduction <add>, %4, %cst_3 [0] : vector<2x16x128xf32> to vector<16x128xf32>
    %cst_4 = arith.constant dense<0.000000e+00> : vector<128xf32>
    %6 = vector.multi_reduction <add>, %5, %cst_4 [0] : vector<16x128xf32> to vector<128xf32>
    %7 = vector.shape_cast %6 : vector<128xf32> to vector<1x128xf32>
    %cst_5 = arith.constant 3.200000e+01 : f32
    %8 = vector.broadcast %cst_5 : f32 to vector<1x128xf32>
    %9 = arith.divf %3, %8 : vector<1x128xf32>
    %cst_6 = arith.constant 3.200000e+01 : f32
    %10 = vector.broadcast %cst_6 : f32 to vector<1x128xf32>
    %11 = arith.divf %7, %10 : vector<1x128xf32>
    %12 = arith.mulf %9, %9 : vector<1x128xf32>
    %13 = arith.subf %11, %12 : vector<1x128xf32>
    %cst_7 = arith.constant 0.000000e+00 : f32
    %14 = vector.broadcast %cst_7 : f32 to vector<1x128xf32>
    %15 = arith.maximumf %13, %14 : vector<1x128xf32>
    %c0_8 = arith.constant 0 : index
    %c0_9 = arith.constant 0 : index
    %16 = vector.load %arg2[%c0_8, %c0_9] : memref<1x128xf32, #tpu.memory_space<vmem>>, vector<1x128xf32>
    %cst_10 = arith.constant 9.99999974E-6 : f32
    %17 = vector.broadcast %cst_10 : f32 to vector<1x128xf32>
    %18 = arith.addf %15, %17 : vector<1x128xf32>
    %19 = math.rsqrt %18 : vector<1x128xf32>
    %20 = arith.mulf %16, %19 : vector<1x128xf32>
    %c0_11 = arith.constant 0 : index
    %c0_12 = arith.constant 0 : index
    %21 = vector.load %arg3[%c0_11, %c0_12] : memref<1x128xf32, #tpu.memory_space<vmem>>, vector<1x128xf32>
    %22 = arith.mulf %9, %20 : vector<1x128xf32>
    %23 = arith.subf %21, %22 : vector<1x128xf32>
    %c0_13 = arith.constant 0 : index
    %c0_14 = arith.constant 0 : index
    %24 = vector.load %arg4[%c0_13, %c0_14] : memref<64x16xbf16, #tpu.memory_space<vmem>>, vector<64x16xbf16>
    %cst_15 = arith.constant 0.000000e+00 : bf16
    %25 = vector.broadcast %cst_15 : bf16 to vector<2x10x10x128xbf16>
    %c0_16 = arith.constant 0 : index
    %c0_17 = arith.constant 0 : index
    %c0_18 = arith.constant 0 : index
    %c0_19 = arith.constant 0 : index
    %26 = vector.load %arg5[%c0_16, %c0_17, %c0_18, %c0_19] : memref<2x10x10x128xbf16, #tpu.memory_space<vmem>>, vector<2x10x10x128xbf16>
    tpu.vector_store %arg5[%c0_16, %c0_17, %c0_18, %c0_19], %25 {strides = array<i32>} : memref<2x10x10x128xbf16, #tpu.memory_space<vmem>>, vector<2x10x10x128xbf16>,
    %27 = vector.extract_strided_slice %0 {offsets = [0, 0, 0], sizes = [1, 16, 128], strides = [1, 1, 1]} : vector<2x16x128xf32> to vector<1x16x128xf32>
    %28 = vector.shape_cast %27 : vector<1x16x128xf32> to vector<16x128xf32>
    %29 = vector.broadcast %20 : vector<1x128xf32> to vector<16x128xf32>
    %30 = arith.mulf %28, %29 : vector<16x128xf32>
    %31 = vector.broadcast %23 : vector<1x128xf32> to vector<16x128xf32>
    %32 = arith.addf %30, %31 : vector<16x128xf32>
    %33 = arith.truncf %32 : vector<16x128xf32> to vector<16x128xbf16>
    %cst_20 = arith.constant dense<0.000000e+00> : vector<64x128xf32>
    %34 = tpu.matmul %24, %33, %cst_20 {dimension_numbers = #tpu.dot_dimension_numbers<[1], [0], [0], [1], [0, 0, 1, 1], [], []>} : vector<64x16xbf16>, vector<16x128xbf16>, vector<64x128xf32> -> vector<64x128xf32>
    %35 = vector.shape_cast %34 : vector<64x128xf32> to vector<8x8x128xf32>
    %36 = arith.truncf %35 : vector<8x8x128xf32> to vector<8x8x128xbf16>
    %c0_21 = arith.constant 0 : index
    %c1 = arith.constant 1 : index
    %c1_22 = arith.constant 1 : index
    %c0_23 = arith.constant 0 : index
    %37 = vector.load %arg5[%c0_21, %c1, %c1_22, %c0_23] : memref<2x10x10x128xbf16, #tpu.memory_space<vmem>>, vector<1x8x8x128xbf16>
    %38 = vector.shape_cast %37 : vector<1x8x8x128xbf16> to vector<8x8x128xbf16>
    %39 = vector.shape_cast %36 : vector<8x8x128xbf16> to vector<1x8x8x128xbf16>
    tpu.vector_store %arg5[%c0_21, %c1, %c1_22, %c0_23], %39 {strides = array<i32>} : memref<2x10x10x128xbf16, #tpu.memory_space<vmem>>, vector<1x8x8x128xbf16>,
    %40 = vector.extract_strided_slice %0 {offsets = [1, 0, 0], sizes = [1, 16, 128], strides = [1, 1, 1]} : vector<2x16x128xf32> to vector<1x16x128xf32>
    %41 = vector.shape_cast %40 : vector<1x16x128xf32> to vector<16x128xf32>
    %42 = vector.broadcast %20 : vector<1x128xf32> to vector<16x128xf32>
    %43 = arith.mulf %41, %42 : vector<16x128xf32>
    %44 = vector.broadcast %23 : vector<1x128xf32> to vector<16x128xf32>
    %45 = arith.addf %43, %44 : vector<16x128xf32>
    %46 = arith.truncf %45 : vector<16x128xf32> to vector<16x128xbf16>
    %cst_24 = arith.constant dense<0.000000e+00> : vector<64x128xf32>
    %47 = tpu.matmul %24, %46, %cst_24 {dimension_numbers = #tpu.dot_dimension_numbers<[1], [0], [0], [1], [0, 0, 1, 1], [], []>} : vector<64x16xbf16>, vector<16x128xbf16>, vector<64x128xf32> -> vector<64x128xf32>
    %48 = vector.shape_cast %47 : vector<64x128xf32> to vector<8x8x128xf32>
    %49 = arith.truncf %48 : vector<8x8x128xf32> to vector<8x8x128xbf16>
    %c1_25 = arith.constant 1 : index
    %c1_26 = arith.constant 1 : index
    %c1_27 = arith.constant 1 : index
    %c0_28 = arith.constant 0 : index
    %50 = vector.load %arg5[%c1_25, %c1_26, %c1_27, %c0_28] : memref<2x10x10x128xbf16, #tpu.memory_space<vmem>>, vector<1x8x8x128xbf16>
    %51 = vector.shape_cast %50 : vector<1x8x8x128xbf16> to vector<8x8x128xbf16>
    %52 = vector.shape_cast %49 : vector<8x8x128xbf16> to vector<1x8x8x128xbf16>
    tpu.vector_store %arg5[%c1_25, %c1_26, %c1_27, %c0_28], %52 {strides = array<i32>} : memref<2x10x10x128xbf16, #tpu.memory_space<vmem>>, vector<1x8x8x128xbf16>,
    return
  }
  func.func @transform_0(%arg0: i32) -> (i32, i32, i32) {
    %c0_i32 = arith.constant 0 : i32
    %c0_i32_0 = arith.constant 0 : i32
    %c0_i32_1 = arith.constant 0 : i32
    %c0_i32_2 = arith.constant 0 : i32
    return %c0_i32, %c0_i32_0, %c0_i32_1 : i32, i32, i32
  }
  func.func @transform_1(%arg0: i32) -> (i32, i32) {
    %c0_i32 = arith.constant 0 : i32
    %c0_i32_0 = arith.constant 0 : i32
    %c0_i32_1 = arith.constant 0 : i32
    return %c0_i32, %c0_i32_0 : i32, i32
  }
  func.func @transform_2(%arg0: i32) -> (i32, i32) {
    %c0_i32 = arith.constant 0 : i32
    %c0_i32_0 = arith.constant 0 : i32
    %c0_i32_1 = arith.constant 0 : i32
    return %c0_i32, %c0_i32_0 : i32, i32
  }
  func.func @transform_3(%arg0: i32) -> (i32, i32) {
    %c0_i32 = arith.constant 0 : i32
    %c0_i32_0 = arith.constant 0 : i32
    %c0_i32_1 = arith.constant 0 : i32
    return %c0_i32, %c0_i32_0 : i32, i32
  }
  func.func @transform_4(%arg0: i32) -> (i32, i32, i32, i32) {
    %c0_i32 = arith.constant 0 : i32
    %c0_i32_0 = arith.constant 0 : i32
    %c0_i32_1 = arith.constant 0 : i32
    %c0_i32_2 = arith.constant 0 : i32
    %c0_i32_3 = arith.constant 0 : i32
    return %c0_i32, %c0_i32_0, %c0_i32_1, %c0_i32_2 : i32, i32, i32, i32
  }
}

module attributes {stable_mosaic.version = 11 : i64} {
  func.func @_linear_kernel(%arg0: i32, %arg1: memref<2x26xbf16, #tpu.memory_space<vmem>>, %arg2: memref<26x2048xbf16, #tpu.memory_space<vmem>>, %arg3: memref<1x2048xf32, #tpu.memory_space<vmem>>, %arg4: memref<2x2048xf32, #tpu.memory_space<vmem>>) attributes {dimension_semantics = [#tpu.dimension_semantics<parallel>], iteration_bounds = array<i64: 1>, scalar_prefetch = 0 : i64, scratch_operands = 0 : i64, tpu.core_type = #tpu.core_type<tc>, window_params = [{pipeline_mode = #tpu.pipeline_mode<synchronous>, transform_indices = @transform_0, window_bounds = array<i64: 2, 26>}, {pipeline_mode = #tpu.pipeline_mode<synchronous>, transform_indices = @transform_1, window_bounds = array<i64: 26, 2048>}, {pipeline_mode = #tpu.pipeline_mode<synchronous>, transform_indices = @transform_2, window_bounds = array<i64: 1, 2048>}, {pipeline_mode = #tpu.pipeline_mode<synchronous>, transform_indices = @transform_3, window_bounds = array<i64: 2, 2048>}]} {
    %c0 = arith.constant 0 : index
    %c0_0 = arith.constant 0 : index
    %0 = vector.load %arg1[%c0, %c0_0] : memref<2x26xbf16, #tpu.memory_space<vmem>>, vector<2x26xbf16>
    %c0_1 = arith.constant 0 : index
    %c0_2 = arith.constant 0 : index
    %1 = vector.load %arg2[%c0_1, %c0_2] : memref<26x2048xbf16, #tpu.memory_space<vmem>>, vector<26x2048xbf16>
    %cst = arith.constant dense<0.000000e+00> : vector<2x2048xf32>
    %2 = tpu.matmul %0, %1, %cst {dimension_numbers = #tpu.dot_dimension_numbers<[1], [0], [0], [1], [0, 0, 1, 1], [], []>} : vector<2x26xbf16>, vector<26x2048xbf16>, vector<2x2048xf32> -> vector<2x2048xf32>
    %c0_3 = arith.constant 0 : index
    %c0_4 = arith.constant 0 : index
    %3 = vector.load %arg3[%c0_3, %c0_4] : memref<1x2048xf32, #tpu.memory_space<vmem>>, vector<1x2048xf32>
    %4 = vector.broadcast %3 : vector<1x2048xf32> to vector<2x2048xf32>
    %5 = arith.addf %2, %4 : vector<2x2048xf32>
    %c0_5 = arith.constant 0 : index
    %c0_6 = arith.constant 0 : index
    %6 = vector.load %arg4[%c0_5, %c0_6] : memref<2x2048xf32, #tpu.memory_space<vmem>>, vector<2x2048xf32>
    tpu.vector_store %arg4[%c0_5, %c0_6], %5 {strides = array<i32>} : memref<2x2048xf32, #tpu.memory_space<vmem>>, vector<2x2048xf32>,
    return
  }
  func.func @transform_0(%arg0: i32) -> (i32, i32) {
    %c0_i32 = arith.constant 0 : i32
    %c0_i32_0 = arith.constant 0 : i32
    %c0_i32_1 = arith.constant 0 : i32
    return %c0_i32, %c0_i32_0 : i32, i32
  }
  func.func @transform_1(%arg0: i32) -> (i32, i32) {
    %c0_i32 = arith.constant 0 : i32
    %c0_i32_0 = arith.constant 0 : i32
    %c0_i32_1 = arith.constant 0 : i32
    return %c0_i32, %c0_i32_0 : i32, i32
  }
  func.func @transform_2(%arg0: i32) -> (i32, i32) {
    %c0_i32 = arith.constant 0 : i32
    %c0_i32_0 = arith.constant 0 : i32
    %c0_i32_1 = arith.constant 0 : i32
    return %c0_i32, %c0_i32_0 : i32, i32
  }
  func.func @transform_3(%arg0: i32) -> (i32, i32) {
    %c0_i32 = arith.constant 0 : i32
    %c0_i32_0 = arith.constant 0 : i32
    %c0_i32_1 = arith.constant 0 : i32
    return %c0_i32, %c0_i32_0 : i32, i32
  }
}

module attributes {stable_mosaic.version = 11 : i64} {
  func.func @_conv3x3_kernel(%arg0: i32, %arg1: memref<1x10x10x128xbf16, #tpu.memory_space<vmem>>, %arg2: memref<9x128x128xbf16, #tpu.memory_space<vmem>>, %arg3: memref<1x128xf32, #tpu.memory_space<vmem>>, %arg4: memref<1x8x8x128xbf16, #tpu.memory_space<vmem>>, %arg5: memref<1x2x128xf32, #tpu.memory_space<vmem>>) attributes {dimension_semantics = [#tpu.dimension_semantics<parallel>], iteration_bounds = array<i64: 2>, scalar_prefetch = 0 : i64, scratch_operands = 0 : i64, tpu.core_type = #tpu.core_type<tc>, window_params = [{transform_indices = @transform_0, window_bounds = array<i64: 1, 10, 10, 128>}, {pipeline_mode = #tpu.pipeline_mode<synchronous>, transform_indices = @transform_1, window_bounds = array<i64: 9, 128, 128>}, {pipeline_mode = #tpu.pipeline_mode<synchronous>, transform_indices = @transform_2, window_bounds = array<i64: 1, 128>}, {transform_indices = @transform_3, window_bounds = array<i64: 1, 8, 8, 128>}, {transform_indices = @transform_4, window_bounds = array<i64: 1, 2, 128>}]} {
    %cst = arith.constant 0.000000e+00 : f32
    %0 = vector.broadcast %cst : f32 to vector<64x128xf32>
    %c0 = arith.constant 0 : index
    %c0_0 = arith.constant 0 : index
    %c0_1 = arith.constant 0 : index
    %c0_2 = arith.constant 0 : index
    %1 = vector.load %arg1[%c0, %c0_0, %c0_1, %c0_2] : memref<1x10x10x128xbf16, #tpu.memory_space<vmem>>, vector<1x8x8x128xbf16>
    %2 = vector.shape_cast %1 : vector<1x8x8x128xbf16> to vector<8x8x128xbf16>
    %3 = vector.shape_cast %2 : vector<8x8x128xbf16> to vector<64x128xbf16>
    %c0_3 = arith.constant 0 : index
    %c0_4 = arith.constant 0 : index
    %c0_5 = arith.constant 0 : index
    %4 = vector.load %arg2[%c0_3, %c0_4, %c0_5] : memref<9x128x128xbf16, #tpu.memory_space<vmem>>, vector<1x128x128xbf16>
    %5 = vector.shape_cast %4 : vector<1x128x128xbf16> to vector<128x128xbf16>
    %cst_6 = arith.constant dense<0.000000e+00> : vector<64x128xf32>
    %6 = tpu.matmul %3, %5, %cst_6 {dimension_numbers = #tpu.dot_dimension_numbers<[1], [0], [0], [1], [0, 0, 1, 1], [], []>} : vector<64x128xbf16>, vector<128x128xbf16>, vector<64x128xf32> -> vector<64x128xf32>
    %7 = arith.addf %0, %6 : vector<64x128xf32>
    %c0_7 = arith.constant 0 : index
    %c0_8 = arith.constant 0 : index
    %c1 = arith.constant 1 : index
    %c0_9 = arith.constant 0 : index
    %8 = vector.load %arg1[%c0_7, %c0_8, %c1, %c0_9] : memref<1x10x10x128xbf16, #tpu.memory_space<vmem>>, vector<1x8x8x128xbf16>
    %9 = vector.shape_cast %8 : vector<1x8x8x128xbf16> to vector<8x8x128xbf16>
    %10 = vector.shape_cast %9 : vector<8x8x128xbf16> to vector<64x128xbf16>
    %c1_10 = arith.constant 1 : index
    %c0_11 = arith.constant 0 : index
    %c0_12 = arith.constant 0 : index
    %11 = vector.load %arg2[%c1_10, %c0_11, %c0_12] : memref<9x128x128xbf16, #tpu.memory_space<vmem>>, vector<1x128x128xbf16>
    %12 = vector.shape_cast %11 : vector<1x128x128xbf16> to vector<128x128xbf16>
    %cst_13 = arith.constant dense<0.000000e+00> : vector<64x128xf32>
    %13 = tpu.matmul %10, %12, %cst_13 {dimension_numbers = #tpu.dot_dimension_numbers<[1], [0], [0], [1], [0, 0, 1, 1], [], []>} : vector<64x128xbf16>, vector<128x128xbf16>, vector<64x128xf32> -> vector<64x128xf32>
    %14 = arith.addf %7, %13 : vector<64x128xf32>
    %c0_14 = arith.constant 0 : index
    %c0_15 = arith.constant 0 : index
    %c2 = arith.constant 2 : index
    %c0_16 = arith.constant 0 : index
    %15 = vector.load %arg1[%c0_14, %c0_15, %c2, %c0_16] : memref<1x10x10x128xbf16, #tpu.memory_space<vmem>>, vector<1x8x8x128xbf16>
    %16 = vector.shape_cast %15 : vector<1x8x8x128xbf16> to vector<8x8x128xbf16>
    %17 = vector.shape_cast %16 : vector<8x8x128xbf16> to vector<64x128xbf16>
    %c2_17 = arith.constant 2 : index
    %c0_18 = arith.constant 0 : index
    %c0_19 = arith.constant 0 : index
    %18 = vector.load %arg2[%c2_17, %c0_18, %c0_19] : memref<9x128x128xbf16, #tpu.memory_space<vmem>>, vector<1x128x128xbf16>
    %19 = vector.shape_cast %18 : vector<1x128x128xbf16> to vector<128x128xbf16>
    %cst_20 = arith.constant dense<0.000000e+00> : vector<64x128xf32>
    %20 = tpu.matmul %17, %19, %cst_20 {dimension_numbers = #tpu.dot_dimension_numbers<[1], [0], [0], [1], [0, 0, 1, 1], [], []>} : vector<64x128xbf16>, vector<128x128xbf16>, vector<64x128xf32> -> vector<64x128xf32>
    %21 = arith.addf %14, %20 : vector<64x128xf32>
    %c0_21 = arith.constant 0 : index
    %c1_22 = arith.constant 1 : index
    %c0_23 = arith.constant 0 : index
    %c0_24 = arith.constant 0 : index
    %22 = vector.load %arg1[%c0_21, %c1_22, %c0_23, %c0_24] : memref<1x10x10x128xbf16, #tpu.memory_space<vmem>>, vector<1x8x8x128xbf16>
    %23 = vector.shape_cast %22 : vector<1x8x8x128xbf16> to vector<8x8x128xbf16>
    %24 = vector.shape_cast %23 : vector<8x8x128xbf16> to vector<64x128xbf16>
    %c3 = arith.constant 3 : index
    %c0_25 = arith.constant 0 : index
    %c0_26 = arith.constant 0 : index
    %25 = vector.load %arg2[%c3, %c0_25, %c0_26] : memref<9x128x128xbf16, #tpu.memory_space<vmem>>, vector<1x128x128xbf16>
    %26 = vector.shape_cast %25 : vector<1x128x128xbf16> to vector<128x128xbf16>
    %cst_27 = arith.constant dense<0.000000e+00> : vector<64x128xf32>
    %27 = tpu.matmul %24, %26, %cst_27 {dimension_numbers = #tpu.dot_dimension_numbers<[1], [0], [0], [1], [0, 0, 1, 1], [], []>} : vector<64x128xbf16>, vector<128x128xbf16>, vector<64x128xf32> -> vector<64x128xf32>
    %28 = arith.addf %21, %27 : vector<64x128xf32>
    %c0_28 = arith.constant 0 : index
    %c1_29 = arith.constant 1 : index
    %c1_30 = arith.constant 1 : index
    %c0_31 = arith.constant 0 : index
    %29 = vector.load %arg1[%c0_28, %c1_29, %c1_30, %c0_31] : memref<1x10x10x128xbf16, #tpu.memory_space<vmem>>, vector<1x8x8x128xbf16>
    %30 = vector.shape_cast %29 : vector<1x8x8x128xbf16> to vector<8x8x128xbf16>
    %31 = vector.shape_cast %30 : vector<8x8x128xbf16> to vector<64x128xbf16>
    %c4 = arith.constant 4 : index
    %c0_32 = arith.constant 0 : index
    %c0_33 = arith.constant 0 : index
    %32 = vector.load %arg2[%c4, %c0_32, %c0_33] : memref<9x128x128xbf16, #tpu.memory_space<vmem>>, vector<1x128x128xbf16>
    %33 = vector.shape_cast %32 : vector<1x128x128xbf16> to vector<128x128xbf16>
    %cst_34 = arith.constant dense<0.000000e+00> : vector<64x128xf32>
    %34 = tpu.matmul %31, %33, %cst_34 {dimension_numbers = #tpu.dot_dimension_numbers<[1], [0], [0], [1], [0, 0, 1, 1], [], []>} : vector<64x128xbf16>, vector<128x128xbf16>, vector<64x128xf32> -> vector<64x128xf32>
    %35 = arith.addf %28, %34 : vector<64x128xf32>
    %c0_35 = arith.constant 0 : index
    %c1_36 = arith.constant 1 : index
    %c2_37 = arith.constant 2 : index
    %c0_38 = arith.constant 0 : index
    %36 = vector.load %arg1[%c0_35, %c1_36, %c2_37, %c0_38] : memref<1x10x10x128xbf16, #tpu.memory_space<vmem>>, vector<1x8x8x128xbf16>
    %37 = vector.shape_cast %36 : vector<1x8x8x128xbf16> to vector<8x8x128xbf16>
    %38 = vector.shape_cast %37 : vector<8x8x128xbf16> to vector<64x128xbf16>
    %c5 = arith.constant 5 : index
    %c0_39 = arith.constant 0 : index
    %c0_40 = arith.constant 0 : index
    %39 = vector.load %arg2[%c5, %c0_39, %c0_40] : memref<9x128x128xbf16, #tpu.memory_space<vmem>>, vector<1x128x128xbf16>
    %40 = vector.shape_cast %39 : vector<1x128x128xbf16> to vector<128x128xbf16>
    %cst_41 = arith.constant dense<0.000000e+00> : vector<64x128xf32>
    %41 = tpu.matmul %38, %40, %cst_41 {dimension_numbers = #tpu.dot_dimension_numbers<[1], [0], [0], [1], [0, 0, 1, 1], [], []>} : vector<64x128xbf16>, vector<128x128xbf16>, vector<64x128xf32> -> vector<64x128xf32>
    %42 = arith.addf %35, %41 : vector<64x128xf32>
    %c0_42 = arith.constant 0 : index
    %c2_43 = arith.constant 2 : index
    %c0_44 = arith.constant 0 : index
    %c0_45 = arith.constant 0 : index
    %43 = vector.load %arg1[%c0_42, %c2_43, %c0_44, %c0_45] : memref<1x10x10x128xbf16, #tpu.memory_space<vmem>>, vector<1x8x8x128xbf16>
    %44 = vector.shape_cast %43 : vector<1x8x8x128xbf16> to vector<8x8x128xbf16>
    %45 = vector.shape_cast %44 : vector<8x8x128xbf16> to vector<64x128xbf16>
    %c6 = arith.constant 6 : index
    %c0_46 = arith.constant 0 : index
    %c0_47 = arith.constant 0 : index
    %46 = vector.load %arg2[%c6, %c0_46, %c0_47] : memref<9x128x128xbf16, #tpu.memory_space<vmem>>, vector<1x128x128xbf16>
    %47 = vector.shape_cast %46 : vector<1x128x128xbf16> to vector<128x128xbf16>
    %cst_48 = arith.constant dense<0.000000e+00> : vector<64x128xf32>
    %48 = tpu.matmul %45, %47, %cst_48 {dimension_numbers = #tpu.dot_dimension_numbers<[1], [0], [0], [1], [0, 0, 1, 1], [], []>} : vector<64x128xbf16>, vector<128x128xbf16>, vector<64x128xf32> -> vector<64x128xf32>
    %49 = arith.addf %42, %48 : vector<64x128xf32>
    %c0_49 = arith.constant 0 : index
    %c2_50 = arith.constant 2 : index
    %c1_51 = arith.constant 1 : index
    %c0_52 = arith.constant 0 : index
    %50 = vector.load %arg1[%c0_49, %c2_50, %c1_51, %c0_52] : memref<1x10x10x128xbf16, #tpu.memory_space<vmem>>, vector<1x8x8x128xbf16>
    %51 = vector.shape_cast %50 : vector<1x8x8x128xbf16> to vector<8x8x128xbf16>
    %52 = vector.shape_cast %51 : vector<8x8x128xbf16> to vector<64x128xbf16>
    %c7 = arith.constant 7 : index
    %c0_53 = arith.constant 0 : index
    %c0_54 = arith.constant 0 : index
    %53 = vector.load %arg2[%c7, %c0_53, %c0_54] : memref<9x128x128xbf16, #tpu.memory_space<vmem>>, vector<1x128x128xbf16>
    %54 = vector.shape_cast %53 : vector<1x128x128xbf16> to vector<128x128xbf16>
    %cst_55 = arith.constant dense<0.000000e+00> : vector<64x128xf32>
    %55 = tpu.matmul %52, %54, %cst_55 {dimension_numbers = #tpu.dot_dimension_numbers<[1], [0], [0], [1], [0, 0, 1, 1], [], []>} : vector<64x128xbf16>, vector<128x128xbf16>, vector<64x128xf32> -> vector<64x128xf32>
    %56 = arith.addf %49, %55 : vector<64x128xf32>
    %c0_56 = arith.constant 0 : index
    %c2_57 = arith.constant 2 : index
    %c2_58 = arith.constant 2 : index
    %c0_59 = arith.constant 0 : index
    %57 = vector.load %arg1[%c0_56, %c2_57, %c2_58, %c0_59] : memref<1x10x10x128xbf16, #tpu.memory_space<vmem>>, vector<1x8x8x128xbf16>
    %58 = vector.shape_cast %57 : vector<1x8x8x128xbf16> to vector<8x8x128xbf16>
    %59 = vector.shape_cast %58 : vector<8x8x128xbf16> to vector<64x128xbf16>
    %c8 = arith.constant 8 : index
    %c0_60 = arith.constant 0 : index
    %c0_61 = arith.constant 0 : index
    %60 = vector.load %arg2[%c8, %c0_60, %c0_61] : memref<9x128x128xbf16, #tpu.memory_space<vmem>>, vector<1x128x128xbf16>
    %61 = vector.shape_cast %60 : vector<1x128x128xbf16> to vector<128x128xbf16>
    %cst_62 = arith.constant dense<0.000000e+00> : vector<64x128xf32>
    %62 = tpu.matmul %59, %61, %cst_62 {dimension_numbers = #tpu.dot_dimension_numbers<[1], [0], [0], [1], [0, 0, 1, 1], [], []>} : vector<64x128xbf16>, vector<128x128xbf16>, vector<64x128xf32> -> vector<64x128xf32>
    %63 = arith.addf %56, %62 : vector<64x128xf32>
    %c0_63 = arith.constant 0 : index
    %c0_64 = arith.constant 0 : index
    %64 = vector.load %arg3[%c0_63, %c0_64] : memref<1x128xf32, #tpu.memory_space<vmem>>, vector<1x128xf32>
    %65 = vector.broadcast %64 : vector<1x128xf32> to vector<64x128xf32>
    %66 = arith.addf %63, %65 : vector<64x128xf32>
    %67 = vector.shape_cast %66 : vector<64x128xf32> to vector<8x8x128xf32>
    %68 = arith.truncf %67 : vector<8x8x128xf32> to vector<8x8x128xbf16>
    %c0_65 = arith.constant 0 : index
    %c0_66 = arith.constant 0 : index
    %c0_67 = arith.constant 0 : index
    %c0_68 = arith.constant 0 : index
    %69 = vector.load %arg4[%c0_65, %c0_66, %c0_67, %c0_68] : memref<1x8x8x128xbf16, #tpu.memory_space<vmem>>, vector<1x8x8x128xbf16>
    %70 = vector.shape_cast %69 : vector<1x8x8x128xbf16> to vector<8x8x128xbf16>
    %71 = vector.shape_cast %68 : vector<8x8x128xbf16> to vector<1x8x8x128xbf16>
    tpu.vector_store %arg4[%c0_65, %c0_66, %c0_67, %c0_68], %71 {strides = array<i32>} : memref<1x8x8x128xbf16, #tpu.memory_space<vmem>>, vector<1x8x8x128xbf16>,
    %cst_69 = arith.constant dense<0.000000e+00> : vector<128xf32>
    %72 = vector.multi_reduction <add>, %66, %cst_69 [0] : vector<64x128xf32> to vector<128xf32>
    %73 = vector.shape_cast %72 : vector<128xf32> to vector<1x128xf32>
    %74 = arith.mulf %66, %66 : vector<64x128xf32>
    %cst_70 = arith.constant dense<0.000000e+00> : vector<128xf32>
    %75 = vector.multi_reduction <add>, %74, %cst_70 [0] : vector<64x128xf32> to vector<128xf32>
    %76 = vector.shape_cast %75 : vector<128xf32> to vector<1x128xf32>
    %77 = tpu.concatenate %73, %76 in 0 : vector<1x128xf32>, vector<1x128xf32> -> vector<2x128xf32>
    %c0_71 = arith.constant 0 : index
    %c0_72 = arith.constant 0 : index
    %c0_73 = arith.constant 0 : index
    %78 = vector.load %arg5[%c0_71, %c0_72, %c0_73] : memref<1x2x128xf32, #tpu.memory_space<vmem>>, vector<1x2x128xf32>
    %79 = vector.shape_cast %78 : vector<1x2x128xf32> to vector<2x128xf32>
    %80 = vector.shape_cast %77 : vector<2x128xf32> to vector<1x2x128xf32>
    tpu.vector_store %arg5[%c0_71, %c0_72, %c0_73], %80 {strides = array<i32>} : memref<1x2x128xf32, #tpu.memory_space<vmem>>, vector<1x2x128xf32>,
    return
  }
  func.func @transform_0(%arg0: i32) -> (i32, i32, i32, i32) {
    %c0_i32 = arith.constant 0 : i32
    %c0_i32_0 = arith.constant 0 : i32
    %c0_i32_1 = arith.constant 0 : i32
    %c0_i32_2 = arith.constant 0 : i32
    return %arg0, %c0_i32, %c0_i32_0, %c0_i32_1 : i32, i32, i32, i32
  }
  func.func @transform_1(%arg0: i32) -> (i32, i32, i32) {
    %c0_i32 = arith.constant 0 : i32
    %c0_i32_0 = arith.constant 0 : i32
    %c0_i32_1 = arith.constant 0 : i32
    %c0_i32_2 = arith.constant 0 : i32
    return %c0_i32, %c0_i32_0, %c0_i32_1 : i32, i32, i32
  }
  func.func @transform_2(%arg0: i32) -> (i32, i32) {
    %c0_i32 = arith.constant 0 : i32
    %c0_i32_0 = arith.constant 0 : i32
    %c0_i32_1 = arith.constant 0 : i32
    return %c0_i32, %c0_i32_0 : i32, i32
  }
  func.func @transform_3(%arg0: i32) -> (i32, i32, i32, i32) {
    %c0_i32 = arith.constant 0 : i32
    %c0_i32_0 = arith.constant 0 : i32
    %c0_i32_1 = arith.constant 0 : i32
    %c0_i32_2 = arith.constant 0 : i32
    return %arg0, %c0_i32, %c0_i32_0, %c0_i32_1 : i32, i32, i32, i32
  }
  func.func @transform_4(%arg0: i32) -> (i32, i32, i32) {
    %c0_i32 = arith.constant 0 : i32
    %c0_i32_0 = arith.constant 0 : i32
    %c0_i32_1 = arith.constant 0 : i32
    return %arg0, %c0_i32, %c0_i32_0 : i32, i32, i32
  }
}

module attributes {stable_mosaic.version = 11 : i64} {
  func.func @_bn_act_pad_kernel(%arg0: i32, %arg1: memref<1x8x8x128xbf16, #tpu.memory_space<vmem>>, %arg2: memref<1x128xf32, #tpu.memory_space<vmem>>, %arg3: memref<1x128xf32, #tpu.memory_space<vmem>>, %arg4: memref<256x64xbf16, #tpu.memory_space<vmem>>, %arg5: memref<1x18x18x128xbf16, #tpu.memory_space<vmem>>) attributes {dimension_semantics = [#tpu.dimension_semantics<parallel>], iteration_bounds = array<i64: 2>, scalar_prefetch = 0 : i64, scratch_operands = 0 : i64, tpu.core_type = #tpu.core_type<tc>, window_params = [{transform_indices = @transform_0, window_bounds = array<i64: 1, 8, 8, 128>}, {pipeline_mode = #tpu.pipeline_mode<synchronous>, transform_indices = @transform_1, window_bounds = array<i64: 1, 128>}, {pipeline_mode = #tpu.pipeline_mode<synchronous>, transform_indices = @transform_2, window_bounds = array<i64: 1, 128>}, {pipeline_mode = #tpu.pipeline_mode<synchronous>, transform_indices = @transform_3, window_bounds = array<i64: 256, 64>}, {transform_indices = @transform_4, window_bounds = array<i64: 1, 18, 18, 128>}]} {
    %c0 = arith.constant 0 : index
    %c0_0 = arith.constant 0 : index
    %c0_1 = arith.constant 0 : index
    %c0_2 = arith.constant 0 : index
    %0 = vector.load %arg1[%c0, %c0_0, %c0_1, %c0_2] : memref<1x8x8x128xbf16, #tpu.memory_space<vmem>>, vector<1x8x8x128xbf16>
    %1 = vector.shape_cast %0 : vector<1x8x8x128xbf16> to vector<8x8x128xbf16>
    %2 = arith.extf %1 : vector<8x8x128xbf16> to vector<8x8x128xf32>
    %c0_3 = arith.constant 0 : index
    %c0_4 = arith.constant 0 : index
    %3 = vector.load %arg2[%c0_3, %c0_4] : memref<1x128xf32, #tpu.memory_space<vmem>>, vector<1x128xf32>
    %4 = vector.shape_cast %3 : vector<1x128xf32> to vector<1x1x128xf32>
    %5 = vector.broadcast %4 : vector<1x1x128xf32> to vector<8x8x128xf32>
    %6 = arith.mulf %2, %5 : vector<8x8x128xf32>
    %c0_5 = arith.constant 0 : index
    %c0_6 = arith.constant 0 : index
    %7 = vector.load %arg3[%c0_5, %c0_6] : memref<1x128xf32, #tpu.memory_space<vmem>>, vector<1x128xf32>
    %8 = vector.shape_cast %7 : vector<1x128xf32> to vector<1x1x128xf32>
    %9 = vector.broadcast %8 : vector<1x1x128xf32> to vector<8x8x128xf32>
    %10 = arith.addf %6, %9 : vector<8x8x128xf32>
    %cst = arith.constant 0.000000e+00 : f32
    %11 = vector.broadcast %cst : f32 to vector<8x8x128xf32>
    %12 = arith.maximumf %10, %11 : vector<8x8x128xf32>
    %13 = vector.shape_cast %12 : vector<8x8x128xf32> to vector<64x128xf32>
    %14 = arith.truncf %13 : vector<64x128xf32> to vector<64x128xbf16>
    %c0_7 = arith.constant 0 : index
    %c0_8 = arith.constant 0 : index
    %15 = vector.load %arg4[%c0_7, %c0_8] : memref<256x64xbf16, #tpu.memory_space<vmem>>, vector<256x64xbf16>
    %cst_9 = arith.constant dense<0.000000e+00> : vector<256x128xf32>
    %16 = tpu.matmul %15, %14, %cst_9 {dimension_numbers = #tpu.dot_dimension_numbers<[1], [0], [0], [1], [0, 0, 1, 1], [], []>} : vector<256x64xbf16>, vector<64x128xbf16>, vector<256x128xf32> -> vector<256x128xf32>
    %17 = vector.shape_cast %16 : vector<256x128xf32> to vector<16x16x128xf32>
    %cst_10 = arith.constant 0.000000e+00 : bf16
    %18 = vector.broadcast %cst_10 : bf16 to vector<1x18x18x128xbf16>
    %c0_11 = arith.constant 0 : index
    %c0_12 = arith.constant 0 : index
    %c0_13 = arith.constant 0 : index
    %c0_14 = arith.constant 0 : index
    %19 = vector.load %arg5[%c0_11, %c0_12, %c0_13, %c0_14] : memref<1x18x18x128xbf16, #tpu.memory_space<vmem>>, vector<1x18x18x128xbf16>
    tpu.vector_store %arg5[%c0_11, %c0_12, %c0_13, %c0_14], %18 {strides = array<i32>} : memref<1x18x18x128xbf16, #tpu.memory_space<vmem>>, vector<1x18x18x128xbf16>,
    %20 = arith.truncf %17 : vector<16x16x128xf32> to vector<16x16x128xbf16>
    %c0_15 = arith.constant 0 : index
    %c1 = arith.constant 1 : index
    %c1_16 = arith.constant 1 : index
    %c0_17 = arith.constant 0 : index
    %21 = vector.load %arg5[%c0_15, %c1, %c1_16, %c0_17] : memref<1x18x18x128xbf16, #tpu.memory_space<vmem>>, vector<1x16x16x128xbf16>
    %22 = vector.shape_cast %21 : vector<1x16x16x128xbf16> to vector<16x16x128xbf16>
    %23 = vector.shape_cast %20 : vector<16x16x128xbf16> to vector<1x16x16x128xbf16>
    tpu.vector_store %arg5[%c0_15, %c1, %c1_16, %c0_17], %23 {strides = array<i32>} : memref<1x18x18x128xbf16, #tpu.memory_space<vmem>>, vector<1x16x16x128xbf16>,
    return
  }
  func.func @transform_0(%arg0: i32) -> (i32, i32, i32, i32) {
    %c0_i32 = arith.constant 0 : i32
    %c0_i32_0 = arith.constant 0 : i32
    %c0_i32_1 = arith.constant 0 : i32
    %c0_i32_2 = arith.constant 0 : i32
    return %arg0, %c0_i32, %c0_i32_0, %c0_i32_1 : i32, i32, i32, i32
  }
  func.func @transform_1(%arg0: i32) -> (i32, i32) {
    %c0_i32 = arith.constant 0 : i32
    %c0_i32_0 = arith.constant 0 : i32
    %c0_i32_1 = arith.constant 0 : i32
    return %c0_i32, %c0_i32_0 : i32, i32
  }
  func.func @transform_2(%arg0: i32) -> (i32, i32) {
    %c0_i32 = arith.constant 0 : i32
    %c0_i32_0 = arith.constant 0 : i32
    %c0_i32_1 = arith.constant 0 : i32
    return %c0_i32, %c0_i32_0 : i32, i32
  }
  func.func @transform_3(%arg0: i32) -> (i32, i32) {
    %c0_i32 = arith.constant 0 : i32
    %c0_i32_0 = arith.constant 0 : i32
    %c0_i32_1 = arith.constant 0 : i32
    return %c0_i32, %c0_i32_0 : i32, i32
  }
  func.func @transform_4(%arg0: i32) -> (i32, i32, i32, i32) {
    %c0_i32 = arith.constant 0 : i32
    %c0_i32_0 = arith.constant 0 : i32
    %c0_i32_1 = arith.constant 0 : i32
    %c0_i32_2 = arith.constant 0 : i32
    return %arg0, %c0_i32, %c0_i32_0, %c0_i32_1 : i32, i32, i32, i32
  }
}

module attributes {stable_mosaic.version = 11 : i64} {
  func.func @_bn_act_pad_kernel(%arg0: i32, %arg1: memref<1x16x16x128xbf16, #tpu.memory_space<vmem>>, %arg2: memref<1x128xf32, #tpu.memory_space<vmem>>, %arg3: memref<1x128xf32, #tpu.memory_space<vmem>>, %arg4: memref<1x18x18x128xbf16, #tpu.memory_space<vmem>>) attributes {dimension_semantics = [#tpu.dimension_semantics<parallel>], iteration_bounds = array<i64: 2>, scalar_prefetch = 0 : i64, scratch_operands = 0 : i64, tpu.core_type = #tpu.core_type<tc>, window_params = [{transform_indices = @transform_0, window_bounds = array<i64: 1, 16, 16, 128>}, {pipeline_mode = #tpu.pipeline_mode<synchronous>, transform_indices = @transform_1, window_bounds = array<i64: 1, 128>}, {pipeline_mode = #tpu.pipeline_mode<synchronous>, transform_indices = @transform_2, window_bounds = array<i64: 1, 128>}, {transform_indices = @transform_3, window_bounds = array<i64: 1, 18, 18, 128>}]} {
    %c0 = arith.constant 0 : index
    %c0_0 = arith.constant 0 : index
    %c0_1 = arith.constant 0 : index
    %c0_2 = arith.constant 0 : index
    %0 = vector.load %arg1[%c0, %c0_0, %c0_1, %c0_2] : memref<1x16x16x128xbf16, #tpu.memory_space<vmem>>, vector<1x16x16x128xbf16>
    %1 = vector.shape_cast %0 : vector<1x16x16x128xbf16> to vector<16x16x128xbf16>
    %2 = arith.extf %1 : vector<16x16x128xbf16> to vector<16x16x128xf32>
    %c0_3 = arith.constant 0 : index
    %c0_4 = arith.constant 0 : index
    %3 = vector.load %arg2[%c0_3, %c0_4] : memref<1x128xf32, #tpu.memory_space<vmem>>, vector<1x128xf32>
    %4 = vector.shape_cast %3 : vector<1x128xf32> to vector<1x1x128xf32>
    %5 = vector.broadcast %4 : vector<1x1x128xf32> to vector<16x16x128xf32>
    %6 = arith.mulf %2, %5 : vector<16x16x128xf32>
    %c0_5 = arith.constant 0 : index
    %c0_6 = arith.constant 0 : index
    %7 = vector.load %arg3[%c0_5, %c0_6] : memref<1x128xf32, #tpu.memory_space<vmem>>, vector<1x128xf32>
    %8 = vector.shape_cast %7 : vector<1x128xf32> to vector<1x1x128xf32>
    %9 = vector.broadcast %8 : vector<1x1x128xf32> to vector<16x16x128xf32>
    %10 = arith.addf %6, %9 : vector<16x16x128xf32>
    %cst = arith.constant 0.000000e+00 : f32
    %11 = vector.broadcast %cst : f32 to vector<16x16x128xf32>
    %12 = arith.maximumf %10, %11 : vector<16x16x128xf32>
    %cst_7 = arith.constant 0.000000e+00 : bf16
    %13 = vector.broadcast %cst_7 : bf16 to vector<1x18x18x128xbf16>
    %c0_8 = arith.constant 0 : index
    %c0_9 = arith.constant 0 : index
    %c0_10 = arith.constant 0 : index
    %c0_11 = arith.constant 0 : index
    %14 = vector.load %arg4[%c0_8, %c0_9, %c0_10, %c0_11] : memref<1x18x18x128xbf16, #tpu.memory_space<vmem>>, vector<1x18x18x128xbf16>
    tpu.vector_store %arg4[%c0_8, %c0_9, %c0_10, %c0_11], %13 {strides = array<i32>} : memref<1x18x18x128xbf16, #tpu.memory_space<vmem>>, vector<1x18x18x128xbf16>,
    %15 = arith.truncf %12 : vector<16x16x128xf32> to vector<16x16x128xbf16>
    %c0_12 = arith.constant 0 : index
    %c1 = arith.constant 1 : index
    %c1_13 = arith.constant 1 : index
    %c0_14 = arith.constant 0 : index
    %16 = vector.load %arg4[%c0_12, %c1, %c1_13, %c0_14] : memref<1x18x18x128xbf16, #tpu.memory_space<vmem>>, vector<1x16x16x128xbf16>
    %17 = vector.shape_cast %16 : vector<1x16x16x128xbf16> to vector<16x16x128xbf16>
    %18 = vector.shape_cast %15 : vector<16x16x128xbf16> to vector<1x16x16x128xbf16>
    tpu.vector_store %arg4[%c0_12, %c1, %c1_13, %c0_14], %18 {strides = array<i32>} : memref<1x18x18x128xbf16, #tpu.memory_space<vmem>>, vector<1x16x16x128xbf16>,
    return
  }
  func.func @transform_0(%arg0: i32) -> (i32, i32, i32, i32) {
    %c0_i32 = arith.constant 0 : i32
    %c0_i32_0 = arith.constant 0 : i32
    %c0_i32_1 = arith.constant 0 : i32
    %c0_i32_2 = arith.constant 0 : i32
    return %arg0, %c0_i32, %c0_i32_0, %c0_i32_1 : i32, i32, i32, i32
  }
  func.func @transform_1(%arg0: i32) -> (i32, i32) {
    %c0_i32 = arith.constant 0 : i32
    %c0_i32_0 = arith.constant 0 : i32
    %c0_i32_1 = arith.constant 0 : i32
    return %c0_i32, %c0_i32_0 : i32, i32
  }
  func.func @transform_2(%arg0: i32) -> (i32, i32) {
    %c0_i32 = arith.constant 0 : i32
    %c0_i32_0 = arith.constant 0 : i32
    %c0_i32_1 = arith.constant 0 : i32
    return %c0_i32, %c0_i32_0 : i32, i32
  }
  func.func @transform_3(%arg0: i32) -> (i32, i32, i32, i32) {
    %c0_i32 = arith.constant 0 : i32
    %c0_i32_0 = arith.constant 0 : i32
    %c0_i32_1 = arith.constant 0 : i32
    %c0_i32_2 = arith.constant 0 : i32
    return %arg0, %c0_i32, %c0_i32_0, %c0_i32_1 : i32, i32, i32, i32
  }
}

module attributes {stable_mosaic.version = 11 : i64} {
  func.func @_conv3x3_kernel(%arg0: i32, %arg1: memref<1x18x18x128xbf16, #tpu.memory_space<vmem>>, %arg2: memref<9x128x128xbf16, #tpu.memory_space<vmem>>, %arg3: memref<1x128xf32, #tpu.memory_space<vmem>>, %arg4: memref<1x16x16x128xbf16, #tpu.memory_space<vmem>>, %arg5: memref<1x2x128xf32, #tpu.memory_space<vmem>>) attributes {dimension_semantics = [#tpu.dimension_semantics<parallel>], iteration_bounds = array<i64: 2>, scalar_prefetch = 0 : i64, scratch_operands = 0 : i64, tpu.core_type = #tpu.core_type<tc>, window_params = [{transform_indices = @transform_0, window_bounds = array<i64: 1, 18, 18, 128>}, {pipeline_mode = #tpu.pipeline_mode<synchronous>, transform_indices = @transform_1, window_bounds = array<i64: 9, 128, 128>}, {pipeline_mode = #tpu.pipeline_mode<synchronous>, transform_indices = @transform_2, window_bounds = array<i64: 1, 128>}, {transform_indices = @transform_3, window_bounds = array<i64: 1, 16, 16, 128>}, {transform_indices = @transform_4, window_bounds = array<i64: 1, 2, 128>}]} {
    %cst = arith.constant 0.000000e+00 : f32
    %0 = vector.broadcast %cst : f32 to vector<256x128xf32>
    %c0 = arith.constant 0 : index
    %c0_0 = arith.constant 0 : index
    %c0_1 = arith.constant 0 : index
    %c0_2 = arith.constant 0 : index
    %1 = vector.load %arg1[%c0, %c0_0, %c0_1, %c0_2] : memref<1x18x18x128xbf16, #tpu.memory_space<vmem>>, vector<1x16x16x128xbf16>
    %2 = vector.shape_cast %1 : vector<1x16x16x128xbf16> to vector<16x16x128xbf16>
    %3 = vector.shape_cast %2 : vector<16x16x128xbf16> to vector<256x128xbf16>
    %c0_3 = arith.constant 0 : index
    %c0_4 = arith.constant 0 : index
    %c0_5 = arith.constant 0 : index
    %4 = vector.load %arg2[%c0_3, %c0_4, %c0_5] : memref<9x128x128xbf16, #tpu.memory_space<vmem>>, vector<1x128x128xbf16>
    %5 = vector.shape_cast %4 : vector<1x128x128xbf16> to vector<128x128xbf16>
    %cst_6 = arith.constant dense<0.000000e+00> : vector<256x128xf32>
    %6 = tpu.matmul %3, %5, %cst_6 {dimension_numbers = #tpu.dot_dimension_numbers<[1], [0], [0], [1], [0, 0, 1, 1], [], []>} : vector<256x128xbf16>, vector<128x128xbf16>, vector<256x128xf32> -> vector<256x128xf32>
    %7 = arith.addf %0, %6 : vector<256x128xf32>
    %c0_7 = arith.constant 0 : index
    %c0_8 = arith.constant 0 : index
    %c1 = arith.constant 1 : index
    %c0_9 = arith.constant 0 : index
    %8 = vector.load %arg1[%c0_7, %c0_8, %c1, %c0_9] : memref<1x18x18x128xbf16, #tpu.memory_space<vmem>>, vector<1x16x16x128xbf16>
    %9 = vector.shape_cast %8 : vector<1x16x16x128xbf16> to vector<16x16x128xbf16>
    %10 = vector.shape_cast %9 : vector<16x16x128xbf16> to vector<256x128xbf16>
    %c1_10 = arith.constant 1 : index
    %c0_11 = arith.constant 0 : index
    %c0_12 = arith.constant 0 : index
    %11 = vector.load %arg2[%c1_10, %c0_11, %c0_12] : memref<9x128x128xbf16, #tpu.memory_space<vmem>>, vector<1x128x128xbf16>
    %12 = vector.shape_cast %11 : vector<1x128x128xbf16> to vector<128x128xbf16>
    %cst_13 = arith.constant dense<0.000000e+00> : vector<256x128xf32>
    %13 = tpu.matmul %10, %12, %cst_13 {dimension_numbers = #tpu.dot_dimension_numbers<[1], [0], [0], [1], [0, 0, 1, 1], [], []>} : vector<256x128xbf16>, vector<128x128xbf16>, vector<256x128xf32> -> vector<256x128xf32>
    %14 = arith.addf %7, %13 : vector<256x128xf32>
    %c0_14 = arith.constant 0 : index
    %c0_15 = arith.constant 0 : index
    %c2 = arith.constant 2 : index
    %c0_16 = arith.constant 0 : index
    %15 = vector.load %arg1[%c0_14, %c0_15, %c2, %c0_16] : memref<1x18x18x128xbf16, #tpu.memory_space<vmem>>, vector<1x16x16x128xbf16>
    %16 = vector.shape_cast %15 : vector<1x16x16x128xbf16> to vector<16x16x128xbf16>
    %17 = vector.shape_cast %16 : vector<16x16x128xbf16> to vector<256x128xbf16>
    %c2_17 = arith.constant 2 : index
    %c0_18 = arith.constant 0 : index
    %c0_19 = arith.constant 0 : index
    %18 = vector.load %arg2[%c2_17, %c0_18, %c0_19] : memref<9x128x128xbf16, #tpu.memory_space<vmem>>, vector<1x128x128xbf16>
    %19 = vector.shape_cast %18 : vector<1x128x128xbf16> to vector<128x128xbf16>
    %cst_20 = arith.constant dense<0.000000e+00> : vector<256x128xf32>
    %20 = tpu.matmul %17, %19, %cst_20 {dimension_numbers = #tpu.dot_dimension_numbers<[1], [0], [0], [1], [0, 0, 1, 1], [], []>} : vector<256x128xbf16>, vector<128x128xbf16>, vector<256x128xf32> -> vector<256x128xf32>
    %21 = arith.addf %14, %20 : vector<256x128xf32>
    %c0_21 = arith.constant 0 : index
    %c1_22 = arith.constant 1 : index
    %c0_23 = arith.constant 0 : index
    %c0_24 = arith.constant 0 : index
    %22 = vector.load %arg1[%c0_21, %c1_22, %c0_23, %c0_24] : memref<1x18x18x128xbf16, #tpu.memory_space<vmem>>, vector<1x16x16x128xbf16>
    %23 = vector.shape_cast %22 : vector<1x16x16x128xbf16> to vector<16x16x128xbf16>
    %24 = vector.shape_cast %23 : vector<16x16x128xbf16> to vector<256x128xbf16>
    %c3 = arith.constant 3 : index
    %c0_25 = arith.constant 0 : index
    %c0_26 = arith.constant 0 : index
    %25 = vector.load %arg2[%c3, %c0_25, %c0_26] : memref<9x128x128xbf16, #tpu.memory_space<vmem>>, vector<1x128x128xbf16>
    %26 = vector.shape_cast %25 : vector<1x128x128xbf16> to vector<128x128xbf16>
    %cst_27 = arith.constant dense<0.000000e+00> : vector<256x128xf32>
    %27 = tpu.matmul %24, %26, %cst_27 {dimension_numbers = #tpu.dot_dimension_numbers<[1], [0], [0], [1], [0, 0, 1, 1], [], []>} : vector<256x128xbf16>, vector<128x128xbf16>, vector<256x128xf32> -> vector<256x128xf32>
    %28 = arith.addf %21, %27 : vector<256x128xf32>
    %c0_28 = arith.constant 0 : index
    %c1_29 = arith.constant 1 : index
    %c1_30 = arith.constant 1 : index
    %c0_31 = arith.constant 0 : index
    %29 = vector.load %arg1[%c0_28, %c1_29, %c1_30, %c0_31] : memref<1x18x18x128xbf16, #tpu.memory_space<vmem>>, vector<1x16x16x128xbf16>
    %30 = vector.shape_cast %29 : vector<1x16x16x128xbf16> to vector<16x16x128xbf16>
    %31 = vector.shape_cast %30 : vector<16x16x128xbf16> to vector<256x128xbf16>
    %c4 = arith.constant 4 : index
    %c0_32 = arith.constant 0 : index
    %c0_33 = arith.constant 0 : index
    %32 = vector.load %arg2[%c4, %c0_32, %c0_33] : memref<9x128x128xbf16, #tpu.memory_space<vmem>>, vector<1x128x128xbf16>
    %33 = vector.shape_cast %32 : vector<1x128x128xbf16> to vector<128x128xbf16>
    %cst_34 = arith.constant dense<0.000000e+00> : vector<256x128xf32>
    %34 = tpu.matmul %31, %33, %cst_34 {dimension_numbers = #tpu.dot_dimension_numbers<[1], [0], [0], [1], [0, 0, 1, 1], [], []>} : vector<256x128xbf16>, vector<128x128xbf16>, vector<256x128xf32> -> vector<256x128xf32>
    %35 = arith.addf %28, %34 : vector<256x128xf32>
    %c0_35 = arith.constant 0 : index
    %c1_36 = arith.constant 1 : index
    %c2_37 = arith.constant 2 : index
    %c0_38 = arith.constant 0 : index
    %36 = vector.load %arg1[%c0_35, %c1_36, %c2_37, %c0_38] : memref<1x18x18x128xbf16, #tpu.memory_space<vmem>>, vector<1x16x16x128xbf16>
    %37 = vector.shape_cast %36 : vector<1x16x16x128xbf16> to vector<16x16x128xbf16>
    %38 = vector.shape_cast %37 : vector<16x16x128xbf16> to vector<256x128xbf16>
    %c5 = arith.constant 5 : index
    %c0_39 = arith.constant 0 : index
    %c0_40 = arith.constant 0 : index
    %39 = vector.load %arg2[%c5, %c0_39, %c0_40] : memref<9x128x128xbf16, #tpu.memory_space<vmem>>, vector<1x128x128xbf16>
    %40 = vector.shape_cast %39 : vector<1x128x128xbf16> to vector<128x128xbf16>
    %cst_41 = arith.constant dense<0.000000e+00> : vector<256x128xf32>
    %41 = tpu.matmul %38, %40, %cst_41 {dimension_numbers = #tpu.dot_dimension_numbers<[1], [0], [0], [1], [0, 0, 1, 1], [], []>} : vector<256x128xbf16>, vector<128x128xbf16>, vector<256x128xf32> -> vector<256x128xf32>
    %42 = arith.addf %35, %41 : vector<256x128xf32>
    %c0_42 = arith.constant 0 : index
    %c2_43 = arith.constant 2 : index
    %c0_44 = arith.constant 0 : index
    %c0_45 = arith.constant 0 : index
    %43 = vector.load %arg1[%c0_42, %c2_43, %c0_44, %c0_45] : memref<1x18x18x128xbf16, #tpu.memory_space<vmem>>, vector<1x16x16x128xbf16>
    %44 = vector.shape_cast %43 : vector<1x16x16x128xbf16> to vector<16x16x128xbf16>
    %45 = vector.shape_cast %44 : vector<16x16x128xbf16> to vector<256x128xbf16>
    %c6 = arith.constant 6 : index
    %c0_46 = arith.constant 0 : index
    %c0_47 = arith.constant 0 : index
    %46 = vector.load %arg2[%c6, %c0_46, %c0_47] : memref<9x128x128xbf16, #tpu.memory_space<vmem>>, vector<1x128x128xbf16>
    %47 = vector.shape_cast %46 : vector<1x128x128xbf16> to vector<128x128xbf16>
    %cst_48 = arith.constant dense<0.000000e+00> : vector<256x128xf32>
    %48 = tpu.matmul %45, %47, %cst_48 {dimension_numbers = #tpu.dot_dimension_numbers<[1], [0], [0], [1], [0, 0, 1, 1], [], []>} : vector<256x128xbf16>, vector<128x128xbf16>, vector<256x128xf32> -> vector<256x128xf32>
    %49 = arith.addf %42, %48 : vector<256x128xf32>
    %c0_49 = arith.constant 0 : index
    %c2_50 = arith.constant 2 : index
    %c1_51 = arith.constant 1 : index
    %c0_52 = arith.constant 0 : index
    %50 = vector.load %arg1[%c0_49, %c2_50, %c1_51, %c0_52] : memref<1x18x18x128xbf16, #tpu.memory_space<vmem>>, vector<1x16x16x128xbf16>
    %51 = vector.shape_cast %50 : vector<1x16x16x128xbf16> to vector<16x16x128xbf16>
    %52 = vector.shape_cast %51 : vector<16x16x128xbf16> to vector<256x128xbf16>
    %c7 = arith.constant 7 : index
    %c0_53 = arith.constant 0 : index
    %c0_54 = arith.constant 0 : index
    %53 = vector.load %arg2[%c7, %c0_53, %c0_54] : memref<9x128x128xbf16, #tpu.memory_space<vmem>>, vector<1x128x128xbf16>
    %54 = vector.shape_cast %53 : vector<1x128x128xbf16> to vector<128x128xbf16>
    %cst_55 = arith.constant dense<0.000000e+00> : vector<256x128xf32>
    %55 = tpu.matmul %52, %54, %cst_55 {dimension_numbers = #tpu.dot_dimension_numbers<[1], [0], [0], [1], [0, 0, 1, 1], [], []>} : vector<256x128xbf16>, vector<128x128xbf16>, vector<256x128xf32> -> vector<256x128xf32>
    %56 = arith.addf %49, %55 : vector<256x128xf32>
    %c0_56 = arith.constant 0 : index
    %c2_57 = arith.constant 2 : index
    %c2_58 = arith.constant 2 : index
    %c0_59 = arith.constant 0 : index
    %57 = vector.load %arg1[%c0_56, %c2_57, %c2_58, %c0_59] : memref<1x18x18x128xbf16, #tpu.memory_space<vmem>>, vector<1x16x16x128xbf16>
    %58 = vector.shape_cast %57 : vector<1x16x16x128xbf16> to vector<16x16x128xbf16>
    %59 = vector.shape_cast %58 : vector<16x16x128xbf16> to vector<256x128xbf16>
    %c8 = arith.constant 8 : index
    %c0_60 = arith.constant 0 : index
    %c0_61 = arith.constant 0 : index
    %60 = vector.load %arg2[%c8, %c0_60, %c0_61] : memref<9x128x128xbf16, #tpu.memory_space<vmem>>, vector<1x128x128xbf16>
    %61 = vector.shape_cast %60 : vector<1x128x128xbf16> to vector<128x128xbf16>
    %cst_62 = arith.constant dense<0.000000e+00> : vector<256x128xf32>
    %62 = tpu.matmul %59, %61, %cst_62 {dimension_numbers = #tpu.dot_dimension_numbers<[1], [0], [0], [1], [0, 0, 1, 1], [], []>} : vector<256x128xbf16>, vector<128x128xbf16>, vector<256x128xf32> -> vector<256x128xf32>
    %63 = arith.addf %56, %62 : vector<256x128xf32>
    %c0_63 = arith.constant 0 : index
    %c0_64 = arith.constant 0 : index
    %64 = vector.load %arg3[%c0_63, %c0_64] : memref<1x128xf32, #tpu.memory_space<vmem>>, vector<1x128xf32>
    %65 = vector.broadcast %64 : vector<1x128xf32> to vector<256x128xf32>
    %66 = arith.addf %63, %65 : vector<256x128xf32>
    %67 = vector.shape_cast %66 : vector<256x128xf32> to vector<16x16x128xf32>
    %68 = arith.truncf %67 : vector<16x16x128xf32> to vector<16x16x128xbf16>
    %c0_65 = arith.constant 0 : index
    %c0_66 = arith.constant 0 : index
    %c0_67 = arith.constant 0 : index
    %c0_68 = arith.constant 0 : index
    %69 = vector.load %arg4[%c0_65, %c0_66, %c0_67, %c0_68] : memref<1x16x16x128xbf16, #tpu.memory_space<vmem>>, vector<1x16x16x128xbf16>
    %70 = vector.shape_cast %69 : vector<1x16x16x128xbf16> to vector<16x16x128xbf16>
    %71 = vector.shape_cast %68 : vector<16x16x128xbf16> to vector<1x16x16x128xbf16>
    tpu.vector_store %arg4[%c0_65, %c0_66, %c0_67, %c0_68], %71 {strides = array<i32>} : memref<1x16x16x128xbf16, #tpu.memory_space<vmem>>, vector<1x16x16x128xbf16>,
    %cst_69 = arith.constant dense<0.000000e+00> : vector<128xf32>
    %72 = vector.multi_reduction <add>, %66, %cst_69 [0] : vector<256x128xf32> to vector<128xf32>
    %73 = vector.shape_cast %72 : vector<128xf32> to vector<1x128xf32>
    %74 = arith.mulf %66, %66 : vector<256x128xf32>
    %cst_70 = arith.constant dense<0.000000e+00> : vector<128xf32>
    %75 = vector.multi_reduction <add>, %74, %cst_70 [0] : vector<256x128xf32> to vector<128xf32>
    %76 = vector.shape_cast %75 : vector<128xf32> to vector<1x128xf32>
    %77 = tpu.concatenate %73, %76 in 0 : vector<1x128xf32>, vector<1x128xf32> -> vector<2x128xf32>
    %c0_71 = arith.constant 0 : index
    %c0_72 = arith.constant 0 : index
    %c0_73 = arith.constant 0 : index
    %78 = vector.load %arg5[%c0_71, %c0_72, %c0_73] : memref<1x2x128xf32, #tpu.memory_space<vmem>>, vector<1x2x128xf32>
    %79 = vector.shape_cast %78 : vector<1x2x128xf32> to vector<2x128xf32>
    %80 = vector.shape_cast %77 : vector<2x128xf32> to vector<1x2x128xf32>
    tpu.vector_store %arg5[%c0_71, %c0_72, %c0_73], %80 {strides = array<i32>} : memref<1x2x128xf32, #tpu.memory_space<vmem>>, vector<1x2x128xf32>,
    return
  }
  func.func @transform_0(%arg0: i32) -> (i32, i32, i32, i32) {
    %c0_i32 = arith.constant 0 : i32
    %c0_i32_0 = arith.constant 0 : i32
    %c0_i32_1 = arith.constant 0 : i32
    %c0_i32_2 = arith.constant 0 : i32
    return %arg0, %c0_i32, %c0_i32_0, %c0_i32_1 : i32, i32, i32, i32
  }
  func.func @transform_1(%arg0: i32) -> (i32, i32, i32) {
    %c0_i32 = arith.constant 0 : i32
    %c0_i32_0 = arith.constant 0 : i32
    %c0_i32_1 = arith.constant 0 : i32
    %c0_i32_2 = arith.constant 0 : i32
    return %c0_i32, %c0_i32_0, %c0_i32_1 : i32, i32, i32
  }
  func.func @transform_2(%arg0: i32) -> (i32, i32) {
    %c0_i32 = arith.constant 0 : i32
    %c0_i32_0 = arith.constant 0 : i32
    %c0_i32_1 = arith.constant 0 : i32
    return %c0_i32, %c0_i32_0 : i32, i32
  }
  func.func @transform_3(%arg0: i32) -> (i32, i32, i32, i32) {
    %c0_i32 = arith.constant 0 : i32
    %c0_i32_0 = arith.constant 0 : i32
    %c0_i32_1 = arith.constant 0 : i32
    %c0_i32_2 = arith.constant 0 : i32
    return %arg0, %c0_i32, %c0_i32_0, %c0_i32_1 : i32, i32, i32, i32
  }
  func.func @transform_4(%arg0: i32) -> (i32, i32, i32) {
    %c0_i32 = arith.constant 0 : i32
    %c0_i32_0 = arith.constant 0 : i32
    %c0_i32_1 = arith.constant 0 : i32
    return %arg0, %c0_i32, %c0_i32_0 : i32, i32, i32
  }
}

module attributes {stable_mosaic.version = 11 : i64} {
  func.func @_conv3x3_kernel(%arg0: i32, %arg1: memref<1x18x18x128xbf16, #tpu.memory_space<vmem>>, %arg2: memref<9x128x128xbf16, #tpu.memory_space<vmem>>, %arg3: memref<1x128xf32, #tpu.memory_space<vmem>>, %arg4: memref<1x16x16x128xf32, #tpu.memory_space<vmem>>) attributes {dimension_semantics = [#tpu.dimension_semantics<parallel>], iteration_bounds = array<i64: 2>, scalar_prefetch = 0 : i64, scratch_operands = 0 : i64, tpu.core_type = #tpu.core_type<tc>, window_params = [{transform_indices = @transform_0, window_bounds = array<i64: 1, 18, 18, 128>}, {pipeline_mode = #tpu.pipeline_mode<synchronous>, transform_indices = @transform_1, window_bounds = array<i64: 9, 128, 128>}, {pipeline_mode = #tpu.pipeline_mode<synchronous>, transform_indices = @transform_2, window_bounds = array<i64: 1, 128>}, {transform_indices = @transform_3, window_bounds = array<i64: 1, 16, 16, 128>}]} {
    %cst = arith.constant 0.000000e+00 : f32
    %0 = vector.broadcast %cst : f32 to vector<256x128xf32>
    %c0 = arith.constant 0 : index
    %c0_0 = arith.constant 0 : index
    %c0_1 = arith.constant 0 : index
    %c0_2 = arith.constant 0 : index
    %1 = vector.load %arg1[%c0, %c0_0, %c0_1, %c0_2] : memref<1x18x18x128xbf16, #tpu.memory_space<vmem>>, vector<1x16x16x128xbf16>
    %2 = vector.shape_cast %1 : vector<1x16x16x128xbf16> to vector<16x16x128xbf16>
    %3 = vector.shape_cast %2 : vector<16x16x128xbf16> to vector<256x128xbf16>
    %c0_3 = arith.constant 0 : index
    %c0_4 = arith.constant 0 : index
    %c0_5 = arith.constant 0 : index
    %4 = vector.load %arg2[%c0_3, %c0_4, %c0_5] : memref<9x128x128xbf16, #tpu.memory_space<vmem>>, vector<1x128x128xbf16>
    %5 = vector.shape_cast %4 : vector<1x128x128xbf16> to vector<128x128xbf16>
    %cst_6 = arith.constant dense<0.000000e+00> : vector<256x128xf32>
    %6 = tpu.matmul %3, %5, %cst_6 {dimension_numbers = #tpu.dot_dimension_numbers<[1], [0], [0], [1], [0, 0, 1, 1], [], []>} : vector<256x128xbf16>, vector<128x128xbf16>, vector<256x128xf32> -> vector<256x128xf32>
    %7 = arith.addf %0, %6 : vector<256x128xf32>
    %c0_7 = arith.constant 0 : index
    %c0_8 = arith.constant 0 : index
    %c1 = arith.constant 1 : index
    %c0_9 = arith.constant 0 : index
    %8 = vector.load %arg1[%c0_7, %c0_8, %c1, %c0_9] : memref<1x18x18x128xbf16, #tpu.memory_space<vmem>>, vector<1x16x16x128xbf16>
    %9 = vector.shape_cast %8 : vector<1x16x16x128xbf16> to vector<16x16x128xbf16>
    %10 = vector.shape_cast %9 : vector<16x16x128xbf16> to vector<256x128xbf16>
    %c1_10 = arith.constant 1 : index
    %c0_11 = arith.constant 0 : index
    %c0_12 = arith.constant 0 : index
    %11 = vector.load %arg2[%c1_10, %c0_11, %c0_12] : memref<9x128x128xbf16, #tpu.memory_space<vmem>>, vector<1x128x128xbf16>
    %12 = vector.shape_cast %11 : vector<1x128x128xbf16> to vector<128x128xbf16>
    %cst_13 = arith.constant dense<0.000000e+00> : vector<256x128xf32>
    %13 = tpu.matmul %10, %12, %cst_13 {dimension_numbers = #tpu.dot_dimension_numbers<[1], [0], [0], [1], [0, 0, 1, 1], [], []>} : vector<256x128xbf16>, vector<128x128xbf16>, vector<256x128xf32> -> vector<256x128xf32>
    %14 = arith.addf %7, %13 : vector<256x128xf32>
    %c0_14 = arith.constant 0 : index
    %c0_15 = arith.constant 0 : index
    %c2 = arith.constant 2 : index
    %c0_16 = arith.constant 0 : index
    %15 = vector.load %arg1[%c0_14, %c0_15, %c2, %c0_16] : memref<1x18x18x128xbf16, #tpu.memory_space<vmem>>, vector<1x16x16x128xbf16>
    %16 = vector.shape_cast %15 : vector<1x16x16x128xbf16> to vector<16x16x128xbf16>
    %17 = vector.shape_cast %16 : vector<16x16x128xbf16> to vector<256x128xbf16>
    %c2_17 = arith.constant 2 : index
    %c0_18 = arith.constant 0 : index
    %c0_19 = arith.constant 0 : index
    %18 = vector.load %arg2[%c2_17, %c0_18, %c0_19] : memref<9x128x128xbf16, #tpu.memory_space<vmem>>, vector<1x128x128xbf16>
    %19 = vector.shape_cast %18 : vector<1x128x128xbf16> to vector<128x128xbf16>
    %cst_20 = arith.constant dense<0.000000e+00> : vector<256x128xf32>
    %20 = tpu.matmul %17, %19, %cst_20 {dimension_numbers = #tpu.dot_dimension_numbers<[1], [0], [0], [1], [0, 0, 1, 1], [], []>} : vector<256x128xbf16>, vector<128x128xbf16>, vector<256x128xf32> -> vector<256x128xf32>
    %21 = arith.addf %14, %20 : vector<256x128xf32>
    %c0_21 = arith.constant 0 : index
    %c1_22 = arith.constant 1 : index
    %c0_23 = arith.constant 0 : index
    %c0_24 = arith.constant 0 : index
    %22 = vector.load %arg1[%c0_21, %c1_22, %c0_23, %c0_24] : memref<1x18x18x128xbf16, #tpu.memory_space<vmem>>, vector<1x16x16x128xbf16>
    %23 = vector.shape_cast %22 : vector<1x16x16x128xbf16> to vector<16x16x128xbf16>
    %24 = vector.shape_cast %23 : vector<16x16x128xbf16> to vector<256x128xbf16>
    %c3 = arith.constant 3 : index
    %c0_25 = arith.constant 0 : index
    %c0_26 = arith.constant 0 : index
    %25 = vector.load %arg2[%c3, %c0_25, %c0_26] : memref<9x128x128xbf16, #tpu.memory_space<vmem>>, vector<1x128x128xbf16>
    %26 = vector.shape_cast %25 : vector<1x128x128xbf16> to vector<128x128xbf16>
    %cst_27 = arith.constant dense<0.000000e+00> : vector<256x128xf32>
    %27 = tpu.matmul %24, %26, %cst_27 {dimension_numbers = #tpu.dot_dimension_numbers<[1], [0], [0], [1], [0, 0, 1, 1], [], []>} : vector<256x128xbf16>, vector<128x128xbf16>, vector<256x128xf32> -> vector<256x128xf32>
    %28 = arith.addf %21, %27 : vector<256x128xf32>
    %c0_28 = arith.constant 0 : index
    %c1_29 = arith.constant 1 : index
    %c1_30 = arith.constant 1 : index
    %c0_31 = arith.constant 0 : index
    %29 = vector.load %arg1[%c0_28, %c1_29, %c1_30, %c0_31] : memref<1x18x18x128xbf16, #tpu.memory_space<vmem>>, vector<1x16x16x128xbf16>
    %30 = vector.shape_cast %29 : vector<1x16x16x128xbf16> to vector<16x16x128xbf16>
    %31 = vector.shape_cast %30 : vector<16x16x128xbf16> to vector<256x128xbf16>
    %c4 = arith.constant 4 : index
    %c0_32 = arith.constant 0 : index
    %c0_33 = arith.constant 0 : index
    %32 = vector.load %arg2[%c4, %c0_32, %c0_33] : memref<9x128x128xbf16, #tpu.memory_space<vmem>>, vector<1x128x128xbf16>
    %33 = vector.shape_cast %32 : vector<1x128x128xbf16> to vector<128x128xbf16>
    %cst_34 = arith.constant dense<0.000000e+00> : vector<256x128xf32>
    %34 = tpu.matmul %31, %33, %cst_34 {dimension_numbers = #tpu.dot_dimension_numbers<[1], [0], [0], [1], [0, 0, 1, 1], [], []>} : vector<256x128xbf16>, vector<128x128xbf16>, vector<256x128xf32> -> vector<256x128xf32>
    %35 = arith.addf %28, %34 : vector<256x128xf32>
    %c0_35 = arith.constant 0 : index
    %c1_36 = arith.constant 1 : index
    %c2_37 = arith.constant 2 : index
    %c0_38 = arith.constant 0 : index
    %36 = vector.load %arg1[%c0_35, %c1_36, %c2_37, %c0_38] : memref<1x18x18x128xbf16, #tpu.memory_space<vmem>>, vector<1x16x16x128xbf16>
    %37 = vector.shape_cast %36 : vector<1x16x16x128xbf16> to vector<16x16x128xbf16>
    %38 = vector.shape_cast %37 : vector<16x16x128xbf16> to vector<256x128xbf16>
    %c5 = arith.constant 5 : index
    %c0_39 = arith.constant 0 : index
    %c0_40 = arith.constant 0 : index
    %39 = vector.load %arg2[%c5, %c0_39, %c0_40] : memref<9x128x128xbf16, #tpu.memory_space<vmem>>, vector<1x128x128xbf16>
    %40 = vector.shape_cast %39 : vector<1x128x128xbf16> to vector<128x128xbf16>
    %cst_41 = arith.constant dense<0.000000e+00> : vector<256x128xf32>
    %41 = tpu.matmul %38, %40, %cst_41 {dimension_numbers = #tpu.dot_dimension_numbers<[1], [0], [0], [1], [0, 0, 1, 1], [], []>} : vector<256x128xbf16>, vector<128x128xbf16>, vector<256x128xf32> -> vector<256x128xf32>
    %42 = arith.addf %35, %41 : vector<256x128xf32>
    %c0_42 = arith.constant 0 : index
    %c2_43 = arith.constant 2 : index
    %c0_44 = arith.constant 0 : index
    %c0_45 = arith.constant 0 : index
    %43 = vector.load %arg1[%c0_42, %c2_43, %c0_44, %c0_45] : memref<1x18x18x128xbf16, #tpu.memory_space<vmem>>, vector<1x16x16x128xbf16>
    %44 = vector.shape_cast %43 : vector<1x16x16x128xbf16> to vector<16x16x128xbf16>
    %45 = vector.shape_cast %44 : vector<16x16x128xbf16> to vector<256x128xbf16>
    %c6 = arith.constant 6 : index
    %c0_46 = arith.constant 0 : index
    %c0_47 = arith.constant 0 : index
    %46 = vector.load %arg2[%c6, %c0_46, %c0_47] : memref<9x128x128xbf16, #tpu.memory_space<vmem>>, vector<1x128x128xbf16>
    %47 = vector.shape_cast %46 : vector<1x128x128xbf16> to vector<128x128xbf16>
    %cst_48 = arith.constant dense<0.000000e+00> : vector<256x128xf32>
    %48 = tpu.matmul %45, %47, %cst_48 {dimension_numbers = #tpu.dot_dimension_numbers<[1], [0], [0], [1], [0, 0, 1, 1], [], []>} : vector<256x128xbf16>, vector<128x128xbf16>, vector<256x128xf32> -> vector<256x128xf32>
    %49 = arith.addf %42, %48 : vector<256x128xf32>
    %c0_49 = arith.constant 0 : index
    %c2_50 = arith.constant 2 : index
    %c1_51 = arith.constant 1 : index
    %c0_52 = arith.constant 0 : index
    %50 = vector.load %arg1[%c0_49, %c2_50, %c1_51, %c0_52] : memref<1x18x18x128xbf16, #tpu.memory_space<vmem>>, vector<1x16x16x128xbf16>
    %51 = vector.shape_cast %50 : vector<1x16x16x128xbf16> to vector<16x16x128xbf16>
    %52 = vector.shape_cast %51 : vector<16x16x128xbf16> to vector<256x128xbf16>
    %c7 = arith.constant 7 : index
    %c0_53 = arith.constant 0 : index
    %c0_54 = arith.constant 0 : index
    %53 = vector.load %arg2[%c7, %c0_53, %c0_54] : memref<9x128x128xbf16, #tpu.memory_space<vmem>>, vector<1x128x128xbf16>
    %54 = vector.shape_cast %53 : vector<1x128x128xbf16> to vector<128x128xbf16>
    %cst_55 = arith.constant dense<0.000000e+00> : vector<256x128xf32>
    %55 = tpu.matmul %52, %54, %cst_55 {dimension_numbers = #tpu.dot_dimension_numbers<[1], [0], [0], [1], [0, 0, 1, 1], [], []>} : vector<256x128xbf16>, vector<128x128xbf16>, vector<256x128xf32> -> vector<256x128xf32>
    %56 = arith.addf %49, %55 : vector<256x128xf32>
    %c0_56 = arith.constant 0 : index
    %c2_57 = arith.constant 2 : index
    %c2_58 = arith.constant 2 : index
    %c0_59 = arith.constant 0 : index
    %57 = vector.load %arg1[%c0_56, %c2_57, %c2_58, %c0_59] : memref<1x18x18x128xbf16, #tpu.memory_space<vmem>>, vector<1x16x16x128xbf16>
    %58 = vector.shape_cast %57 : vector<1x16x16x128xbf16> to vector<16x16x128xbf16>
    %59 = vector.shape_cast %58 : vector<16x16x128xbf16> to vector<256x128xbf16>
    %c8 = arith.constant 8 : index
    %c0_60 = arith.constant 0 : index
    %c0_61 = arith.constant 0 : index
    %60 = vector.load %arg2[%c8, %c0_60, %c0_61] : memref<9x128x128xbf16, #tpu.memory_space<vmem>>, vector<1x128x128xbf16>
    %61 = vector.shape_cast %60 : vector<1x128x128xbf16> to vector<128x128xbf16>
    %cst_62 = arith.constant dense<0.000000e+00> : vector<256x128xf32>
    %62 = tpu.matmul %59, %61, %cst_62 {dimension_numbers = #tpu.dot_dimension_numbers<[1], [0], [0], [1], [0, 0, 1, 1], [], []>} : vector<256x128xbf16>, vector<128x128xbf16>, vector<256x128xf32> -> vector<256x128xf32>
    %63 = arith.addf %56, %62 : vector<256x128xf32>
    %c0_63 = arith.constant 0 : index
    %c0_64 = arith.constant 0 : index
    %64 = vector.load %arg3[%c0_63, %c0_64] : memref<1x128xf32, #tpu.memory_space<vmem>>, vector<1x128xf32>
    %65 = vector.broadcast %64 : vector<1x128xf32> to vector<256x128xf32>
    %66 = arith.addf %63, %65 : vector<256x128xf32>
    %67 = math.tanh %66 : vector<256x128xf32>
    %68 = vector.shape_cast %67 : vector<256x128xf32> to vector<16x16x128xf32>
    %c0_65 = arith.constant 0 : index
    %c0_66 = arith.constant 0 : index
    %c0_67 = arith.constant 0 : index
    %c0_68 = arith.constant 0 : index
    %69 = vector.load %arg4[%c0_65, %c0_66, %c0_67, %c0_68] : memref<1x16x16x128xf32, #tpu.memory_space<vmem>>, vector<1x16x16x128xf32>
    %70 = vector.shape_cast %69 : vector<1x16x16x128xf32> to vector<16x16x128xf32>
    %71 = vector.shape_cast %68 : vector<16x16x128xf32> to vector<1x16x16x128xf32>
    tpu.vector_store %arg4[%c0_65, %c0_66, %c0_67, %c0_68], %71 {strides = array<i32>} : memref<1x16x16x128xf32, #tpu.memory_space<vmem>>, vector<1x16x16x128xf32>,
    return
  }
  func.func @transform_0(%arg0: i32) -> (i32, i32, i32, i32) {
    %c0_i32 = arith.constant 0 : i32
    %c0_i32_0 = arith.constant 0 : i32
    %c0_i32_1 = arith.constant 0 : i32
    %c0_i32_2 = arith.constant 0 : i32
    return %arg0, %c0_i32, %c0_i32_0, %c0_i32_1 : i32, i32, i32, i32
  }
  func.func @transform_1(%arg0: i32) -> (i32, i32, i32) {
    %c0_i32 = arith.constant 0 : i32
    %c0_i32_0 = arith.constant 0 : i32
    %c0_i32_1 = arith.constant 0 : i32
    %c0_i32_2 = arith.constant 0 : i32
    return %c0_i32, %c0_i32_0, %c0_i32_1 : i32, i32, i32
  }
  func.func @transform_2(%arg0: i32) -> (i32, i32) {
    %c0_i32 = arith.constant 0 : i32
    %c0_i32_0 = arith.constant 0 : i32
    %c0_i32_1 = arith.constant 0 : i32
    return %c0_i32, %c0_i32_0 : i32, i32
  }
  func.func @transform_3(%arg0: i32) -> (i32, i32, i32, i32) {
    %c0_i32 = arith.constant 0 : i32
    %c0_i32_0 = arith.constant 0 : i32
    %c0_i32_1 = arith.constant 0 : i32
    %c0_i32_2 = arith.constant 0 : i32
    return %arg0, %c0_i32, %c0_i32_0, %c0_i32_1 : i32, i32, i32, i32
  }
}

</mosaic_0001>

<bundles_post_ra>
// kernel: generator_forward.7
= control target key start
LH: loop header
LB: loop body
LE: loop exit
PB: predicated region body
PF: predicated region fallthrough
CT: control target
= control target key end

     0   :  { %8 = vsyncpa [#allocation3], 0  ;;  %s845_s12 = smov [#allocation2]   ;;  %s966_s0 = inlined_call_operand.vmem [shape: bf16[2,26], index: 0, kind: input, shape index: {}]   ;;  %s967_s1 = inlined_call_operand.hbm [shape: bf16[26,2048], index: 1, kind: input, shape index: {}]   ;;  %s968_s2 = inlined_call_operand.vmem [shape: f32[1,2048], index: 2, kind: input, shape index: {}]   ;;  %s969_s3 = inlined_call_operand.vmem [shape: f32[2,2048], index: 3, kind: output, shape index: {}]  }
   0x1   :  { %s16_s13 = sshll.u32 %s845_s12, 4  ;;  %s821_s16 = scalar_lea.hbm %s967_s1, 4096  ;;  %s17_s13 = int_to_ptr.vmem [resolvable:$true] %s16_s13 }
   0x2   :  { %p822_p0 = scmp.ne.s32.totalorder %s967_s1, %s821_s16  ;;  %p825_p1 = scmp.lt.u32.totalorder %s821_s16, %s967_s1 }
   0x4   :  { %p827_p2 = pnand %p825_p1, %p822_p0 }
   0x6   :  { %830 = shalt.err (!%p827_p2)
}
   0x7   :  { %s831_s21 = scalar_lea.vmem %s17_s13, 4096  ;;  %p836_p4 = scmp.lt.s32.totalorder %s17_s13, %s17_s13 }
   0x8   :  { %p832_p3 = scmp.ne.s32.totalorder %s17_s13, %s831_s21  ;;  %p837_p5 = scmp.lt.s32.totalorder %s831_s21, %s831_s21 }
   0xa   :  { %p838_p6 = por %p837_p5, %p836_p4 }
   0xc   :  { %p839_p7 = pnand %p838_p6, %p832_p3 }
   0xe   :  { %842 = shalt.err (!%p839_p7)
}
   0xf   :  { %s846_s22 = smov 1024   ;;  %s847_s23 = smov 64  }
  0x10   :  { %22 = dma.hbm_to_vmem [thread:$0]  %s967_s1, 4096, %s17_s13, [#allocation3], %s846_s22, %s846_s22, %s847_s23  }
  0x11   :  { %843 = dma.done.wait [#allocation3], 4096  }
  0x12   :  { %844 = vsyncadd [#allocation3], 4294963200  ;;  %v848_v0 = vmov 0   ;;  %v30_v1 = vld [vmem:[#allocation2] sm:$0xff]  ;;  %v31_v3 = vld [vmem:[#allocation2 + $0x8] sm:$0xff]  ;;  %vm294_vm0 = vcmask 1044480  }
  0x13   :  { %375 = vmatprep.mubr.bf16.mxu0 %v848_v0  ;;  %416 = vmatprep.mubr.bf16.mxu1 %v848_v0  ;;  %v38_v2 = vld [vmem:[#allocation2 + $0x40] sm:$0xff]  ;;  %v39_v5 = vld [vmem:[#allocation2 + $0x48] sm:$0xff]  ;;  %v32_v17 = vld [vmem:[#allocation2 + $0x10] sm:$0xff]  ;;  %vm290_vm1 = vcmask 211968  }
  0x14   :  { %v769_v4 = vcombine.high %v30_v1, %v38_v2  ;;  %v768_v6 = vcombine.low %v30_v1, %v38_v2  ;;  %v46_v7 = vld [vmem:[#allocation2 + $0x80] sm:$0xff]  ;;  %v771_v9 = vcombine.high %v31_v3, %v39_v5  ;;  %v770_v10 = vcombine.low %v31_v3, %v39_v5  ;;  %v47_v12 = vld [vmem:[#allocation2 + $0x88] sm:$0xff]  ;;  %v40_v18 = vld [vmem:[#allocation2 + $0x50] sm:$0xff] }
  0x15   :  { %v54_v8 = vld [vmem:[#allocation2 + $0xc0] sm:$0x11]  ;;  %v55_v13 = vld [vmem:[#allocation2 + $0xc8] sm:$0x11]  ;;  %v33_v19 = vld [vmem:[#allocation2 + $0x18] sm:$0xff]  ;;  %v773_v22 = vcombine.high %v32_v17, %v40_v18  ;;  %v772_v30 = vcombine.low %v32_v17, %v40_v18 }
  0x16   :  { %v785_v11 = vcombine.high %v46_v7, %v54_v8  ;;  %v784_v14 = vcombine.low %v46_v7, %v54_v8  ;;  %343 = vmatprep.subr.bf16.mxu0 %v769_v4  ;;  %v787_v15 = vcombine.high %v47_v12, %v55_v13  ;;  %v786_v16 = vcombine.low %v47_v12, %v55_v13  ;;  %v41_v20 = vld [vmem:[#allocation2 + $0x58] sm:$0xff]  ;;  %v48_v25 = vld [vmem:[#allocation2 + $0x90] sm:$0xff]  ;;  %v891_v29 = vld [vmem:[%s966_s0] sm:$0x1] }
  0x17   :  { %384 = vmatprep.subr.bf16.mxu1 %v771_v9  ;;  %344 = vmatpush1.bf16.msra.mxu0 %v768_v6  ;;  %v775_v24 = vcombine.high %v33_v19, %v41_v20  ;;  %v56_v26 = vld [vmem:[#allocation2 + $0xd0] sm:$0x11]  ;;  %v49_v27 = vld [vmem:[#allocation2 + $0x98] sm:$0xff]  ;;  %v774_v31 = vcombine.low %v33_v19, %v41_v20  ;;  %v34_v36 = vld [vmem:[#allocation2 + $0x20] sm:$0xff] }
  0x18   :  { %385 = vmatpush1.bf16.msra.mxu1 %v770_v10  ;;  %800 = vmatprep.subr.msk.bf16.mxu0 %vm294_vm0, %v785_v11  ;;  %v296_v21 = vsel %vm294_vm0, %v784_v14, 0  ;;  %v302_v23 = vsel %vm294_vm0, %v786_v16, 0  ;;  %v57_v28 = vld [vmem:[#allocation2 + $0xd8] sm:$0x11]  ;;  %v789_v32 = vcombine.high %v48_v25, %v56_v26  ;;  %v788_v33 = vcombine.low %v48_v25, %v56_v26  ;;  %v42_v37 = vld [vmem:[#allocation2 + $0x60] sm:$0xff]  ;;  %v35_v38 = vld [vmem:[#allocation2 + $0x28] sm:$0xff] }
  0x19   :  { %802 = vmatprep.subr.msk.bf16.mxu1 %vm294_vm0, %v787_v15  ;;  %v791_v34 = vcombine.high %v49_v27, %v57_v28  ;;  %v790_v35 = vcombine.low %v49_v27, %v57_v28  ;;  %v43_v39 = vld [vmem:[#allocation2 + $0x68] sm:$0xff]  ;;  %v777_v41 = vcombine.high %v34_v36, %v42_v37  ;;  %v50_v44 = vld [vmem:[#allocation2 + $0xa0] sm:$0xff]  ;;  %v776_v48 = vcombine.low %v34_v36, %v42_v37  ;;  %v36_v54 = vld [vmem:[#allocation2 + $0x30] sm:$0xff] }
  0x1a   :  { %v308_v40 = vsel %vm294_vm0, %v788_v33, 0  ;;  %v779_v43 = vcombine.high %v35_v38, %v43_v39  ;;  %v58_v45 = vld [vmem:[#allocation2 + $0xe0] sm:$0x11]  ;;  %v51_v46 = vld [vmem:[#allocation2 + $0xa8] sm:$0xff]  ;;  %v778_v49 = vcombine.low %v35_v38, %v43_v39  ;;  %v44_v55 = vld [vmem:[#allocation2 + $0x70] sm:$0xff]  ;;  %v66_v11 = vlaneseq }
  0x1b   :  { %346 = vmatpush1.bf16.msra.mxu0 %v296_v21  ;;  %v314_v42 = vsel %vm294_vm0, %v790_v35, 0  ;;  %v59_v47 = vld [vmem:[#allocation2 + $0xe8] sm:$0x11]  ;;  %v793_v50 = vcombine.high %v50_v44, %v58_v45  ;;  %v792_v51 = vcombine.low %v50_v44, %v58_v45  ;;  %v37_v56 = vld [vmem:[#allocation2 + $0x38] sm:$0xff]  ;;  %v781_v59 = vcombine.high %v36_v54, %v44_v55  ;;  %v52_v62 = vld [vmem:[#allocation2 + $0xb0] sm:$0xff] }
  0x1c   :  { %387 = vmatpush1.bf16.msra.mxu1 %v302_v23  ;;  %425 = vmatprep.subr.bf16.mxu0 %v773_v22  ;;  %v795_v52 = vcombine.high %v51_v46, %v59_v47  ;;  %v794_v53 = vcombine.low %v51_v46, %v59_v47  ;;  %v45_v57 = vld [vmem:[#allocation2 + $0x78] sm:$0xff]  ;;  %v60_v63 = vld [vmem:[#allocation2 + $0xf0] sm:$0x11]  ;;  %v780_v3 = vcombine.low %v36_v54, %v44_v55  ;;  %v927_v12 = vshrl.u32 %v66_v11, 7  ;;  %v62_v16 = vld [vmem:[%s968_s2] sm:$0xff] }
  0x1d   :  { %466 = vmatprep.subr.bf16.mxu1 %v775_v24  ;;  %v320_v58 = vsel %vm294_vm0, %v792_v51, 0  ;;  %v783_v61 = vcombine.high %v37_v56, %v45_v57  ;;  %v53_v1 = vld [vmem:[#allocation2 + $0xb8] sm:$0xff]  ;;  %v782_v4 = vcombine.low %v37_v56, %v45_v57  ;;  %v797_v5 = vcombine.high %v52_v62, %v60_v63 }
  0x1e   :  { %801 = vmatmul.mubr.msk.bf16.vlgmr.msra.gmra.mrb[0].mxu0 %vm290_vm1, %v891_v29  ;;  %v326_v60 = vsel %vm294_vm0, %v794_v53, 0  ;;  %v61_v2 = vld [vmem:[#allocation2 + $0xf8] sm:$0x11]  ;;  %v796_v6 = vcombine.low %v52_v62, %v60_v63  ;;  %v68_v13 = vsub.s32 0, %v927_v12  ;;  %v849_v14 = vmov 1983009808  }
  0x1f   :  { %803 = vmatmul.mubr.msk.bf16.vlgmr.msra.gmra.mrb[0].mxu1 %vm290_vm1, %v891_v29  ;;  %426 = vmatpush1.bf16.msra.mxu0 %v772_v30  ;;  %v799_v7 = vcombine.high %v53_v1, %v61_v2  ;;  %v798_v8 = vcombine.low %v53_v1, %v61_v2  ;;  %v690_v15 = vunpack.c.l.s4 %v849_v14  ;;  %v72_v17 = vsub.s32 1, %v927_v12 }
  0x20   :  { %467 = vmatpush1.bf16.msra.mxu1 %v774_v31  ;;  %804 = vmatprep.subr.msk.bf16.mxu0 %vm294_vm0, %v789_v32  ;;  %v332_v9 = vsel %vm294_vm0, %v796_v6, 0  ;;  %v80_v18 = vsub.s32 3, %v927_v12  ;;  %v69_v19 = vrot.slane %v62_v16, %v68_v13  ;;  %v88_v35 = vsub.s32 5, %v927_v12 }
  0x21   :  { %806 = vmatprep.subr.msk.bf16.mxu1 %vm294_vm0, %v791_v34  ;;  %457 = vmatprep.mubr.bf16.mxu0 %v848_v0  ;;  %v338_v10 = vsel %vm294_vm0, %v798_v8, 0  ;;  %v691_v20 = vunpack.c.0.s8 %v690_v15  ;;  %v73_v22 = vrot.slane %v62_v16, %v72_v17  ;;  %v92_v34 = vsub.s32 6, %v927_v12 }
  0x22   :  { %498 = vmatprep.mubr.bf16.mxu1 %v848_v0  ;;  %v81_v23 = vrot.slane %v62_v16, %v80_v18  ;;  %v96_v39 = vsub.s32 7, %v927_v12  ;;  %v89_v46 = vrot.slane %v62_v16, %v88_v35 }
  0x23   :  { %428 = vmatpush1.bf16.msra.mxu0 %v308_v40  ;;  %v937_v28 = vsub.s32 %v691_v20, %v927_v12  ;;  %v93_v45 = vrot.slane %v62_v16, %v92_v34 }
  0x24   :  { %469 = vmatpush1.bf16.msra.mxu1 %v314_v42  ;;  %507 = vmatprep.subr.bf16.mxu0 %v777_v41 }
  0x25   :  { %548 = vmatprep.subr.bf16.mxu1 %v779_v43 }
  0x26   :  { %805 = vmatmul.mubr.msk.bf16.vlgmr.msra.gmra.mrb[4].mxu0 %vm290_vm1, %v891_v29 }
  0x27   :  { %807 = vmatmul.mubr.msk.bf16.vlgmr.msra.gmra.mrb[4].mxu1 %vm290_vm1, %v891_v29  ;;  %508 = vmatpush1.bf16.msra.mxu0 %v776_v48  ;;  %v97_v48 = vrot.slane %v62_v16, %v96_v39 }
  0x28   :  { %549 = vmatpush1.bf16.msra.mxu1 %v778_v49  ;;  %808 = vmatprep.subr.msk.bf16.mxu0 %vm294_vm0, %v793_v50 }
  0x29   :  { %810 = vmatprep.subr.msk.bf16.mxu1 %vm294_vm0, %v795_v52  ;;  %539 = vmatprep.mubr.bf16.mxu0 %v848_v0 }
  0x2a   :  { %580 = vmatprep.mubr.bf16.mxu1 %v848_v0 }
  0x2b   :  { %510 = vmatpush1.bf16.msra.mxu0 %v320_v58  ;;  %v63_v58 = vld [vmem:[%s968_s2 + $0x8] sm:$0xff] }
  0x2c   :  { %551 = vmatpush1.bf16.msra.mxu1 %v326_v60  ;;  %589 = vmatprep.subr.bf16.mxu0 %v781_v59  ;;  %v101_v2 = vrot.slane %v63_v58, %v68_v13 }
  0x2d   :  { %630 = vmatprep.subr.bf16.mxu1 %v783_v61 }
  0x2e   :  { %809 = vmatmul.mubr.msk.bf16.vlgmr.msra.gmra.mrb[8].mxu0 %vm290_vm1, %v891_v29 }
  0x2f   :  { %811 = vmatmul.mubr.msk.bf16.vlgmr.msra.gmra.mrb[8].mxu1 %vm290_vm1, %v891_v29  ;;  %590 = vmatpush1.bf16.msra.mxu0 %v780_v3 }
  0x30   :  { %631 = vmatpush1.bf16.msra.mxu1 %v782_v4  ;;  %812 = vmatprep.subr.msk.bf16.mxu0 %vm294_vm0, %v797_v5  ;;  %v105_v5 = vrot.slane %v63_v58, %v72_v17 }
  0x31   :  { %814 = vmatprep.subr.msk.bf16.mxu1 %vm294_vm0, %v799_v7  ;;  %621 = vmatprep.mubr.bf16.mxu0 %v848_v0  ;;  %v113_v7 = vrot.slane %v63_v58, %v80_v18 }
  0x32   :  { %662 = vmatprep.mubr.bf16.mxu1 %v848_v0  ;;  %v76_v0 = vsub.s32 2, %v927_v12 }
  0x33   :  { %592 = vmatpush1.bf16.msra.mxu0 %v332_v9 }
  0x34   :  { %633 = vmatpush1.bf16.msra.mxu1 %v338_v10  ;;  %v77_v21 = vrot.slane %v62_v16, %v76_v0  ;;  %v109_v4 = vrot.slane %v63_v58, %v76_v0 }
  0x36   :  { %813 = vmatmul.mubr.msk.bf16.vlgmr.msra.gmra.mrb[12].mxu0 %vm290_vm1, %v891_v29 }
  0x37   :  { %815 = vmatmul.mubr.msk.bf16.vlgmr.msra.gmra.mrb[12].mxu1 %vm290_vm1, %v891_v29  ;;  %v84_v29 = vsub.s32 4, %v927_v12 }
  0x39   :  { %v85_v43 = vrot.slane %v62_v16, %v84_v29  ;;  %v117_v18 = vrot.slane %v63_v58, %v84_v29 }
  0xf1   :  { %v377_v24 = vpop.f32.mrb[0].mxu0 }
  0xf2   :  { %v378_v25 = vadd.f32 %v377_v24, %v69_v19  ;;  %v418_v26 = vpop.f32.mrb[0].mxu1  ;;  %v379_v27 = vpop.f32.mrb[1].mxu0  ;;  %v125_v24 = vrot.slane %v63_v58, %v92_v34 }
  0xf3   :  { %v419_v30 = vadd.f32 %v418_v26, %v77_v21  ;;  %v380_v31 = vadd.f32 %v379_v27, %v73_v22  ;;  %v420_v32 = vpop.f32.mrb[1].mxu1  ;;  %v381_v33 = vpop.f32.mrb[2].mxu0  ;;  %v129_v27 = vrot.slane %v63_v58, %v96_v39 }
  0xf4   :  { %v421_v36 = vadd.f32 %v420_v32, %v81_v23  ;;  %v422_v37 = vpop.f32.mrb[2].mxu1  ;;  %v382_v38 = vpop.f32.mrb[3].mxu0 }
  0xf5   :  { %v687_v40 = vcombine.low %v378_v25, %v380_v31  ;;  %v423_v41 = vpop.f32.mrb[3].mxu1  ;;  %v121_v25 = vrot.slane %v63_v58, %v88_v35 }
  0xf6   :  { %v688_v42 = vcombine.low %v419_v30, %v421_v36 }
  0xf7   :  { %v695_v44 = vrot.slane %v687_v40, %v937_v28 }
  0xf8   :  { %v702_v47 = vrot.slane %v688_v42, %v937_v28 }
  0xf9   :  { %v459_v49 = vpop.f32.mrb[4].mxu0 }
  0xfa   :  { %v703_v50 = vcombine.low %v695_v44, %v702_v47  ;;  %v460_v51 = vadd.f32 %v459_v49, %v85_v43  ;;  %v500_v52 = vpop.f32.mrb[4].mxu1  ;;  %v461_v53 = vpop.f32.mrb[5].mxu0 }
  0xfb   :  { %v501_v54 = vadd.f32 %v500_v52, %v93_v45  ;;  %v462_v55 = vadd.f32 %v461_v53, %v89_v46  ;;  %v502_v56 = vpop.f32.mrb[5].mxu1  ;;  %v463_v57 = vpop.f32.mrb[6].mxu0 }
  0xfc   :  { %759 = vst [vmem:[%s969_s3] sm:$0xff] %v703_v50  ;;  %v503_v59 = vadd.f32 %v502_v56, %v97_v48  ;;  %v504_v60 = vpop.f32.mrb[6].mxu1  ;;  %v464_v61 = vpop.f32.mrb[7].mxu0 }
  0xfd   :  { %v704_v62 = vcombine.low %v460_v51, %v462_v55  ;;  %v505_v63 = vpop.f32.mrb[7].mxu1 }
  0xfe   :  { %v705_v1 = vcombine.low %v501_v54, %v503_v59 }
  0xff   :  { %v712_v3 = vrot.slane %v704_v62, %v937_v28 }
 0x100   :  { %v719_v6 = vrot.slane %v705_v1, %v937_v28 }
 0x101   :  { %v541_v8 = vpop.f32.mrb[8].mxu0 }
 0x102   :  { %v720_v9 = vcombine.low %v712_v3, %v719_v6  ;;  %v542_v10 = vadd.f32 %v541_v8, %v101_v2  ;;  %v582_v11 = vpop.f32.mrb[8].mxu1  ;;  %v543_v12 = vpop.f32.mrb[9].mxu0 }
 0x103   :  { %v583_v14 = vadd.f32 %v582_v11, %v109_v4  ;;  %v544_v15 = vadd.f32 %v543_v12, %v105_v5  ;;  %v584_v16 = vpop.f32.mrb[9].mxu1  ;;  %v545_v19 = vpop.f32.mrb[10].mxu0 }
 0x104   :  { %760 = vst [vmem:[%s969_s3 + $0x8] sm:$0xff] %v720_v9  ;;  %v585_v13 = vadd.f32 %v584_v16, %v113_v7  ;;  %v586_v20 = vpop.f32.mrb[10].mxu1  ;;  %v546_v0 = vpop.f32.mrb[11].mxu0 }
 0x105   :  { %v721_v17 = vcombine.low %v542_v10, %v544_v15  ;;  %v587_v21 = vpop.f32.mrb[11].mxu1 }
 0x106   :  { %v722_v22 = vcombine.low %v583_v14, %v585_v13 }
 0x107   :  { %v729_v23 = vrot.slane %v721_v17, %v937_v28 }
 0x108   :  { %v736_v26 = vrot.slane %v722_v22, %v937_v28 }
 0x109   :  { %v623_v30 = vpop.f32.mrb[12].mxu0 }
 0x10a   :  { %v737_v31 = vcombine.low %v729_v23, %v736_v26  ;;  %v624_v32 = vadd.f32 %v623_v30, %v117_v18  ;;  %v664_v33 = vpop.f32.mrb[12].mxu1  ;;  %v625_v36 = vpop.f32.mrb[13].mxu0 }
 0x10b   :  { %v665_v37 = vadd.f32 %v664_v33, %v125_v24  ;;  %v626_v38 = vadd.f32 %v625_v36, %v121_v25  ;;  %v666_v40 = vpop.f32.mrb[13].mxu1  ;;  %v627_v41 = vpop.f32.mrb[14].mxu0 }
 0x10c   :  { %761 = vst [vmem:[%s969_s3 + $0x10] sm:$0xff] %v737_v31  ;;  %v667_v29 = vadd.f32 %v666_v40, %v129_v27  ;;  %v668_v42 = vpop.f32.mrb[14].mxu1  ;;  %v628_v34 = vpop.f32.mrb[15].mxu0 }
 0x10d   :  { %v738_v35 = vcombine.low %v624_v32, %v626_v38  ;;  %v669_v43 = vpop.f32.mrb[15].mxu1 }
 0x10e   :  { %v739_v44 = vcombine.low %v665_v37, %v667_v29 }
 0x10f   :  { %v746_v39 = vrot.slane %v738_v35, %v937_v28 }
 0x110   :  { %v753_v45 = vrot.slane %v739_v44, %v937_v28 }
 0x112   :  { %v754_v46 = vcombine.low %v746_v39, %v753_v45 }
 0x114   :  { %762 = vst [vmem:[%s969_s3 + $0x18] sm:$0xff] %v754_v46 }
 0x115   :  { %767 = vsyncpa [#allocation3], 1 }

// kernel: generator_forward.8
= control target key start
LH: loop header
LB: loop body
LE: loop exit
PB: predicated region body
PF: predicated region fallthrough
CT: control target
= control target key end

     0   :  { %9 = vsyncpa [#allocation3], 0  ;;  %s1347_s0 = inlined_call_operand.vmem [shape: f32[2,16,128], index: 0, kind: input, shape index: {}]   ;;  %s1348_s1 = inlined_call_operand.hbm [shape: f32[1,128], index: 1, kind: input, shape index: {}]   ;;  %s1349_s2 = inlined_call_operand.hbm [shape: f32[1,128], index: 2, kind: input, shape index: {}]   ;;  %s1350_s3 = inlined_call_operand.vmem [shape: bf16[64,16], index: 3, kind: input, shape index: {}]   ;;  %s1351_s4 = inlined_call_operand.vmem [shape: bf16[2,10,10,128], index: 4, kind: output, shape index: {}]  }
   0x1   :  { %10 = vsyncpa [#allocation5], 0  ;;  %s843_s15 = smov [#allocation2]   ;;  %s844_s17 = smov [#allocation4]  }
   0x2   :  { %s19_s16 = sshll.u32 %s843_s15, 4  ;;  %s29_s18 = sshll.u32 %s844_s17, 4  ;;  %s20_s16 = int_to_ptr.vmem [resolvable:$true] %s19_s16  ;;  %s30_s18 = int_to_ptr.vmem [resolvable:$true] %s29_s18 }
   0x3   :  { %s795_s21 = scalar_lea.hbm %s1348_s1, 16 }
   0x4   :  { %p796_p0 = scmp.ne.s32.totalorder %s1348_s1, %s795_s21  ;;  %p799_p1 = scmp.lt.u32.totalorder %s795_s21, %s1348_s1 }
   0x6   :  { %p801_p2 = pnand %p799_p1, %p796_p0 }
   0x8   :  { %804 = shalt.err (!%p801_p2)
}
   0x9   :  { %s805_s26 = scalar_lea.vmem %s20_s16, 16  ;;  %s809_s27 = scalar_lea.vmem %s20_s16, 32 }
   0xa   :  { %p806_p3 = scmp.ne.s32.totalorder %s20_s16, %s805_s26  ;;  %p810_p4 = scmp.lt.s32.totalorder %s20_s16, %s20_s16 }
   0xb   :  { %p811_p5 = scmp.lt.s32.totalorder %s809_s27, %s805_s26 }
   0xd   :  { %p812_p6 = por %p811_p5, %p810_p4 }
   0xf   :  { %p813_p7 = pnand %p812_p6, %p806_p3 }
  0x11   :  { %816 = shalt.err (!%p813_p7)
}
  0x12   :  { %22 = dma.hbm_to_vmem [thread:$0]  %s1348_s1, 16, %s20_s16, [#allocation3]  }
  0x13   :  { %s817_s6 = scalar_lea.hbm %s1349_s2, 16 }
  0x14   :  { %p818_p8 = scmp.ne.s32.totalorder %s1349_s2, %s817_s6  ;;  %p821_p9 = scmp.lt.u32.totalorder %s817_s6, %s1349_s2 }
  0x16   :  { %p823_p10 = pnand %p821_p9, %p818_p8 }
  0x18   :  { %826 = shalt.err (!%p823_p10)
}
  0x19   :  { %s827_s11 = scalar_lea.vmem %s30_s18, 16  ;;  %s831_s12 = scalar_lea.vmem %s30_s18, 32 }
  0x1a   :  { %p828_p11 = scmp.ne.s32.totalorder %s30_s18, %s827_s11  ;;  %p832_p12 = scmp.lt.s32.totalorder %s30_s18, %s30_s18 }
  0x1b   :  { %p833_p13 = scmp.lt.s32.totalorder %s831_s12, %s827_s11 }
  0x1d   :  { %p834_p0 = por %p833_p13, %p832_p12 }
  0x1f   :  { %p835_p1 = pnand %p834_p0, %p828_p11 }
  0x21   :  { %838 = shalt.err (!%p835_p1)
}
  0x22   :  { %32 = dma.hbm_to_vmem [thread:$0]  %s1349_s2, 16, %s30_s18, [#allocation5]  }
  0x23   :  { %839 = dma.done.wait [#allocation3], 16  }
  0x24   :  { %840 = vsyncadd [#allocation3], 4294967280 }
  0x25   :  { %841 = dma.done.wait [#allocation5], 16  }
  0x26   :  { %842 = vsyncadd [#allocation5], 4294967280  ;;  %v845_v0 = vmov 0   ;;  %v42_v1 = vld [vmem:[%s1347_s0] sm:$0xff]  ;;  %v43_v2 = vld [vmem:[%s1347_s0 + $0x8] sm:$0xff]  ;;  %vm166_vm0 = vcmask 130048   ;;  %v130_v34 = vlaneseq }
  0x27   :  { %89 = vst [vmem:[%s1351_s4] sm:$0xf] %v845_v0  ;;  %90 = vst [vmem:[%s1351_s4 + $0x4] sm:$0x1] %v845_v0  ;;  %v44_v3 = vld [vmem:[%s1347_s0 + $0x10] sm:$0xff]  ;;  %v45_v4 = vld [vmem:[%s1347_s0 + $0x18] sm:$0xff]  ;;  %v55_v6 = vmul.f32 %v42_v1, %v42_v1  ;;  %v56_v7 = vmul.f32 %v43_v2, %v43_v2  ;;  %vm357_vm1 = vcmask 1043456  }
  0x28   :  { %107 = vst [vmem:[%s1351_s4 + $0x48] sm:$0xf] %v845_v0  ;;  %108 = vst [vmem:[%s1351_s4 + $0x4c] sm:$0x1] %v845_v0  ;;  %v46_v5 = vadd.f32 %v44_v3, %v42_v1  ;;  %v57_v8 = vmul.f32 %v44_v3, %v44_v3  ;;  %v47_v9 = vadd.f32 %v45_v4, %v43_v2  ;;  %v789_v11 = vld [vmem:[%s1350_s3] sm:$0xff]   ;;  %v131_v35 = vshrl.u32 %v130_v34, 7 }
  0x29   :  { %109 = vst [vmem:[%s1351_s4 + $0x50] sm:$0xf] %v845_v0  ;;  %110 = vst [vmem:[%s1351_s4 + $0x54] sm:$0x1] %v845_v0  ;;  %v58_v10 = vmul.f32 %v45_v4, %v45_v4  ;;  %768 = vmatprep.mubr.msk.bf16.mxu0 %vm166_vm0, %v789_v11  ;;  %778 = vmatprep.mubr.msk.bf16.mxu1 %vm166_vm0, %v789_v11  ;;  %v74_v36 = vld [vmem:[#allocation2] sm:$0x1] }
  0x2a   :  { %127 = vst [vmem:[%s1351_s4 + $0x98] sm:$0xf] %v845_v0  ;;  %128 = vst [vmem:[%s1351_s4 + $0x9c] sm:$0x1] %v845_v0  ;;  %v59_v12 = vadd.f32 %v57_v8, %v55_v6  ;;  %v48_v13 = vadd.f32 %v47_v9, %v46_v5  ;;  %v132_v37 = vsub.s32 0, %v131_v35  ;;  %v790_v55 = vld [vmem:[%s1350_s3 + $0x8] sm:$0xff]  }
  0x2b   :  { %91 = vst [vmem:[%s1351_s4 + $0x8] sm:$0xf] %v845_v0  ;;  %92 = vst [vmem:[%s1351_s4 + $0xc] sm:$0x1] %v845_v0  ;;  %v60_v14 = vadd.f32 %v58_v10, %v56_v7  ;;  %v78_v40 = vld [vmem:[#allocation4] sm:$0x1] }
  0x2c   :  { %93 = vst [vmem:[%s1351_s4 + $0x10] sm:$0xf] %v845_v0  ;;  %94 = vst [vmem:[%s1351_s4 + $0x14] sm:$0x1] %v845_v0  ;;  %v49_v15 = vrot.slane %v48_v13, 4  ;;  %v791_v56 = vld [vmem:[%s1350_s3 + $0x10] sm:$0xff]  }
  0x2d   :  { %95 = vst [vmem:[%s1351_s4 + $0x18] sm:$0xf] %v845_v0  ;;  %96 = vst [vmem:[%s1351_s4 + $0x1c] sm:$0x1] %v845_v0  ;;  %v61_v16 = vadd.f32 %v60_v14, %v59_v12  ;;  %v792_v57 = vld [vmem:[%s1350_s3 + $0x18] sm:$0xff]   ;;  %vm363_vm3 = vcmask 1040384  }
  0x2e   :  { %97 = vst [vmem:[%s1351_s4 + $0x20] sm:$0xf] %v845_v0  ;;  %98 = vst [vmem:[%s1351_s4 + $0x24] sm:$0x1] %v845_v0  ;;  %v50_v17 = vadd.f32 %v49_v15, %v48_v13  ;;  %vm358_vm2 = vsmask.f32 7938 }
  0x2f   :  { %99 = vst [vmem:[%s1351_s4 + $0x28] sm:$0xf] %v845_v0  ;;  %100 = vst [vmem:[%s1351_s4 + $0x2c] sm:$0x1] %v845_v0  ;;  %v62_v18 = vrot.slane %v61_v16, 4 }
  0x30   :  { %101 = vst [vmem:[%s1351_s4 + $0x30] sm:$0xf] %v845_v0  ;;  %102 = vst [vmem:[%s1351_s4 + $0x34] sm:$0x1] %v845_v0  ;;  %v51_v19 = vrot.slane %v50_v17, 2 }
  0x31   :  { %103 = vst [vmem:[%s1351_s4 + $0x38] sm:$0xf] %v845_v0  ;;  %104 = vst [vmem:[%s1351_s4 + $0x3c] sm:$0x1] %v845_v0  ;;  %v63_v20 = vadd.f32 %v62_v18, %v61_v16  ;;  %vm364_vm4 = vsmask.f32 256 }
  0x32   :  { %105 = vst [vmem:[%s1351_s4 + $0x40] sm:$0xf] %v845_v0  ;;  %106 = vst [vmem:[%s1351_s4 + $0x44] sm:$0x1] %v845_v0  ;;  %v52_v21 = vadd.f32 %v51_v19, %v50_v17 }
  0x33   :  { %111 = vst [vmem:[%s1351_s4 + $0x58] sm:$0xf] %v845_v0  ;;  %112 = vst [vmem:[%s1351_s4 + $0x5c] sm:$0x1] %v845_v0  ;;  %v64_v22 = vrot.slane %v63_v20, 2 }
  0x34   :  { %113 = vst [vmem:[%s1351_s4 + $0x60] sm:$0xf] %v845_v0  ;;  %114 = vst [vmem:[%s1351_s4 + $0x64] sm:$0x1] %v845_v0  ;;  %v53_v23 = vrot.slane %v52_v21, 1 }
  0x35   :  { %115 = vst [vmem:[%s1351_s4 + $0x68] sm:$0xf] %v845_v0  ;;  %116 = vst [vmem:[%s1351_s4 + $0x6c] sm:$0x1] %v845_v0  ;;  %v65_v24 = vadd.f32 %v64_v22, %v63_v20  ;;  %v672_v10 = vld [vmem:[%s1351_s4 + $0x18] sm:$0xf] }
  0x36   :  { %117 = vst [vmem:[%s1351_s4 + $0x70] sm:$0xf] %v845_v0  ;;  %118 = vst [vmem:[%s1351_s4 + $0x74] sm:$0x1] %v845_v0  ;;  %v54_v25 = vadd.f32 %v53_v23, %v52_v21  ;;  %v674_v11 = vld [vmem:[%s1351_s4 + $0x1c] sm:$0x1] }
  0x37   :  { %119 = vst [vmem:[%s1351_s4 + $0x78] sm:$0xf] %v845_v0  ;;  %120 = vst [vmem:[%s1351_s4 + $0x7c] sm:$0x1] %v845_v0  ;;  %v66_v26 = vrot.slane %v65_v24, 1 }
  0x38   :  { %121 = vst [vmem:[%s1351_s4 + $0x80] sm:$0xf] %v845_v0  ;;  %122 = vst [vmem:[%s1351_s4 + $0x84] sm:$0x1] %v845_v0  ;;  %v69_v28 = vmul.f32 0.03125, %v54_v25 }
  0x39   :  { %123 = vst [vmem:[%s1351_s4 + $0x88] sm:$0xf] %v845_v0  ;;  %124 = vst [vmem:[%s1351_s4 + $0x8c] sm:$0x1] %v845_v0  ;;  %v67_v27 = vadd.f32 %v66_v26, %v65_v24  ;;  %v664_v25 = vld [vmem:[%s1351_s4 + $0x8] sm:$0xf] }
  0x3a   :  { %125 = vst [vmem:[%s1351_s4 + $0x90] sm:$0xf] %v845_v0  ;;  %126 = vst [vmem:[%s1351_s4 + $0x94] sm:$0x1] %v845_v0  ;;  %v71_v30 = vmul.f32 %v69_v28, %v69_v28  ;;  %v666_v26 = vld [vmem:[%s1351_s4 + $0xc] sm:$0x1] }
  0x3b   :  { %v70_v29 = vmul.f32 0.03125, %v67_v27  ;;  %vm1055_vm5 = vmand %vm357_vm1, %vm358_vm2  ;;  %v708_v34 = vld [vmem:[%s1351_s4 + $0x58] sm:$0xf]  ;;  %v710_v35 = vld [vmem:[%s1351_s4 + $0x5c] sm:$0x1] }
  0x3c   :  { %v716_v19 = vld [vmem:[%s1351_s4 + $0x68] sm:$0xf]  ;;  %v718_v20 = vld [vmem:[%s1351_s4 + $0x6c] sm:$0x1]  ;;  %vm1071_vm6 = vmand %vm363_vm3, %vm364_vm4 }
  0x3d   :  { %v72_v31 = vsub.f32 %v70_v29, %v71_v30 }
  0x3f   :  { %v73_v32 = vmax.f32 %v72_v31, 0.0 }
  0x41   :  { %v75_v33 = vadd.f32 1e-05, %v73_v32 }
  0x43   :  { %793 = vrsqrt.f32 %v75_v33 }
  0x4d   :  { %v794_v38 = vpop.eup %793 }
  0x4e   :  { %v77_v39 = vmul.f32 %v794_v38, %v74_v36 }
  0x50   :  { %v79_v41 = vmul.f32 %v77_v39, %v69_v28  ;;  %v133_v42 = vrot.slane %v77_v39, %v132_v37 }
  0x52   :  { %v80_v43 = vsub.f32 %v78_v40, %v79_v41  ;;  %v135_v44 = vmul.f32 %v133_v42, %v42_v1  ;;  %v136_v45 = vmul.f32 %v133_v42, %v43_v2  ;;  %v411_v46 = vmul.f32 %v133_v42, %v44_v3 }
  0x53   :  { %v412_v47 = vmul.f32 %v133_v42, %v45_v4 }
  0x54   :  { %v141_v48 = vrot.slane %v80_v43, %v132_v37 }
  0x56   :  { %v143_v49 = vadd.f32 %v141_v48, %v135_v44  ;;  %v144_v50 = vadd.f32 %v141_v48, %v136_v45  ;;  %v413_v51 = vadd.f32 %v411_v46, %v141_v48  ;;  %v414_v52 = vadd.f32 %v412_v47, %v141_v48 }
  0x58   :  { %v145_v53 = vpack.c.bf16 %v144_v50, %v143_v49  ;;  %v415_v54 = vpack.c.bf16 %v414_v52, %v413_v51 }
  0x5a   :  { %766 = vmatprep.subr.bf16.mxu0 %v145_v53  ;;  %776 = vmatprep.subr.bf16.mxu1 %v415_v54 }
  0x5b   :  { %767 = vmatpush3.bf16.msra.mxu0 %v145_v53  ;;  %777 = vmatpush3.bf16.msra.mxu1 %v415_v54 }
  0x5e   :  { %769 = vmatmul.mubr.msk.bf16.vlgmr.msra.gmra.mrb[0].mxu0 %vm166_vm0, %v790_v55  ;;  %779 = vmatmul.mubr.msk.bf16.vlgmr.msra.gmra.mrb[0].mxu1 %vm166_vm0, %v790_v55 }
  0x5f   :  { %772 = vmatprep.mubr.msk.bf16.mxu0 %vm166_vm0, %v791_v56  ;;  %782 = vmatprep.mubr.msk.bf16.mxu1 %vm166_vm0, %v791_v56 }
  0x66   :  { %773 = vmatmul.mubr.msk.bf16.gmra.mrb[4].mxu0 %vm166_vm0, %v792_v57  ;;  %783 = vmatmul.mubr.msk.bf16.gmra.mrb[4].mxu1 %vm166_vm0, %v792_v57 }
 0x131   :  { %v770_v58 = vpop.f32.mrb[0].mxu0  ;;  %v780_v59 = vpop.f32.mrb[0].mxu1 }
 0x132   :  { %v742_v60 = vpack.c.bf16 %v770_v58, %v770_v58  ;;  %v750_v61 = vpack.c.bf16 %v780_v59, %v780_v59  ;;  %v213_v62 = vpop.f32.mrb[1].mxu0  ;;  %v450_v63 = vpop.f32.mrb[1].mxu1 }
 0x133   :  { %v740_v0 = vpack.c.bf16 %v213_v62, %v213_v62  ;;  %v748_v1 = vpack.c.bf16 %v450_v63, %v450_v63  ;;  %v771_v2 = vpop.f32.mrb[2].mxu0  ;;  %v781_v3 = vpop.f32.mrb[2].mxu1 }
 0x134   :  { %v293_v4 = vshrl.u32 %v742_v60, 16  ;;  %v296_v5 = vshll.u32 %v742_v60, 16  ;;  %v530_v6 = vshrl.u32 %v750_v61, 16  ;;  %v533_v7 = vshll.u32 %v750_v61, 16  ;;  %v216_v8 = vpop.f32.mrb[3].mxu0  ;;  %v453_v9 = vpop.f32.mrb[3].mxu1 }
 0x135   :  { %v277_v12 = vshrl.u32 %v740_v0, 16  ;;  %v280_v13 = vshll.u32 %v740_v0, 16  ;;  %v514_v14 = vshrl.u32 %v748_v1, 16  ;;  %v517_v15 = vshll.u32 %v748_v1, 16  ;;  %v676_v60 = vld [vmem:[%s1351_s4 + $0x20] sm:$0xf] }
 0x136   :  { %v295_v16 = vrot.slane %v293_v4, 7  ;;  %v532_v18 = vrot.slane %v530_v6, 7  ;;  %v1065_v21 = vpack.c.bf16 %v771_v2, %v771_v2  ;;  %v1067_v22 = vpack.c.bf16 %v781_v3, %v781_v3  ;;  %v678_v61 = vld [vmem:[%s1351_s4 + $0x24] sm:$0x1]  ;;  %v720_v4 = vld [vmem:[%s1351_s4 + $0x70] sm:$0xf] }
 0x137   :  { %v279_v24 = vrot.slane %v277_v12, 7  ;;  %v516_v27 = vrot.slane %v514_v14, 7  ;;  %v1081_v28 = vpack.c.bf16 %v216_v8, %v216_v8  ;;  %v1083_v29 = vpack.c.bf16 %v453_v9, %v453_v9  ;;  %v668_v9 = vld [vmem:[%s1351_s4 + $0x10] sm:$0xf] }
 0x138   :  { %v298_v30 = vor.u32 %v296_v5, %v295_v16  ;;  %v299_v31 = vrot.slane %v295_v16, 4  ;;  %v535_v32 = vor.u32 %v533_v7, %v532_v18  ;;  %v536_v33 = vrot.slane %v532_v18, 4  ;;  %v722_v5 = vld [vmem:[%s1351_s4 + $0x74] sm:$0x1] }
 0x139   :  { %v282_v36 = vor.u32 %v280_v13, %v279_v24  ;;  %v283_v37 = vrot.slane %v279_v24, 4  ;;  %v519_v38 = vor.u32 %v517_v15, %v516_v27  ;;  %v520_v39 = vrot.slane %v516_v27, 4  ;;  %v774_v40 = vpop.f32.mrb[4].mxu0  ;;  %v784_v41 = vpop.f32.mrb[4].mxu1 }
 0x13a   :  { %v376_v42 = vsel %vm1055_vm5, %v298_v30, %v672_v10  ;;  %v379_v43 = vsel %vm1071_vm6, %v299_v31, %v674_v11  ;;  %v607_v44 = vsel %vm1055_vm5, %v535_v32, %v716_v19  ;;  %v610_v45 = vsel %vm1071_vm6, %v536_v33, %v718_v20  ;;  %v229_v46 = vpop.f32.mrb[5].mxu0  ;;  %v466_v47 = vpop.f32.mrb[5].mxu1  ;;  %v670_v10 = vld [vmem:[%s1351_s4 + $0x14] sm:$0x1]  ;;  %v712_v19 = vld [vmem:[%s1351_s4 + $0x60] sm:$0xf] }
 0x13b   :  { %673 = vst [vmem:[%s1351_s4 + $0x18] sm:$0xf] %v376_v42  ;;  %675 = vst [vmem:[%s1351_s4 + $0x1c] sm:$0x1] %v379_v43  ;;  %v361_v48 = vsel %vm1055_vm5, %v282_v36, %v664_v25  ;;  %v367_v49 = vsel %vm1071_vm6, %v283_v37, %v666_v26  ;;  %v595_v50 = vsel %vm1055_vm5, %v519_v38, %v708_v34  ;;  %v1119_v52 = vpop.f32.mrb[6].mxu0  ;;  %v1121_v53 = vpop.f32.mrb[6].mxu1 }
 0x13c   :  { %717 = vst [vmem:[%s1351_s4 + $0x68] sm:$0xf] %v607_v44  ;;  %719 = vst [vmem:[%s1351_s4 + $0x6c] sm:$0x1] %v610_v45  ;;  %v598_v51 = vsel %vm1071_vm6, %v520_v39, %v710_v35  ;;  %v301_v54 = vshrl.u32 %v1065_v21, 16  ;;  %v304_v55 = vshll.u32 %v1065_v21, 16  ;;  %v746_v6 = vpack.c.bf16 %v774_v40, %v774_v40 }
 0x13d   :  { %665 = vst [vmem:[%s1351_s4 + $0x8] sm:$0xf] %v361_v48  ;;  %667 = vst [vmem:[%s1351_s4 + $0xc] sm:$0x1] %v367_v49  ;;  %v538_v56 = vshrl.u32 %v1067_v22, 16  ;;  %v541_v57 = vshll.u32 %v1067_v22, 16  ;;  %v754_v7 = vpack.c.bf16 %v784_v41, %v784_v41  ;;  %v744_v12 = vpack.c.bf16 %v229_v46, %v229_v46 }
 0x13e   :  { %709 = vst [vmem:[%s1351_s4 + $0x58] sm:$0xf] %v595_v50  ;;  %711 = vst [vmem:[%s1351_s4 + $0x5c] sm:$0x1] %v598_v51  ;;  %v1139_v58 = vpop.f32.mrb[7].mxu0  ;;  %v1141_v59 = vpop.f32.mrb[7].mxu1  ;;  %v752_v13 = vpack.c.bf16 %v466_v47, %v466_v47  ;;  %v747_v48 = vpack.c.bf16 %v1119_v52, %v1119_v52  ;;  %v755_v49 = vpack.c.bf16 %v1121_v53, %v1121_v53 }
 0x13f   :  { %v285_v62 = vshrl.u32 %v1081_v28, 16  ;;  %v288_v63 = vshll.u32 %v1081_v28, 16  ;;  %v522_v0 = vshrl.u32 %v1083_v29, 16  ;;  %v525_v1 = vshll.u32 %v1083_v29, 16  ;;  %v714_v20 = vld [vmem:[%s1351_s4 + $0x64] sm:$0x1] }
 0x140   :  { %v303_v2 = vrot.slane %v301_v54, 7  ;;  %v540_v3 = vrot.slane %v538_v56, 7  ;;  %v325_v34 = vshrl.u32 %v746_v6, 16  ;;  %v328_v35 = vshll.u32 %v746_v6, 16  ;;  %v688_v38 = vld [vmem:[%s1351_s4 + $0x38] sm:$0xf] }
 0x141   :  { %v287_v8 = vrot.slane %v285_v62, 7  ;;  %v524_v11 = vrot.slane %v522_v0, 7  ;;  %v562_v36 = vshrl.u32 %v754_v7, 16  ;;  %v565_v37 = vshll.u32 %v754_v7, 16  ;;  %v690_v39 = vld [vmem:[%s1351_s4 + $0x3c] sm:$0x1] }
 0x142   :  { %v306_v14 = vor.u32 %v304_v55, %v303_v2  ;;  %v307_v15 = vrot.slane %v303_v2, 4  ;;  %v543_v16 = vor.u32 %v541_v57, %v540_v3  ;;  %v544_v18 = vrot.slane %v540_v3, 4  ;;  %v732_v46 = vld [vmem:[%s1351_s4 + $0x88] sm:$0xf]  ;;  %v734_v47 = vld [vmem:[%s1351_s4 + $0x8c] sm:$0x1] }
 0x143   :  { %v290_v21 = vor.u32 %v288_v63, %v287_v8  ;;  %v291_v22 = vrot.slane %v287_v8, 4  ;;  %v527_v24 = vor.u32 %v525_v1, %v524_v11  ;;  %v528_v25 = vrot.slane %v524_v11, 4  ;;  %v680_v51 = vld [vmem:[%s1351_s4 + $0x28] sm:$0xf]  ;;  %v682_v54 = vld [vmem:[%s1351_s4 + $0x2c] sm:$0x1] }
 0x144   :  { %v382_v26 = vsel %vm1055_vm5, %v306_v14, %v676_v60  ;;  %v385_v27 = vsel %vm1071_vm6, %v307_v15, %v678_v61  ;;  %v613_v28 = vsel %vm1055_vm5, %v543_v16, %v720_v4  ;;  %v616_v29 = vsel %vm1071_vm6, %v544_v18, %v722_v5  ;;  %v724_v62 = vld [vmem:[%s1351_s4 + $0x78] sm:$0xf]  ;;  %v726_v63 = vld [vmem:[%s1351_s4 + $0x7c] sm:$0x1]  ;;  %v736_v14 = vld [vmem:[%s1351_s4 + $0x90] sm:$0xf] }
 0x145   :  { %677 = vst [vmem:[%s1351_s4 + $0x20] sm:$0xf] %v382_v26  ;;  %679 = vst [vmem:[%s1351_s4 + $0x24] sm:$0x1] %v385_v27  ;;  %v370_v30 = vsel %vm1055_vm5, %v290_v21, %v668_v9  ;;  %v373_v31 = vsel %vm1071_vm6, %v291_v22, %v670_v10  ;;  %v601_v32 = vsel %vm1055_vm5, %v527_v24, %v712_v19  ;;  %v309_v40 = vshrl.u32 %v744_v12, 16 }
 0x146   :  { %721 = vst [vmem:[%s1351_s4 + $0x70] sm:$0xf] %v613_v28  ;;  %723 = vst [vmem:[%s1351_s4 + $0x74] sm:$0x1] %v616_v29  ;;  %v604_v33 = vsel %vm1071_vm6, %v528_v25, %v714_v20  ;;  %v312_v41 = vshll.u32 %v744_v12, 16  ;;  %v546_v42 = vshrl.u32 %v752_v13, 16  ;;  %v745_v56 = vpack.c.bf16 %v1139_v58, %v1139_v58 }
 0x147   :  { %669 = vst [vmem:[%s1351_s4 + $0x10] sm:$0xf] %v370_v30  ;;  %671 = vst [vmem:[%s1351_s4 + $0x14] sm:$0x1] %v373_v31  ;;  %v549_v43 = vshll.u32 %v752_v13, 16  ;;  %v327_v44 = vrot.slane %v325_v34, 7  ;;  %v753_v57 = vpack.c.bf16 %v1141_v59, %v1141_v59 }
 0x148   :  { %713 = vst [vmem:[%s1351_s4 + $0x60] sm:$0xf] %v601_v32  ;;  %715 = vst [vmem:[%s1351_s4 + $0x64] sm:$0x1] %v604_v33  ;;  %v564_v45 = vrot.slane %v562_v36, 7  ;;  %v311_v50 = vrot.slane %v309_v40, 7 }
 0x149   :  { %v548_v55 = vrot.slane %v546_v42, 7  ;;  %v330_v52 = vor.u32 %v328_v35, %v327_v44  ;;  %v331_v60 = vrot.slane %v327_v44, 4  ;;  %v333_v10 = vshrl.u32 %v747_v48, 16  ;;  %v692_v12 = vld [vmem:[%s1351_s4 + $0x40] sm:$0xf] }
 0x14a   :  { %v567_v61 = vor.u32 %v565_v37, %v564_v45  ;;  %v568_v53 = vrot.slane %v564_v45, 4  ;;  %v314_v0 = vor.u32 %v312_v41, %v311_v50  ;;  %v315_v1 = vrot.slane %v311_v50, 4  ;;  %v694_v13 = vld [vmem:[%s1351_s4 + $0x44] sm:$0x1]  ;;  %v738_v15 = vld [vmem:[%s1351_s4 + $0x94] sm:$0x1] }
 0x14b   :  { %v551_v2 = vor.u32 %v549_v43, %v548_v55  ;;  %v552_v3 = vrot.slane %v548_v55, 4  ;;  %v400_v58 = vsel %vm1055_vm5, %v330_v52, %v688_v38  ;;  %v403_v59 = vsel %vm1071_vm6, %v331_v60, %v690_v39  ;;  %v684_v24 = vld [vmem:[%s1351_s4 + $0x30] sm:$0xf]  ;;  %v686_v27 = vld [vmem:[%s1351_s4 + $0x34] sm:$0x1] }
 0x14c   :  { %v631_v4 = vsel %vm1055_vm5, %v567_v61, %v732_v46  ;;  %v634_v5 = vsel %vm1071_vm6, %v568_v53, %v734_v47  ;;  %689 = vst [vmem:[%s1351_s4 + $0x38] sm:$0xf] %v400_v58  ;;  %691 = vst [vmem:[%s1351_s4 + $0x3c] sm:$0x1] %v403_v59  ;;  %v388_v6 = vsel %vm1055_vm5, %v314_v0, %v680_v51  ;;  %v570_v11 = vshrl.u32 %v755_v49, 16 }
 0x14d   :  { %733 = vst [vmem:[%s1351_s4 + $0x88] sm:$0xf] %v631_v4  ;;  %735 = vst [vmem:[%s1351_s4 + $0x8c] sm:$0x1] %v634_v5  ;;  %v391_v7 = vsel %vm1071_vm6, %v315_v1, %v682_v54  ;;  %v619_v8 = vsel %vm1055_vm5, %v551_v2, %v724_v62  ;;  %v622_v9 = vsel %vm1071_vm6, %v552_v3, %v726_v63  ;;  %v317_v16 = vshrl.u32 %v745_v56, 16 }
 0x14e   :  { %681 = vst [vmem:[%s1351_s4 + $0x28] sm:$0xf] %v388_v6  ;;  %683 = vst [vmem:[%s1351_s4 + $0x2c] sm:$0x1] %v391_v7  ;;  %v554_v18 = vshrl.u32 %v753_v57, 16  ;;  %v335_v19 = vrot.slane %v333_v10, 7 }
 0x14f   :  { %725 = vst [vmem:[%s1351_s4 + $0x78] sm:$0xf] %v619_v8  ;;  %727 = vst [vmem:[%s1351_s4 + $0x7c] sm:$0x1] %v622_v9  ;;  %v336_v20 = vshll.u32 %v747_v48, 16  ;;  %v572_v21 = vrot.slane %v570_v11, 7 }
 0x150   :  { %v573_v22 = vshll.u32 %v755_v49, 16  ;;  %v319_v25 = vrot.slane %v317_v16, 7  ;;  %v320_v26 = vshll.u32 %v745_v56, 16  ;;  %v556_v28 = vrot.slane %v554_v18, 7  ;;  %v728_v34 = vld [vmem:[%s1351_s4 + $0x80] sm:$0xf] }
 0x151   :  { %v557_v29 = vshll.u32 %v753_v57, 16  ;;  %v338_v30 = vor.u32 %v336_v20, %v335_v19  ;;  %v339_v31 = vrot.slane %v335_v19, 4  ;;  %v576_v33 = vrot.slane %v572_v21, 4  ;;  %v730_v35 = vld [vmem:[%s1351_s4 + $0x84] sm:$0x1] }
 0x152   :  { %v575_v32 = vor.u32 %v573_v22, %v572_v21  ;;  %v322_v36 = vor.u32 %v320_v26, %v319_v25  ;;  %v323_v37 = vrot.slane %v319_v25, 4  ;;  %v560_v39 = vrot.slane %v556_v28, 4 }
 0x153   :  { %v559_v38 = vor.u32 %v557_v29, %v556_v28  ;;  %v406_v40 = vsel %vm1055_vm5, %v338_v30, %v692_v12  ;;  %v409_v41 = vsel %vm1071_vm6, %v339_v31, %v694_v13  ;;  %v640_v43 = vsel %vm1071_vm6, %v576_v33, %v738_v15 }
 0x154   :  { %v637_v42 = vsel %vm1055_vm5, %v575_v32, %v736_v14  ;;  %693 = vst [vmem:[%s1351_s4 + $0x40] sm:$0xf] %v406_v40  ;;  %695 = vst [vmem:[%s1351_s4 + $0x44] sm:$0x1] %v409_v41  ;;  %v394_v44 = vsel %vm1055_vm5, %v322_v36, %v684_v24  ;;  %v397_v45 = vsel %vm1071_vm6, %v323_v37, %v686_v27 }
 0x155   :  { %737 = vst [vmem:[%s1351_s4 + $0x90] sm:$0xf] %v637_v42  ;;  %739 = vst [vmem:[%s1351_s4 + $0x94] sm:$0x1] %v640_v43  ;;  %v625_v46 = vsel %vm1055_vm5, %v559_v38, %v728_v34  ;;  %v628_v47 = vsel %vm1071_vm6, %v560_v39, %v730_v35 }
 0x156   :  { %685 = vst [vmem:[%s1351_s4 + $0x30] sm:$0xf] %v394_v44  ;;  %687 = vst [vmem:[%s1351_s4 + $0x34] sm:$0x1] %v397_v45 }
 0x157   :  { %729 = vst [vmem:[%s1351_s4 + $0x80] sm:$0xf] %v625_v46  ;;  %731 = vst [vmem:[%s1351_s4 + $0x84] sm:$0x1] %v628_v47 }
 0x158   :  { %646 = vsyncpa [#allocation3], 1 }
 0x159   :  { %647 = vsyncpa [#allocation5], 1 }

// kernel: generator_forward.10
= control target key start
LH: loop header
LB: loop body
LE: loop exit
PB: predicated region body
PF: predicated region fallthrough
CT: control target
= control target key end

     0   :  { %s1561_s15 = smov 0   ;;  %s2020_s0 = inlined_call_operand.vmem [shape: bf16[2,8,8,128], index: 0, kind: input, shape index: {}]   ;;  %s2021_s1 = inlined_call_operand.vmem [shape: f32[1,128], index: 1, kind: input, shape index: {}]   ;;  %s2022_s2 = inlined_call_operand.vmem [shape: f32[1,128], index: 2, kind: input, shape index: {}]   ;;  %s2023_s3 = inlined_call_operand.vmem [shape: bf16[256,64], index: 3, kind: input, shape index: {}]   ;;  %s2024_s4 = inlined_call_operand.vmem [shape: bf16[2,18,18,128], index: 4, kind: output, shape index: {}]  }
   0x1 LB: > { %s1225_s16 = sadd.s32 4294967295, %s1533_s15   ;;  %p1229_p0 = scmp.ge.s32.totalorder %s1533_s15, 1  ;;  %s1533_s15 = sphi %s1561_s15, %s14_s15  }
   0x2   : > { %p162_p1 = scmp.lt.s32.totalorder %s1533_s15, 3 }
   0x4   : > { %p163_p2 = pnand %p1229_p0, %p162_p1 }
   0x5   : > { %p188_p3 = scmp.lt.s32.totalorder (!%p163_p2), %s1225_s16, 1  ;;  %v1511_v0 = vld [vmem:[%s2023_s3] sm:$0xff] (!%p163_p2)   ;;  %vm369_vm0 = vcmask (!%p163_p2), 523264   ;;  %v1513_v44 = vld [vmem:[%s2023_s3 + $0x8] sm:$0xff] (!%p163_p2)   ;;  %v1515_v46 = vld [vmem:[%s2023_s3 + $0x10] sm:$0xff] (!%p163_p2)   ;;  %v1535_v58 = vmov (!%p163_p2), 0  }
   0x6   : > { %166 = sbr.rel (%p163_p2) target bundleno = 319 (0x13f), region = 36  ;;  %v1512_v1 = vld [vmem:[%s2023_s3 + $0x40] sm:$0xff] (!%p163_p2)   ;;  %1461 = vmatprep.mubr.msk.bf16.mxu0 (!%p163_p2), %vm369_vm0, %v1511_v0  ;;  %v1514_v45 = vld [vmem:[%s2023_s3 + $0x48] sm:$0xff] (!%p163_p2)   ;;  %v1516_v47 = vld [vmem:[%s2023_s3 + $0x50] sm:$0xff] (!%p163_p2)   ;;  %vm1053_vm1 = vcmask (!%p163_p2), 1043456   ;;  %vm1060_vm5 = vcmask (!%p163_p2), 1040384  }
   0x7   : > { %1477 = vmatprep.mubr.msk.bf16.mxu1 (!%p163_p2), %vm369_vm0, %v1512_v1  ;;  %v1233_v2 = vld [vmem:[%s2021_s1] ss:$0 sm:$0xff] (!%p163_p2)  ;;  %v1517_v48 = vld [vmem:[%s2023_s3 + $0x18] sm:$0xff] (!%p163_p2)   ;;  %v1521_v52 = vld [vmem:[%s2023_s3 + $0x28] sm:$0xff] (!%p163_p2)   ;;  %vm1054_vm2 = vsmask.f32 (!%p163_p2), 7938 }
   0x8   : > { %v1234_v11 = vld [vmem:[%s2022_s2] ss:$0 sm:$0xff] (!%p163_p2)  ;;  %v1518_v49 = vld [vmem:[%s2023_s3 + $0x58] sm:$0xff] (!%p163_p2)   ;;  %v1522_v53 = vld [vmem:[%s2023_s3 + $0x68] sm:$0xff] (!%p163_p2)   ;;  %vm729_vm3 = vsmask.f32 (!%p163_p2), 256 }
   0x9   : > { %v1519_v50 = vld [vmem:[%s2023_s3 + $0x20] sm:$0xff] (!%p163_p2)   ;;  %v1523_v54 = vld [vmem:[%s2023_s3 + $0x30] sm:$0xff] (!%p163_p2)   ;;  %v1525_v56 = vld [vmem:[%s2023_s3 + $0x38] sm:$0xff] (!%p163_p2)   ;;  %vm730_vm4 = vsmask.f32 (!%p163_p2), 4368 }
   0xa   : > { %v1520_v51 = vld [vmem:[%s2023_s3 + $0x60] sm:$0xff] (!%p163_p2)   ;;  %v1524_v55 = vld [vmem:[%s2023_s3 + $0x70] sm:$0xff] (!%p163_p2)   ;;  %v1526_v57 = vld [vmem:[%s2023_s3 + $0x78] sm:$0xff] (!%p163_p2)  }
   0xb   : > { %vm1711_vm6 = vmand (!%p163_p2), %vm1053_vm1, %vm1054_vm2 }
   0xc   : > { %vm1751_vm7 = vmor (!%p163_p2), %vm729_vm3, %vm730_vm4 }
   0xd   : > { %s2032_s16 = smov (!%p188_p3, %s1225_s16), 1  ;;  %vm1761_vm8 = vmand %vm1060_vm5, %vm729_vm3 }
   0xe   : > { %s1381_s21 = sshll.u32 %s2032_s16, 5  ;;  %s1501_s7 = smul.u32 216, %s2032_s16 }
   0xf   : > { %s192_s26 = scalar_lea.vmem %s2020_s0, %s1381_s21 }
  0x10   : > { %v1415_v3 = vld [vmem:[%s192_s26] sm:$0xff]   ;;  %v1430_v4 = vld [vmem:[%s192_s26 + $0x8] sm:$0xff]   ;;  %v1431_v5 = vld [vmem:[%s192_s26 + $0x10] sm:$0xff]   ;;  %s1649_s10 = scalar_lea.vmem %s2024_s4, %s1501_s7 }
  0x11   : > { %v1416_v6 = vunpack.c.l.bf16 %v1415_v3  ;;  %v1417_v7 = vunpack.c.h.bf16 %v1415_v3  ;;  %v1420_v8 = vunpack.c.l.bf16 %v1430_v4  ;;  %v1421_v9 = vunpack.c.h.bf16 %v1430_v4  ;;  %v1432_v10 = vld [vmem:[%s192_s26 + $0x18] sm:$0xff]   ;;  %585 = vst [vmem:[%s1649_s10 + $0x18] sm:$0xf] %v1535_v58  ;;  %579 = vst [vmem:[%s1649_s10] sm:$0xf] %v1535_v58 }
  0x12   : > { %v1424_v12 = vunpack.c.l.bf16 %v1431_v5  ;;  %v1425_v13 = vunpack.c.h.bf16 %v1431_v5  ;;  %v1428_v14 = vunpack.c.l.bf16 %v1432_v10  ;;  %v1429_v15 = vunpack.c.h.bf16 %v1432_v10  ;;  %580 = vst [vmem:[%s1649_s10 + $0x4] sm:$0xf] %v1535_v58  ;;  %581 = vst [vmem:[%s1649_s10 + $0x8] sm:$0x1] %v1535_v58 }
  0x13   : > { %v222_v16 = vmul.f32 %v1416_v6, %v1233_v2  ;;  %v223_v17 = vmul.f32 %v1417_v7, %v1233_v2  ;;  %v224_v18 = vmul.f32 %v1420_v8, %v1233_v2  ;;  %v225_v19 = vmul.f32 %v1421_v9, %v1233_v2  ;;  %582 = vst [vmem:[%s1649_s10 + $0xc] sm:$0xf] %v1535_v58 }
  0x14   : > { %v226_v20 = vmul.f32 %v1424_v12, %v1233_v2  ;;  %v227_v21 = vmul.f32 %v1425_v13, %v1233_v2  ;;  %v228_v22 = vmul.f32 %v1428_v14, %v1233_v2  ;;  %v229_v23 = vmul.f32 %v1429_v15, %v1233_v2  ;;  %583 = vst [vmem:[%s1649_s10 + $0x10] sm:$0xf] %v1535_v58 }
  0x15   : > { %v237_v24 = vadd.f32 %v1234_v11, %v222_v16  ;;  %v238_v25 = vadd.f32 %v1234_v11, %v223_v17  ;;  %v239_v26 = vadd.f32 %v1234_v11, %v224_v18  ;;  %v240_v27 = vadd.f32 %v1234_v11, %v225_v19  ;;  %584 = vst [vmem:[%s1649_s10 + $0x14] sm:$0x1] %v1535_v58 }
  0x16   : > { %v241_v28 = vadd.f32 %v1234_v11, %v226_v20  ;;  %v242_v29 = vadd.f32 %v1234_v11, %v227_v21  ;;  %v243_v34 = vadd.f32 %v1234_v11, %v228_v22  ;;  %v244_v35 = vadd.f32 %v1234_v11, %v229_v23  ;;  %586 = vst [vmem:[%s1649_s10 + $0x1c] sm:$0xf] %v1535_v58 }
  0x17   : > { %v245_v30 = vmax.f32 %v237_v24, 0.0  ;;  %v246_v31 = vmax.f32 %v238_v25, 0.0  ;;  %v247_v32 = vmax.f32 %v239_v26, 0.0  ;;  %v248_v33 = vmax.f32 %v240_v27, 0.0  ;;  %587 = vst [vmem:[%s1649_s10 + $0x20] sm:$0x1] %v1535_v58 }
  0x18   : > { %v249_v38 = vmax.f32 %v241_v28, 0.0  ;;  %v250_v39 = vmax.f32 %v242_v29, 0.0  ;;  %v251_v41 = vmax.f32 %v243_v34, 0.0  ;;  %v252_v42 = vmax.f32 %v244_v35, 0.0  ;;  %588 = vst [vmem:[%s1649_s10 + $0x24] sm:$0xf] %v1535_v58 }
  0x19   : > { %v253_v36 = vpack.c.bf16 %v246_v31, %v245_v30  ;;  %v254_v37 = vpack.c.bf16 %v248_v33, %v247_v32  ;;  %589 = vst [vmem:[%s1649_s10 + $0x28] sm:$0xf] %v1535_v58  ;;  %590 = vst [vmem:[%s1649_s10 + $0x2c] sm:$0x1] %v1535_v58  ;;  %v1304_v20 = vld [vmem:[%s1649_s10 + $0x18] sm:$0xf] }
  0x1a   : > { %v255_v40 = vpack.c.bf16 %v250_v39, %v249_v38  ;;  %v256_v43 = vpack.c.bf16 %v252_v42, %v251_v41  ;;  %591 = vst [vmem:[%s1649_s10 + $0x30] sm:$0xf] %v1535_v58  ;;  %592 = vst [vmem:[%s1649_s10 + $0x34] sm:$0xf] %v1535_v58  ;;  %v1299_v30 = vld [vmem:[%s1649_s10 + $0xc] sm:$0xf] }
  0x1b   : > { %1453 = vmatprep.subr.bf16.mxu0 %v253_v36  ;;  %1493 = vmatprep.subr.bf16.mxu1 %v253_v36  ;;  %593 = vst [vmem:[%s1649_s10 + $0x38] sm:$0x1] %v1535_v58  ;;  %594 = vst [vmem:[%s1649_s10 + $0x3c] sm:$0xf] %v1535_v58 }
  0x1c   : > { %1454 = vmatpush3.bf16.msra.mxu0 %v253_v36  ;;  %1497 = vmatpush3.bf16.msra.mxu1 %v253_v36  ;;  %595 = vst [vmem:[%s1649_s10 + $0x40] sm:$0xf] %v1535_v58  ;;  %596 = vst [vmem:[%s1649_s10 + $0x44] sm:$0x1] %v1535_v58 }
  0x1d   : > { %1455 = vmatprep.subr.bf16.mxu0 %v254_v37  ;;  %1494 = vmatprep.subr.bf16.mxu1 %v254_v37  ;;  %597 = vst [vmem:[%s1649_s10 + $0x48] sm:$0xf] %v1535_v58  ;;  %598 = vst [vmem:[%s1649_s10 + $0x4c] sm:$0xf] %v1535_v58 }
  0x1e   : > { %599 = vst [vmem:[%s1649_s10 + $0x50] sm:$0x1] %v1535_v58  ;;  %600 = vst [vmem:[%s1649_s10 + $0x54] sm:$0xf] %v1535_v58 }
  0x1f   : > { %601 = vst [vmem:[%s1649_s10 + $0x58] sm:$0xf] %v1535_v58  ;;  %602 = vst [vmem:[%s1649_s10 + $0x5c] sm:$0x1] %v1535_v58 }
  0x20   : > { %1456 = vmatpush3.bf16.msra.mxu0 %v254_v37  ;;  %1498 = vmatpush3.bf16.msra.mxu1 %v254_v37  ;;  %603 = vst [vmem:[%s1649_s10 + $0x60] sm:$0xf] %v1535_v58  ;;  %604 = vst [vmem:[%s1649_s10 + $0x64] sm:$0xf] %v1535_v58 }
  0x21   : > { %1457 = vmatprep.subr.bf16.mxu0 %v255_v40  ;;  %1495 = vmatprep.subr.bf16.mxu1 %v255_v40  ;;  %605 = vst [vmem:[%s1649_s10 + $0x68] sm:$0x1] %v1535_v58  ;;  %606 = vst [vmem:[%s1649_s10 + $0x6c] sm:$0xf] %v1535_v58 }
  0x22   : > { %607 = vst [vmem:[%s1649_s10 + $0x70] sm:$0xf] %v1535_v58  ;;  %608 = vst [vmem:[%s1649_s10 + $0x74] sm:$0x1] %v1535_v58 }
  0x23   : > { %609 = vst [vmem:[%s1649_s10 + $0x78] sm:$0xf] %v1535_v58  ;;  %610 = vst [vmem:[%s1649_s10 + $0x7c] sm:$0xf] %v1535_v58 }
  0x24   : > { %1458 = vmatpush3.bf16.msra.mxu0 %v255_v40  ;;  %1499 = vmatpush3.bf16.msra.mxu1 %v255_v40  ;;  %611 = vst [vmem:[%s1649_s10 + $0x80] sm:$0x1] %v1535_v58  ;;  %612 = vst [vmem:[%s1649_s10 + $0x84] sm:$0xf] %v1535_v58 }
  0x25   : > { %1459 = vmatprep.subr.bf16.mxu0 %v256_v43  ;;  %1496 = vmatprep.subr.bf16.mxu1 %v256_v43  ;;  %613 = vst [vmem:[%s1649_s10 + $0x88] sm:$0xf] %v1535_v58  ;;  %614 = vst [vmem:[%s1649_s10 + $0x8c] sm:$0x1] %v1535_v58 }
  0x26   : > { %615 = vst [vmem:[%s1649_s10 + $0x90] sm:$0xf] %v1535_v58  ;;  %616 = vst [vmem:[%s1649_s10 + $0x94] sm:$0xf] %v1535_v58 }
  0x27   : > { %617 = vst [vmem:[%s1649_s10 + $0x98] sm:$0x1] %v1535_v58  ;;  %618 = vst [vmem:[%s1649_s10 + $0x9c] sm:$0xf] %v1535_v58 }
  0x28   : > { %1460 = vmatpush3.bf16.msra.mxu0 %v256_v43  ;;  %1500 = vmatpush3.bf16.msra.mxu1 %v256_v43  ;;  %619 = vst [vmem:[%s1649_s10 + $0xa0] sm:$0xf] %v1535_v58  ;;  %620 = vst [vmem:[%s1649_s10 + $0xa4] sm:$0x1] %v1535_v58  ;;  %v1339_v31 = vld [vmem:[%s1649_s10 + $0x6c] sm:$0xf] }
  0x29   : > { %621 = vst [vmem:[%s1649_s10 + $0xa8] sm:$0xf] %v1535_v58  ;;  %622 = vst [vmem:[%s1649_s10 + $0xac] sm:$0xf] %v1535_v58 }
  0x2a   : > { %623 = vst [vmem:[%s1649_s10 + $0xb0] sm:$0x1] %v1535_v58  ;;  %624 = vst [vmem:[%s1649_s10 + $0xb4] sm:$0xf] %v1535_v58  ;;  %v1344_v21 = vld [vmem:[%s1649_s10 + $0x78] sm:$0xf] }
  0x2b   : > { %1462 = vmatmul.mubr.msk.bf16.vlgmr.msra.gmra.mrb[0].mxu0 %vm369_vm0, %v1513_v44  ;;  %1478 = vmatmul.mubr.msk.bf16.vlgmr.msra.gmra.mrb[0].mxu1 %vm369_vm0, %v1514_v45  ;;  %625 = vst [vmem:[%s1649_s10 + $0xb8] sm:$0xf] %v1535_v58  ;;  %626 = vst [vmem:[%s1649_s10 + $0xbc] sm:$0x1] %v1535_v58 }
  0x2c   : > { %1465 = vmatprep.mubr.msk.bf16.mxu0 %vm369_vm0, %v1515_v46  ;;  %1481 = vmatprep.mubr.msk.bf16.mxu1 %vm369_vm0, %v1516_v47  ;;  %627 = vst [vmem:[%s1649_s10 + $0xc0] sm:$0xf] %v1535_v58  ;;  %628 = vst [vmem:[%s1649_s10 + $0xc4] sm:$0xf] %v1535_v58 }
  0x2d   : > { %629 = vst [vmem:[%s1649_s10 + $0xc8] sm:$0x1] %v1535_v58  ;;  %630 = vst [vmem:[%s1649_s10 + $0xcc] sm:$0xf] %v1535_v58 }
  0x2e   : > { %631 = vst [vmem:[%s1649_s10 + $0xd0] sm:$0xf] %v1535_v58  ;;  %632 = vst [vmem:[%s1649_s10 + $0xd4] sm:$0x1] %v1535_v58  ;;  %v1307_v58 = vld [vmem:[%s1649_s10 + $0x20] sm:$0x1] }
  0x33   : > { %1466 = vmatmul.mubr.msk.bf16.gmra.mrb[4].mxu0 %vm369_vm0, %v1517_v48  ;;  %1482 = vmatmul.mubr.msk.bf16.gmra.mrb[4].mxu1 %vm369_vm0, %v1518_v49 }
  0x34   : > { %1469 = vmatprep.mubr.msk.bf16.mxu0 %vm369_vm0, %v1519_v50  ;;  %1485 = vmatprep.mubr.msk.bf16.mxu1 %vm369_vm0, %v1520_v51 }
  0x3b   : > { %1470 = vmatmul.mubr.msk.bf16.gmra.mrb[8].mxu0 %vm369_vm0, %v1521_v52  ;;  %1486 = vmatmul.mubr.msk.bf16.gmra.mrb[8].mxu1 %vm369_vm0, %v1522_v53 }
  0x3c   : > { %1473 = vmatprep.mubr.msk.bf16.mxu0 %vm369_vm0, %v1523_v54  ;;  %1489 = vmatprep.mubr.msk.bf16.mxu1 %vm369_vm0, %v1524_v55 }
  0x43   : > { %1474 = vmatmul.mubr.msk.bf16.gmra.mrb[12].mxu0 %vm369_vm0, %v1525_v56  ;;  %1490 = vmatmul.mubr.msk.bf16.gmra.mrb[12].mxu1 %vm369_vm0, %v1526_v57 }
  0xfe   : > { %v1463_v59 = vpop.f32.mrb[0].mxu0  ;;  %v1479_v60 = vpop.f32.mrb[0].mxu1 }
  0xff   : > { %v1384_v61 = vpack.c.bf16 %v1463_v59, %v1463_v59  ;;  %v1400_v62 = vpack.c.bf16 %v1479_v60, %v1479_v60  ;;  %v452_v63 = vpop.f32.mrb[1].mxu0  ;;  %v516_v0 = vpop.f32.mrb[1].mxu1 }
 0x100   : > { %v1382_v1 = vpack.c.bf16 %v452_v63, %v452_v63  ;;  %v1398_v2 = vpack.c.bf16 %v516_v0, %v516_v0  ;;  %v1464_v3 = vpop.f32.mrb[2].mxu0  ;;  %v1480_v4 = vpop.f32.mrb[2].mxu1 }
 0x101   : > { %v750_v5 = vshrl.u32 %v1384_v61, 16  ;;  %v753_v6 = vshll.u32 %v1384_v61, 16  ;;  %v886_v7 = vshrl.u32 %v1400_v62, 16  ;;  %v889_v8 = vshll.u32 %v1400_v62, 16  ;;  %v455_v9 = vpop.f32.mrb[3].mxu0  ;;  %v519_v10 = vpop.f32.mrb[3].mxu1 }
 0x102   : > { %v733_v11 = vshrl.u32 %v1382_v1, 16  ;;  %v736_v12 = vshll.u32 %v1382_v1, 16  ;;  %v869_v13 = vshrl.u32 %v1398_v2, 16  ;;  %v872_v14 = vshll.u32 %v1398_v2, 16  ;;  %v1347_v1 = vld [vmem:[%s1649_s10 + $0x80] sm:$0x1] }
 0x103   : > { %v1705_v15 = vrot.slane %v750_v5, 7  ;;  %v1707_v16 = vrot.slane %v886_v7, 7  ;;  %v1385_v17 = vpack.c.bf16 %v1464_v3, %v1464_v3  ;;  %v1401_v18 = vpack.c.bf16 %v1480_v4, %v1480_v4 }
 0x104   : > { %v1717_v22 = vrot.slane %v733_v11, 7  ;;  %v1719_v23 = vrot.slane %v869_v13, 7  ;;  %v1383_v24 = vpack.c.bf16 %v455_v9, %v455_v9  ;;  %v1399_v25 = vpack.c.bf16 %v519_v10, %v519_v10  ;;  %v1342_v13 = vld [vmem:[%s1649_s10 + $0x74] sm:$0x1] }
 0x105   : > { %v755_v26 = vor.u32 %v753_v6, %v1705_v15  ;;  %v756_v27 = vrot.slane %v1705_v15, 4  ;;  %v891_v28 = vor.u32 %v889_v8, %v1707_v16  ;;  %v892_v29 = vrot.slane %v1707_v16, 4  ;;  %v1302_v6 = vld [vmem:[%s1649_s10 + $0x14] sm:$0x1] }
 0x106   : > { %v738_v32 = vor.u32 %v736_v12, %v1717_v22  ;;  %v739_v33 = vrot.slane %v1717_v22, 4  ;;  %v874_v34 = vor.u32 %v872_v14, %v1719_v23  ;;  %v875_v35 = vrot.slane %v1719_v23, 4  ;;  %v1467_v36 = vpop.f32.mrb[4].mxu0  ;;  %v1483_v37 = vpop.f32.mrb[4].mxu1 }
 0x107   : > { %v1066_v38 = vsel %vm1711_vm6, %v755_v26, %v1304_v20  ;;  %v1122_v39 = vsel %vm1711_vm6, %v891_v28, %v1344_v21  ;;  %v758_v40 = vshrl.u32 %v1385_v17, 16  ;;  %v761_v41 = vshll.u32 %v1385_v17, 16  ;;  %v468_v42 = vpop.f32.mrb[5].mxu0  ;;  %v1735_v43 = vpop.f32.mrb[5].mxu1 }
 0x108   : > { %1305 = vst [vmem:[%s1649_s10 + $0x18] sm:$0xf] %v1066_v38  ;;  %1345 = vst [vmem:[%s1649_s10 + $0x78] sm:$0xf] %v1122_v39  ;;  %v1057_v44 = vsel %vm1711_vm6, %v738_v32, %v1299_v30  ;;  %v1115_v45 = vsel %vm1711_vm6, %v874_v34, %v1339_v31  ;;  %v894_v46 = vshrl.u32 %v1401_v18, 16  ;;  %v897_v47 = vshll.u32 %v1401_v18, 16 }
 0x109   : > { %v1743_v48 = vpop.f32.mrb[6].mxu0  ;;  %v1745_v49 = vpop.f32.mrb[6].mxu1  ;;  %1300 = vst [vmem:[%s1649_s10 + $0xc] sm:$0xf] %v1057_v44  ;;  %1340 = vst [vmem:[%s1649_s10 + $0x6c] sm:$0xf] %v1115_v45  ;;  %v1388_v61 = vpack.c.bf16 %v1467_v36, %v1467_v36  ;;  %v1404_v62 = vpack.c.bf16 %v1483_v37, %v1483_v37  ;;  %v1386_v31 = vpack.c.bf16 %v468_v42, %v468_v42 }
 0x10a   : > { %v760_v51 = vrot.slane %v758_v40, 7  ;;  %v741_v52 = vshrl.u32 %v1383_v24, 16  ;;  %v744_v53 = vshll.u32 %v1383_v24, 16  ;;  %v877_v54 = vshrl.u32 %v1399_v25, 16  ;;  %v1755_v55 = vpop.f32.mrb[7].mxu0  ;;  %v1757_v56 = vpop.f32.mrb[7].mxu1 }
 0x10b   : > { %v896_v59 = vrot.slane %v894_v46, 7  ;;  %v880_v60 = vshll.u32 %v1399_v25, 16  ;;  %v784_v7 = vshrl.u32 %v1388_v61, 16  ;;  %v787_v8 = vshll.u32 %v1388_v61, 16  ;;  %v1314_v30 = vld [vmem:[%s1649_s10 + $0x30] sm:$0xf] }
 0x10c   : > { %v763_v63 = vor.u32 %v761_v41, %v760_v51  ;;  %v765_v0 = vrot.slane %v760_v51, 4  ;;  %v743_v2 = vrot.slane %v741_v52, 7  ;;  %v879_v3 = vrot.slane %v877_v54, 7  ;;  %v1354_v40 = vld [vmem:[%s1649_s10 + $0x90] sm:$0xf] }
 0x10d   : > { %v899_v4 = vor.u32 %v897_v47, %v896_v59  ;;  %v901_v5 = vrot.slane %v896_v59, 4  ;;  %v1789_v24 = vrot.slane %v784_v7, 7  ;;  %v920_v25 = vshrl.u32 %v1404_v62, 16 }
 0x10e   : > { %v764_v9 = vsel %vm1751_vm7, %v756_v27, %v763_v63  ;;  %v1070_v10 = vsel %vm1761_vm8, %v765_v0, %v1307_v58  ;;  %v746_v11 = vor.u32 %v744_v53, %v743_v2  ;;  %v748_v12 = vrot.slane %v743_v2, 4  ;;  %v1779_v18 = vpop.f32.mrb[8].mxu0  ;;  %v1781_v20 = vpop.f32.mrb[8].mxu1  ;;  %v1309_v58 = vld [vmem:[%s1649_s10 + $0x24] sm:$0xf] }
 0x10f   : > { %1306 = vst [vmem:[%s1649_s10 + $0x1c] sm:$0xf] %v764_v9  ;;  %1308 = vst [vmem:[%s1649_s10 + $0x20] sm:$0x1] %v1070_v10  ;;  %v900_v14 = vsel %vm1751_vm7, %v892_v29, %v899_v4  ;;  %v1126_v15 = vsel %vm1761_vm8, %v901_v5, %v1347_v1  ;;  %v882_v16 = vor.u32 %v880_v60, %v879_v3  ;;  %v884_v17 = vrot.slane %v879_v3, 4  ;;  %v1791_v26 = vpop.f32.mrb[9].mxu0 }
 0x110   : > { %1346 = vst [vmem:[%s1649_s10 + $0x7c] sm:$0xf] %v900_v14  ;;  %1348 = vst [vmem:[%s1649_s10 + $0x80] sm:$0x1] %v1126_v15  ;;  %v747_v21 = vsel %vm1751_vm7, %v739_v33, %v746_v11  ;;  %v1063_v22 = vsel %vm1761_vm8, %v748_v12, %v1302_v6  ;;  %v1793_v27 = vpop.f32.mrb[9].mxu1  ;;  %v1804_v32 = vpop.f32.mrb[10].mxu0  ;;  %v789_v34 = vor.u32 %v787_v8, %v1789_v24 }
 0x111   : > { %1301 = vst [vmem:[%s1649_s10 + $0x10] sm:$0xf] %v747_v21  ;;  %1303 = vst [vmem:[%s1649_s10 + $0x14] sm:$0x1] %v1063_v22  ;;  %v883_v28 = vsel %vm1751_vm7, %v875_v35, %v882_v16  ;;  %v1119_v29 = vsel %vm1761_vm8, %v884_v17, %v1342_v13  ;;  %v1806_v33 = vpop.f32.mrb[10].mxu1  ;;  %v922_v36 = vrot.slane %v920_v25, 7  ;;  %v1402_v37 = vpack.c.bf16 %v1735_v43, %v1735_v43 }
 0x112   : > { %1341 = vst [vmem:[%s1649_s10 + $0x70] sm:$0xf] %v883_v28  ;;  %1343 = vst [vmem:[%s1649_s10 + $0x74] sm:$0x1] %v1119_v29  ;;  %v923_v23 = vshll.u32 %v1404_v62, 16  ;;  %v1813_v35 = vpop.f32.mrb[11].mxu0  ;;  %v1389_v42 = vpack.c.bf16 %v1743_v48, %v1743_v48  ;;  %v1405_v44 = vpack.c.bf16 %v1745_v49, %v1745_v49  ;;  %v1080_v45 = vsel %vm1711_vm6, %v789_v34, %v1314_v30 }
 0x113   : > { %v1815_v38 = vpop.f32.mrb[11].mxu1  ;;  %v790_v39 = vrot.slane %v1789_v24, 4  ;;  %v767_v41 = vshrl.u32 %v1386_v31, 16  ;;  %v770_v46 = vshll.u32 %v1386_v31, 16  ;;  %v903_v47 = vshrl.u32 %v1402_v37, 16 }
 0x114   : > { %v925_v43 = vor.u32 %v923_v23, %v922_v36  ;;  %1315 = vst [vmem:[%s1649_s10 + $0x30] sm:$0xf] %v1080_v45  ;;  %v926_v51 = vrot.slane %v922_v36, 4  ;;  %v906_v53 = vshll.u32 %v1402_v37, 16  ;;  %v792_v54 = vshrl.u32 %v1389_v42, 16 }
 0x115   : > { %v769_v52 = vrot.slane %v767_v41, 7  ;;  %v1829_v59 = vrot.slane %v903_v47, 7  ;;  %v795_v49 = vshll.u32 %v1389_v42, 16  ;;  %v928_v60 = vshrl.u32 %v1405_v44, 16  ;;  %v1349_v62 = vld [vmem:[%s1649_s10 + $0x84] sm:$0xf] }
 0x116   : > { %v1136_v48 = vsel %vm1711_vm6, %v925_v43, %v1354_v40  ;;  %v794_v63 = vrot.slane %v792_v54, 7  ;;  %v931_v0 = vshll.u32 %v1405_v44, 16  ;;  %v1387_v1 = vpack.c.bf16 %v1755_v55, %v1755_v55  ;;  %v1835_v2 = vpop.f32.mrb[12].mxu0  ;;  %v1837_v3 = vpop.f32.mrb[12].mxu1  ;;  %v1317_v6 = vld [vmem:[%s1649_s10 + $0x38] sm:$0x1] }
 0x117   : > { %1355 = vst [vmem:[%s1649_s10 + $0x90] sm:$0xf] %v1136_v48  ;;  %v772_v61 = vor.u32 %v770_v46, %v769_v52  ;;  %v773_v4 = vrot.slane %v769_v52, 4  ;;  %v908_v5 = vor.u32 %v906_v53, %v1829_v59  ;;  %v930_v7 = vrot.slane %v928_v60, 7  ;;  %v1843_v9 = vpop.f32.mrb[13].mxu0  ;;  %v1845_v10 = vpop.f32.mrb[13].mxu1 }
 0x118   : > { %v1403_v8 = vpack.c.bf16 %v1757_v56, %v1757_v56  ;;  %v797_v11 = vor.u32 %v795_v49, %v794_v63  ;;  %v799_v12 = vrot.slane %v794_v63, 4  ;;  %v1357_v13 = vld [vmem:[%s1649_s10 + $0x98] sm:$0x1]  ;;  %v775_v14 = vshrl.u32 %v1387_v1, 16  ;;  %v1850_v15 = vpop.f32.mrb[14].mxu0  ;;  %v1852_v16 = vpop.f32.mrb[14].mxu1 }
 0x119   : > { %v1073_v55 = vsel %vm1711_vm6, %v772_v61, %v1309_v58  ;;  %v1129_v56 = vsel %vm1711_vm6, %v908_v5, %v1349_v62  ;;  %v933_v17 = vor.u32 %v931_v0, %v930_v7  ;;  %v935_v21 = vrot.slane %v930_v7, 4  ;;  %v1857_v24 = vpop.f32.mrb[15].mxu0  ;;  %v1859_v25 = vpop.f32.mrb[15].mxu1  ;;  %v1312_v23 = vld [vmem:[%s1649_s10 + $0x2c] sm:$0x1] }
 0x11a   : > { %1310 = vst [vmem:[%s1649_s10 + $0x24] sm:$0xf] %v1073_v55  ;;  %v778_v22 = vshll.u32 %v1387_v1, 16  ;;  %1350 = vst [vmem:[%s1649_s10 + $0x84] sm:$0xf] %v1129_v56  ;;  %v798_v28 = vsel %vm1751_vm7, %v790_v39, %v797_v11  ;;  %v1084_v29 = vsel %vm1761_vm8, %v799_v12, %v1317_v6  ;;  %v777_v30 = vrot.slane %v775_v14, 7 }
 0x11b   : > { %v911_v31 = vshrl.u32 %v1403_v8, 16  ;;  %1316 = vst [vmem:[%s1649_s10 + $0x34] sm:$0xf] %v798_v28  ;;  %1318 = vst [vmem:[%s1649_s10 + $0x38] sm:$0x1] %v1084_v29  ;;  %v934_v34 = vsel %vm1751_vm7, %v926_v51, %v933_v17  ;;  %v1140_v36 = vsel %vm1761_vm8, %v935_v21, %v1357_v13  ;;  %v914_v37 = vshll.u32 %v1403_v8, 16 }
 0x11c   : > { %v1392_v40 = vpack.c.bf16 %v1779_v18, %v1779_v18  ;;  %1356 = vst [vmem:[%s1649_s10 + $0x94] sm:$0xf] %v934_v34  ;;  %1358 = vst [vmem:[%s1649_s10 + $0x98] sm:$0x1] %v1140_v36  ;;  %v780_v39 = vor.u32 %v778_v22, %v777_v30  ;;  %v782_v41 = vrot.slane %v777_v30, 4  ;;  %v1408_v44 = vpack.c.bf16 %v1781_v20, %v1781_v20 }
 0x11d   : > { %v913_v42 = vrot.slane %v911_v31, 7  ;;  %v909_v45 = vrot.slane %v1829_v59, 4  ;;  %v1352_v43 = vld [vmem:[%s1649_s10 + $0x8c] sm:$0x1]  ;;  %v1390_v47 = vpack.c.bf16 %v1791_v26, %v1791_v26  ;;  %v1406_v18 = vpack.c.bf16 %v1793_v27, %v1793_v27  ;;  %v1324_v49 = vld [vmem:[%s1649_s10 + $0x48] sm:$0xf] }
 0x11e   : > { %v818_v46 = vshrl.u32 %v1392_v40, 16  ;;  %v781_v51 = vsel %vm1751_vm7, %v773_v4, %v780_v39  ;;  %v1077_v52 = vsel %vm1761_vm8, %v782_v41, %v1312_v23  ;;  %v821_v48 = vshll.u32 %v1392_v40, 16  ;;  %v1364_v4 = vld [vmem:[%s1649_s10 + $0xa8] sm:$0xf]  ;;  %v1319_v5 = vld [vmem:[%s1649_s10 + $0x3c] sm:$0xf] }
 0x11f   : > { %v916_v20 = vor.u32 %v914_v37, %v913_v42  ;;  %v918_v53 = vrot.slane %v913_v42, 4  ;;  %1311 = vst [vmem:[%s1649_s10 + $0x28] sm:$0xf] %v781_v51  ;;  %1313 = vst [vmem:[%s1649_s10 + $0x2c] sm:$0x1] %v1077_v52  ;;  %v954_v26 = vshrl.u32 %v1408_v44, 16  ;;  %v1393_v8 = vpack.c.bf16 %v1804_v32, %v1804_v32 }
 0x120   : > { %v820_v54 = vrot.slane %v818_v46, 7  ;;  %v801_v58 = vshrl.u32 %v1390_v47, 16  ;;  %v957_v60 = vshll.u32 %v1408_v44, 16  ;;  %v937_v61 = vshrl.u32 %v1406_v18, 16  ;;  %v1359_v56 = vld [vmem:[%s1649_s10 + $0x9c] sm:$0xf] }
 0x121   : > { %v917_v27 = vsel %vm1751_vm7, %v909_v45, %v916_v20  ;;  %v1133_v59 = vsel %vm1761_vm8, %v918_v53, %v1352_v43  ;;  %v956_v63 = vrot.slane %v954_v26, 7  ;;  %v804_v1 = vshll.u32 %v1390_v47, 16  ;;  %v1327_v37 = vld [vmem:[%s1649_s10 + $0x50] sm:$0x1] }
 0x122   : > { %1351 = vst [vmem:[%s1649_s10 + $0x88] sm:$0xf] %v917_v27  ;;  %1353 = vst [vmem:[%s1649_s10 + $0x8c] sm:$0x1] %v1133_v59  ;;  %v823_v62 = vor.u32 %v821_v48, %v820_v54  ;;  %v1898_v0 = vrot.slane %v801_v58, 7  ;;  %v1902_v6 = vrot.slane %v937_v61, 7  ;;  %v1409_v55 = vpack.c.bf16 %v1806_v33, %v1806_v33 }
 0x123   : > { %v940_v7 = vshll.u32 %v1406_v18, 16  ;;  %v824_v11 = vrot.slane %v820_v54, 4  ;;  %v959_v13 = vor.u32 %v957_v60, %v956_v63  ;;  %v960_v17 = vrot.slane %v956_v63, 4  ;;  %v1367_v43 = vld [vmem:[%s1649_s10 + $0xb0] sm:$0x1] }
 0x124   : > { %v1094_v12 = vsel %vm1711_vm6, %v823_v62, %v1324_v49  ;;  %v806_v14 = vor.u32 %v804_v1, %v1898_v0  ;;  %v807_v21 = vrot.slane %v1898_v0, 4  ;;  %v826_v22 = vshrl.u32 %v1393_v8, 16  ;;  %v1322_v48 = vld [vmem:[%s1649_s10 + $0x44] sm:$0x1]  ;;  %v1334_v1 = vld [vmem:[%s1649_s10 + $0x60] sm:$0xf] }
 0x125   : > { %1325 = vst [vmem:[%s1649_s10 + $0x48] sm:$0xf] %v1094_v12  ;;  %v942_v32 = vor.u32 %v940_v7, %v1902_v6  ;;  %v1150_v33 = vsel %vm1711_vm6, %v959_v13, %v1364_v4  ;;  %v829_v29 = vshll.u32 %v1393_v8, 16  ;;  %v962_v30 = vshrl.u32 %v1409_v55, 16  ;;  %v1362_v49 = vld [vmem:[%s1649_s10 + $0xa4] sm:$0x1] }
 0x126   : > { %v1087_v28 = vsel %vm1711_vm6, %v806_v14, %v1319_v5  ;;  %1365 = vst [vmem:[%s1649_s10 + $0xa8] sm:$0xf] %v1150_v33  ;;  %v828_v34 = vrot.slane %v826_v22, 7  ;;  %v965_v36 = vshll.u32 %v1409_v55, 16  ;;  %v1391_v23 = vpack.c.bf16 %v1813_v35, %v1813_v35  ;;  %v1374_v14 = vld [vmem:[%s1649_s10 + $0xc0] sm:$0xf] }
 0x127   : > { %1320 = vst [vmem:[%s1649_s10 + $0x3c] sm:$0xf] %v1087_v28  ;;  %v1143_v31 = vsel %vm1711_vm6, %v942_v32, %v1359_v56  ;;  %v964_v40 = vrot.slane %v962_v30, 7  ;;  %v1407_v39 = vpack.c.bf16 %v1815_v38, %v1815_v38  ;;  %v1396_v41 = vpack.c.bf16 %v1835_v2, %v1835_v2  ;;  %v1329_v28 = vld [vmem:[%s1649_s10 + $0x54] sm:$0xf] }
 0x128   : > { %1360 = vst [vmem:[%s1649_s10 + $0x9c] sm:$0xf] %v1143_v31  ;;  %v1412_v42 = vpack.c.bf16 %v1837_v3, %v1837_v3  ;;  %v831_v44 = vor.u32 %v829_v29, %v828_v34  ;;  %v833_v45 = vrot.slane %v828_v34, 4  ;;  %v809_v46 = vshrl.u32 %v1391_v23, 16 }
 0x129   : > { %v812_v35 = vshll.u32 %v1391_v23, 16  ;;  %v967_v47 = vor.u32 %v965_v36, %v964_v40  ;;  %v969_v18 = vrot.slane %v964_v40, 4  ;;  %v945_v51 = vshrl.u32 %v1407_v39, 16 }
 0x12a   : > { %v948_v38 = vshll.u32 %v1407_v39, 16  ;;  %v832_v2 = vsel %vm1751_vm7, %v824_v11, %v831_v44  ;;  %v1098_v52 = vsel %vm1761_vm8, %v833_v45, %v1327_v37  ;;  %v811_v3 = vrot.slane %v809_v46, 7  ;;  %v1369_v39 = vld [vmem:[%s1649_s10 + $0xb4] sm:$0xf] }
 0x12b   : > { %v852_v20 = vshrl.u32 %v1396_v41, 16  ;;  %1326 = vst [vmem:[%s1649_s10 + $0x4c] sm:$0xf] %v832_v2  ;;  %1328 = vst [vmem:[%s1649_s10 + $0x50] sm:$0x1] %v1098_v52  ;;  %v968_v53 = vsel %vm1751_vm7, %v960_v17, %v967_v47  ;;  %v1154_v54 = vsel %vm1761_vm8, %v969_v18, %v1367_v43  ;;  %v947_v26 = vrot.slane %v945_v51, 7 }
 0x12c   : > { %v855_v58 = vshll.u32 %v1396_v41, 16  ;;  %1366 = vst [vmem:[%s1649_s10 + $0xac] sm:$0xf] %v968_v53  ;;  %1368 = vst [vmem:[%s1649_s10 + $0xb0] sm:$0x1] %v1154_v54  ;;  %v814_v27 = vor.u32 %v812_v35, %v811_v3  ;;  %v816_v59 = vrot.slane %v811_v3, 4  ;;  %v1394_v4 = vpack.c.bf16 %v1843_v9, %v1843_v9 }
 0x12d   : > { %v854_v60 = vrot.slane %v852_v20, 7  ;;  %v988_v61 = vshrl.u32 %v1412_v42, 16  ;;  %v943_v62 = vrot.slane %v1902_v6, 4  ;;  %v950_v63 = vor.u32 %v948_v38, %v947_v26  ;;  %v1337_v41 = vld [vmem:[%s1649_s10 + $0x68] sm:$0x1] }
 0x12e   : > { %v952_v0 = vrot.slane %v947_v26, 4  ;;  %v815_v5 = vsel %vm1751_vm7, %v807_v21, %v814_v27  ;;  %v1091_v7 = vsel %vm1761_vm8, %v816_v59, %v1322_v48  ;;  %v991_v55 = vshll.u32 %v1412_v42, 16  ;;  %v1377_v18 = vld [vmem:[%s1649_s10 + $0xc8] sm:$0x1]  ;;  %v1332_v26 = vld [vmem:[%s1649_s10 + $0x5c] sm:$0x1] }
 0x12f   : > { %v857_v8 = vor.u32 %v855_v58, %v854_v60  ;;  %1321 = vst [vmem:[%s1649_s10 + $0x40] sm:$0xf] %v815_v5  ;;  %1323 = vst [vmem:[%s1649_s10 + $0x44] sm:$0x1] %v1091_v7  ;;  %v951_v6 = vsel %vm1751_vm7, %v943_v62, %v950_v63  ;;  %v990_v12 = vrot.slane %v988_v61, 7  ;;  %v835_v9 = vshrl.u32 %v1394_v4, 16 }
 0x130   : > { %v1147_v11 = vsel %vm1761_vm8, %v952_v0, %v1362_v49  ;;  %1361 = vst [vmem:[%s1649_s10 + $0xa0] sm:$0xf] %v951_v6  ;;  %v1410_v56 = vpack.c.bf16 %v1845_v10, %v1845_v10  ;;  %v1397_v17 = vpack.c.bf16 %v1850_v15, %v1850_v15  ;;  %v838_v22 = vshll.u32 %v1394_v4, 16  ;;  %v1372_v61 = vld [vmem:[%s1649_s10 + $0xbc] sm:$0x1] }
 0x131   : > { %1363 = vst [vmem:[%s1649_s10 + $0xa4] sm:$0x1] %v1147_v11  ;;  %v1108_v13 = vsel %vm1711_vm6, %v857_v8, %v1334_v1  ;;  %v993_v21 = vor.u32 %v991_v55, %v990_v12  ;;  %v837_v32 = vrot.slane %v835_v9, 7  ;;  %v1413_v33 = vpack.c.bf16 %v1852_v16, %v1852_v16 }
 0x132   : > { %1335 = vst [vmem:[%s1649_s10 + $0x60] sm:$0xf] %v1108_v13  ;;  %v971_v29 = vshrl.u32 %v1410_v56, 16  ;;  %v860_v30 = vshrl.u32 %v1397_v17, 16  ;;  %v974_v34 = vshll.u32 %v1410_v56, 16  ;;  %v863_v37 = vshll.u32 %v1397_v17, 16 }
 0x133   : > { %v1164_v31 = vsel %vm1711_vm6, %v993_v21, %v1374_v14  ;;  %v840_v10 = vor.u32 %v838_v22, %v837_v32  ;;  %v996_v36 = vshrl.u32 %v1413_v33, 16  ;;  %v1395_v40 = vpack.c.bf16 %v1857_v24, %v1857_v24 }
 0x134   : > { %1375 = vst [vmem:[%s1649_s10 + $0xc0] sm:$0xf] %v1164_v31  ;;  %v973_v15 = vrot.slane %v971_v29, 7  ;;  %v862_v23 = vrot.slane %v860_v30, 7  ;;  %v999_v44 = vshll.u32 %v1413_v33, 16  ;;  %v1411_v45 = vpack.c.bf16 %v1859_v25, %v1859_v25 }
 0x135   : > { %v1101_v16 = vsel %vm1711_vm6, %v840_v10, %v1329_v28  ;;  %v998_v42 = vrot.slane %v996_v36, 7  ;;  %v858_v43 = vrot.slane %v854_v60, 4  ;;  %v994_v24 = vrot.slane %v990_v12, 4 }
 0x136   : > { %1330 = vst [vmem:[%s1649_s10 + $0x54] sm:$0xf] %v1101_v16  ;;  %v976_v46 = vor.u32 %v974_v34, %v973_v15  ;;  %v865_v35 = vor.u32 %v863_v37, %v862_v23  ;;  %v867_v47 = vrot.slane %v862_v23, 4  ;;  %v843_v2 = vshrl.u32 %v1395_v40, 16 }
 0x137   : > { %v1001_v51 = vor.u32 %v999_v44, %v998_v42  ;;  %v1003_v38 = vrot.slane %v998_v42, 4  ;;  %v979_v20 = vshrl.u32 %v1411_v45, 16  ;;  %v846_v19 = vshll.u32 %v1395_v40, 16 }
 0x138   : > { %v1157_v52 = vsel %vm1711_vm6, %v976_v46, %v1369_v39  ;;  %v866_v25 = vsel %vm1751_vm7, %v858_v43, %v865_v35  ;;  %v1112_v3 = vsel %vm1761_vm8, %v867_v47, %v1337_v41  ;;  %v845_v48 = vrot.slane %v843_v2, 7 }
 0x139   : > { %1370 = vst [vmem:[%s1649_s10 + $0xb4] sm:$0xf] %v1157_v52  ;;  %1336 = vst [vmem:[%s1649_s10 + $0x64] sm:$0xf] %v866_v25  ;;  %v1002_v53 = vsel %vm1751_vm7, %v994_v24, %v1001_v51  ;;  %v1168_v54 = vsel %vm1761_vm8, %v1003_v38, %v1377_v18  ;;  %v981_v58 = vrot.slane %v979_v20, 7  ;;  %v982_v27 = vshll.u32 %v1411_v45, 16 }
 0x13a   : > { %1338 = vst [vmem:[%s1649_s10 + $0x68] sm:$0x1] %v1112_v3  ;;  %1376 = vst [vmem:[%s1649_s10 + $0xc4] sm:$0xf] %v1002_v53  ;;  %v841_v59 = vrot.slane %v837_v32, 4  ;;  %v848_v49 = vor.u32 %v846_v19, %v845_v48  ;;  %v850_v60 = vrot.slane %v845_v48, 4 }
 0x13b   : > { %1378 = vst [vmem:[%s1649_s10 + $0xc8] sm:$0x1] %v1168_v54  ;;  %v977_v62 = vrot.slane %v973_v15, 4  ;;  %v984_v63 = vor.u32 %v982_v27, %v981_v58  ;;  %v986_v0 = vrot.slane %v981_v58, 4 }
 0x13c   : > { %v849_v1 = vsel %vm1751_vm7, %v841_v59, %v848_v49  ;;  %v1105_v4 = vsel %vm1761_vm8, %v850_v60, %v1332_v26 }
 0x13d   : > { %1331 = vst [vmem:[%s1649_s10 + $0x58] sm:$0xf] %v849_v1  ;;  %1333 = vst [vmem:[%s1649_s10 + $0x5c] sm:$0x1] %v1105_v4  ;;  %v985_v5 = vsel %vm1751_vm7, %v977_v62, %v984_v63  ;;  %v1161_v7 = vsel %vm1761_vm8, %v986_v0, %v1372_v61 }
 0x13e   : > { %1371 = vst [vmem:[%s1649_s10 + $0xb8] sm:$0xf] %v985_v5  ;;  %1373 = vst [vmem:[%s1649_s10 + $0xbc] sm:$0x1] %v1161_v7 }
 0x13f PF: > { %s14_s15 = sadd.s32 1, %s1533_s15  }
 0x140   : > { %p11_p4 = scmp.ge.s32.totalorder %s14_s15, 4  }
 0x142   :  { %13 = sbr.rel (!%p11_p4) target bundleno = 1 (0x1), region = 67 }

// kernel: generator_forward.9
= control target key start
LH: loop header
LB: loop body
LE: loop exit
PB: predicated region body
PF: predicated region fallthrough
CT: control target
= control target key end

     0   :  { %s3223_s15 = smov 0   ;;  %s3799_s0 = inlined_call_operand.vmem [shape: bf16[2,10,10,128], index: 0, kind: input, shape index: {}]   ;;  %s3800_s1 = inlined_call_operand.vmem [shape: bf16[9,128,128], index: 1, kind: input, shape index: {}]   ;;  %s3801_s2 = inlined_call_operand.vmem [shape: f32[1,128], index: 2, kind: input, shape index: {}]   ;;  %s3802_s3 = inlined_call_operand.vmem [shape: bf16[2,8,8,128], index: 3, kind: output, shape index: {0}]   ;;  %s3803_s4 = inlined_call_operand.vmem [shape: f32[2,2,128], index: 4, kind: output, shape index: {1}]  }
   0x1 LB: > { %s2333_s16 = sadd.s32 4294967295, %s3196_s15   ;;  %p2337_p0 = scmp.ge.s32.totalorder %s3196_s15, 1  ;;  %s3196_s15 = sphi %s3223_s15, %s15_s15  }
   0x2   : > { %p165_p1 = scmp.lt.s32.totalorder %s3196_s15, 3 }
   0x4   : > { %p166_p2 = pnand %p2337_p0, %p165_p1 }
   0x5   : > { %v3106_v0 = vld [vmem:[%s3800_s1 + $0x40] sm:$0xff] (!%p166_p2)   ;;  %p195_p3 = scmp.lt.s32.totalorder (!%p166_p2), %s2333_s16, 1  ;;  %v3108_v2 = vld [vmem:[%s3800_s1 + $0x48] sm:$0xff] (!%p166_p2)   ;;  %v3110_v4 = vld [vmem:[%s3800_s1 + $0x50] sm:$0xff] (!%p166_p2)   ;;  %vm242_vm0 = vsmask.f32 (!%p166_p2), 3328 }
   0x6   : > { %169 = sbr.rel (%p166_p2) target bundleno = 421 (0x1a5), region = 32  ;;  %v3107_v1 = vld [vmem:[%s3800_s1 + $0x100] sm:$0xff] (!%p166_p2)   ;;  %2801 = vmatprep.subr.bf16.mxu1 (!%p166_p2), %v3106_v0  ;;  %v3109_v3 = vld [vmem:[%s3800_s1 + $0x108] sm:$0xff] (!%p166_p2)   ;;  %v3111_v5 = vld [vmem:[%s3800_s1 + $0x110] sm:$0xff] (!%p166_p2)   ;;  %vm243_vm1 = vsmask.f32 (!%p166_p2), 7440 }
   0x7   : > { %2897 = vmatprep.subr.bf16.mxu0 (!%p166_p2), %v3107_v1  ;;  %2802 = vmatpush3.bf16.msra.mxu1 (!%p166_p2), %v3106_v0  ;;  %v3112_v6 = vld [vmem:[%s3800_s1 + $0x58] sm:$0xff] (!%p166_p2)   ;;  %v3114_v8 = vld [vmem:[%s3800_s1 + $0x60] sm:$0xff] (!%p166_p2)   ;;  %v3116_v10 = vld [vmem:[%s3800_s1 + $0x68] sm:$0xff] (!%p166_p2)   ;;  %vm664_vm3 = vcmask (!%p166_p2), 1042432   ;;  %vm665_vm4 = vcmask (!%p166_p2), 1046532   ;;  %vm2244_vm6 = vcmask (!%p166_p2), 1040384  }
   0x8   : > { %2898 = vmatpush3.bf16.msra.mxu0 (!%p166_p2), %v3107_v1  ;;  %2803 = vmatprep.subr.bf16.mxu1 (!%p166_p2), %v3108_v2  ;;  %v3113_v7 = vld [vmem:[%s3800_s1 + $0x118] sm:$0xff] (!%p166_p2)   ;;  %v3115_v9 = vld [vmem:[%s3800_s1 + $0x120] sm:$0xff] (!%p166_p2)   ;;  %v3117_v14 = vld [vmem:[%s3800_s1 + $0x128] sm:$0xff] (!%p166_p2)  }
   0x9   : > { %2899 = vmatprep.subr.bf16.mxu0 (!%p166_p2), %v3109_v3  ;;  %v3118_v22 = vld [vmem:[%s3800_s1 + $0x70] sm:$0xff] (!%p166_p2)   ;;  %v3120_v37 = vld [vmem:[%s3800_s1 + $0x78] sm:$0xff] (!%p166_p2)   ;;  %vm3312_vm2 = vmor (!%p166_p2), %vm242_vm0, %vm243_vm1 }
   0xa   : > { %v3119_v23 = vld [vmem:[%s3800_s1 + $0x130] sm:$0xff] (!%p166_p2)   ;;  %v3121_v47 = vld [vmem:[%s3800_s1 + $0x138] sm:$0xff] (!%p166_p2)   ;;  %v3122_v63 = vld [vmem:[%s3800_s1] sm:$0xff] (!%p166_p2)  }
   0xb   : > { %2804 = vmatpush3.bf16.msra.mxu1 (!%p166_p2), %v3108_v2  ;;  %v3344_v1 = vld [vmem:[%s3800_s1 + $0x140] sm:$0xff] (!%p166_p2)   ;;  %vm3486_vm5 = vmor (!%p166_p2), %vm664_vm3, %vm665_vm4 }
   0xc   : > { %2900 = vmatpush3.bf16.msra.mxu0 (!%p166_p2), %v3109_v3  ;;  %2805 = vmatprep.subr.bf16.mxu1 (!%p166_p2), %v3110_v4  ;;  %v3186_v38 = vld [vmem:[%s3800_s1 + $0x220] sm:$0xff] (!%p166_p2)  }
   0xd   : > { %s3809_s16 = smov (!%p195_p3, %s2333_s16), 1  ;;  %2901 = vmatprep.subr.bf16.mxu0 %v3111_v5 }
   0xe   : > { %s3097_s7 = smul.u32 80, %s3809_s16  ;;  %s2669_s27 = sshll.u32 %s3809_s16, 5 }
   0xf   : > { %2806 = vmatpush3.bf16.msra.mxu1 %v3110_v4  ;;  %s204_s30 = scalar_lea.vmem %s3802_s3, %s2669_s27  ;;  %s2341_s5 = sshll.u32 %s3809_s16, 1 }
  0x10   : > { %2902 = vmatpush3.bf16.msra.mxu0 %v3111_v5  ;;  %2807 = vmatprep.subr.bf16.mxu1 %v3112_v6  ;;  %s3267_s14 = scalar_lea.vmem %s3799_s0, %s3097_s7  ;;  %s208_s8 = scalar_lea.vmem %s3803_s4, %s2341_s5 }
  0x11   : > { %2903 = vmatprep.subr.bf16.mxu0 %v3113_v7  ;;  %v3273_v11 = vld [vmem:[%s3267_s14] sm:$0xf]  ;;  %v3276_v12 = vld [vmem:[%s3267_s14 + $0x8] sm:$0xf]  ;;  %v3279_v13 = vld [vmem:[%s3267_s14 + $0x4] sm:$0x1] }
  0x12   : > { %v3285_v15 = vld [vmem:[%s3267_s14 + $0xc] sm:$0x1]  ;;  %v246_v16 = vshrl.u32 %v3273_v11, 16  ;;  %v249_v17 = vshll.u32 %v3273_v11, 16  ;;  %v255_v18 = vshll.u32 %v3279_v13, 16  ;;  %v260_v19 = vshrl.u32 %v3276_v12, 16 }
  0x13   : > { %2808 = vmatpush3.bf16.msra.mxu1 %v3112_v6  ;;  %v263_v20 = vshll.u32 %v3276_v12, 16  ;;  %v269_v21 = vshll.u32 %v3285_v15, 16  ;;  %v2454_v30 = vld [vmem:[%s3267_s14 + $0x8] sm:$0xf]  ;;  %v3301_v31 = vld [vmem:[%s3267_s14 + $0xc] sm:$0x1] }
  0x14   : > { %2904 = vmatpush3.bf16.msra.mxu0 %v3113_v7  ;;  %2809 = vmatprep.subr.bf16.mxu1 %v3114_v8  ;;  %v248_v24 = vrot.slane %v246_v16, 4  ;;  %v251_v25 = vrot.slane %v249_v17, 5  ;;  %v257_v26 = vrot.slane %v255_v18, 5  ;;  %v262_v27 = vrot.slane %v260_v19, 4  ;;  %v2456_v33 = vld [vmem:[%s3267_s14 + $0x10] sm:$0xf] }
  0x15   : > { %2905 = vmatprep.subr.bf16.mxu0 %v3115_v9  ;;  %v265_v28 = vrot.slane %v263_v20, 5  ;;  %v271_v29 = vrot.slane %v269_v21, 5  ;;  %v3305_v34 = vld [vmem:[%s3267_s14 + $0x14] sm:$0x1]  ;;  %v1041_v35 = vshrl.u32 %v2454_v30, 16  ;;  %v1044_v36 = vshll.u32 %v2454_v30, 16 }
  0x16   : > { %v252_v32 = vor.u32 %v251_v25, %v248_v24  ;;  %v1050_v40 = vshll.u32 %v3301_v31, 16  ;;  %v1055_v41 = vshrl.u32 %v2456_v33, 16  ;;  %v1058_v42 = vshll.u32 %v2456_v33, 16  ;;  %v3322_v51 = vld [vmem:[%s3267_s14 + $0x10] sm:$0xf] }
  0x17   : > { %2810 = vmatpush3.bf16.msra.mxu1 %v3114_v8  ;;  %v266_v39 = vor.u32 %v265_v28, %v262_v27  ;;  %v1043_v44 = vrot.slane %v1041_v35, 4  ;;  %v1046_v45 = vrot.slane %v1044_v36, 5  ;;  %v1064_v46 = vshll.u32 %v3305_v34, 16  ;;  %v3327_v55 = vld [vmem:[%s3267_s14 + $0x18] sm:$0xf] }
  0x18   : > { %2906 = vmatpush3.bf16.msra.mxu0 %v3115_v9  ;;  %2811 = vmatprep.subr.bf16.mxu1 %v3116_v10  ;;  %v253_v43 = vrot.slane %v252_v32, 4  ;;  %v1057_v49 = vrot.slane %v1055_v41, 4  ;;  %v1060_v50 = vrot.slane %v1058_v42, 5  ;;  %v1052_v54 = vrot.slane %v1050_v40, 5  ;;  %v3330_v56 = vld [vmem:[%s3267_s14 + $0x14] sm:$0x1] }
  0x19   : > { %2907 = vmatprep.subr.bf16.mxu0 %v3117_v14  ;;  %v267_v48 = vrot.slane %v266_v39, 4  ;;  %v1047_v53 = vor.u32 %v1046_v45, %v1043_v44  ;;  %v1066_v59 = vrot.slane %v1064_v46, 5  ;;  %v3335_v60 = vld [vmem:[%s3267_s14 + $0x1c] sm:$0x1]  ;;  %v274_v61 = vshrl.u32 %v3322_v51, 16 }
  0x1a   : > { %v258_v52 = vsel %vm3312_vm2, %v253_v43, %v257_v26  ;;  %v1061_v58 = vor.u32 %v1060_v50, %v1057_v49  ;;  %v277_v2 = vshll.u32 %v3322_v51, 16  ;;  %v283_v3 = vshll.u32 %v3330_v56, 16  ;;  %v2458_v8 = vld [vmem:[%s3267_s14 + $0x18] sm:$0xf]  ;;  %v3355_v16 = vld [vmem:[%s3267_s14 + $0x1c] sm:$0x1] }
  0x1b   : > { %2812 = vmatpush3.bf16.msra.mxu1 %v3116_v10  ;;  %v272_v57 = vsel %vm3312_vm2, %v267_v48, %v271_v29  ;;  %v1048_v0 = vrot.slane %v1047_v53, 4  ;;  %v276_v5 = vrot.slane %v274_v61, 4  ;;  %v288_v6 = vshrl.u32 %v3327_v55, 16  ;;  %v2460_v17 = vld [vmem:[%s3267_s14 + $0x20] sm:$0xf]  ;;  %v3124_v43 = vld [vmem:[%s3800_s1 + $0x8] sm:$0xff]  }
  0x1c   : > { %2908 = vmatpush3.bf16.msra.mxu0 %v3117_v14  ;;  %2813 = vmatprep.subr.bf16.mxu1 %v3118_v22  ;;  %v2358_v62 = vcombine.low %v258_v52, %v272_v57  ;;  %v1062_v4 = vrot.slane %v1061_v58, 4  ;;  %v291_v7 = vshll.u32 %v3327_v55, 16  ;;  %v279_v10 = vrot.slane %v277_v2, 5  ;;  %v3361_v21 = vld [vmem:[%s3267_s14 + $0x24] sm:$0x1] }
  0x1d   : > { %2909 = vmatprep.subr.bf16.mxu0 %v3119_v23  ;;  %v1053_v9 = vsel %vm3312_vm2, %v1048_v0, %v1052_v54  ;;  %v297_v14 = vshll.u32 %v3335_v60, 16  ;;  %v290_v19 = vrot.slane %v288_v6, 4  ;;  %v285_v24 = vrot.slane %v283_v3, 5  ;;  %v3125_v54 = vld [vmem:[%s3800_s1 + $0x148] sm:$0xff]   ;;  %v3391_v0 = vld [vmem:[%s3267_s14 + $0x24] sm:$0x1] }
  0x1e   : > { %2817 = vmatprep.mubr.bf16.mxu1 %v2358_v62  ;;  %v1067_v18 = vsel %vm3312_vm2, %v1062_v4, %v1066_v59  ;;  %v293_v20 = vrot.slane %v291_v7, 5  ;;  %v1069_v27 = vshrl.u32 %v2458_v8, 16  ;;  %v1072_v28 = vshll.u32 %v2458_v8, 16  ;;  %v3126_v59 = vld [vmem:[%s3800_s1 + $0x10] sm:$0xff]   ;;  %v3385_v62 = vld [vmem:[%s3267_s14 + $0x20] sm:$0xf] }
  0x1f   : > { %2814 = vmatpush3.bf16.msra.mxu1 %v3118_v22  ;;  %v2486_v22 = vcombine.low %v1053_v9, %v1067_v18  ;;  %v299_v25 = vrot.slane %v297_v14, 5  ;;  %v1078_v29 = vshll.u32 %v3355_v16, 16  ;;  %v1083_v32 = vshrl.u32 %v2460_v17, 16  ;;  %v3394_v2 = vld [vmem:[%s3267_s14 + $0x2c] sm:$0x1]  ;;  %v3127_v9 = vld [vmem:[%s3800_s1 + $0x150] sm:$0xff]  }
  0x20   : > { %2910 = vmatpush3.bf16.msra.mxu0 %v3119_v23  ;;  %2815 = vmatprep.subr.bf16.mxu1 %v3120_v37  ;;  %v280_v23 = vor.u32 %v279_v10, %v276_v5  ;;  %v294_v26 = vor.u32 %v293_v20, %v290_v19  ;;  %v1086_v33 = vshll.u32 %v2460_v17, 16  ;;  %v1092_v35 = vshll.u32 %v3361_v21, 16  ;;  %v3128_v10 = vld [vmem:[%s3800_s1 + $0x18] sm:$0xff]  }
  0x21   : > { %2911 = vmatprep.subr.bf16.mxu0 %v3121_v47  ;;  %2913 = vmatprep.mubr.bf16.mxu0 %v2486_v22  ;;  %v1074_v39 = vrot.slane %v1072_v28, 5  ;;  %v1085_v41 = vrot.slane %v1083_v32, 4  ;;  %v1080_v46 = vrot.slane %v1078_v29, 5  ;;  %v1332_v57 = vrot.slane %v3301_v31, 5  ;;  %v3129_v29 = vld [vmem:[%s3800_s1 + $0x158] sm:$0xff]  }
  0x22   : > { %v281_v30 = vrot.slane %v280_v23, 4  ;;  %v295_v36 = vrot.slane %v294_v26, 4  ;;  %v1088_v42 = vrot.slane %v1086_v33, 5  ;;  %v302_v3 = vshrl.u32 %v3385_v62, 16  ;;  %v2462_v23 = vld [vmem:[%s3267_s14 + $0x28] sm:$0xf] }
  0x23   : > { %2816 = vmatpush3.bf16.msra.mxu1 %v3120_v37  ;;  %v1071_v37 = vrot.slane %v1069_v27, 4  ;;  %v305_v4 = vshll.u32 %v3385_v62, 16  ;;  %v311_v5 = vshll.u32 %v3391_v0, 16  ;;  %v325_v8 = vshll.u32 %v3394_v2, 16  ;;  %v3415_v26 = vld [vmem:[%s3267_s14 + $0x34] sm:$0x1] }
  0x24   : > { %2912 = vmatpush3.bf16.msra.mxu0 %v3121_v47  ;;  %2825 = vmatprep.subr.bf16.mxu1 %v3122_v63  ;;  %v286_v40 = vsel %vm3312_vm2, %v281_v30, %v285_v24  ;;  %v300_v44 = vsel %vm3312_vm2, %v295_v36, %v299_v25  ;;  %v1094_v47 = vrot.slane %v1092_v35, 5  ;;  %v1089_v49 = vor.u32 %v1088_v42, %v1085_v41  ;;  %v3411_v24 = vld [vmem:[%s3267_s14 + $0x2c] sm:$0x1]  ;;  %v2464_v25 = vld [vmem:[%s3267_s14 + $0x30] sm:$0xf]  ;;  %v3130_v30 = vld [vmem:[%s3800_s1 + $0x20] sm:$0xff]  }
  0x25   : > { %2921 = vmatprep.subr.bf16.mxu0 %v3344_v1  ;;  %v1075_v45 = vor.u32 %v1074_v39, %v1071_v37  ;;  %v2359_v48 = vcombine.low %v286_v40, %v300_v44  ;;  %v304_v14 = vrot.slane %v302_v3, 4  ;;  %v307_v17 = vrot.slane %v305_v4, 5 }
  0x26   : > { %v1090_v52 = vrot.slane %v1089_v49, 4  ;;  %v313_v18 = vrot.slane %v311_v5, 5  ;;  %v327_v22 = vrot.slane %v325_v8, 5  ;;  %v1097_v27 = vshrl.u32 %v2462_v23, 16  ;;  %v2466_v5 = vld [vmem:[%s3267_s14 + $0x38] sm:$0xf] }
  0x27   : > { %v1076_v50 = vrot.slane %v1075_v45, 4  ;;  %2818 = vmatmul.mubr.bf16.vlgmr.msra.gmra.mrb[0].mxu1 %v2359_v48  ;;  %v1100_v28 = vshll.u32 %v2462_v23, 16  ;;  %v1106_v33 = vshll.u32 %v3411_v24, 16  ;;  %v1111_v35 = vshrl.u32 %v2464_v25, 16 }
  0x28   : > { %2826 = vmatpush3.bf16.msra.mxu1 %v3122_v63  ;;  %v1095_v58 = vsel %vm3312_vm2, %v1090_v52, %v1094_v47  ;;  %v3388_v63 = vld [vmem:[%s3267_s14 + $0x28] sm:$0xf]  ;;  %v1114_v36 = vshll.u32 %v2464_v25, 16  ;;  %v1099_v39 = vrot.slane %v1097_v27, 4  ;;  %v1120_v41 = vshll.u32 %v3415_v26, 16 }
  0x29   : > { %v1081_v53 = vsel %vm3312_vm2, %v1076_v50, %v1080_v46  ;;  %2827 = vmatprep.subr.bf16.mxu1 %v3124_v43  ;;  %v316_v6 = vshrl.u32 %v3388_v63, 16  ;;  %v319_v7 = vshll.u32 %v3388_v63, 16  ;;  %v1102_v40 = vrot.slane %v1100_v28, 5  ;;  %v3426_v46 = vld [vmem:[%s3267_s14 + $0x30] sm:$0xf] }
  0x2a   : > { %v2487_v61 = vcombine.low %v1081_v53, %v1095_v58  ;;  %v1113_v44 = vrot.slane %v1111_v35, 4  ;;  %v1116_v45 = vrot.slane %v1114_v36, 5  ;;  %v1122_v49 = vrot.slane %v1120_v41, 5  ;;  %v3431_v50 = vld [vmem:[%s3267_s14 + $0x38] sm:$0xf] }
  0x2b   : > { %v318_v19 = vrot.slane %v316_v6, 4  ;;  %v321_v20 = vrot.slane %v319_v7, 5  ;;  %v1103_v48 = vor.u32 %v1102_v40, %v1099_v39  ;;  %v3434_v52 = vld [vmem:[%s3267_s14 + $0x34] sm:$0x1]  ;;  %v330_v53 = vshrl.u32 %v3426_v46, 16  ;;  %v3132_v6 = vld [vmem:[%s3800_s1 + $0x28] sm:$0xff]  }
  0x2c   : > { %2914 = vmatmul.mubr.bf16.vlgmr.msra.gmra.mrb[0].mxu0 %v2487_v61  ;;  %2828 = vmatpush3.bf16.msra.mxu1 %v3124_v43  ;;  %v1108_v43 = vrot.slane %v1106_v33, 5  ;;  %v3443_v61 = vld [vmem:[%s3267_s14 + $0x3c] sm:$0x1]  ;;  %v333_v3 = vshll.u32 %v3426_v46, 16  ;;  %v339_v4 = vshll.u32 %v3434_v52, 16  ;;  %v1125_v28 = vshrl.u32 %v2466_v5, 16 }
  0x2d   : > { %2922 = vmatpush3.bf16.msra.mxu0 %v3344_v1  ;;  %2829 = vmatprep.subr.bf16.mxu1 %v3126_v59  ;;  %v308_v1 = vor.u32 %v307_v17, %v304_v14  ;;  %v322_v32 = vor.u32 %v321_v20, %v318_v19  ;;  %v1104_v8 = vrot.slane %v1103_v48, 4  ;;  %v344_v14 = vshrl.u32 %v3431_v50, 16  ;;  %v3453_v17 = vld [vmem:[%s3267_s14 + $0x3c] sm:$0x1]  ;;  %v3461_v27 = vld [vmem:[%s3267_s14 + $0x44] sm:$0x1] }
  0x2e   : > { %2923 = vmatprep.subr.bf16.mxu0 %v3125_v54  ;;  %v335_v19 = vrot.slane %v333_v3, 5  ;;  %v341_v20 = vrot.slane %v339_v4, 5  ;;  %v353_v25 = vshll.u32 %v3443_v61, 16  ;;  %v1128_v36 = vshll.u32 %v2466_v5, 16 }
  0x2f   : > { %v309_v37 = vrot.slane %v308_v1, 4  ;;  %v323_v42 = vrot.slane %v322_v32, 4  ;;  %v1109_v23 = vsel %vm3312_vm2, %v1104_v8, %v1108_v43  ;;  %v346_v1 = vrot.slane %v344_v14, 4 }
  0x30   : > { %2830 = vmatpush3.bf16.msra.mxu1 %v3126_v59  ;;  %v1117_v59 = vor.u32 %v1116_v45, %v1113_v44  ;;  %v355_v40 = vrot.slane %v353_v25, 5  ;;  %v1127_v41 = vrot.slane %v1125_v28, 4  ;;  %v1130_v45 = vrot.slane %v1128_v36, 5  ;;  %v2500_v25 = vld [vmem:[%s3267_s14 + $0x18] sm:$0xe] }
  0x31   : > { %2924 = vmatpush3.bf16.msra.mxu0 %v3125_v54  ;;  %2831 = vmatprep.subr.bf16.mxu1 %v3128_v10  ;;  %v314_v47 = vsel %vm3312_vm2, %v309_v37, %v313_v18  ;;  %v3131_v54 = vld [vmem:[%s3800_s1 + $0x160] sm:$0xff]   ;;  %v328_v58 = vsel %vm3312_vm2, %v323_v42, %v327_v22  ;;  %v347_v22 = vshll.u32 %v3431_v50, 16  ;;  %v3134_v37 = vld [vmem:[%s3800_s1 + $0x30] sm:$0xff]   ;;  %v1134_v42 = vshll.u32 %v3453_v17, 16  ;;  %v3137_v28 = vld [vmem:[%s3800_s1 + $0x178] sm:$0xff]  }
  0x32   : > { %2925 = vmatprep.subr.bf16.mxu0 %v3127_v9  ;;  %v2360_v7 = vcombine.low %v314_v47, %v328_v58  ;;  %v1118_v18 = vrot.slane %v1117_v59, 4  ;;  %v1336_v47 = vrot.slane %v3305_v34, 5  ;;  %v1340_v48 = vrot.slane %v3355_v16, 5  ;;  %v3135_v58 = vld [vmem:[%s3800_s1 + $0x170] sm:$0xff]  }
  0x33   : > { %v349_v35 = vrot.slane %v347_v22, 5  ;;  %v1131_v4 = vor.u32 %v1130_v45, %v1127_v41  ;;  %v1136_v34 = vrot.slane %v1134_v42, 5  ;;  %v1344_v22 = vrot.slane %v3361_v21, 5  ;;  %v3140_v41 = vld [vmem:[%s3800_s1 + $0x180] sm:$0xff]  }
  0x34   : > { %2832 = vmatpush3.bf16.msra.mxu1 %v3128_v10  ;;  %v332_v10 = vrot.slane %v330_v53, 4  ;;  %2821 = vmatprep.mubr.bf16.mxu1 %v2360_v7  ;;  %v1123_v32 = vsel %vm3312_vm2, %v1118_v18, %v1122_v49  ;;  %v1148_v53 = vshll.u32 %v3461_v27, 16  ;;  %v2498_v7 = vld [vmem:[%s3267_s14 + $0x8] sm:$0xe]  ;;  %v2508_v36 = vrot.slane %v2500_v25, 9 }
  0x35   : > { %2926 = vmatpush3.bf16.msra.mxu0 %v3127_v9  ;;  %2833 = vmatprep.subr.bf16.mxu1 %v3130_v30  ;;  %v2468_v9 = vld [vmem:[%s3267_s14 + $0x40] sm:$0xf]  ;;  %v2488_v39 = vcombine.low %v1109_v23, %v1123_v32  ;;  %v350_v44 = vor.u32 %v349_v35, %v346_v1  ;;  %v2506_v14 = vrot.slane %v2498_v7, 9  ;;  %v1132_v18 = vrot.slane %v1131_v4, 4 }
  0x36   : > { %2927 = vmatprep.subr.bf16.mxu0 %v3129_v29  ;;  %v336_v33 = vor.u32 %v335_v19, %v332_v10  ;;  %v1142_v49 = vshll.u32 %v2468_v9, 16  ;;  %v2499_v10 = vld [vmem:[%s3267_s14 + $0x10] sm:$0xe]  ;;  %v2370_v19 = vcombine.low %v3273_v11, %v3276_v12  ;;  %v1150_v1 = vrot.slane %v1148_v53, 5  ;;  %v2501_v12 = vld [vmem:[%s3267_s14 + $0x20] sm:$0xe] }
  0x37   : > { %2917 = vmatprep.mubr.bf16.mxu0 %v2488_v39  ;;  %v351_v3 = vrot.slane %v350_v44, 4  ;;  %v1333_v32 = vsel %vm3486_vm5, %v2506_v14, %v1332_v57  ;;  %v1137_v21 = vsel %vm3312_vm2, %v1132_v18, %v1136_v34  ;;  %v3139_v35 = vld [vmem:[%s3800_s1 + $0x80] sm:$0xff]   ;;  %v1341_v42 = vsel %vm3486_vm5, %v2508_v36, %v1340_v48  ;;  %v3144_v44 = vld [vmem:[%s3800_s1 + $0x90] sm:$0xff]  }
  0x38   : > { %2834 = vmatpush3.bf16.msra.mxu1 %v3130_v30  ;;  %v3133_v30 = vld [vmem:[%s3800_s1 + $0x168] sm:$0xff]   ;;  %v337_v43 = vrot.slane %v336_v33, 4  ;;  %v1144_v16 = vrot.slane %v1142_v49, 5  ;;  %v1348_v45 = vrot.slane %v3411_v24, 5  ;;  %v1356_v53 = vrot.slane %v3453_v17, 5  ;;  %v3148_v18 = vld [vmem:[%s3800_s1 + $0xa0] sm:$0xff]  }
  0x39   : > { %2928 = vmatpush3.bf16.msra.mxu0 %v3129_v29  ;;  %2835 = vmatprep.subr.bf16.mxu1 %v3132_v6  ;;  %v1139_v29 = vshrl.u32 %v2468_v9, 16  ;;  %v1360_v24 = vrot.slane %v3461_v27, 5  ;;  %v673_v34 = vrot.slane %v3285_v15, 5  ;;  %v677_v17 = vrot.slane %v3330_v56, 5  ;;  %v641_v15 = vld [vmem:[%s3267_s14 + $0x8] sm:$0xe] }
  0x3a   : > { %2929 = vmatprep.subr.bf16.mxu0 %v3131_v54  ;;  %v342_v59 = vsel %vm3312_vm2, %v337_v43, %v341_v20  ;;  %v2507_v20 = vrot.slane %v2499_v10, 9  ;;  %v3142_v43 = vld [vmem:[%s3800_s1 + $0x88] sm:$0xff]   ;;  %v3145_v10 = vld [vmem:[%s3800_s1 + $0x190] sm:$0xff]   ;;  %v2383_v14 = vrot.slane %v641_v15, 9  ;;  %v685_v36 = vrot.slane %v3391_v0, 5  ;;  %v3158_v0 = vld [vmem:[%s3800_s1 + $0xc0] sm:$0xff]  }
  0x3b   : > { %v1141_v5 = vrot.slane %v1139_v29, 4  ;;  %v1352_v29 = vrot.slane %v3415_v26, 5  ;;  %v2373_v26 = vcombine.low %v3426_v46, %v3431_v50  ;;  %v3146_v46 = vld [vmem:[%s3800_s1 + $0x98] sm:$0xff]   ;;  %v3163_v15 = vld [vmem:[%s3800_s1 + $0x1c8] sm:$0xff]  }
  0x3c   : > { %2836 = vmatpush3.bf16.msra.mxu1 %v3132_v6  ;;  %v3136_v6 = vld [vmem:[%s3800_s1 + $0x38] sm:$0xff]   ;;  %v1337_v11 = vsel %vm3486_vm5, %v2507_v20, %v1336_v47 }
  0x3d   : > { %2930 = vmatpush3.bf16.msra.mxu0 %v3131_v54  ;;  %2837 = vmatprep.subr.bf16.mxu1 %v3134_v37  ;;  %v356_v54 = vsel %vm3312_vm2, %v351_v3, %v355_v40  ;;  %v1145_v23 = vor.u32 %v1144_v16, %v1141_v5  ;;  %v2530_v57 = vcombine.low %v1333_v32, %v1337_v11  ;;  %v640_v16 = vld [vmem:[%s3267_s14] sm:$0xe]  ;;  %v3147_v20 = vld [vmem:[%s3800_s1 + $0x198] sm:$0xff]  }
  0x3e   : > { %2931 = vmatprep.subr.bf16.mxu0 %v3133_v30  ;;  %v2361_v9 = vcombine.low %v342_v59, %v356_v54  ;;  %v2371_v40 = vcombine.low %v3322_v51, %v3327_v55  ;;  %v2372_v51 = vcombine.low %v3385_v62, %v3388_v63  ;;  %v669_v55 = vrot.slane %v3279_v13, 5  ;;  %v3143_v62 = vld [vmem:[%s3800_s1 + $0x188] sm:$0xff]   ;;  %v2503_v63 = vld [vmem:[%s3267_s14 + $0x30] sm:$0xe]  ;;  %v2505_v59 = vld [vmem:[%s3267_s14 + $0x40] sm:$0xe] }
  0x3f   : > { %v1146_v33 = vrot.slane %v1145_v23, 4  ;;  %v2502_v13 = vld [vmem:[%s3267_s14 + $0x28] sm:$0xe]  ;;  %v2511_v49 = vrot.slane %v2503_v63, 9  ;;  %v2513_v7 = vrot.slane %v2505_v59, 9  ;;  %v2382_v56 = vrot.slane %v640_v16, 9 }
  0x40   : > { %2838 = vmatpush3.bf16.msra.mxu1 %v3134_v37  ;;  %v2509_v37 = vrot.slane %v2501_v12, 9  ;;  %v2510_v48 = vrot.slane %v2502_v13, 9  ;;  %v681_v54 = vrot.slane %v3335_v60, 5  ;;  %v642_v23 = vld [vmem:[%s3267_s14 + $0x10] sm:$0xe] }
  0x41   : > { %2932 = vmatpush3.bf16.msra.mxu0 %v3133_v30  ;;  %2822 = vmatmul.mubr.bf16.gmra.mrb[4].mxu1 %v2361_v9  ;;  %v1151_v31 = vsel %vm3312_vm2, %v1146_v33, %v1150_v1  ;;  %v1353_v4 = vsel %vm3486_vm5, %v2511_v49, %v1352_v29  ;;  %v674_v9 = vsel %vm3486_vm5, %v2383_v14, %v673_v34  ;;  %v643_v60 = vld [vmem:[%s3267_s14 + $0x18] sm:$0xe]  ;;  %v2384_v25 = vrot.slane %v642_v23, 9  ;;  %v3150_v33 = vld [vmem:[%s3800_s1 + $0xa8] sm:$0xff]  }
  0x42   : > { %2933 = vmatprep.subr.bf16.mxu0 %v3135_v58  ;;  %2839 = vmatprep.subr.bf16.mxu1 %v3136_v6  ;;  %v2489_v39 = vcombine.low %v1137_v21, %v1151_v31  ;;  %v1345_v30 = vsel %vm3486_vm5, %v2509_v37, %v1344_v22  ;;  %v1349_v3 = vsel %vm3486_vm5, %v2510_v48, %v1348_v45  ;;  %v3159_v32 = vld [vmem:[%s3267_s14 + $0x10] ss:$8 sps:$4 sm:$0xff]   ;;  %v693_v29 = vrot.slane %v3434_v52, 5  ;;  %v3162_v49 = vld [vmem:[%s3800_s1 + $0xc8] sm:$0xff]  }
  0x43   : > { %2841 = vmatprep.mubr.bf16.mxu1 %v2370_v19  ;;  %v2531_v47 = vcombine.low %v1341_v42, %v1345_v30  ;;  %v2532_v27 = vcombine.low %v1349_v3, %v1353_v4  ;;  %v670_v19 = vsel %vm3486_vm5, %v2382_v56, %v669_v55  ;;  %v678_v11 = vsel %vm3486_vm5, %v2384_v25, %v677_v17  ;;  %v3153_v31 = vld [vmem:[%s3800_s1 + $0xb0] sm:$0xff]   ;;  %v3156_v37 = vld [vmem:[%s3800_s1 + $0xb8] sm:$0xff]   ;;  %v2584_v25 = vld [vmem:[%s3267_s14 + $0x28] sm:$0xf] }
  0x44   : > { %2840 = vmatpush3.bf16.msra.mxu1 %v3136_v6  ;;  %2918 = vmatmul.mubr.bf16.gmra.mrb[4].mxu0 %v2489_v39  ;;  %v1361_v6 = vsel %vm3486_vm5, %v2513_v7, %v1360_v24  ;;  %v2406_v1 = vcombine.low %v670_v19, %v674_v9  ;;  %v644_v39 = vld [vmem:[%s3267_s14 + $0x20] sm:$0xe]  ;;  %v3157_v45 = vld [vmem:[%s3800_s1 + $0x1b8] sm:$0xff]   ;;  %v3625_v24 = vld [vmem:[%s3267_s14 + $0x14] sm:$0x1] }
  0x45   : > { %2934 = vmatpush3.bf16.msra.mxu0 %v3135_v58  ;;  %2849 = vmatprep.subr.bf16.mxu1 %v3139_v35  ;;  %v2504_v58 = vld [vmem:[%s3267_s14 + $0x38] sm:$0xe]  ;;  %v2386_v42 = vrot.slane %v644_v39, 9  ;;  %v1713_v59 = vshll.u32 %v3625_v24, 16  ;;  %v3161_v7 = vld [vmem:[%s3267_s14 + $0x20] ss:$8 sps:$4 sm:$0xff]  }
  0x46   : > { %2935 = vmatprep.subr.bf16.mxu0 %v3137_v28  ;;  %2937 = vmatprep.mubr.bf16.mxu0 %v2530_v57  ;;  %v2512_v5 = vrot.slane %v2504_v58, 9  ;;  %v3151_v57 = vld [vmem:[%s3800_s1 + $0x1a8] sm:$0xff]   ;;  %v2580_v52 = vld [vmem:[%s3267_s14 + $0x18] sm:$0xf]  ;;  %v3165_v9 = vld [vmem:[%s3800_s1 + $0x1d0] sm:$0xff]  }
  0x47   : > { %v1718_v3 = vshrl.u32 %v2580_v52, 16  ;;  %v1721_v4 = vshll.u32 %v2580_v52, 16  ;;  %v3172_v56 = vld [vmem:[%s3267_s14 + $0x30] ss:$8 sps:$4 sm:$0xff]   ;;  %v3171_v52 = vld [vmem:[%s3800_s1 + $0x1e8] sm:$0xff]  }
  0x48   : > { %v1357_v50 = vsel %vm3486_vm5, %v2512_v5, %v1356_v53  ;;  %v2578_v53 = vld [vmem:[%s3267_s14 + $0x10] sm:$0xf]  ;;  %v3166_v23 = vld [vmem:[%s3800_s1 + $0xd8] sm:$0xff]  }
  0x49   : > { %2936 = vmatpush3.bf16.msra.mxu0 %v3137_v28  ;;  %2842 = vmatmul.mubr.bf16.vlgmr.msra.gmra.mrb[0].mxu1 %v2371_v40  ;;  %v2533_v22 = vcombine.low %v1357_v50, %v1361_v6  ;;  %v2385_v28 = vrot.slane %v643_v60, 9  ;;  %v645_v40 = vld [vmem:[%s3267_s14 + $0x28] sm:$0xe]  ;;  %v1707_v58 = vshll.u32 %v2578_v53, 16  ;;  %v1720_v50 = vrot.slane %v1718_v3, 4 }
  0x4a   : > { %2945 = vmatprep.subr.bf16.mxu0 %v3140_v41  ;;  %2850 = vmatpush3.bf16.msra.mxu1 %v3139_v35  ;;  %v3149_v35 = vld [vmem:[%s3800_s1 + $0x1a0] sm:$0xff]   ;;  %v2387_v30 = vrot.slane %v645_v40, 9  ;;  %v1723_v6 = vrot.slane %v1721_v4, 5 }
  0x4b   : > { %2851 = vmatprep.subr.bf16.mxu1 %v3142_v43  ;;  %2845 = vmatprep.mubr.bf16.mxu1 %v2372_v51  ;;  %v682_v12 = vsel %vm3486_vm5, %v2385_v28, %v681_v54  ;;  %v646_v51 = vld [vmem:[%s3267_s14 + $0x30] sm:$0xe]  ;;  %v1709_v16 = vrot.slane %v1707_v58, 5  ;;  %v1715_v54 = vrot.slane %v1713_v59, 5 }
  0x4c   : > { %2938 = vmatmul.mubr.bf16.vlgmr.msra.gmra.mrb[0].mxu0 %v2531_v47  ;;  %v2407_v21 = vcombine.low %v678_v11, %v682_v12  ;;  %v697_v47 = vrot.slane %v3443_v61, 5  ;;  %v2388_v63 = vrot.slane %v646_v51, 9  ;;  %v3629_v61 = vld [vmem:[%s3267_s14 + $0x1c] sm:$0x1]  ;;  %v3174_v11 = vld [vmem:[%s3267_s14 + $0x40] ss:$8 sps:$4 sm:$0xff]  }
  0x4d   : > { %2946 = vmatpush3.bf16.msra.mxu0 %v3140_v41  ;;  %2941 = vmatprep.mubr.bf16.mxu0 %v2532_v27  ;;  %v689_v41 = vrot.slane %v3394_v2, 5  ;;  %v686_v2 = vsel %vm3486_vm5, %v2386_v42, %v685_v36  ;;  %v1727_v5 = vshll.u32 %v3629_v61, 16  ;;  %v2586_v12 = vld [vmem:[%s3267_s14 + $0x30] sm:$0xf]  ;;  %v1749_v36 = vshll.u32 %v2584_v25, 16 }
  0x4e   : > { %2852 = vmatpush3.bf16.msra.mxu1 %v3142_v43  ;;  %2947 = vmatprep.subr.bf16.mxu0 %v3143_v62  ;;  %v3154_v43 = vld [vmem:[%s3800_s1 + $0x1b0] sm:$0xff]   ;;  %v694_v34 = vsel %vm3486_vm5, %v2388_v63, %v693_v29  ;;  %v1760_v40 = vshrl.u32 %v2586_v12, 16  ;;  %v3674_v51 = vld [vmem:[%s3267_s14 + $0x24] sm:$0x1] }
  0x4f   : > { %2853 = vmatprep.subr.bf16.mxu1 %v3144_v44  ;;  %v690_v55 = vsel %vm3486_vm5, %v2387_v30, %v689_v41  ;;  %v1729_v19 = vrot.slane %v1727_v5, 5  ;;  %v1763_v41 = vshll.u32 %v2586_v12, 16  ;;  %v1751_v29 = vrot.slane %v1749_v36, 5  ;;  %v2592_v5 = vld [vmem:[%s3267_s14 + $0x48] sm:$0xf]  ;;  %v3177_v12 = vld [vmem:[%s3800_s1 + $0x1f8] sm:$0xff]  }
  0x50   : > { %v2408_v13 = vcombine.low %v686_v2, %v690_v55  ;;  %v3677_v2 = vld [vmem:[%s3267_s14 + $0x2c] sm:$0x1]  ;;  %v1741_v58 = vshll.u32 %v3674_v51, 16 }
  0x51   : > { %2846 = vmatmul.mubr.bf16.gmra.mrb[4].mxu1 %v2373_v26  ;;  %2948 = vmatpush3.bf16.msra.mxu0 %v3143_v62  ;;  %v3160_v62 = vld [vmem:[%s3800_s1 + $0x1c0] sm:$0xff]   ;;  %v1704_v26 = vshrl.u32 %v2578_v53, 16  ;;  %v1765_v63 = vrot.slane %v1763_v41, 5  ;;  %v1755_v59 = vshll.u32 %v3677_v2, 16 }
  0x52   : > { %2854 = vmatpush3.bf16.msra.mxu1 %v3144_v44  ;;  %2949 = vmatprep.subr.bf16.mxu0 %v3145_v10  ;;  %v647_v44 = vld [vmem:[%s3267_s14 + $0x38] sm:$0xe]  ;;  %v2590_v53 = vld [vmem:[%s3267_s14 + $0x40] sm:$0xf] }
  0x53   : > { %2855 = vmatprep.subr.bf16.mxu1 %v3146_v46  ;;  %2865 = vmatprep.mubr.bf16.mxu1 %v2406_v1  ;;  %v2389_v48 = vrot.slane %v647_v44, 9  ;;  %v1706_v27 = vrot.slane %v1704_v26, 4  ;;  %v2582_v1 = vld [vmem:[%s3267_s14 + $0x20] sm:$0xf]  ;;  %v3173_v26 = vld [vmem:[%s3800_s1 + $0xf0] sm:$0xff]  }
  0x54   : > { %2942 = vmatmul.mubr.bf16.gmra.mrb[4].mxu0 %v2533_v22 }
  0x55   : > { %2950 = vmatpush3.bf16.msra.mxu0 %v3145_v10  ;;  %2961 = vmatprep.mubr.bf16.mxu0 %v3159_v32  ;;  %v698_v17 = vsel %vm3486_vm5, %v2389_v48, %v697_v47  ;;  %v1710_v10 = vor.u32 %v1709_v16, %v1706_v27  ;;  %v3680_v47 = vld [vmem:[%s3267_s14 + $0x34] sm:$0x1]  ;;  %v1791_v27 = vshll.u32 %v2590_v53, 16 }
  0x56   : > { %2856 = vmatpush3.bf16.msra.mxu1 %v3146_v46  ;;  %2951 = vmatprep.subr.bf16.mxu0 %v3147_v20  ;;  %v3164_v46 = vld [vmem:[%s3800_s1 + $0xd0] sm:$0xff]   ;;  %v2409_v14 = vcombine.low %v694_v34, %v698_v17  ;;  %v1769_v3 = vshll.u32 %v3680_v47, 16  ;;  %v1788_v17 = vshrl.u32 %v2590_v53, 16  ;;  %v2623_v53 = vld [vmem:[%s3267_s14 + $0x18] sm:$0xe] }
  0x57   : > { %2857 = vmatprep.subr.bf16.mxu1 %v3148_v18  ;;  %v1711_v22 = vrot.slane %v1710_v10, 4 }
  0x59   : > { %2952 = vmatpush3.bf16.msra.mxu0 %v3147_v20  ;;  %v3178_v20 = vld [vmem:[%s3267_s14 + $0x8] ss:$8 sps:$4 sm:$0xff]   ;;  %v1716_v28 = vsel %vm3312_vm2, %v1711_v22, %v1715_v54 }
  0x5a   : > { %2858 = vmatpush3.bf16.msra.mxu1 %v3148_v18  ;;  %2953 = vmatprep.subr.bf16.mxu0 %v3149_v35  ;;  %v1724_v18 = vor.u32 %v1723_v6, %v1720_v50  ;;  %v1802_v50 = vshrl.u32 %v2592_v5, 16  ;;  %v1805_v6 = vshll.u32 %v2592_v5, 16  ;;  %v2631_v5 = vrot.slane %v2623_v53, 9 }
  0x5b   : > { %2859 = vmatprep.subr.bf16.mxu1 %v3150_v33 }
  0x5c   : > { %v1725_v60 = vrot.slane %v1724_v18, 4  ;;  %v1757_v18 = vrot.slane %v1755_v59, 5  ;;  %v3183_v59 = vld [vmem:[%s3267_s14 + $0x38] ss:$8 sps:$4 sm:$0xff]  }
  0x5d   : > { %2954 = vmatpush3.bf16.msra.mxu0 %v3149_v35  ;;  %v1732_v35 = vshrl.u32 %v2582_v1, 16 }
  0x5e   : > { %2860 = vmatpush3.bf16.msra.mxu1 %v3150_v33  ;;  %2955 = vmatprep.subr.bf16.mxu0 %v3151_v57  ;;  %v1730_v32 = vsel %vm3312_vm2, %v1725_v60, %v1729_v19  ;;  %v3168_v33 = vld [vmem:[%s3800_s1 + $0xe0] sm:$0xff]   ;;  %v3707_v60 = vld [vmem:[%s3267_s14 + $0x4c] sm:$0x1] }
  0x5f   : > { %2861 = vmatprep.subr.bf16.mxu1 %v3153_v31  ;;  %v2610_v39 = vcombine.low %v1716_v28, %v1730_v32  ;;  %v1734_v55 = vrot.slane %v1732_v35, 4  ;;  %v1804_v28 = vrot.slane %v1802_v50, 4  ;;  %v1807_v32 = vrot.slane %v1805_v6, 5  ;;  %v3179_v35 = vld [vmem:[%s3267_s14 + $0x18] ss:$8 sps:$4 sm:$0xff]   ;;  %v3187_v6 = vld [vmem:[%s3800_s1 + $0x228] sm:$0xff]  }
  0x61   : > { %2956 = vmatpush3.bf16.msra.mxu0 %v3151_v57  ;;  %v1746_v57 = vshrl.u32 %v2584_v25, 16  ;;  %v1793_v25 = vrot.slane %v1791_v27, 5 }
  0x62   : > { %2862 = vmatpush3.bf16.msra.mxu1 %v3153_v31  ;;  %2957 = vmatprep.subr.bf16.mxu0 %v3154_v43  ;;  %v1735_v31 = vshll.u32 %v2582_v1, 16  ;;  %v1790_v1 = vrot.slane %v1788_v17, 4 }
  0x63   : > { %2863 = vmatprep.subr.bf16.mxu1 %v3156_v37 }
  0x64   : > { %v1737_v44 = vrot.slane %v1735_v31, 5 }
  0x65   : > { %2958 = vmatpush3.bf16.msra.mxu0 %v3154_v43  ;;  %v3169_v43 = vld [vmem:[%s3800_s1 + $0x1e0] sm:$0xff]  }
  0x66   : > { %2864 = vmatpush3.bf16.msra.mxu1 %v3156_v37  ;;  %2959 = vmatprep.subr.bf16.mxu0 %v3157_v45  ;;  %v3167_v37 = vld [vmem:[%s3800_s1 + $0x1d8] sm:$0xff]  }
  0x67   : > { %2873 = vmatprep.subr.bf16.mxu1 %v3158_v0 }
  0x69   : > { %2866 = vmatmul.mubr.bf16.vlgmr.msra.gmra.mrb[0].mxu1 %v2407_v21  ;;  %2960 = vmatpush3.bf16.msra.mxu0 %v3157_v45  ;;  %v2588_v21 = vld [vmem:[%s3267_s14 + $0x38] sm:$0xf]  ;;  %v1748_v45 = vrot.slane %v1746_v57, 4 }
  0x6a   : > { %2874 = vmatpush3.bf16.msra.mxu1 %v3158_v0  ;;  %2869 = vmatprep.mubr.bf16.mxu1 %v2408_v13  ;;  %v1774_v42 = vshrl.u32 %v2588_v21, 16  ;;  %v1777_v30 = vshll.u32 %v2588_v21, 16  ;;  %v3170_v0 = vld [vmem:[%s3800_s1 + $0xe8] sm:$0xff]   ;;  %v1762_v13 = vrot.slane %v1760_v40, 4  ;;  %v2626_v21 = vld [vmem:[%s3267_s14 + $0x30] sm:$0xe] }
  0x6b   : > { %2875 = vmatprep.subr.bf16.mxu1 %v3162_v49  ;;  %2969 = vmatprep.subr.bf16.mxu0 %v3160_v62  ;;  %v1752_v34 = vor.u32 %v1751_v29, %v1748_v45 }
  0x6c   : > { %2962 = vmatmul.mubr.bf16.vlgmr.msra.gmra.mrb[0].mxu0 %v3161_v7  ;;  %v1776_v48 = vrot.slane %v1774_v42, 4  ;;  %v1738_v7 = vor.u32 %v1737_v44, %v1734_v55  ;;  %v1766_v16 = vor.u32 %v1765_v63, %v1762_v13  ;;  %v1794_v42 = vor.u32 %v1793_v25, %v1790_v1 }
  0x6d   : > { %2970 = vmatpush3.bf16.msra.mxu0 %v3160_v62  ;;  %2965 = vmatprep.mubr.bf16.mxu0 %v3172_v56  ;;  %v3683_v62 = vld [vmem:[%s3267_s14 + $0x3c] sm:$0x1]  ;;  %v3175_v56 = vld [vmem:[%s3800_s1 + $0x1f0] sm:$0xff]   ;;  %v1753_v54 = vrot.slane %v1752_v34, 4  ;;  %v2011_v55 = vrot.slane %v3680_v47, 5  ;;  %v2003_v25 = vrot.slane %v3674_v51, 5 }
  0x6e   : > { %2876 = vmatpush3.bf16.msra.mxu1 %v3162_v49  ;;  %2971 = vmatprep.subr.bf16.mxu0 %v3163_v15  ;;  %v1779_v49 = vrot.slane %v1777_v30, 5  ;;  %v1783_v4 = vshll.u32 %v3683_v62, 16  ;;  %v1739_v10 = vrot.slane %v1738_v7, 4  ;;  %v1767_v19 = vrot.slane %v1766_v16, 4  ;;  %v3185_v16 = vld [vmem:[%s3800_s1 + $0x218] sm:$0xff]  }
  0x6f   : > { %2877 = vmatprep.subr.bf16.mxu1 %v3164_v46  ;;  %v1758_v57 = vsel %vm3312_vm2, %v1753_v54, %v1757_v18  ;;  %v1808_v30 = vor.u32 %v1807_v32, %v1804_v28  ;;  %v2015_v45 = vrot.slane %v3683_v62, 5  ;;  %v1999_v7 = vrot.slane %v3629_v61, 5 }
  0x70   : > { %v2023_v54 = vrot.slane %v3707_v60, 5  ;;  %v2007_v32 = vrot.slane %v3677_v2, 5 }
  0x71   : > { %2870 = vmatmul.mubr.bf16.gmra.mrb[4].mxu1 %v2409_v14  ;;  %2972 = vmatpush3.bf16.msra.mxu0 %v3163_v15  ;;  %v3176_v15 = vld [vmem:[%s3800_s1 + $0xf8] sm:$0xff]   ;;  %v1743_v14 = vrot.slane %v1741_v58, 5  ;;  %v3184_v58 = vld [vmem:[%s3800_s1 + $0x210] sm:$0xff]   ;;  %v2000_v61 = vsel %vm3486_vm5, %v2631_v5, %v1999_v7 }
  0x72   : > { %2878 = vmatpush3.bf16.msra.mxu1 %v3164_v46  ;;  %2889 = vmatprep.mubr.bf16.mxu1 %v3178_v20  ;;  %v1780_v46 = vor.u32 %v1779_v49, %v1776_v48  ;;  %v1771_v20 = vrot.slane %v1769_v3, 5  ;;  %v2622_v49 = vld [vmem:[%s3267_s14 + $0x10] sm:$0xe] }
  0x73   : > { %2879 = vmatprep.subr.bf16.mxu1 %v3166_v23  ;;  %2973 = vmatprep.subr.bf16.mxu0 %v3165_v9  ;;  %v1744_v31 = vsel %vm3312_vm2, %v1739_v10, %v1743_v14  ;;  %v2630_v3 = vrot.slane %v2622_v49, 9  ;;  %v2629_v10 = vld [vmem:[%s3267_s14 + $0x48] sm:$0xe] }
  0x74   : > { %2966 = vmatmul.mubr.bf16.gmra.mrb[4].mxu0 %v3174_v11  ;;  %v1781_v22 = vrot.slane %v1780_v46, 4  ;;  %v3180_v11 = vld [vmem:[%s3800_s1 + $0x200] sm:$0xff]   ;;  %v1772_v40 = vsel %vm3312_vm2, %v1767_v19, %v1771_v20  ;;  %v2611_v29 = vcombine.low %v1744_v31, %v1758_v57  ;;  %v2637_v19 = vrot.slane %v2629_v10, 9  ;;  %v3189_v20 = vld [vmem:[%s3800_s1 + $0x238] sm:$0xff]  }
  0x75   : > { %2974 = vmatpush3.bf16.msra.mxu0 %v3165_v9  ;;  %2985 = vmatprep.mubr.bf16.mxu0 %v2610_v39  ;;  %v1785_v9 = vrot.slane %v1783_v4, 5  ;;  %v3182_v39 = vld [vmem:[%s3267_s14 + $0x28] ss:$8 sps:$4 sm:$0xff]   ;;  %v1995_v4 = vrot.slane %v3625_v24, 5 }
  0x76   : > { %2880 = vmatpush3.bf16.msra.mxu1 %v3166_v23  ;;  %2975 = vmatprep.subr.bf16.mxu0 %v3167_v37  ;;  %v3704_v23 = vld [vmem:[%s3267_s14 + $0x44] sm:$0x1] }
  0x77   : > { %2881 = vmatprep.subr.bf16.mxu1 %v3168_v33  ;;  %v1797_v36 = vshll.u32 %v3704_v23, 16  ;;  %v1786_v41 = vsel %vm3312_vm2, %v1781_v22, %v1785_v9  ;;  %v1996_v24 = vsel %vm3486_vm5, %v2630_v3, %v1995_v4  ;;  %v2019_v14 = vrot.slane %v3704_v23, 5  ;;  %v2624_v22 = vld [vmem:[%s3267_s14 + $0x20] sm:$0xe]  ;;  %v2625_v9 = vld [vmem:[%s3267_s14 + $0x28] sm:$0xe] }
  0x78   : > { %v2612_v13 = vcombine.low %v1772_v40, %v1786_v41  ;;  %v2654_v50 = vcombine.low %v1996_v24, %v2000_v61  ;;  %v2024_v23 = vsel %vm3486_vm5, %v2637_v19, %v2023_v54  ;;  %v2633_v28 = vrot.slane %v2625_v9, 9 }
  0x79   : > { %2976 = vmatpush3.bf16.msra.mxu0 %v3167_v37  ;;  %v1811_v37 = vshll.u32 %v3707_v60, 16  ;;  %v1799_v63 = vrot.slane %v1797_v36, 5  ;;  %v2632_v60 = vrot.slane %v2624_v22, 9 }
  0x7a   : > { %2882 = vmatpush3.bf16.msra.mxu1 %v3168_v33  ;;  %2977 = vmatprep.subr.bf16.mxu0 %v3169_v43  ;;  %v2627_v33 = vld [vmem:[%s3267_s14 + $0x38] sm:$0xe] }
  0x7b   : > { %2883 = vmatprep.subr.bf16.mxu1 %v3170_v0  ;;  %v2635_v44 = vrot.slane %v2627_v33, 9  ;;  %v1813_v48 = vrot.slane %v1811_v37, 5 }
  0x7d   : > { %2978 = vmatpush3.bf16.msra.mxu0 %v3169_v43  ;;  %v3181_v43 = vld [vmem:[%s3800_s1 + $0x208] sm:$0xff]   ;;  %v2016_v62 = vsel %vm3486_vm5, %v2635_v44, %v2015_v45 }
  0x7e   : > { %2884 = vmatpush3.bf16.msra.mxu1 %v3170_v0  ;;  %2979 = vmatprep.subr.bf16.mxu0 %v3171_v52  ;;  %v2634_v0 = vrot.slane %v2626_v21, 9  ;;  %v2008_v21 = vsel %vm3486_vm5, %v2633_v28, %v2007_v32 }
  0x7f   : > { %2885 = vmatprep.subr.bf16.mxu1 %v3173_v26 }
  0x80   : > { %v2012_v47 = vsel %vm3486_vm5, %v2634_v0, %v2011_v55 }
  0x81   : > { %2980 = vmatpush3.bf16.msra.mxu0 %v3171_v52  ;;  %v1795_v52 = vrot.slane %v1794_v42, 4  ;;  %v2656_v34 = vcombine.low %v2012_v47, %v2016_v62 }
  0x82   : > { %2886 = vmatpush3.bf16.msra.mxu1 %v3173_v26  ;;  %2981 = vmatprep.subr.bf16.mxu0 %v3175_v56  ;;  %v1809_v26 = vrot.slane %v1808_v30, 4 }
  0x83   : > { %2887 = vmatprep.subr.bf16.mxu1 %v3176_v15  ;;  %v1800_v17 = vsel %vm3312_vm2, %v1795_v52, %v1799_v63 }
  0x84   : > { %v1814_v27 = vsel %vm3312_vm2, %v1809_v26, %v1813_v48 }
  0x85   : > { %2982 = vmatpush3.bf16.msra.mxu0 %v3175_v56  ;;  %v2613_v46 = vcombine.low %v1800_v17, %v1814_v27  ;;  %v2628_v56 = vld [vmem:[%s3267_s14 + $0x40] sm:$0xe] }
  0x86   : > { %2888 = vmatpush3.bf16.msra.mxu1 %v3176_v15  ;;  %2983 = vmatprep.subr.bf16.mxu0 %v3177_v12  ;;  %v3188_v15 = vld [vmem:[%s3800_s1 + $0x230] sm:$0xff]   ;;  %v2636_v18 = vrot.slane %v2628_v56, 9 }
  0x87   : > { %3017 = vmatprep.subr.bf16.mxu1 %v3180_v11 }
  0x88   : > { %v2020_v1 = vsel %vm3486_vm5, %v2636_v18, %v2019_v14 }
  0x89   : > { %2890 = vmatmul.mubr.bf16.vlgmr.msra.gmra.mrb[0].mxu1 %v3179_v35  ;;  %2984 = vmatpush3.bf16.msra.mxu0 %v3177_v12  ;;  %v2004_v12 = vsel %vm3486_vm5, %v2632_v60, %v2003_v25 }
  0x8a   : > { %3025 = vmatpush3.bf16.msra.mxu1 %v3180_v11  ;;  %2893 = vmatprep.mubr.bf16.mxu1 %v3182_v39  ;;  %v2655_v33 = vcombine.low %v2004_v12, %v2008_v21 }
  0x8b   : > { %3018 = vmatprep.subr.bf16.mxu1 %v3181_v43  ;;  %2993 = vmatprep.subr.bf16.mxu0 %v3180_v11 }
  0x8c   : > { %2986 = vmatmul.mubr.bf16.vlgmr.msra.gmra.mrb[0].mxu0 %v2611_v29 }
  0x8d   : > { %2994 = vmatpush3.bf16.msra.mxu0 %v3180_v11  ;;  %2989 = vmatprep.mubr.bf16.mxu0 %v2612_v13  ;;  %v2657_v11 = vcombine.low %v2020_v1, %v2024_v23  ;;  %v2666_v13 = vld [vmem:[%s3801_s2] ss:$0 sm:$0xff] }
  0x8e   : > { %3026 = vmatpush3.bf16.msra.mxu1 %v3181_v43  ;;  %2995 = vmatprep.subr.bf16.mxu0 %v3181_v43 }
  0x8f   : > { %3019 = vmatprep.subr.bf16.mxu1 %v3184_v58 }
  0x91   : > { %2894 = vmatmul.mubr.bf16.gmra.mrb[4].mxu1 %v3183_v59  ;;  %2996 = vmatpush3.bf16.msra.mxu0 %v3181_v43 }
  0x92   : > { %3027 = vmatpush3.bf16.msra.mxu1 %v3184_v58  ;;  %3013 = vmatprep.mubr.bf16.mxu1 %v2656_v34 }
  0x93   : > { %3020 = vmatprep.subr.bf16.mxu1 %v3185_v16  ;;  %2997 = vmatprep.subr.bf16.mxu0 %v3184_v58 }
  0x94   : > { %2990 = vmatmul.mubr.bf16.gmra.mrb[4].mxu0 %v2613_v46 }
  0x95   : > { %2998 = vmatpush3.bf16.msra.mxu0 %v3184_v58  ;;  %3009 = vmatprep.mubr.bf16.mxu0 %v2654_v50 }
  0x96   : > { %3028 = vmatpush3.bf16.msra.mxu1 %v3185_v16  ;;  %2999 = vmatprep.subr.bf16.mxu0 %v3185_v16 }
  0x97   : > { %3021 = vmatprep.subr.bf16.mxu1 %v3186_v38 }
  0x99   : > { %3000 = vmatpush3.bf16.msra.mxu0 %v3185_v16 }
  0x9a   : > { %3029 = vmatpush3.bf16.msra.mxu1 %v3186_v38  ;;  %3001 = vmatprep.subr.bf16.mxu0 %v3186_v38 }
  0x9b   : > { %3022 = vmatprep.subr.bf16.mxu1 %v3187_v6 }
  0x9d   : > { %3002 = vmatpush3.bf16.msra.mxu0 %v3186_v38 }
  0x9e   : > { %3030 = vmatpush3.bf16.msra.mxu1 %v3187_v6  ;;  %3003 = vmatprep.subr.bf16.mxu0 %v3187_v6 }
  0x9f   : > { %3023 = vmatprep.subr.bf16.mxu1 %v3188_v15 }
  0xa1   : > { %3004 = vmatpush3.bf16.msra.mxu0 %v3187_v6 }
  0xa2   : > { %3031 = vmatpush3.bf16.msra.mxu1 %v3188_v15  ;;  %3005 = vmatprep.subr.bf16.mxu0 %v3188_v15 }
  0xa3   : > { %3024 = vmatprep.subr.bf16.mxu1 %v3189_v20 }
  0xa5   : > { %3006 = vmatpush3.bf16.msra.mxu0 %v3188_v15 }
  0xa6   : > { %3032 = vmatpush3.bf16.msra.mxu1 %v3189_v20  ;;  %3007 = vmatprep.subr.bf16.mxu0 %v3189_v20 }
  0xa9   : > { %3014 = vmatmul.mubr.bf16.vlgmr.msra.gmra.mrb[8].mxu1 %v2657_v11  ;;  %3008 = vmatpush3.bf16.msra.mxu0 %v3189_v20 }
  0xac   : > { %3010 = vmatmul.mubr.bf16.vlgmr.msra.gmra.mrb[0].mxu0 %v2655_v33 }
 0x15c   : > { %v2891_v35 = vpop.f32.mrb[0].mxu1 }
 0x15d   : > { %v985_v51 = vpop.f32.mrb[1].mxu1 }
 0x15e   : > { %v2892_v31 = vpop.f32.mrb[2].mxu1 }
 0x15f   : > { %v988_v57 = vpop.f32.mrb[3].mxu1 }
 0x164   : > { %v2895_v2 = vpop.f32.mrb[4].mxu1 }
 0x165   : > { %v1001_v36 = vpop.f32.mrb[5].mxu1 }
 0x166   : > { %v2896_v37 = vpop.f32.mrb[6].mxu1 }
 0x167   : > { %v1004_v39 = vpop.f32.mrb[7].mxu1  ;;  %v2991_v40 = vpop.f32.mrb[4].mxu0 }
 0x168   : > { %v3037_v41 = vadd.f32 %v2991_v40, %v2895_v2  ;;  %v1946_v42 = vpop.f32.mrb[5].mxu0 }
 0x169   : > { %v3039_v30 = vadd.f32 %v1946_v42, %v1001_v36  ;;  %v2992_v8 = vpop.f32.mrb[6].mxu0 }
 0x16a   : > { %v3041_v43 = vadd.f32 %v2992_v8, %v2896_v37  ;;  %v1949_v0 = vpop.f32.mrb[7].mxu0 }
 0x16b   : > { %v3043_v55 = vadd.f32 %v1949_v0, %v1004_v39 }
 0x17c   : > { %v3015_v44 = vpop.f32.mrb[8].mxu1 }
 0x17d   : > { %v3038_v45 = vadd.f32 %v3037_v41, %v3015_v44  ;;  %v2156_v29 = vpop.f32.mrb[9].mxu1 }
 0x17e   : > { %v3040_v63 = vadd.f32 %v3039_v30, %v2156_v29  ;;  %v3016_v48 = vpop.f32.mrb[10].mxu1 }
 0x17f   : > { %v3042_v49 = vadd.f32 %v3041_v43, %v3016_v48  ;;  %v2159_v53 = vpop.f32.mrb[11].mxu1  ;;  %v3011_v26 = vpop.f32.mrb[0].mxu0  ;;  %v2192_v47 = vadd.f32 %v3038_v45, %v2666_v13 }
 0x180   : > { %v3044_v52 = vadd.f32 %v3043_v55, %v2159_v53  ;;  %v3033_v58 = vadd.f32 %v3011_v26, %v2891_v35  ;;  %v2140_v59 = vpop.f32.mrb[1].mxu0  ;;  %v2190_v3 = vadd.f32 %v3040_v63, %v2666_v13 }
 0x181   : > { %v2193_v62 = vadd.f32 %v3042_v49, %v2666_v13  ;;  %v3034_v5 = vadd.f32 %v2140_v59, %v985_v51  ;;  %v3012_v7 = vpop.f32.mrb[2].mxu0  ;;  %v2229_v11 = vmul.f32 %v2192_v47, %v2192_v47 }
 0x182   : > { %v2191_v4 = vadd.f32 %v3044_v52, %v2666_v13  ;;  %v3035_v17 = vadd.f32 %v3012_v7, %v2892_v31  ;;  %v2143_v27 = vpop.f32.mrb[3].mxu0  ;;  %v2188_v46 = vadd.f32 %v3033_v58, %v2666_v13  ;;  %v2227_v1 = vmul.f32 %v2190_v3, %v2190_v3 }
 0x183   : > { %v2688_v34 = vpack.c.bf16 %v2193_v62, %v2192_v47  ;;  %v2186_v24 = vadd.f32 %v3034_v5, %v2666_v13  ;;  %v3036_v61 = vadd.f32 %v2143_v27, %v988_v57  ;;  %v2230_v33 = vmul.f32 %v2193_v62, %v2193_v62 }
 0x184   : > { %v2683_v16 = vpack.c.bf16 %v2191_v4, %v2190_v3  ;;  %v2189_v38 = vadd.f32 %v3035_v17, %v2666_v13  ;;  %v2225_v54 = vmul.f32 %v2188_v46, %v2188_v46  ;;  %v2228_v28 = vmul.f32 %v2191_v4, %v2191_v4 }
 0x185   : > { %2692 = vst [vmem:[%s204_s30 + $0x18] sm:$0xff] %v2688_v34   ;;  %v2187_v50 = vadd.f32 %v3036_v61, %v2666_v13  ;;  %v2223_v15 = vmul.f32 %v2186_v24, %v2186_v24 }
 0x186   : > { %2691 = vst [vmem:[%s204_s30 + $0x10] sm:$0xff] %v2683_v16   ;;  %v2678_v6 = vpack.c.bf16 %v2189_v38, %v2188_v46  ;;  %v2226_v20 = vmul.f32 %v2189_v38, %v2189_v38 }
 0x187   : > { %v2673_v56 = vpack.c.bf16 %v2187_v50, %v2186_v24  ;;  %v2210_v10 = vadd.f32 %v2187_v50, %v2186_v24  ;;  %v2224_v14 = vmul.f32 %v2187_v50, %v2187_v50 }
 0x188   : > { %2690 = vst [vmem:[%s204_s30 + $0x8] sm:$0xff] %v2678_v6  }
 0x189   : > { %2674 = vst [vmem:[%s204_s30] sm:$0xff] %v2673_v56   ;;  %v2211_v18 = vadd.f32 %v2210_v10, %v2188_v46  ;;  %v2231_v19 = vadd.f32 %v2224_v14, %v2223_v15 }
 0x18b   : > { %v2232_v22 = vadd.f32 %v2231_v19, %v2225_v54  ;;  %v2212_v9 = vadd.f32 %v2211_v18, %v2189_v38 }
 0x18d   : > { %v2213_v23 = vadd.f32 %v2212_v9, %v2190_v3  ;;  %v2233_v60 = vadd.f32 %v2232_v22, %v2226_v20 }
 0x18f   : > { %v2214_v25 = vadd.f32 %v2213_v23, %v2191_v4  ;;  %v2234_v32 = vadd.f32 %v2233_v60, %v2227_v1 }
 0x191   : > { %v2215_v12 = vadd.f32 %v2214_v25, %v2192_v47  ;;  %v2235_v21 = vadd.f32 %v2234_v32, %v2228_v28 }
 0x193   : > { %v2216_v35 = vadd.f32 %v2215_v12, %v2193_v62  ;;  %v2236_v51 = vadd.f32 %v2235_v21, %v2229_v11 }
 0x195   : > { %v2217_v31 = vrot.slane %v2216_v35, 4  ;;  %v2237_v57 = vadd.f32 %v2236_v51, %v2230_v33 }
 0x197   : > { %v2218_v2 = vadd.f32 %v2217_v31, %v2216_v35  ;;  %v2238_v36 = vrot.slane %v2237_v57, 4 }
 0x199   : > { %v2219_v37 = vrot.slane %v2218_v2, 2  ;;  %v2239_v39 = vadd.f32 %v2238_v36, %v2237_v57 }
 0x19b   : > { %v2220_v40 = vadd.f32 %v2219_v37, %v2218_v2  ;;  %v2240_v41 = vrot.slane %v2239_v39, 2 }
 0x19d   : > { %v2221_v42 = vrot.slane %v2220_v40, 1  ;;  %v2241_v30 = vadd.f32 %v2240_v41, %v2239_v39 }
 0x19f   : > { %v2242_v8 = vrot.slane %v2241_v30, 1  ;;  %v2222_v43 = vadd.f32 %v2221_v42, %v2220_v40 }
 0x1a1   : > { %v2243_v0 = vadd.f32 %v2242_v8, %v2241_v30 }
 0x1a3   : > { %v2245_v55 = vsel %vm2244_vm6, %v2222_v43, %v2243_v0 }
 0x1a4   : > { %2246 = vst [vmem:[%s208_s8] sm:$0x3] %v2245_v55 }
 0x1a5 PF: > { %s15_s15 = sadd.s32 1, %s3196_s15  }
 0x1a6   : > { %p12_p4 = scmp.ge.s32.totalorder %s15_s15, 4  }
 0x1a8   :  { %14 = sbr.rel (!%p12_p4) target bundleno = 1 (0x1), region = 84 }

// kernel: generator_forward.12
= control target key start
LH: loop header
LB: loop body
LE: loop exit
PB: predicated region body
PF: predicated region fallthrough
CT: control target
= control target key end

     0   :  { %s1267_s12 = smov 0   ;;  %s1658_s0 = inlined_call_operand.vmem [shape: bf16[2,16,16,128], index: 0, kind: input, shape index: {}]   ;;  %s1659_s1 = inlined_call_operand.vmem [shape: f32[1,128], index: 1, kind: input, shape index: {}]   ;;  %s1660_s2 = inlined_call_operand.vmem [shape: f32[1,128], index: 2, kind: input, shape index: {}]   ;;  %s1661_s3 = inlined_call_operand.vmem [shape: bf16[2,18,18,128], index: 3, kind: output, shape index: {}]  }
   0x1 LB: > { %s992_s13 = sadd.s32 4294967295, %s1244_s12   ;;  %p996_p0 = scmp.ge.s32.totalorder %s1244_s12, 1  ;;  %s1244_s12 = sphi %s1267_s12, %s13_s12  }
   0x2   : > { %p137_p1 = scmp.lt.s32.totalorder %s1244_s12, 3 }
   0x4   : > { %p138_p2 = pnand %p996_p0, %p137_p1 }
   0x5   : > { %p161_p3 = scmp.lt.s32.totalorder (!%p138_p2), %s992_s13, 1  ;;  %v1283_v0 = vld [vmem:[%s1659_s1] ss:$0 sm:$0xff] (!%p138_p2)  ;;  %v1246_v4 = vmov (!%p138_p2), 0   ;;  %vm820_vm0 = vcmask (!%p138_p2), 1043456   ;;  %vm827_vm4 = vcmask (!%p138_p2), 1040384  }
   0x6   : > { %141 = sbr.rel (%p138_p2) target bundleno = 124 (0x7c), region = 32  ;;  %vm821_vm1 = vsmask.f32 (!%p138_p2), 7938  ;;  %v1361_v10 = vld [vmem:[%s1660_s2] ss:$0 sm:$0xff] (!%p138_p2) }
   0x7   : > { %vm496_vm2 = vsmask.f32 (!%p138_p2), 256  ;;  %vm497_vm3 = vsmask.f32 (!%p138_p2), 4368  ;;  %vm1393_vm5 = vmand (!%p138_p2), %vm820_vm0, %vm821_vm1 }
   0x8   : > { %vm1399_vm6 = vmor (!%p138_p2), %vm496_vm2, %vm497_vm3 }
   0x9   : > { %vm1406_vm7 = vmand (!%p138_p2), %vm827_vm4, %vm496_vm2 }
   0xd   : > { %s1669_s13 = smov (!%p161_p3, %s992_s13), 1 }
   0xe   : > { %s1228_s14 = smul.u32 216, %s1669_s13  ;;  %s1116_s15 = sshll.u32 %s1669_s13, 7 }
   0xf   : > { %s1278_s18 = scalar_lea.vmem %s1658_s0, %s1116_s15 }
  0x10   : > { %s1288_s23 = scalar_lea.vmem %s1661_s3, %s1228_s14  ;;  %v1291_v1 = vld [vmem:[%s1278_s18] sm:$0xff]   ;;  %v1294_v2 = vld [vmem:[%s1278_s18 + $0x8] sm:$0xff]   ;;  %v1297_v3 = vld [vmem:[%s1278_s18 + $0x10] sm:$0xff]  }
  0x11   : > { %349 = vst [vmem:[%s1288_s23 + $0xc] sm:$0xf] %v1246_v4  ;;  %346 = vst [vmem:[%s1288_s23] sm:$0xf] %v1246_v4  ;;  %v1151_v5 = vunpack.c.l.bf16 %v1291_v1  ;;  %v1152_v6 = vunpack.c.h.bf16 %v1291_v1  ;;  %v1155_v7 = vunpack.c.l.bf16 %v1294_v2  ;;  %v1156_v8 = vunpack.c.h.bf16 %v1294_v2  ;;  %v1215_v9 = vld [vmem:[%s1278_s18 + $0x18] sm:$0xff]   ;;  %v1378_v27 = vld [vmem:[%s1278_s18 + $0x20] sm:$0xff]  }
  0x12   : > { %347 = vst [vmem:[%s1288_s23 + $0x4] sm:$0xf] %v1246_v4  ;;  %348 = vst [vmem:[%s1288_s23 + $0x8] sm:$0x1] %v1246_v4  ;;  %v1159_v11 = vunpack.c.l.bf16 %v1297_v3  ;;  %v1160_v12 = vunpack.c.h.bf16 %v1297_v3  ;;  %v1163_v13 = vunpack.c.l.bf16 %v1215_v9  ;;  %v1164_v14 = vunpack.c.h.bf16 %v1215_v9  ;;  %v1381_v28 = vld [vmem:[%s1278_s18 + $0x28] sm:$0xff]  }
  0x13   : > { %350 = vst [vmem:[%s1288_s23 + $0x10] sm:$0xf] %v1246_v4  ;;  %351 = vst [vmem:[%s1288_s23 + $0x14] sm:$0x1] %v1246_v4  ;;  %v243_v15 = vmul.f32 %v1151_v5, %v1283_v0  ;;  %v244_v16 = vmul.f32 %v1152_v6, %v1283_v0  ;;  %v245_v17 = vmul.f32 %v1155_v7, %v1283_v0  ;;  %v1167_v37 = vunpack.c.l.bf16 %v1378_v27 }
  0x14   : > { %352 = vst [vmem:[%s1288_s23 + $0x18] sm:$0xf] %v1246_v4  ;;  %353 = vst [vmem:[%s1288_s23 + $0x1c] sm:$0xf] %v1246_v4  ;;  %v246_v18 = vmul.f32 %v1156_v8, %v1283_v0  ;;  %v247_v19 = vmul.f32 %v1159_v11, %v1283_v0  ;;  %v248_v20 = vmul.f32 %v1160_v12, %v1283_v0  ;;  %v1168_v38 = vunpack.c.h.bf16 %v1378_v27 }
  0x15   : > { %354 = vst [vmem:[%s1288_s23 + $0x20] sm:$0x1] %v1246_v4  ;;  %355 = vst [vmem:[%s1288_s23 + $0x24] sm:$0xf] %v1246_v4  ;;  %v249_v21 = vmul.f32 %v1163_v13, %v1283_v0  ;;  %v250_v22 = vmul.f32 %v1164_v14, %v1283_v0  ;;  %v282_v23 = vadd.f32 %v1361_v10, %v243_v15  ;;  %v1171_v39 = vunpack.c.l.bf16 %v1381_v28 }
  0x16   : > { %356 = vst [vmem:[%s1288_s23 + $0x28] sm:$0xf] %v1246_v4  ;;  %357 = vst [vmem:[%s1288_s23 + $0x2c] sm:$0x1] %v1246_v4  ;;  %v283_v24 = vadd.f32 %v1361_v10, %v244_v16  ;;  %v284_v25 = vadd.f32 %v1361_v10, %v245_v17  ;;  %v285_v26 = vadd.f32 %v1361_v10, %v246_v18  ;;  %v1172_v40 = vunpack.c.h.bf16 %v1381_v28 }
  0x17   : > { %358 = vst [vmem:[%s1288_s23 + $0x30] sm:$0xf] %v1246_v4  ;;  %359 = vst [vmem:[%s1288_s23 + $0x34] sm:$0xf] %v1246_v4  ;;  %v286_v29 = vadd.f32 %v1361_v10, %v247_v19  ;;  %v287_v30 = vadd.f32 %v1361_v10, %v248_v20  ;;  %v288_v31 = vadd.f32 %v1361_v10, %v249_v21  ;;  %v314_v33 = vmax.f32 %v282_v23, 0.0 }
  0x18   : > { %360 = vst [vmem:[%s1288_s23 + $0x38] sm:$0x1] %v1246_v4  ;;  %361 = vst [vmem:[%s1288_s23 + $0x3c] sm:$0xf] %v1246_v4  ;;  %v289_v32 = vadd.f32 %v1361_v10, %v250_v22  ;;  %v315_v34 = vmax.f32 %v283_v24, 0.0  ;;  %v316_v35 = vmax.f32 %v284_v25, 0.0 }
  0x19   : > { %362 = vst [vmem:[%s1288_s23 + $0x40] sm:$0xf] %v1246_v4  ;;  %363 = vst [vmem:[%s1288_s23 + $0x44] sm:$0x1] %v1246_v4  ;;  %v317_v36 = vmax.f32 %v285_v26, 0.0  ;;  %v1117_v41 = vpack.c.bf16 %v314_v33, %v314_v33  ;;  %v318_v45 = vmax.f32 %v286_v29, 0.0 }
  0x1a   : > { %364 = vst [vmem:[%s1288_s23 + $0x48] sm:$0xf] %v1246_v4  ;;  %365 = vst [vmem:[%s1288_s23 + $0x4c] sm:$0xf] %v1246_v4  ;;  %v1118_v42 = vpack.c.bf16 %v315_v34, %v315_v34  ;;  %v1119_v43 = vpack.c.bf16 %v316_v35, %v316_v35  ;;  %v319_v46 = vmax.f32 %v287_v30, 0.0  ;;  %v320_v47 = vmax.f32 %v288_v31, 0.0 }
  0x1b   : > { %366 = vst [vmem:[%s1288_s23 + $0x50] sm:$0x1] %v1246_v4  ;;  %367 = vst [vmem:[%s1288_s23 + $0x54] sm:$0xf] %v1246_v4  ;;  %v1120_v44 = vpack.c.bf16 %v317_v36, %v317_v36  ;;  %v321_v48 = vmax.f32 %v289_v32, 0.0  ;;  %v500_v49 = vshrl.u32 %v1117_v41, 16  ;;  %v1121_v61 = vpack.c.bf16 %v318_v45, %v318_v45 }
  0x1c   : > { %368 = vst [vmem:[%s1288_s23 + $0x58] sm:$0xf] %v1246_v4  ;;  %369 = vst [vmem:[%s1288_s23 + $0x5c] sm:$0x1] %v1246_v4  ;;  %v503_v50 = vshll.u32 %v1117_v41, 16  ;;  %v508_v51 = vshrl.u32 %v1118_v42, 16  ;;  %v1122_v62 = vpack.c.bf16 %v319_v46, %v319_v46  ;;  %v1123_v5 = vpack.c.bf16 %v320_v47, %v320_v47 }
  0x1d   : > { %370 = vst [vmem:[%s1288_s23 + $0x60] sm:$0xf] %v1246_v4  ;;  %371 = vst [vmem:[%s1288_s23 + $0x64] sm:$0xf] %v1246_v4  ;;  %v511_v52 = vshll.u32 %v1118_v42, 16  ;;  %v517_v54 = vshrl.u32 %v1119_v43, 16  ;;  %v1124_v6 = vpack.c.bf16 %v321_v48, %v321_v48  ;;  %v251_v36 = vmul.f32 %v1167_v37, %v1283_v0 }
  0x1e   : > { %372 = vst [vmem:[%s1288_s23 + $0x68] sm:$0x1] %v1246_v4  ;;  %373 = vst [vmem:[%s1288_s23 + $0x6c] sm:$0xf] %v1246_v4  ;;  %v520_v55 = vshll.u32 %v1119_v43, 16  ;;  %v525_v56 = vshrl.u32 %v1120_v44, 16 }
  0x1f   : > { %374 = vst [vmem:[%s1288_s23 + $0x70] sm:$0xf] %v1246_v4  ;;  %375 = vst [vmem:[%s1288_s23 + $0x74] sm:$0x1] %v1246_v4  ;;  %v528_v57 = vshll.u32 %v1120_v44, 16  ;;  %v502_v58 = vrot.slane %v500_v49, 7  ;;  %v290_v48 = vadd.f32 %v1361_v10, %v251_v36  ;;  %v252_v49 = vmul.f32 %v1168_v38, %v1283_v0 }
  0x20   : > { %376 = vst [vmem:[%s1288_s23 + $0x78] sm:$0xf] %v1246_v4  ;;  %377 = vst [vmem:[%s1288_s23 + $0x7c] sm:$0xf] %v1246_v4  ;;  %v510_v60 = vrot.slane %v508_v51, 7  ;;  %v519_v3 = vrot.slane %v517_v54, 7 }
  0x21   : > { %378 = vst [vmem:[%s1288_s23 + $0x80] sm:$0x1] %v1246_v4  ;;  %379 = vst [vmem:[%s1288_s23 + $0x84] sm:$0xf] %v1246_v4  ;;  %v1034_v63 = vld [vmem:[%s1288_s23 + $0xc] sm:$0xf]  ;;  %v505_v7 = vor.u32 %v503_v50, %v502_v58  ;;  %v253_v50 = vmul.f32 %v1171_v39, %v1283_v0 }
  0x22   : > { %380 = vst [vmem:[%s1288_s23 + $0x88] sm:$0xf] %v1246_v4  ;;  %381 = vst [vmem:[%s1288_s23 + $0x8c] sm:$0x1] %v1246_v4  ;;  %v1037_v2 = vld [vmem:[%s1288_s23 + $0x14] sm:$0x1]  ;;  %v513_v9 = vor.u32 %v511_v52, %v510_v60  ;;  %v522_v14 = vor.u32 %v520_v55, %v519_v3 }
  0x23   : > { %382 = vst [vmem:[%s1288_s23 + $0x90] sm:$0xf] %v1246_v4  ;;  %383 = vst [vmem:[%s1288_s23 + $0x94] sm:$0xf] %v1246_v4  ;;  %v506_v8 = vrot.slane %v502_v58, 4  ;;  %v515_v11 = vrot.slane %v510_v60, 4  ;;  %v824_v18 = vsel %vm1393_vm5, %v505_v7, %v1034_v63  ;;  %v254_v7 = vmul.f32 %v1172_v40, %v1283_v0 }
  0x24   : > { %384 = vst [vmem:[%s1288_s23 + $0x98] sm:$0x1] %v1246_v4  ;;  %385 = vst [vmem:[%s1288_s23 + $0x9c] sm:$0xf] %v1246_v4  ;;  %v1039_v12 = vld [vmem:[%s1288_s23 + $0x18] sm:$0xf] }
  0x25   : > { %386 = vst [vmem:[%s1288_s23 + $0xa0] sm:$0xf] %v1246_v4  ;;  %387 = vst [vmem:[%s1288_s23 + $0xa4] sm:$0x1] %v1246_v4  ;;  %v1042_v13 = vld [vmem:[%s1288_s23 + $0x20] sm:$0x1]  ;;  %v514_v19 = vsel %vm1399_vm6, %v506_v8, %v513_v9  ;;  %v830_v20 = vsel %vm1406_vm7, %v515_v11, %v1037_v2  ;;  %v833_v22 = vsel %vm1393_vm5, %v522_v14, %v1039_v12 }
  0x26   : > { %388 = vst [vmem:[%s1288_s23 + $0xa8] sm:$0xf] %v1246_v4  ;;  %389 = vst [vmem:[%s1288_s23 + $0xac] sm:$0xf] %v1246_v4  ;;  %v523_v15 = vrot.slane %v519_v3, 4  ;;  %v534_v21 = vshrl.u32 %v1121_v61, 16 }
  0x27   : > { %390 = vst [vmem:[%s1288_s23 + $0xb0] sm:$0x1] %v1246_v4  ;;  %391 = vst [vmem:[%s1288_s23 + $0xb4] sm:$0xf] %v1246_v4  ;;  %v537_v25 = vshll.u32 %v1121_v61, 16  ;;  %v542_v29 = vshrl.u32 %v1122_v62, 16 }
  0x28   : > { %392 = vst [vmem:[%s1288_s23 + $0xb8] sm:$0xf] %v1246_v4  ;;  %393 = vst [vmem:[%s1288_s23 + $0xbc] sm:$0x1] %v1246_v4  ;;  %v536_v26 = vrot.slane %v534_v21, 7  ;;  %v545_v30 = vshll.u32 %v1122_v62, 16  ;;  %v291_v62 = vadd.f32 %v1361_v10, %v252_v49 }
  0x29   : > { %394 = vst [vmem:[%s1288_s23 + $0xc0] sm:$0xf] %v1246_v4  ;;  %395 = vst [vmem:[%s1288_s23 + $0xc4] sm:$0xf] %v1246_v4  ;;  %v551_v31 = vshrl.u32 %v1123_v5, 16  ;;  %v554_v33 = vshll.u32 %v1123_v5, 16  ;;  %v292_v5 = vadd.f32 %v1361_v10, %v253_v50 }
  0x2a   : > { %396 = vst [vmem:[%s1288_s23 + $0xc8] sm:$0x1] %v1246_v4  ;;  %397 = vst [vmem:[%s1288_s23 + $0xcc] sm:$0xf] %v1246_v4  ;;  %v1044_v32 = vld [vmem:[%s1288_s23 + $0x24] sm:$0xf]  ;;  %v539_v41 = vor.u32 %v537_v25, %v536_v26 }
  0x2b   : > { %398 = vst [vmem:[%s1288_s23 + $0xd0] sm:$0xf] %v1246_v4  ;;  %399 = vst [vmem:[%s1288_s23 + $0xd4] sm:$0x1] %v1246_v4  ;;  %v527_v4 = vrot.slane %v525_v56, 7  ;;  %v559_v34 = vshrl.u32 %v1124_v6, 16 }
  0x2c   : > { %1035 = vst [vmem:[%s1288_s23 + $0xc] sm:$0xf] %v824_v18  ;;  %1036 = vst [vmem:[%s1288_s23 + $0x10] sm:$0xf] %v514_v19  ;;  %v562_v35 = vshll.u32 %v1124_v6, 16  ;;  %v540_v42 = vrot.slane %v536_v26, 4  ;;  %v840_v37 = vsel %vm1393_vm5, %v539_v41, %v1044_v32 }
  0x2d   : > { %v530_v16 = vor.u32 %v528_v57, %v527_v4  ;;  %v532_v17 = vrot.slane %v527_v4, 4  ;;  %1038 = vst [vmem:[%s1288_s23 + $0x14] sm:$0x1] %v830_v20  ;;  %1040 = vst [vmem:[%s1288_s23 + $0x18] sm:$0xf] %v833_v22  ;;  %v544_v43 = vrot.slane %v542_v29, 7 }
  0x2e   : > { %v553_v44 = vrot.slane %v551_v31, 7  ;;  %v1047_v45 = vld [vmem:[%s1288_s23 + $0x2c] sm:$0x1]  ;;  %v1049_v46 = vld [vmem:[%s1288_s23 + $0x30] sm:$0xf]  ;;  %v561_v47 = vrot.slane %v559_v34, 7 }
  0x2f   : > { %v531_v23 = vsel %vm1399_vm6, %v523_v15, %v530_v16  ;;  %v837_v24 = vsel %vm1406_vm7, %v532_v17, %v1042_v13  ;;  %v547_v51 = vor.u32 %v545_v30, %v544_v43  ;;  %v549_v52 = vrot.slane %v544_v43, 4  ;;  %v1052_v55 = vld [vmem:[%s1288_s23 + $0x38] sm:$0x1]  ;;  %1045 = vst [vmem:[%s1288_s23 + $0x24] sm:$0xf] %v840_v37  ;;  %v1218_v58 = vld [vmem:[%s1278_s18 + $0x30] sm:$0xff]  }
  0x30   : > { %1041 = vst [vmem:[%s1288_s23 + $0x1c] sm:$0xf] %v531_v23  ;;  %1043 = vst [vmem:[%s1288_s23 + $0x20] sm:$0x1] %v837_v24  ;;  %v556_v54 = vor.u32 %v554_v33, %v553_v44  ;;  %v557_v56 = vrot.slane %v553_v44, 4  ;;  %v564_v57 = vor.u32 %v562_v35, %v561_v47  ;;  %v566_v27 = vrot.slane %v561_v47, 4 }
  0x31   : > { %v322_v38 = vmax.f32 %v290_v48, 0.0  ;;  %v548_v39 = vsel %vm1399_vm6, %v540_v42, %v547_v51  ;;  %v844_v60 = vsel %vm1406_vm7, %v549_v52, %v1047_v45  ;;  %v1219_v63 = vld [vmem:[%s1278_s18 + $0x38] sm:$0xff]   ;;  %v323_v6 = vmax.f32 %v291_v62, 0.0  ;;  %v1057_v41 = vld [vmem:[%s1288_s23 + $0x44] sm:$0x1] }
  0x32   : > { %v847_v61 = vsel %vm1393_vm5, %v556_v54, %v1049_v46  ;;  %1046 = vst [vmem:[%s1288_s23 + $0x28] sm:$0xf] %v548_v39  ;;  %1048 = vst [vmem:[%s1288_s23 + $0x2c] sm:$0x1] %v844_v60  ;;  %v565_v2 = vsel %vm1399_vm6, %v557_v56, %v564_v57  ;;  %v851_v3 = vsel %vm1406_vm7, %v566_v27, %v1052_v55  ;;  %v1175_v8 = vunpack.c.l.bf16 %v1218_v58  ;;  %v1054_v40 = vld [vmem:[%s1288_s23 + $0x3c] sm:$0xf] }
  0x33   : > { %1050 = vst [vmem:[%s1288_s23 + $0x30] sm:$0xf] %v847_v61  ;;  %v1125_v4 = vpack.c.bf16 %v322_v38, %v322_v38  ;;  %1051 = vst [vmem:[%s1288_s23 + $0x34] sm:$0xf] %v565_v2  ;;  %v1176_v9 = vunpack.c.h.bf16 %v1218_v58  ;;  %v324_v13 = vmax.f32 %v292_v5, 0.0  ;;  %v1179_v14 = vunpack.c.l.bf16 %v1219_v63  ;;  %v1220_v27 = vld [vmem:[%s1278_s18 + $0x40] sm:$0xff]  }
  0x34   : > { %1053 = vst [vmem:[%s1288_s23 + $0x38] sm:$0x1] %v851_v3  ;;  %v1126_v15 = vpack.c.bf16 %v323_v6, %v323_v6  ;;  %v293_v16 = vadd.f32 %v1361_v10, %v254_v7  ;;  %v255_v17 = vmul.f32 %v1175_v8, %v1283_v0  ;;  %v1180_v28 = vunpack.c.h.bf16 %v1219_v63  ;;  %v1059_v47 = vld [vmem:[%s1288_s23 + $0x48] sm:$0xf]  ;;  %v1062_v58 = vld [vmem:[%s1288_s23 + $0x50] sm:$0x1] }
  0x35   : > { %v568_v11 = vshrl.u32 %v1125_v4, 16  ;;  %v571_v12 = vshll.u32 %v1125_v4, 16  ;;  %v256_v18 = vmul.f32 %v1176_v9, %v1283_v0  ;;  %v1127_v20 = vpack.c.bf16 %v324_v13, %v324_v13  ;;  %v1221_v8 = vld [vmem:[%s1278_s18 + $0x48] sm:$0xff]  }
  0x36   : > { %v257_v21 = vmul.f32 %v1179_v14, %v1283_v0  ;;  %v576_v22 = vshrl.u32 %v1126_v15, 16  ;;  %v579_v23 = vshll.u32 %v1126_v15, 16  ;;  %v325_v24 = vmax.f32 %v293_v16, 0.0 }
  0x37   : > { %v570_v19 = vrot.slane %v568_v11, 7  ;;  %v294_v25 = vadd.f32 %v1361_v10, %v255_v17  ;;  %v585_v30 = vshrl.u32 %v1127_v20, 16  ;;  %v588_v31 = vshll.u32 %v1127_v20, 16 }
  0x38   : > { %v578_v32 = vrot.slane %v576_v22, 7  ;;  %v1128_v33 = vpack.c.bf16 %v325_v24, %v325_v24  ;;  %v295_v35 = vadd.f32 %v1361_v10, %v256_v18  ;;  %v296_v43 = vadd.f32 %v1361_v10, %v257_v21 }
  0x39   : > { %v573_v26 = vor.u32 %v571_v12, %v570_v19  ;;  %v574_v29 = vrot.slane %v570_v19, 4  ;;  %v326_v34 = vmax.f32 %v294_v25, 0.0  ;;  %v587_v42 = vrot.slane %v585_v30, 7  ;;  %v1064_v12 = vld [vmem:[%s1288_s23 + $0x54] sm:$0xf] }
  0x3a   : > { %v258_v44 = vmul.f32 %v1180_v28, %v1283_v0  ;;  %v581_v45 = vor.u32 %v579_v23, %v578_v32  ;;  %v583_v46 = vrot.slane %v578_v32, 4  ;;  %v593_v48 = vshrl.u32 %v1128_v33, 16  ;;  %v1067_v19 = vld [vmem:[%s1288_s23 + $0x5c] sm:$0x1]  ;;  %v1069_v25 = vld [vmem:[%s1288_s23 + $0x60] sm:$0xf] }
  0x3b   : > { %v854_v36 = vsel %vm1393_vm5, %v573_v26, %v1054_v40  ;;  %v596_v49 = vshll.u32 %v1128_v33, 16  ;;  %v590_v50 = vor.u32 %v588_v31, %v587_v42  ;;  %v591_v37 = vrot.slane %v587_v42, 4  ;;  %v1222_v33 = vld [vmem:[%s1278_s18 + $0x50] sm:$0xff]   ;;  %v1518_v42 = vld [vmem:[%s1278_s18 + $0x58] sm:$0xff]  }
  0x3c   : > { %1055 = vst [vmem:[%s1288_s23 + $0x3c] sm:$0xf] %v854_v36  ;;  %v1129_v51 = vpack.c.bf16 %v326_v34, %v326_v34  ;;  %v327_v52 = vmax.f32 %v295_v35, 0.0  ;;  %v582_v54 = vsel %vm1399_vm6, %v574_v29, %v581_v45  ;;  %v858_v55 = vsel %vm1406_vm7, %v583_v46, %v1057_v41 }
  0x3d   : > { %v595_v56 = vrot.slane %v593_v48, 7  ;;  %v328_v57 = vmax.f32 %v296_v43, 0.0  ;;  %1056 = vst [vmem:[%s1288_s23 + $0x40] sm:$0xf] %v582_v54  ;;  %1058 = vst [vmem:[%s1288_s23 + $0x44] sm:$0x1] %v858_v55  ;;  %v861_v38 = vsel %vm1393_vm5, %v590_v50, %v1059_v47  ;;  %v297_v3 = vadd.f32 %v1361_v10, %v258_v44 }
  0x3e   : > { %v602_v39 = vshrl.u32 %v1129_v51, 16  ;;  %v605_v60 = vshll.u32 %v1129_v51, 16  ;;  %v1130_v61 = vpack.c.bf16 %v327_v52, %v327_v52  ;;  %1060 = vst [vmem:[%s1288_s23 + $0x48] sm:$0xf] %v861_v38  ;;  %v1183_v7 = vunpack.c.l.bf16 %v1220_v27 }
  0x3f   : > { %v598_v62 = vor.u32 %v596_v49, %v595_v56  ;;  %v600_v63 = vrot.slane %v595_v56, 4  ;;  %v1131_v2 = vpack.c.bf16 %v328_v57, %v328_v57  ;;  %v329_v18 = vmax.f32 %v297_v3, 0.0 }
  0x40   : > { %v604_v4 = vrot.slane %v602_v39, 7  ;;  %v610_v5 = vshrl.u32 %v1130_v61, 16  ;;  %v613_v6 = vshll.u32 %v1130_v61, 16  ;;  %v259_v21 = vmul.f32 %v1183_v7, %v1283_v0 }
  0x41   : > { %v599_v9 = vsel %vm1399_vm6, %v591_v37, %v598_v62  ;;  %v865_v11 = vsel %vm1406_vm7, %v600_v63, %v1062_v58  ;;  %v619_v13 = vshrl.u32 %v1131_v2, 16  ;;  %v622_v14 = vshll.u32 %v1131_v2, 16  ;;  %v1072_v37 = vld [vmem:[%s1288_s23 + $0x68] sm:$0x1] }
  0x42   : > { %1061 = vst [vmem:[%s1288_s23 + $0x4c] sm:$0xf] %v599_v9  ;;  %1063 = vst [vmem:[%s1288_s23 + $0x50] sm:$0x1] %v865_v11  ;;  %v607_v15 = vor.u32 %v605_v60, %v604_v4  ;;  %v608_v16 = vrot.slane %v604_v4, 4  ;;  %v612_v17 = vrot.slane %v610_v5, 7  ;;  %v1184_v28 = vunpack.c.h.bf16 %v1220_v27 }
  0x43   : > { %v621_v20 = vrot.slane %v619_v13, 7  ;;  %v1187_v40 = vunpack.c.l.bf16 %v1221_v8  ;;  %v1132_v26 = vpack.c.bf16 %v329_v18, %v329_v18  ;;  %v298_v31 = vadd.f32 %v1361_v10, %v259_v21  ;;  %v1077_v18 = vld [vmem:[%s1288_s23 + $0x74] sm:$0x1] }
  0x44   : > { %v868_v22 = vsel %vm1393_vm5, %v607_v15, %v1064_v12  ;;  %v615_v23 = vor.u32 %v613_v6, %v612_v17  ;;  %v617_v24 = vrot.slane %v612_v17, 4  ;;  %v260_v32 = vmul.f32 %v1184_v28, %v1283_v0 }
  0x45   : > { %1065 = vst [vmem:[%s1288_s23 + $0x54] sm:$0xf] %v868_v22  ;;  %v624_v29 = vor.u32 %v622_v14, %v621_v20  ;;  %v625_v30 = vrot.slane %v621_v20, 4  ;;  %v627_v36 = vshrl.u32 %v1132_v26, 16  ;;  %v630_v41 = vshll.u32 %v1132_v26, 16 }
  0x46   : > { %v616_v34 = vsel %vm1399_vm6, %v608_v16, %v615_v23  ;;  %v872_v35 = vsel %vm1406_vm7, %v617_v24, %v1067_v19  ;;  %v330_v44 = vmax.f32 %v298_v31, 0.0  ;;  %v299_v45 = vadd.f32 %v1361_v10, %v260_v32  ;;  %v1079_v26 = vld [vmem:[%s1288_s23 + $0x78] sm:$0xf] }
  0x47   : > { %1066 = vst [vmem:[%s1288_s23 + $0x58] sm:$0xf] %v616_v34  ;;  %1068 = vst [vmem:[%s1288_s23 + $0x5c] sm:$0x1] %v872_v35  ;;  %v875_v43 = vsel %vm1393_vm5, %v624_v29, %v1069_v25  ;;  %v261_v46 = vmul.f32 %v1187_v40, %v1283_v0  ;;  %v629_v47 = vrot.slane %v627_v36, 7  ;;  %v1188_v48 = vunpack.c.h.bf16 %v1221_v8  ;;  %v1224_v25 = vld [vmem:[%s1278_s18 + $0x60] sm:$0xff]  }
  0x48   : > { %1070 = vst [vmem:[%s1288_s23 + $0x60] sm:$0xf] %v875_v43  ;;  %v1191_v49 = vunpack.c.l.bf16 %v1222_v33  ;;  %v1192_v50 = vunpack.c.h.bf16 %v1222_v33  ;;  %v1133_v51 = vpack.c.bf16 %v330_v44, %v330_v44  ;;  %v331_v52 = vmax.f32 %v299_v45, 0.0  ;;  %v1074_v8 = vld [vmem:[%s1288_s23 + $0x6c] sm:$0xf] }
  0x49   : > { %v300_v54 = vadd.f32 %v1361_v10, %v261_v46  ;;  %v1195_v55 = vunpack.c.l.bf16 %v1518_v42  ;;  %v632_v56 = vor.u32 %v630_v41, %v629_v47  ;;  %v634_v57 = vrot.slane %v629_v47, 4  ;;  %v1082_v47 = vld [vmem:[%s1288_s23 + $0x80] sm:$0x1] }
  0x4a   : > { %v262_v27 = vmul.f32 %v1188_v48, %v1283_v0  ;;  %v263_v38 = vmul.f32 %v1191_v49, %v1283_v0  ;;  %v636_v58 = vshrl.u32 %v1133_v51, 16  ;;  %v639_v39 = vshll.u32 %v1133_v51, 16  ;;  %v1084_v48 = vld [vmem:[%s1288_s23 + $0x84] sm:$0xf] }
  0x4b   : > { %v1134_v60 = vpack.c.bf16 %v331_v52, %v331_v52  ;;  %v332_v61 = vmax.f32 %v300_v54, 0.0  ;;  %v633_v62 = vsel %vm1399_vm6, %v625_v30, %v632_v56  ;;  %v879_v63 = vsel %vm1406_vm7, %v634_v57, %v1072_v37 }
  0x4c   : > { %v301_v2 = vadd.f32 %v1361_v10, %v262_v27  ;;  %v302_v3 = vadd.f32 %v1361_v10, %v263_v38  ;;  %1071 = vst [vmem:[%s1288_s23 + $0x64] sm:$0xf] %v633_v62  ;;  %1073 = vst [vmem:[%s1288_s23 + $0x68] sm:$0x1] %v879_v63  ;;  %v638_v4 = vrot.slane %v636_v58, 7  ;;  %v264_v12 = vmul.f32 %v1192_v50, %v1283_v0  ;;  %v1225_v58 = vld [vmem:[%s1278_s18 + $0x68] sm:$0xff]  }
  0x4d   : > { %v644_v5 = vshrl.u32 %v1134_v60, 16  ;;  %v647_v6 = vshll.u32 %v1134_v60, 16  ;;  %v1135_v7 = vpack.c.bf16 %v332_v61, %v332_v61  ;;  %v265_v13 = vmul.f32 %v1195_v55, %v1283_v0 }
  0x4e   : > { %v333_v9 = vmax.f32 %v301_v2, 0.0  ;;  %v334_v11 = vmax.f32 %v302_v3, 0.0  ;;  %v641_v14 = vor.u32 %v639_v39, %v638_v4  ;;  %v642_v15 = vrot.slane %v638_v4, 4 }
  0x4f   : > { %v646_v16 = vrot.slane %v644_v5, 7  ;;  %v653_v17 = vshrl.u32 %v1135_v7, 16  ;;  %v656_v19 = vshll.u32 %v1135_v7, 16  ;;  %v303_v28 = vadd.f32 %v1361_v10, %v264_v12 }
  0x50   : > { %v1136_v20 = vpack.c.bf16 %v333_v9, %v333_v9  ;;  %v1137_v21 = vpack.c.bf16 %v334_v11, %v334_v11  ;;  %v882_v40 = vsel %vm1393_vm5, %v641_v14, %v1074_v8  ;;  %v304_v45 = vadd.f32 %v1361_v10, %v265_v13  ;;  %v1087_v8 = vld [vmem:[%s1288_s23 + $0x8c] sm:$0x1] }
  0x51   : > { %v649_v22 = vor.u32 %v647_v6, %v646_v16  ;;  %v651_v23 = vrot.slane %v646_v16, 4  ;;  %v655_v24 = vrot.slane %v653_v17, 7  ;;  %1075 = vst [vmem:[%s1288_s23 + $0x6c] sm:$0xf] %v882_v40  ;;  %v335_v44 = vmax.f32 %v303_v28, 0.0 }
  0x52   : > { %v661_v29 = vshrl.u32 %v1136_v20, 16  ;;  %v664_v30 = vshll.u32 %v1136_v20, 16  ;;  %v670_v31 = vshrl.u32 %v1137_v21, 16  ;;  %v673_v32 = vshll.u32 %v1137_v21, 16 }
  0x53   : > { %v650_v33 = vsel %vm1399_vm6, %v642_v15, %v649_v22  ;;  %v886_v34 = vsel %vm1406_vm7, %v651_v23, %v1077_v18  ;;  %v658_v35 = vor.u32 %v656_v19, %v655_v24  ;;  %v659_v36 = vrot.slane %v655_v24, 4  ;;  %v1089_v22 = vld [vmem:[%s1288_s23 + $0x90] sm:$0xf] }
  0x54   : > { %1076 = vst [vmem:[%s1288_s23 + $0x70] sm:$0xf] %v650_v33  ;;  %1078 = vst [vmem:[%s1288_s23 + $0x74] sm:$0x1] %v886_v34  ;;  %v663_v41 = vrot.slane %v661_v29, 7  ;;  %v672_v43 = vrot.slane %v670_v31, 7  ;;  %v1196_v49 = vunpack.c.h.bf16 %v1518_v42  ;;  %v1199_v50 = vunpack.c.l.bf16 %v1224_v25 }
  0x55   : > { %v889_v46 = vsel %vm1393_vm5, %v658_v35, %v1079_v26  ;;  %v1200_v37 = vunpack.c.h.bf16 %v1224_v25  ;;  %v1138_v55 = vpack.c.bf16 %v335_v44, %v335_v44  ;;  %v336_v57 = vmax.f32 %v304_v45, 0.0  ;;  %v1226_v25 = vld [vmem:[%s1278_s18 + $0x70] sm:$0xff]   ;;  %v1092_v45 = vld [vmem:[%s1288_s23 + $0x98] sm:$0x1] }
  0x56   : > { %1080 = vst [vmem:[%s1288_s23 + $0x78] sm:$0xf] %v889_v46  ;;  %v666_v51 = vor.u32 %v664_v30, %v663_v41  ;;  %v668_v52 = vrot.slane %v663_v41, 4  ;;  %v675_v54 = vor.u32 %v673_v32, %v672_v43  ;;  %v676_v56 = vrot.slane %v672_v43, 4 }
  0x57   : > { %v266_v27 = vmul.f32 %v1196_v49, %v1283_v0  ;;  %v267_v38 = vmul.f32 %v1199_v50, %v1283_v0  ;;  %v678_v61 = vshrl.u32 %v1138_v55, 16  ;;  %v681_v62 = vshll.u32 %v1138_v55, 16 }
  0x58   : > { %v667_v42 = vsel %vm1399_vm6, %v659_v36, %v666_v51  ;;  %v893_v39 = vsel %vm1406_vm7, %v668_v52, %v1082_v47  ;;  %v896_v60 = vsel %vm1393_vm5, %v675_v54, %v1084_v48  ;;  %v1139_v63 = vpack.c.bf16 %v336_v57, %v336_v57  ;;  %v1094_v51 = vld [vmem:[%s1288_s23 + $0x9c] sm:$0xf] }
  0x59   : > { %1081 = vst [vmem:[%s1288_s23 + $0x7c] sm:$0xf] %v667_v42  ;;  %1083 = vst [vmem:[%s1288_s23 + $0x80] sm:$0x1] %v893_v39  ;;  %v305_v2 = vadd.f32 %v1361_v10, %v266_v27  ;;  %v306_v3 = vadd.f32 %v1361_v10, %v267_v38  ;;  %v680_v4 = vrot.slane %v678_v61, 7  ;;  %v268_v5 = vmul.f32 %v1200_v37, %v1283_v0 }
  0x5a   : > { %1085 = vst [vmem:[%s1288_s23 + $0x84] sm:$0xf] %v896_v60  ;;  %v1203_v6 = vunpack.c.l.bf16 %v1225_v58  ;;  %v1204_v7 = vunpack.c.h.bf16 %v1225_v58  ;;  %v687_v9 = vshrl.u32 %v1139_v63, 16  ;;  %v690_v11 = vshll.u32 %v1139_v63, 16  ;;  %v1097_v42 = vld [vmem:[%s1288_s23 + $0xa4] sm:$0x1] }
  0x5b   : > { %v337_v12 = vmax.f32 %v305_v2, 0.0  ;;  %v338_v13 = vmax.f32 %v306_v3, 0.0  ;;  %v683_v14 = vor.u32 %v681_v62, %v680_v4  ;;  %v685_v15 = vrot.slane %v680_v4, 4  ;;  %v1227_v3 = vld [vmem:[%s1278_s18 + $0x78] sm:$0xff]   ;;  %v1099_v4 = vld [vmem:[%s1288_s23 + $0xa8] sm:$0xf] }
  0x5c   : > { %v307_v16 = vadd.f32 %v1361_v10, %v268_v5  ;;  %v269_v17 = vmul.f32 %v1203_v6, %v1283_v0  ;;  %v689_v18 = vrot.slane %v687_v9, 7  ;;  %v270_v21 = vmul.f32 %v1204_v7, %v1283_v0 }
  0x5d   : > { %v1140_v19 = vpack.c.bf16 %v337_v12, %v337_v12  ;;  %v1141_v20 = vpack.c.bf16 %v338_v13, %v338_v13  ;;  %v684_v28 = vsel %vm1399_vm6, %v676_v56, %v683_v14  ;;  %v900_v40 = vsel %vm1406_vm7, %v685_v15, %v1087_v8 }
  0x5e   : > { %v339_v23 = vmax.f32 %v307_v16, 0.0  ;;  %v308_v24 = vadd.f32 %v1361_v10, %v269_v17  ;;  %1086 = vst [vmem:[%s1288_s23 + $0x88] sm:$0xf] %v684_v28  ;;  %1088 = vst [vmem:[%s1288_s23 + $0x8c] sm:$0x1] %v900_v40  ;;  %v692_v26 = vor.u32 %v690_v11, %v689_v18  ;;  %v693_v29 = vrot.slane %v689_v18, 4 }
  0x5f   : > { %v695_v30 = vshrl.u32 %v1140_v19, 16  ;;  %v698_v31 = vshll.u32 %v1140_v19, 16  ;;  %v704_v32 = vshrl.u32 %v1141_v20, 16  ;;  %v707_v33 = vshll.u32 %v1141_v20, 16  ;;  %v1102_v19 = vld [vmem:[%s1288_s23 + $0xb0] sm:$0x1] }
  0x60   : > { %v1142_v34 = vpack.c.bf16 %v339_v23, %v339_v23  ;;  %v340_v35 = vmax.f32 %v308_v24, 0.0  ;;  %v903_v36 = vsel %vm1393_vm5, %v692_v26, %v1089_v22  ;;  %v309_v43 = vadd.f32 %v1361_v10, %v270_v21 }
  0x61   : > { %v697_v41 = vrot.slane %v695_v30, 7  ;;  %v1207_v44 = vunpack.c.l.bf16 %v1226_v25  ;;  %1090 = vst [vmem:[%s1288_s23 + $0x90] sm:$0xf] %v903_v36  ;;  %v706_v46 = vrot.slane %v704_v32, 7  ;;  %v1208_v8 = vunpack.c.h.bf16 %v1226_v25 }
  0x62   : > { %v712_v47 = vshrl.u32 %v1142_v34, 16  ;;  %v715_v48 = vshll.u32 %v1142_v34, 16  ;;  %v1143_v49 = vpack.c.bf16 %v340_v35, %v340_v35  ;;  %v341_v52 = vmax.f32 %v309_v43, 0.0  ;;  %v1104_v35 = vld [vmem:[%s1288_s23 + $0xb4] sm:$0xf] }
  0x63   : > { %v700_v50 = vor.u32 %v698_v31, %v697_v41  ;;  %v702_v37 = vrot.slane %v697_v41, 4  ;;  %v271_v54 = vmul.f32 %v1207_v44, %v1283_v0  ;;  %v709_v55 = vor.u32 %v707_v33, %v706_v46 }
  0x64   : > { %v710_v56 = vrot.slane %v706_v46, 4  ;;  %v714_v57 = vrot.slane %v712_v47, 7  ;;  %v721_v27 = vshrl.u32 %v1143_v49, 16  ;;  %v724_v39 = vshll.u32 %v1143_v49, 16 }
  0x65   : > { %v701_v38 = vsel %vm1399_vm6, %v693_v29, %v700_v50  ;;  %v907_v58 = vsel %vm1406_vm7, %v702_v37, %v1092_v45  ;;  %v1144_v60 = vpack.c.bf16 %v341_v52, %v341_v52  ;;  %v910_v61 = vsel %vm1393_vm5, %v709_v55, %v1094_v51  ;;  %v1107_v52 = vld [vmem:[%s1288_s23 + $0xbc] sm:$0x1] }
  0x66   : > { %1091 = vst [vmem:[%s1288_s23 + $0x94] sm:$0xf] %v701_v38  ;;  %1093 = vst [vmem:[%s1288_s23 + $0x98] sm:$0x1] %v907_v58  ;;  %v717_v62 = vor.u32 %v715_v48, %v714_v57  ;;  %v719_v63 = vrot.slane %v714_v57, 4  ;;  %v723_v2 = vrot.slane %v721_v27, 7  ;;  %v310_v7 = vadd.f32 %v1361_v10, %v271_v54 }
  0x67   : > { %1095 = vst [vmem:[%s1288_s23 + $0x9c] sm:$0xf] %v910_v61  ;;  %v729_v5 = vshrl.u32 %v1144_v60, 16  ;;  %v732_v6 = vshll.u32 %v1144_v60, 16  ;;  %v272_v16 = vmul.f32 %v1208_v8, %v1283_v0  ;;  %v1211_v17 = vunpack.c.l.bf16 %v1227_v3  ;;  %v1109_v38 = vld [vmem:[%s1288_s23 + $0xc0] sm:$0xf] }
  0x68   : > { %v718_v9 = vsel %vm1399_vm6, %v710_v56, %v717_v62  ;;  %v914_v11 = vsel %vm1406_vm7, %v719_v63, %v1097_v42  ;;  %v726_v12 = vor.u32 %v724_v39, %v723_v2  ;;  %v727_v13 = vrot.slane %v723_v2, 4  ;;  %v1112_v61 = vld [vmem:[%s1288_s23 + $0xc8] sm:$0x1] }
  0x69   : > { %1096 = vst [vmem:[%s1288_s23 + $0xa0] sm:$0xf] %v718_v9  ;;  %1098 = vst [vmem:[%s1288_s23 + $0xa4] sm:$0x1] %v914_v11  ;;  %v731_v14 = vrot.slane %v729_v5, 7  ;;  %v342_v15 = vmax.f32 %v310_v7, 0.0  ;;  %v1212_v20 = vunpack.c.h.bf16 %v1227_v3  ;;  %v311_v22 = vadd.f32 %v1361_v10, %v272_v16 }
  0x6a   : > { %v917_v18 = vsel %vm1393_vm5, %v726_v12, %v1099_v4  ;;  %v273_v23 = vmul.f32 %v1211_v17, %v1283_v0 }
  0x6b   : > { %1100 = vst [vmem:[%s1288_s23 + $0xa8] sm:$0xf] %v917_v18  ;;  %v734_v21 = vor.u32 %v732_v6, %v731_v14  ;;  %v736_v28 = vrot.slane %v731_v14, 4  ;;  %v1145_v40 = vpack.c.bf16 %v342_v15, %v342_v15  ;;  %v274_v24 = vmul.f32 %v1212_v20, %v1283_v0 }
  0x6c   : > { %v343_v31 = vmax.f32 %v311_v22, 0.0  ;;  %v312_v32 = vadd.f32 %v1361_v10, %v273_v23 }
  0x6d   : > { %v735_v25 = vsel %vm1399_vm6, %v727_v13, %v734_v21  ;;  %v921_v26 = vsel %vm1406_vm7, %v736_v28, %v1102_v19  ;;  %v738_v29 = vshrl.u32 %v1145_v40, 16  ;;  %v741_v30 = vshll.u32 %v1145_v40, 16 }
  0x6e   : > { %1101 = vst [vmem:[%s1288_s23 + $0xac] sm:$0xf] %v735_v25  ;;  %1103 = vst [vmem:[%s1288_s23 + $0xb0] sm:$0x1] %v921_v26  ;;  %v313_v33 = vadd.f32 %v1361_v10, %v274_v24  ;;  %v1146_v0 = vpack.c.bf16 %v343_v31, %v343_v31  ;;  %v344_v36 = vmax.f32 %v312_v32, 0.0 }
  0x6f   : > { %v740_v34 = vrot.slane %v738_v29, 7 }
  0x70   : > { %v345_v41 = vmax.f32 %v313_v33, 0.0  ;;  %v746_v44 = vshrl.u32 %v1146_v0, 16  ;;  %v749_v45 = vshll.u32 %v1146_v0, 16  ;;  %v1147_v46 = vpack.c.bf16 %v344_v36, %v344_v36 }
  0x71   : > { %v743_v43 = vor.u32 %v741_v30, %v740_v34  ;;  %v744_v49 = vrot.slane %v740_v34, 4 }
  0x72   : > { %v1148_v47 = vpack.c.bf16 %v345_v41, %v345_v41  ;;  %v748_v50 = vrot.slane %v746_v44, 7  ;;  %v755_v10 = vshrl.u32 %v1147_v46, 16  ;;  %v758_v37 = vshll.u32 %v1147_v46, 16 }
  0x73   : > { %v924_v48 = vsel %vm1393_vm5, %v743_v43, %v1104_v35 }
  0x74   : > { %1105 = vst [vmem:[%s1288_s23 + $0xb4] sm:$0xf] %v924_v48  ;;  %v763_v51 = vshrl.u32 %v1148_v47, 16  ;;  %v766_v54 = vshll.u32 %v1148_v47, 16  ;;  %v751_v55 = vor.u32 %v749_v45, %v748_v50  ;;  %v753_v56 = vrot.slane %v748_v50, 4 }
  0x75   : > { %v757_v57 = vrot.slane %v755_v10, 7 }
  0x76   : > { %v765_v27 = vrot.slane %v763_v51, 7  ;;  %v752_v58 = vsel %vm1399_vm6, %v744_v49, %v751_v55  ;;  %v928_v42 = vsel %vm1406_vm7, %v753_v56, %v1107_v52 }
  0x77   : > { %v760_v39 = vor.u32 %v758_v37, %v757_v57  ;;  %v761_v60 = vrot.slane %v757_v57, 4  ;;  %1106 = vst [vmem:[%s1288_s23 + $0xb8] sm:$0xf] %v752_v58  ;;  %1108 = vst [vmem:[%s1288_s23 + $0xbc] sm:$0x1] %v928_v42 }
  0x78   : > { %v768_v62 = vor.u32 %v766_v54, %v765_v27  ;;  %v770_v63 = vrot.slane %v765_v27, 4 }
  0x79   : > { %v931_v2 = vsel %vm1393_vm5, %v760_v39, %v1109_v38 }
  0x7a   : > { %1110 = vst [vmem:[%s1288_s23 + $0xc0] sm:$0xf] %v931_v2  ;;  %v769_v3 = vsel %vm1399_vm6, %v761_v60, %v768_v62  ;;  %v935_v4 = vsel %vm1406_vm7, %v770_v63, %v1112_v61 }
  0x7b   : > { %1111 = vst [vmem:[%s1288_s23 + $0xc4] sm:$0xf] %v769_v3  ;;  %1113 = vst [vmem:[%s1288_s23 + $0xc8] sm:$0x1] %v935_v4 }
  0x7c PF: > { %s13_s12 = sadd.s32 1, %s1244_s12  }
  0x7d   : > { %p10_p4 = scmp.ge.s32.totalorder %s13_s12, 4  }
  0x7f   :  { %12 = sbr.rel (!%p10_p4) target bundleno = 1 (0x1), region = 63 }

// kernel: generator_forward.11
= control target key start
LH: loop header
LB: loop body
LE: loop exit
PB: predicated region body
PF: predicated region fallthrough
CT: control target
= control target key end

     0   :  { %s7321_s15 = smov 0   ;;  %s9180_s0 = inlined_call_operand.vmem [shape: bf16[2,18,18,128], index: 0, kind: input, shape index: {}]   ;;  %s9181_s1 = inlined_call_operand.vmem [shape: bf16[9,128,128], index: 1, kind: input, shape index: {}]   ;;  %s9182_s2 = inlined_call_operand.vmem [shape: f32[1,128], index: 2, kind: input, shape index: {}]   ;;  %s9183_s3 = inlined_call_operand.vmem [shape: bf16[2,16,16,128], index: 3, kind: output, shape index: {0}]   ;;  %s9184_s4 = inlined_call_operand.vmem [shape: f32[2,2,128], index: 4, kind: output, shape index: {1}]  }
   0x1 LB: > { %s5413_s16 = sadd.s32 4294967295, %s7294_s15   ;;  %p5417_p0 = scmp.ge.s32.totalorder %s7294_s15, 1  ;;  %s7294_s15 = sphi %s7321_s15, %s15_s15  }
   0x2   : > { %p165_p1 = scmp.lt.s32.totalorder %s7294_s15, 3 }
   0x4   : > { %p166_p2 = pnand %p5417_p0, %p165_p1 }
   0x6   : > { %169 = sbr.rel (%p166_p2) target bundleno = 606 (0x25e), region = 32 }
   0xd   : > { %v7098_v0 = vld [vmem:[%s9181_s1 + $0x40] sm:$0xff]   ;;  %p195_p3 = scmp.lt.s32.totalorder %s5413_s16, 1  ;;  %v7100_v2 = vld [vmem:[%s9181_s1 + $0x48] sm:$0xff]   ;;  %v7102_v4 = vld [vmem:[%s9181_s1 + $0x50] sm:$0xff]   ;;  %vm274_vm0 = vsmask.f32 3328 }
   0xe   : > { %v7099_v1 = vld [vmem:[%s9181_s1 + $0x100] sm:$0xff]   ;;  %6385 = vmatprep.subr.bf16.mxu1 %v7098_v0  ;;  %v7101_v3 = vld [vmem:[%s9181_s1 + $0x108] sm:$0xff]   ;;  %v7103_v5 = vld [vmem:[%s9181_s1 + $0x110] sm:$0xff]   ;;  %vm275_vm1 = vsmask.f32 7440  ;;  %vm1304_vm3 = vcmask 1042432  }
   0xf   : > { %6577 = vmatprep.subr.bf16.mxu0 %v7099_v1  ;;  %6386 = vmatpush3.bf16.msra.mxu1 %v7098_v0  ;;  %s9252_s16 = smov (!%p195_p3, %s5413_s16), 1  ;;  %v7104_v6 = vld [vmem:[%s9181_s1 + $0x58] sm:$0xff]   ;;  %v7106_v8 = vld [vmem:[%s9181_s1 + $0x60] sm:$0xff]   ;;  %v7108_v10 = vld [vmem:[%s9181_s1 + $0x68] sm:$0xff]   ;;  %vm1305_vm4 = vcmask 1046532   ;;  %vm5324_vm6 = vcmask 1040384  }
  0x10   : > { %6578 = vmatpush3.bf16.msra.mxu0 %v7099_v1  ;;  %6387 = vmatprep.subr.bf16.mxu1 %v7100_v2  ;;  %v7105_v7 = vld [vmem:[%s9181_s1 + $0x118] sm:$0xff]   ;;  %s7089_s7 = smul.u32 216, %s9252_s16  ;;  %v7107_v9 = vld [vmem:[%s9181_s1 + $0x120] sm:$0xff]   ;;  %v7109_v11 = vld [vmem:[%s9181_s1 + $0x128] sm:$0xff]   ;;  %s6041_s20 = sshll.u32 %s9252_s16, 7 }
  0x11   : > { %6579 = vmatprep.subr.bf16.mxu0 %v7101_v3  ;;  %v7110_v25 = vld [vmem:[%s9181_s1 + $0x70] sm:$0xff]   ;;  %v7112_v36 = vld [vmem:[%s9181_s1 + $0x78] sm:$0xff]   ;;  %vm7397_vm2 = vmor %vm274_vm0, %vm275_vm1  ;;  %s9119_s23 = scalar_lea.vmem %s9183_s3, %s6041_s20  ;;  %s5421_s24 = sshll.u32 %s9252_s16, 1 }
  0x12   : > { %s7365_s14 = scalar_lea.vmem %s9180_s0, %s7089_s7  ;;  %v7111_v30 = vld [vmem:[%s9181_s1 + $0x130] sm:$0xff]   ;;  %v7113_v51 = vld [vmem:[%s9181_s1 + $0x138] sm:$0xff]   ;;  %vm7643_vm5 = vmor %vm1304_vm3, %vm1305_vm4  ;;  %s208_s27 = scalar_lea.vmem %s9184_s4, %s5421_s24 }
  0x13   : > { %6388 = vmatpush3.bf16.msra.mxu1 %v7100_v2  ;;  %v210_v12 = vld [vmem:[%s7365_s14] sm:$0xf]  ;;  %v211_v13 = vld [vmem:[%s7365_s14 + $0x4] sm:$0xf]  ;;  %v258_v14 = vld [vmem:[%s7365_s14 + $0x8] sm:$0x1] }
  0x14   : > { %6580 = vmatpush3.bf16.msra.mxu0 %v7101_v3  ;;  %6389 = vmatprep.subr.bf16.mxu1 %v7102_v4  ;;  %v278_v15 = vshrl.u32 %v210_v12, 16  ;;  %v281_v16 = vshll.u32 %v210_v12, 16  ;;  %v287_v17 = vshll.u32 %v211_v13, 16  ;;  %v291_v18 = vshrl.u32 %v211_v13, 16  ;;  %v5614_v20 = vld [vmem:[%s7365_s14 + $0xc] sm:$0xf] }
  0x15   : > { %6581 = vmatprep.subr.bf16.mxu0 %v7103_v5  ;;  %v297_v19 = vshll.u32 %v258_v14, 16  ;;  %v7378_v23 = vld [vmem:[%s7365_s14 + $0x10] sm:$0xf]  ;;  %v7381_v24 = vld [vmem:[%s7365_s14 + $0x14] sm:$0x1]  ;;  %v2177_v29 = vshrl.u32 %v5614_v20, 16 }
  0x16   : > { %v280_v21 = vrot.slane %v278_v15, 4  ;;  %v283_v22 = vrot.slane %v281_v16, 5  ;;  %v289_v26 = vrot.slane %v287_v17, 5  ;;  %v293_v27 = vrot.slane %v291_v18, 4  ;;  %v212_v35 = vld [vmem:[%s7365_s14 + $0xc] sm:$0xf] }
  0x17   : > { %6390 = vmatpush3.bf16.msra.mxu1 %v7102_v4  ;;  %v299_v28 = vrot.slane %v297_v19, 5  ;;  %v2180_v32 = vshll.u32 %v5614_v20, 16  ;;  %v2186_v33 = vshll.u32 %v7378_v23, 16  ;;  %v2190_v34 = vshrl.u32 %v7378_v23, 16  ;;  %v213_v42 = vld [vmem:[%s7365_s14 + $0x10] sm:$0xf] }
  0x18   : > { %6582 = vmatpush3.bf16.msra.mxu0 %v7103_v5  ;;  %6391 = vmatprep.subr.bf16.mxu1 %v7104_v6  ;;  %v284_v31 = vor.u32 %v283_v22, %v280_v21  ;;  %v294_v38 = vor.u32 %v293_v27, %v289_v26  ;;  %v2179_v39 = vrot.slane %v2177_v29, 4  ;;  %v2196_v40 = vshll.u32 %v7381_v24, 16  ;;  %v259_v55 = vld [vmem:[%s7365_s14 + $0x14] sm:$0x1]  ;;  %v5617_v57 = vld [vmem:[%s7365_s14 + $0x18] sm:$0xf] }
  0x19   : > { %6583 = vmatprep.subr.bf16.mxu0 %v7105_v7  ;;  %v2951_v41 = vrot.slane %v7381_v24, 5  ;;  %v2182_v44 = vrot.slane %v2180_v32, 5  ;;  %v2188_v45 = vrot.slane %v2186_v33, 5  ;;  %v2192_v46 = vrot.slane %v2190_v34, 4  ;;  %v7414_v62 = vld [vmem:[%s7365_s14 + $0x1c] sm:$0xf] }
  0x1a   : > { %v285_v43 = vrot.slane %v284_v31, 4  ;;  %v295_v47 = vrot.slane %v294_v38, 4  ;;  %v2198_v48 = vrot.slane %v2196_v40, 5  ;;  %v302_v49 = vshrl.u32 %v212_v35, 16  ;;  %v7114_v3 = vld [vmem:[%s9181_s1] sm:$0xff]  }
  0x1b   : > { %6392 = vmatpush3.bf16.msra.mxu1 %v7104_v6  ;;  %v305_v50 = vshll.u32 %v212_v35, 16  ;;  %v2183_v53 = vor.u32 %v2182_v44, %v2179_v39  ;;  %v2193_v54 = vor.u32 %v2192_v46, %v2188_v45  ;;  %v311_v56 = vshll.u32 %v213_v42, 16  ;;  %v7422_v4 = vld [vmem:[%s9181_s1 + $0x140] sm:$0xff]   ;;  %v214_v21 = vld [vmem:[%s7365_s14 + $0x18] sm:$0xf]  ;;  %v7117_v46 = vld [vmem:[%s9181_s1 + $0x8] sm:$0xff]  }
  0x1c   : > { %6584 = vmatpush3.bf16.msra.mxu0 %v7105_v7  ;;  %6393 = vmatprep.subr.bf16.mxu1 %v7106_v8  ;;  %v290_v52 = vsel %vm7397_vm2, %v285_v43, %v289_v26  ;;  %v300_v58 = vsel %vm7397_vm2, %v295_v47, %v299_v28  ;;  %v304_v59 = vrot.slane %v302_v49, 4  ;;  %v315_v61 = vshrl.u32 %v213_v42, 16  ;;  %v215_v28 = vld [vmem:[%s7365_s14 + $0x1c] sm:$0xf]  ;;  %v260_v33 = vld [vmem:[%s7365_s14 + $0x20] sm:$0x1] }
  0x1d   : > { %6585 = vmatprep.subr.bf16.mxu0 %v7107_v9  ;;  %v307_v60 = vrot.slane %v305_v50, 5  ;;  %v5438_v63 = vcombine.low %v290_v52, %v300_v58  ;;  %v2184_v0 = vrot.slane %v2183_v53, 4  ;;  %v2194_v1 = vrot.slane %v2193_v54, 4  ;;  %v5620_v39 = vld [vmem:[%s7365_s14 + $0x24] sm:$0xf] }
  0x1e   : > { %v313_v2 = vrot.slane %v311_v56, 5  ;;  %v317_v6 = vrot.slane %v315_v61, 4  ;;  %v321_v7 = vshll.u32 %v259_v55, 16  ;;  %v2204_v12 = vshll.u32 %v5617_v57, 16  ;;  %v216_v52 = vld [vmem:[%s7365_s14 + $0x24] sm:$0xf] }
  0x1f   : > { %6394 = vmatpush3.bf16.msra.mxu1 %v7106_v8  ;;  %v308_v5 = vor.u32 %v307_v60, %v304_v59  ;;  %v7425_v8 = vld [vmem:[%s7365_s14 + $0x20] sm:$0x1]  ;;  %6401 = vmatprep.mubr.bf16.mxu1 %v5438_v63  ;;  %v2210_v19 = vshll.u32 %v7414_v62, 16  ;;  %v2214_v20 = vshrl.u32 %v7414_v62, 16  ;;  %v2955_v27 = vrot.slane %v7414_v62, 5  ;;  %v7116_v63 = vld [vmem:[%s9181_s1 + $0x148] sm:$0xff]  }
  0x20   : > { %6586 = vmatpush3.bf16.msra.mxu0 %v7107_v9  ;;  %6395 = vmatprep.subr.bf16.mxu1 %v7108_v10  ;;  %v2189_v9 = vsel %vm7397_vm2, %v2184_v0, %v2188_v45  ;;  %v318_v15 = vor.u32 %v317_v6, %v313_v2  ;;  %v323_v16 = vrot.slane %v321_v7, 5  ;;  %v2206_v18 = vrot.slane %v2204_v12, 5  ;;  %v7450_v45 = vld [vmem:[%s7365_s14 + $0x28] sm:$0xf] }
  0x21   : > { %6587 = vmatprep.subr.bf16.mxu0 %v7109_v11  ;;  %v309_v14 = vrot.slane %v308_v5, 4  ;;  %v2220_v26 = vshll.u32 %v7425_v8, 16  ;;  %v2216_v31 = vrot.slane %v2214_v20, 4  ;;  %v2958_v32 = vrot.slane %v7425_v8, 5  ;;  %v217_v5 = vld [vmem:[%s7365_s14 + $0x28] sm:$0xf] }
  0x22   : > { %v326_v38 = vshrl.u32 %v214_v21, 16  ;;  %v329_v44 = vshll.u32 %v214_v21, 16  ;;  %v339_v49 = vshrl.u32 %v215_v28, 16  ;;  %v345_v50 = vshll.u32 %v260_v33, 16  ;;  %v7481_v33 = vld [vmem:[%s7365_s14 + $0x34] sm:$0xf] }
  0x23   : > { %6396 = vmatpush3.bf16.msra.mxu1 %v7108_v10  ;;  %v2199_v10 = vsel %vm7397_vm2, %v2194_v1, %v2198_v48  ;;  %v314_v22 = vsel %vm7397_vm2, %v309_v14, %v313_v2  ;;  %v2222_v35 = vrot.slane %v2220_v26, 5  ;;  %v335_v48 = vshll.u32 %v215_v28, 16 }
  0x24   : > { %6588 = vmatpush3.bf16.msra.mxu0 %v7109_v11  ;;  %6397 = vmatprep.subr.bf16.mxu1 %v7110_v25  ;;  %v2201_v11 = vshrl.u32 %v5617_v57, 16  ;;  %v5678_v13 = vcombine.low %v2189_v9, %v2199_v10  ;;  %v328_v47 = vrot.slane %v326_v38, 4  ;;  %v331_v55 = vrot.slane %v329_v44, 5 }
  0x25   : > { %6589 = vmatprep.subr.bf16.mxu0 %v7111_v30  ;;  %v2225_v56 = vshrl.u32 %v5620_v39, 16  ;;  %v337_v57 = vrot.slane %v335_v48, 5  ;;  %v341_v58 = vrot.slane %v339_v49, 4  ;;  %v347_v59 = vrot.slane %v345_v50, 5  ;;  %v7119_v48 = vld [vmem:[%s9181_s1 + $0x158] sm:$0xff]  }
  0x26   : > { %v2203_v17 = vrot.slane %v2201_v11, 4  ;;  %6593 = vmatprep.mubr.bf16.mxu0 %v5678_v13  ;;  %v2228_v60 = vshll.u32 %v5620_v39, 16  ;;  %v332_v0 = vor.u32 %v331_v55, %v328_v47  ;;  %v2234_v2 = vshll.u32 %v7450_v45, 16  ;;  %v261_v11 = vld [vmem:[%s7365_s14 + $0x2c] sm:$0x1] }
  0x27   : > { %6398 = vmatpush3.bf16.msra.mxu1 %v7110_v25  ;;  %v319_v25 = vrot.slane %v318_v15, 4  ;;  %v2227_v1 = vrot.slane %v2225_v56, 4  ;;  %v342_v7 = vor.u32 %v341_v58, %v337_v57  ;;  %v2238_v10 = vshrl.u32 %v7450_v45, 16 }
  0x28   : > { %6590 = vmatpush3.bf16.msra.mxu0 %v7111_v30  ;;  %6399 = vmatprep.subr.bf16.mxu1 %v7112_v36  ;;  %v2207_v29 = vor.u32 %v2206_v18, %v2203_v17  ;;  %v2212_v30 = vrot.slane %v2210_v19, 5  ;;  %v2230_v9 = vrot.slane %v2228_v60, 5  ;;  %v333_v12 = vrot.slane %v332_v0, 4  ;;  %v7126_v60 = vld [vmem:[%s9181_s1 + $0x20] sm:$0xff]  }
  0x29   : > { %6591 = vmatprep.subr.bf16.mxu0 %v7113_v51  ;;  %v324_v34 = vsel %vm7397_vm2, %v319_v25, %v323_v16  ;;  %v2236_v13 = vrot.slane %v2234_v2, 5  ;;  %v350_v15 = vshrl.u32 %v216_v52, 16  ;;  %v5623_v16 = vld [vmem:[%s7365_s14 + $0x30] sm:$0xf]  ;;  %v343_v17 = vrot.slane %v342_v7, 4 }
  0x2a   : > { %v5439_v40 = vcombine.low %v314_v22, %v324_v34  ;;  %v2208_v42 = vrot.slane %v2207_v29, 4  ;;  %v2217_v43 = vor.u32 %v2216_v31, %v2212_v30  ;;  %v2231_v18 = vor.u32 %v2230_v9, %v2227_v1  ;;  %v7123_v34 = vld [vmem:[%s9181_s1 + $0x18] sm:$0xff]  }
  0x2b   : > { %6400 = vmatpush3.bf16.msra.mxu1 %v7112_v36  ;;  %v7446_v36 = vrot.slane %v2955_v27, 4  ;;  %v2240_v19 = vrot.slane %v2238_v10, 4  ;;  %v353_v20 = vshll.u32 %v216_v52, 16  ;;  %v338_v21 = vsel %vm7397_vm2, %v333_v12, %v337_v57  ;;  %v262_v2 = vld [vmem:[%s7365_s14 + $0x38] sm:$0x1] }
  0x2c   : > { %6592 = vmatpush3.bf16.msra.mxu0 %v7113_v51  ;;  %6433 = vmatprep.subr.bf16.mxu1 %v7114_v3  ;;  %v7456_v51 = vld [vmem:[%s7365_s14 + $0x2c] sm:$0x1]  ;;  %v2213_v53 = vsel %vm7397_vm2, %v2208_v42, %v2212_v30  ;;  %v2218_v54 = vrot.slane %v2217_v43, 4  ;;  %v352_v25 = vrot.slane %v350_v15, 4  ;;  %v359_v26 = vshll.u32 %v217_v5, 16 }
  0x2d   : > { %6625 = vmatprep.subr.bf16.mxu0 %v7422_v4  ;;  %v2244_v14 = vshll.u32 %v7456_v51, 16  ;;  %v348_v28 = vsel %vm7397_vm2, %v343_v17, %v347_v59  ;;  %v2232_v29 = vrot.slane %v2231_v18, 4  ;;  %v2241_v30 = vor.u32 %v2240_v19, %v2236_v13  ;;  %v219_v59 = vld [vmem:[%s7365_s14 + $0x34] sm:$0xf]  ;;  %v5626_v9 = vld [vmem:[%s7365_s14 + $0x3c] sm:$0xf] }
  0x2e   : > { %6402 = vmatmul.mubr.bf16.vlgmr.msra.gmra.mrb[0].mxu1 %v5439_v40  ;;  %v2223_v61 = vsel %vm7397_vm2, %v2218_v54, %v2222_v35  ;;  %v355_v31 = vrot.slane %v353_v20, 5  ;;  %v5440_v35 = vcombine.low %v338_v21, %v348_v28  ;;  %v361_v38 = vrot.slane %v359_v26, 5  ;;  %v218_v54 = vld [vmem:[%s7365_s14 + $0x30] sm:$0xf]  ;;  %v7515_v19 = vld [vmem:[%s7365_s14 + $0x40] sm:$0xf] }
  0x2f   : > { %6434 = vmatpush3.bf16.msra.mxu1 %v7114_v3  ;;  %v7120_v3 = vld [vmem:[%s9181_s1 + $0x10] sm:$0xff]   ;;  %v5679_v6 = vcombine.low %v2213_v53, %v2223_v61  ;;  %v2246_v22 = vrot.slane %v2244_v14, 5  ;;  %v363_v39 = vshrl.u32 %v217_v5, 16  ;;  %v369_v40 = vshll.u32 %v261_v11, 16  ;;  %v7128_v14 = vld [vmem:[%s9181_s1 + $0x28] sm:$0xff]   ;;  %v7121_v20 = vld [vmem:[%s9181_s1 + $0x160] sm:$0xff]  }
  0x30   : > { %6435 = vmatprep.subr.bf16.mxu1 %v7117_v46  ;;  %v2237_v42 = vsel %vm7397_vm2, %v2232_v29, %v2236_v13  ;;  %v2242_v43 = vrot.slane %v2241_v30, 4  ;;  %v356_v44 = vor.u32 %v355_v31, %v352_v25  ;;  %v2249_v47 = vshrl.u32 %v5623_v16, 16  ;;  %6405 = vmatprep.mubr.bf16.mxu1 %v5440_v35  ;;  %v7523_v28 = vld [vmem:[%s7365_s14 + $0x44] sm:$0x1]  ;;  %v7130_v35 = vld [vmem:[%s9181_s1 + $0x30] sm:$0xff]  }
  0x31   : > { %6594 = vmatmul.mubr.bf16.vlgmr.msra.gmra.mrb[0].mxu0 %v5679_v6  ;;  %v365_v49 = vrot.slane %v363_v39, 4  ;;  %v371_v50 = vrot.slane %v369_v40, 5  ;;  %v2252_v52 = vshll.u32 %v5623_v16, 16  ;;  %v2258_v53 = vshll.u32 %v7481_v33, 16 }
  0x32   : > { %6626 = vmatpush3.bf16.msra.mxu0 %v7422_v4  ;;  %v7118_v4 = vld [vmem:[%s9181_s1 + $0x150] sm:$0xff]   ;;  %v2247_v55 = vsel %vm7397_vm2, %v2242_v43, %v2246_v22  ;;  %v357_v56 = vrot.slane %v356_v44, 4  ;;  %v2251_v57 = vrot.slane %v2249_v47, 4  ;;  %v2262_v58 = vshrl.u32 %v7481_v33, 16 }
  0x33   : > { %6436 = vmatpush3.bf16.msra.mxu1 %v7117_v46  ;;  %6627 = vmatprep.subr.bf16.mxu0 %v7116_v63  ;;  %v7492_v46 = vld [vmem:[%s7365_s14 + $0x38] sm:$0x1]  ;;  %v5680_v61 = vcombine.low %v2237_v42, %v2247_v55  ;;  %v2254_v0 = vrot.slane %v2252_v52, 5  ;;  %v2260_v1 = vrot.slane %v2258_v53, 5  ;;  %v374_v7 = vshrl.u32 %v218_v54, 16 }
  0x34   : > { %6437 = vmatprep.subr.bf16.mxu1 %v7120_v3  ;;  %v362_v5 = vsel %vm7397_vm2, %v357_v56, %v361_v38  ;;  %v2268_v6 = vshll.u32 %v7492_v46, 16  ;;  %v377_v12 = vshll.u32 %v218_v54, 16  ;;  %v383_v13 = vshll.u32 %v219_v59, 16  ;;  %v221_v55 = vld [vmem:[%s7365_s14 + $0x40] sm:$0xf] }
  0x35   : > { %6597 = vmatprep.mubr.bf16.mxu0 %v5680_v61  ;;  %v2255_v11 = vor.u32 %v2254_v0, %v2251_v57  ;;  %v376_v17 = vrot.slane %v374_v7, 4  ;;  %v387_v18 = vshrl.u32 %v219_v59, 16  ;;  %v2273_v40 = vshrl.u32 %v5626_v9, 16 }
  0x36   : > { %6628 = vmatpush3.bf16.msra.mxu0 %v7116_v63  ;;  %v366_v63 = vor.u32 %v365_v49, %v361_v38  ;;  %v2270_v16 = vrot.slane %v2268_v6, 5  ;;  %v379_v25 = vrot.slane %v377_v12, 5  ;;  %v385_v26 = vrot.slane %v383_v13, 5 }
  0x37   : > { %6438 = vmatpush3.bf16.msra.mxu1 %v7120_v3  ;;  %6629 = vmatprep.subr.bf16.mxu0 %v7118_v4  ;;  %v2264_v3 = vrot.slane %v2262_v58, 4  ;;  %v2256_v22 = vrot.slane %v2255_v11, 4  ;;  %v389_v31 = vrot.slane %v387_v18, 4  ;;  %v2276_v42 = vshll.u32 %v5626_v9, 16  ;;  %v5629_v9 = vld [vmem:[%s7365_s14 + $0x48] sm:$0xf] }
  0x38   : > { %6439 = vmatprep.subr.bf16.mxu1 %v7123_v34  ;;  %v367_v10 = vrot.slane %v366_v63, 4  ;;  %v380_v39 = vor.u32 %v379_v25, %v376_v17  ;;  %v2282_v49 = vshll.u32 %v7515_v19, 16  ;;  %v2275_v53 = vrot.slane %v2273_v40, 4  ;;  %v263_v63 = vld [vmem:[%s7365_s14 + $0x44] sm:$0x1] }
  0x39   : > { %v2265_v15 = vor.u32 %v2264_v3, %v2260_v1  ;;  %v2261_v38 = vsel %vm7397_vm2, %v2256_v22, %v2260_v1  ;;  %v390_v44 = vor.u32 %v389_v31, %v385_v26  ;;  %v2278_v54 = vrot.slane %v2276_v42, 5  ;;  %v7556_v22 = vld [vmem:[%s7365_s14 + $0x50] sm:$0x1]  ;;  %v7125_v31 = vld [vmem:[%s9181_s1 + $0x178] sm:$0xff]  }
  0x3a   : > { %6630 = vmatpush3.bf16.msra.mxu0 %v7118_v4  ;;  %v372_v21 = vsel %vm7397_vm2, %v367_v10, %v371_v50  ;;  %v393_v4 = vshll.u32 %v262_v2, 16  ;;  %v381_v52 = vrot.slane %v380_v39, 4  ;;  %v2284_v57 = vrot.slane %v2282_v49, 5  ;;  %v7132_v2 = vld [vmem:[%s9181_s1 + $0x38] sm:$0xff]  }
  0x3b   : > { %6440 = vmatpush3.bf16.msra.mxu1 %v7123_v34  ;;  %6631 = vmatprep.subr.bf16.mxu0 %v7119_v48  ;;  %v5441_v29 = vcombine.low %v362_v5, %v372_v21  ;;  %v2266_v30 = vrot.slane %v2265_v15, 4  ;;  %v220_v34 = vld [vmem:[%s7365_s14 + $0x3c] sm:$0xf]  ;;  %v391_v56 = vrot.slane %v390_v44, 4  ;;  %v2286_v58 = vshrl.u32 %v7515_v19, 16  ;;  %v7124_v15 = vld [vmem:[%s9181_s1 + $0x170] sm:$0xff]  }
  0x3c   : > { %6441 = vmatprep.subr.bf16.mxu1 %v7126_v60  ;;  %v395_v47 = vrot.slane %v393_v4, 5  ;;  %v2292_v59 = vshll.u32 %v7523_v28, 16  ;;  %v2279_v61 = vor.u32 %v2278_v54, %v2275_v53  ;;  %v398_v0 = vshrl.u32 %v220_v34, 16  ;;  %v7567_v4 = vld [vmem:[%s9181_s1 + $0x80] sm:$0xff]   ;;  %v223_v53 = vld [vmem:[%s7365_s14 + $0x4c] sm:$0xf] }
  0x3d   : > { %6406 = vmatmul.mubr.bf16.gmra.mrb[4].mxu1 %v5441_v29  ;;  %v2271_v43 = vsel %vm7397_vm2, %v2266_v30, %v2270_v16  ;;  %v401_v1 = vshll.u32 %v220_v34, 16  ;;  %v2288_v3 = vrot.slane %v2286_v58, 4  ;;  %v407_v7 = vshll.u32 %v221_v55, 16  ;;  %v222_v30 = vld [vmem:[%s7365_s14 + $0x48] sm:$0xf] }
  0x3e   : > { %6632 = vmatpush3.bf16.msra.mxu0 %v7119_v48  ;;  %v5681_v50 = vcombine.low %v2261_v38, %v2271_v43  ;;  %v7122_v48 = vld [vmem:[%s9181_s1 + $0x168] sm:$0xff]   ;;  %v396_v5 = vsel %vm7397_vm2, %v391_v56, %v395_v47  ;;  %v2294_v6 = vrot.slane %v2292_v59, 5  ;;  %v2280_v11 = vrot.slane %v2279_v61, 4  ;;  %v264_v54 = vld [vmem:[%s7365_s14 + $0x50] sm:$0x1] }
  0x3f   : > { %6442 = vmatpush3.bf16.msra.mxu1 %v7126_v60  ;;  %6633 = vmatprep.subr.bf16.mxu0 %v7121_v20  ;;  %v386_v60 = vsel %vm7397_vm2, %v381_v52, %v385_v26  ;;  %v400_v12 = vrot.slane %v398_v0, 4  ;;  %v403_v13 = vrot.slane %v401_v1, 5  ;;  %v2289_v16 = vor.u32 %v2288_v3, %v2284_v57  ;;  %v5632_v58 = vld [vmem:[%s7365_s14 + $0x54] sm:$0xf]  ;;  %v7581_v0 = vld [vmem:[%s7365_s14 + $0x58] sm:$0xf] }
  0x40   : > { %6443 = vmatprep.subr.bf16.mxu1 %v7128_v14  ;;  %6598 = vmatmul.mubr.bf16.gmra.mrb[4].mxu0 %v5681_v50  ;;  %v5442_v10 = vcombine.low %v386_v60, %v396_v5  ;;  %v409_v17 = vrot.slane %v407_v7, 5  ;;  %v411_v18 = vshrl.u32 %v221_v55, 16  ;;  %v417_v21 = vshll.u32 %v263_v63, 16 }
  0x41   : > { %v404_v25 = vor.u32 %v403_v13, %v400_v12  ;;  %v2297_v26 = vshrl.u32 %v5629_v9, 16  ;;  %v2300_v29 = vshll.u32 %v5629_v9, 16  ;;  %v2290_v34 = vrot.slane %v2289_v16, 4 }
  0x42   : > { %6634 = vmatpush3.bf16.msra.mxu0 %v7121_v20  ;;  %6409 = vmatprep.mubr.bf16.mxu1 %v5442_v10  ;;  %v2285_v20 = vsel %vm7397_vm2, %v2280_v11, %v2284_v57  ;;  %v419_v38 = vrot.slane %v417_v21, 5  ;;  %v2316_v52 = vshll.u32 %v7556_v22, 16  ;;  %v422_v61 = vshrl.u32 %v222_v30, 16 }
  0x43   : > { %6444 = vmatpush3.bf16.msra.mxu1 %v7128_v14  ;;  %v7550_v14 = vld [vmem:[%s7365_s14 + $0x4c] sm:$0xf]  ;;  %6635 = vmatprep.subr.bf16.mxu0 %v7122_v48  ;;  %v405_v40 = vrot.slane %v404_v25, 4  ;;  %v2299_v42 = vrot.slane %v2297_v26, 4  ;;  %v2302_v43 = vrot.slane %v2300_v29, 5  ;;  %v2295_v47 = vsel %vm7397_vm2, %v2290_v34, %v2294_v6  ;;  %v7586_v6 = vld [vmem:[%s9181_s1 + $0x180] sm:$0xff]  }
  0x44   : > { %6445 = vmatprep.subr.bf16.mxu1 %v7130_v35  ;;  %v2306_v39 = vshll.u32 %v7550_v14, 16  ;;  %v2310_v44 = vshrl.u32 %v7550_v14, 16  ;;  %v5682_v55 = vcombine.low %v2285_v20, %v2295_v47  ;;  %v2318_v60 = vrot.slane %v2316_v52, 5  ;;  %v7593_v20 = vld [vmem:[%s7365_s14 + $0x5c] sm:$0x1] }
  0x45   : > { %v2303_v56 = vor.u32 %v2302_v43, %v2299_v42  ;;  %v425_v63 = vshll.u32 %v222_v30, 16  ;;  %v435_v3 = vshrl.u32 %v223_v53, 16  ;;  %v424_v9 = vrot.slane %v422_v61, 4  ;;  %v225_v43 = vld [vmem:[%s7365_s14 + $0x58] sm:$0xf] }
  0x46   : > { %6636 = vmatpush3.bf16.msra.mxu0 %v7122_v48  ;;  %v2308_v50 = vrot.slane %v2306_v39, 5  ;;  %v410_v48 = vsel %vm7397_vm2, %v405_v40, %v409_v17  ;;  %v2312_v57 = vrot.slane %v2310_v44, 4  ;;  %6601 = vmatprep.mubr.bf16.mxu0 %v5682_v55  ;;  %v441_v11 = vshll.u32 %v264_v54, 16  ;;  %v5635_v52 = vld [vmem:[%s7365_s14 + $0x60] sm:$0xf] }
  0x47   : > { %6446 = vmatpush3.bf16.msra.mxu1 %v7130_v35  ;;  %v413_v35 = vrot.slane %v411_v18, 4  ;;  %6637 = vmatprep.subr.bf16.mxu0 %v7124_v15  ;;  %v2304_v1 = vrot.slane %v2303_v56, 4  ;;  %v427_v10 = vrot.slane %v425_v63, 5  ;;  %v437_v18 = vrot.slane %v435_v3, 4 }
  0x48   : > { %6447 = vmatprep.subr.bf16.mxu1 %v7132_v2  ;;  %v2313_v5 = vor.u32 %v2312_v57, %v2308_v50  ;;  %v443_v21 = vrot.slane %v441_v11, 5  ;;  %v2321_v25 = vshrl.u32 %v5632_v58, 16  ;;  %v2324_v29 = vshll.u32 %v5632_v58, 16 }
  0x49   : > { %v414_v49 = vor.u32 %v413_v35, %v409_v17  ;;  %v2309_v13 = vsel %vm7397_vm2, %v2304_v1, %v2308_v50  ;;  %v428_v17 = vor.u32 %v427_v10, %v424_v9  ;;  %v2330_v30 = vshll.u32 %v7581_v0, 16  ;;  %v224_v35 = vld [vmem:[%s7365_s14 + $0x54] sm:$0xf]  ;;  %v265_v50 = vld [vmem:[%s7365_s14 + $0x5c] sm:$0x1] }
  0x4a   : > { %6638 = vmatpush3.bf16.msra.mxu0 %v7124_v15  ;;  %v2314_v15 = vrot.slane %v2313_v5, 4  ;;  %v2334_v34 = vshrl.u32 %v7581_v0, 16  ;;  %v2323_v42 = vrot.slane %v2321_v25, 4  ;;  %v446_v55 = vshrl.u32 %v224_v35, 16  ;;  %v7621_v25 = vld [vmem:[%s7365_s14 + $0x60] sm:$0xf] }
  0x4b   : > { %6448 = vmatpush3.bf16.msra.mxu1 %v7132_v2  ;;  %v415_v59 = vrot.slane %v414_v49, 4  ;;  %v431_v2 = vshll.u32 %v223_v53, 16  ;;  %6639 = vmatprep.subr.bf16.mxu0 %v7125_v31  ;;  %v429_v39 = vrot.slane %v428_v17, 4  ;;  %v2332_v44 = vrot.slane %v2330_v30, 5  ;;  %v7617_v17 = vld [vmem:[%s7365_s14 + $0x68] sm:$0x1] }
  0x4c   : > { %6481 = vmatprep.subr.bf16.mxu1 %v7567_v4  ;;  %v2319_v26 = vsel %vm7397_vm2, %v2314_v15, %v2318_v60  ;;  %v2336_v47 = vrot.slane %v2334_v34, 4  ;;  %v2340_v49 = vshll.u32 %v7593_v20, 16  ;;  %v7608_v60 = vld [vmem:[%s7365_s14 + $0x64] sm:$0xf]  ;;  %v448_v63 = vrot.slane %v446_v55, 4 }
  0x4d   : > { %v420_v7 = vsel %vm7397_vm2, %v415_v59, %v419_v38  ;;  %v433_v16 = vrot.slane %v431_v2, 5  ;;  %v5683_v38 = vcombine.low %v2309_v13, %v2319_v26  ;;  %v455_v59 = vshll.u32 %v225_v43, 16 }
  0x4e   : > { %v5443_v12 = vcombine.low %v410_v48, %v420_v7  ;;  %6640 = vmatpush3.bf16.msra.mxu0 %v7125_v31  ;;  %v2326_v31 = vrot.slane %v2324_v29, 5  ;;  %v449_v48 = vshll.u32 %v224_v35, 16  ;;  %v2337_v57 = vor.u32 %v2336_v47, %v2332_v44  ;;  %v7624_v35 = vld [vmem:[%s7365_s14 + $0x64] sm:$0xf] }
  0x4f   : > { %6673 = vmatprep.subr.bf16.mxu0 %v7586_v6  ;;  %v438_v40 = vor.u32 %v437_v18, %v433_v16  ;;  %6602 = vmatmul.mubr.bf16.gmra.mrb[8].mxu0 %v5683_v38  ;;  %v434_v53 = vsel %vm7397_vm2, %v429_v39, %v433_v16  ;;  %v2342_v58 = vrot.slane %v2340_v49, 5  ;;  %v459_v5 = vshrl.u32 %v225_v43, 16  ;;  %v266_v43 = vld [vmem:[%s7365_s14 + $0x68] sm:$0x1] }
  0x50   : > { %6410 = vmatmul.mubr.bf16.gmra.mrb[8].mxu1 %v5443_v12  ;;  %v2327_v56 = vor.u32 %v2326_v31, %v2323_v42  ;;  %v451_v1 = vrot.slane %v449_v48, 5  ;;  %v2338_v7 = vrot.slane %v2337_v57, 4  ;;  %v457_v9 = vrot.slane %v455_v59, 5 }
  0x51   : > { %v439_v54 = vrot.slane %v438_v40, 4  ;;  %v461_v11 = vrot.slane %v459_v5, 4  ;;  %v465_v12 = vshll.u32 %v265_v50, 16  ;;  %v2345_v13 = vshrl.u32 %v5635_v52, 16  ;;  %v5702_v50 = vld [vmem:[%s7365_s14 + $0xc] sm:$0xe] }
  0x52   : > { %v2328_v3 = vrot.slane %v2327_v56, 4  ;;  %v452_v10 = vor.u32 %v451_v1, %v448_v63  ;;  %v2343_v16 = vsel %vm7397_vm2, %v2338_v7, %v2342_v58  ;;  %v2348_v18 = vshll.u32 %v5635_v52, 16  ;;  %v7639_v5 = vld [vmem:[%s7365_s14 + $0x6c] sm:$0xf] }
  0x53   : > { %v444_v61 = vsel %vm7397_vm2, %v439_v54, %v443_v21  ;;  %v2354_v21 = vshll.u32 %v7608_v60, 16  ;;  %v462_v30 = vor.u32 %v461_v11, %v457_v9  ;;  %v467_v34 = vrot.slane %v465_v12, 5 }
  0x54   : > { %v5444_v2 = vcombine.low %v434_v53, %v444_v61  ;;  %v2333_v15 = vsel %vm7397_vm2, %v2328_v3, %v2332_v44  ;;  %v453_v29 = vrot.slane %v452_v10, 4  ;;  %v2347_v38 = vrot.slane %v2345_v13, 4 }
  0x55   : > { %v5684_v26 = vcombine.low %v2333_v15, %v2343_v16  ;;  %v2350_v39 = vrot.slane %v2348_v18, 5  ;;  %v2356_v40 = vrot.slane %v2354_v21, 5  ;;  %v2358_v42 = vshrl.u32 %v7608_v60, 16  ;;  %v7651_v21 = vld [vmem:[%s7365_s14 + $0x70] sm:$0xf] }
  0x56   : > { %6413 = vmatprep.mubr.bf16.mxu1 %v5444_v2  ;;  %v458_v31 = vsel %vm7397_vm2, %v453_v29, %v457_v9  ;;  %v463_v44 = vrot.slane %v462_v30, 4  ;;  %v2364_v47 = vshll.u32 %v7617_v17, 16  ;;  %v470_v49 = vshrl.u32 %v7621_v25, 16  ;;  %v7216_v9 = vld [vmem:[%s7365_s14 + $0xb4] sm:$0xff]  }
  0x57   : > { %6605 = vmatprep.mubr.bf16.mxu0 %v5684_v26  ;;  %v2351_v52 = vor.u32 %v2350_v39, %v2347_v38  ;;  %v2360_v53 = vrot.slane %v2358_v42, 4  ;;  %v473_v54 = vshll.u32 %v7621_v25, 16  ;;  %v479_v55 = vshll.u32 %v7624_v35, 16 }
  0x58   : > { %v468_v48 = vsel %vm7397_vm2, %v463_v44, %v467_v34  ;;  %v2366_v56 = vrot.slane %v2364_v47, 5  ;;  %v472_v57 = vrot.slane %v470_v49, 4  ;;  %v483_v58 = vshrl.u32 %v7624_v35, 16  ;;  %v7662_v47 = vld [vmem:[%s7365_s14 + $0x78] sm:$0xf] }
  0x59   : > { %v5445_v59 = vcombine.low %v458_v31, %v468_v48  ;;  %v2352_v61 = vrot.slane %v2351_v52, 4  ;;  %v2361_v63 = vor.u32 %v2360_v53, %v2356_v40  ;;  %v475_v1 = vrot.slane %v473_v54, 5  ;;  %v7673_v54 = vld [vmem:[%s7365_s14 + $0x7c] sm:$0xf] }
  0x5a   : > { %v481_v2 = vrot.slane %v479_v55, 5  ;;  %v485_v3 = vrot.slane %v483_v58, 4  ;;  %v489_v7 = vshll.u32 %v266_v43, 16  ;;  %v5718_v10 = vrot.slane %v5702_v50, 9  ;;  %v268_v58 = vld [vmem:[%s7365_s14 + $0x80] sm:$0x1] }
  0x5b   : > { %6414 = vmatmul.mubr.bf16.gmra.mrb[12].mxu1 %v5445_v59  ;;  %v2357_v11 = vsel %vm7397_vm2, %v2352_v61, %v2356_v40  ;;  %v2362_v12 = vrot.slane %v2361_v63, 4  ;;  %v476_v13 = vor.u32 %v475_v1, %v472_v57  ;;  %v2948_v15 = vrot.slane %v7378_v23, 5  ;;  %v267_v40 = vld [vmem:[%s7365_s14 + $0x74] sm:$0x1]  ;;  %v5703_v23 = vld [vmem:[%s7365_s14 + $0x18] sm:$0xe] }
  0x5c   : > { %v486_v16 = vor.u32 %v485_v3, %v481_v2  ;;  %v491_v18 = vrot.slane %v489_v7, 5  ;;  %v494_v26 = vshrl.u32 %v7639_v5, 16  ;;  %v497_v29 = vshll.u32 %v7639_v5, 16 }
  0x5d   : > { %v2367_v30 = vsel %vm7397_vm2, %v2362_v12, %v2366_v56  ;;  %v477_v34 = vrot.slane %v476_v13, 4  ;;  %v2949_v38 = vsel %vm7643_vm5, %v5718_v10, %v2948_v15  ;;  %v2950_v39 = vrot.slane %v2948_v15, 4  ;;  %v5704_v13 = vld [vmem:[%s7365_s14 + $0x24] sm:$0xe] }
  0x5e   : > { %v5685_v42 = vcombine.low %v2357_v11, %v2367_v30  ;;  %v487_v43 = vrot.slane %v486_v16, 4  ;;  %v496_v31 = vrot.slane %v494_v26, 4  ;;  %v499_v44 = vrot.slane %v497_v29, 5  ;;  %v7695_v16 = vld [vmem:[%s7365_s14 + $0x84] sm:$0xf]  ;;  %v7129_v29 = vld [vmem:[%s9181_s1 + $0x188] sm:$0xff]  }
  0x5f   : > { %v482_v49 = vsel %vm7397_vm2, %v477_v34, %v481_v2  ;;  %v2952_v50 = vsel %vm7643_vm5, %v2950_v39, %v2951_v41  ;;  %v503_v52 = vshll.u32 %v7651_v21, 16  ;;  %v507_v53 = vshrl.u32 %v7651_v21, 16 }
  0x60   : > { %6606 = vmatmul.mubr.bf16.gmra.mrb[12].mxu0 %v5685_v42  ;;  %v492_v55 = vsel %vm7397_vm2, %v487_v43, %v491_v18  ;;  %v5750_v48 = vcombine.low %v2949_v38, %v2952_v50  ;;  %v500_v56 = vor.u32 %v499_v44, %v496_v31  ;;  %v513_v57 = vshll.u32 %v267_v40, 16  ;;  %v7703_v40 = vld [vmem:[%s7365_s14 + $0x88] sm:$0xf]  ;;  %v269_v31 = vld [vmem:[%s7365_s14 + $0x8c] sm:$0x1] }
  0x61   : > { %v5446_v59 = vcombine.low %v482_v49, %v492_v55  ;;  %v505_v24 = vrot.slane %v503_v52, 5  ;;  %v509_v61 = vrot.slane %v507_v53, 4  ;;  %v5719_v63 = vrot.slane %v5703_v23, 9 }
  0x62   : > { %6641 = vmatprep.mubr.bf16.mxu0 %v5750_v48  ;;  %v501_v41 = vrot.slane %v500_v56, 4  ;;  %v515_v1 = vrot.slane %v513_v57, 5  ;;  %v2959_v2 = vsel %vm7643_vm5, %v7446_v36, %v2958_v32  ;;  %v518_v3 = vshrl.u32 %v7662_v47, 16 }
  0x63   : > { %6417 = vmatprep.mubr.bf16.mxu1 %v5446_v59  ;;  %v510_v7 = vor.u32 %v509_v61, %v505_v24  ;;  %v2956_v10 = vsel %vm7643_vm5, %v5719_v63, %v2955_v27  ;;  %v521_v11 = vshll.u32 %v7662_v47, 16  ;;  %v527_v12 = vshll.u32 %v7673_v54, 16 }
  0x64   : > { %v506_v8 = vsel %vm7397_vm2, %v501_v41, %v505_v24  ;;  %v5751_v15 = vcombine.low %v2956_v10, %v2959_v2  ;;  %v520_v32 = vrot.slane %v518_v3, 4  ;;  %v531_v36 = vshrl.u32 %v7673_v54, 16  ;;  %v7724_v2 = vld [vmem:[%s7365_s14 + $0x90] sm:$0xf]  ;;  %v7727_v3 = vld [vmem:[%s7365_s14 + $0x94] sm:$0xf] }
  0x65   : > { %v511_v62 = vrot.slane %v510_v7, 4  ;;  %v523_v18 = vrot.slane %v521_v11, 5  ;;  %v529_v26 = vrot.slane %v527_v12, 5  ;;  %v537_v27 = vshll.u32 %v268_v58, 16 }
  0x66   : > { %v533_v30 = vrot.slane %v531_v36, 4  ;;  %v5720_v34 = vrot.slane %v5704_v13, 9  ;;  %v2962_v38 = vrot.slane %v7450_v45, 5  ;;  %v2965_v39 = vrot.slane %v7456_v51, 5  ;;  %v5705_v45 = vld [vmem:[%s7365_s14 + $0x30] sm:$0xe] }
  0x67   : > { %v516_v23 = vsel %vm7397_vm2, %v511_v62, %v515_v1  ;;  %v524_v42 = vor.u32 %v523_v18, %v520_v32  ;;  %v539_v43 = vrot.slane %v537_v27, 5  ;;  %v542_v44 = vshrl.u32 %v7695_v16, 16  ;;  %v270_v62 = vld [vmem:[%s7365_s14 + $0x98] sm:$0x1] }
  0x68   : > { %v5447_v49 = vcombine.low %v506_v8, %v516_v23  ;;  %6642 = vmatmul.mubr.bf16.vlgmr.msra.gmra.mrb[0].mxu0 %v5751_v15  ;;  %v534_v50 = vor.u32 %v533_v30, %v529_v26  ;;  %v2963_v52 = vsel %vm7643_vm5, %v5720_v34, %v2962_v38  ;;  %v2964_v53 = vrot.slane %v2962_v38, 4  ;;  %v7133_v30 = vld [vmem:[%s9181_s1 + $0x198] sm:$0xff]  }
  0x69   : > { %6674 = vmatpush3.bf16.msra.mxu0 %v7586_v6  ;;  %v525_v51 = vrot.slane %v524_v42, 4  ;;  %v544_v55 = vrot.slane %v542_v44, 4  ;;  %v545_v48 = vshll.u32 %v7695_v16, 16  ;;  %v551_v56 = vshll.u32 %v7703_v40, 16  ;;  %v7131_v6 = vld [vmem:[%s9181_s1 + $0x190] sm:$0xff]  }
  0x6a   : > { %6418 = vmatmul.mubr.bf16.gmra.mrb[16].mxu1 %v5447_v49  ;;  %v535_v57 = vrot.slane %v534_v50, 4  ;;  %v2966_v58 = vsel %vm7643_vm5, %v2964_v53, %v2965_v39  ;;  %v555_v59 = vshrl.u32 %v7703_v40, 16  ;;  %v561_v24 = vshll.u32 %v269_v31, 16  ;;  %6675 = vmatprep.subr.bf16.mxu0 %v7129_v29  ;;  %v5706_v38 = vld [vmem:[%s7365_s14 + $0x3c] sm:$0xe] }
  0x6b   : > { %v530_v61 = vsel %vm7397_vm2, %v525_v51, %v529_v26  ;;  %v5752_v63 = vcombine.low %v2963_v52, %v2966_v58  ;;  %v547_v41 = vrot.slane %v545_v48, 5  ;;  %v553_v1 = vrot.slane %v551_v56, 5  ;;  %v7745_v31 = vld [vmem:[%s7365_s14 + $0x9c] sm:$0xf]  ;;  %v7754_v48 = vld [vmem:[%s7365_s14 + $0xa0] sm:$0xf] }
  0x6c   : > { %v540_v7 = vsel %vm7397_vm2, %v535_v57, %v539_v43  ;;  %v557_v10 = vrot.slane %v555_v59, 4  ;;  %v563_v11 = vrot.slane %v561_v24, 5  ;;  %v5721_v12 = vrot.slane %v5705_v45, 9  ;;  %v7137_v56 = vld [vmem:[%s9181_s1 + $0x1a0] sm:$0xff]  }
  0x6d   : > { %v5448_v13 = vcombine.low %v530_v61, %v540_v7  ;;  %6645 = vmatprep.mubr.bf16.mxu0 %v5752_v63  ;;  %v548_v8 = vor.u32 %v547_v41, %v544_v55  ;;  %v2969_v15 = vrot.slane %v7481_v33, 5  ;;  %v2972_v32 = vrot.slane %v7492_v46, 5  ;;  %6676 = vmatpush3.bf16.msra.mxu0 %v7129_v29  ;;  %v271_v61 = vld [vmem:[%s7365_s14 + $0xa4] sm:$0x1] }
  0x6e   : > { %v558_v36 = vor.u32 %v557_v10, %v553_v1  ;;  %v566_v18 = vshrl.u32 %v7724_v2, 16  ;;  %v569_v26 = vshll.u32 %v7724_v2, 16  ;;  %v575_v27 = vshll.u32 %v7727_v3, 16  ;;  %6677 = vmatprep.subr.bf16.mxu0 %v7131_v6 }
  0x6f   : > { %6421 = vmatprep.mubr.bf16.mxu1 %v5448_v13  ;;  %v549_v34 = vrot.slane %v548_v8, 4  ;;  %v2970_v33 = vsel %vm7643_vm5, %v5721_v12, %v2969_v15  ;;  %v2971_v46 = vrot.slane %v2969_v15, 4  ;;  %v579_v29 = vshrl.u32 %v7727_v3, 16  ;;  %v5707_v15 = vld [vmem:[%s7365_s14 + $0x48] sm:$0xe] }
  0x70   : > { %v559_v39 = vrot.slane %v558_v36, 4  ;;  %v568_v23 = vrot.slane %v566_v18, 4  ;;  %v571_v42 = vrot.slane %v569_v26, 5  ;;  %v577_v43 = vrot.slane %v575_v27, 5  ;;  %v7779_v27 = vld [vmem:[%s7365_s14 + $0xa8] sm:$0xf] }
  0x71   : > { %v554_v44 = vsel %vm7397_vm2, %v549_v34, %v553_v1  ;;  %v2973_v49 = vsel %vm7643_vm5, %v2971_v46, %v2972_v32  ;;  %v581_v50 = vrot.slane %v579_v29, 4  ;;  %v585_v52 = vshll.u32 %v270_v62, 16  ;;  %6678 = vmatpush3.bf16.msra.mxu0 %v7131_v6  ;;  %v7141_v32 = vld [vmem:[%s9181_s1 + $0x1a8] sm:$0xff]  }
  0x72   : > { %v564_v53 = vsel %vm7397_vm2, %v559_v39, %v563_v11  ;;  %v5753_v45 = vcombine.low %v2970_v33, %v2973_v49  ;;  %v572_v51 = vor.u32 %v571_v42, %v568_v23  ;;  %v5722_v55 = vrot.slane %v5706_v38, 9  ;;  %6679 = vmatprep.subr.bf16.mxu0 %v7133_v30  ;;  %v7782_v29 = vld [vmem:[%s7365_s14 + $0xac] sm:$0xf] }
  0x73   : > { %v5449_v57 = vcombine.low %v554_v44, %v564_v53  ;;  %v582_v58 = vor.u32 %v581_v50, %v577_v43  ;;  %v587_v59 = vrot.slane %v585_v52, 5  ;;  %v2976_v24 = vrot.slane %v7515_v19, 5  ;;  %v5708_v53 = vld [vmem:[%s7365_s14 + $0x54] sm:$0xe] }
  0x74   : > { %6646 = vmatmul.mubr.bf16.gmra.mrb[4].mxu0 %v5753_v45  ;;  %v573_v6 = vrot.slane %v572_v51, 4  ;;  %v2979_v63 = vrot.slane %v7523_v28, 5  ;;  %v590_v41 = vshrl.u32 %v7745_v31, 16  ;;  %v593_v1 = vshll.u32 %v7745_v31, 16  ;;  %v7145_v45 = vld [vmem:[%s9181_s1 + $0x1b0] sm:$0xff]  }
  0x75   : > { %6422 = vmatmul.mubr.bf16.gmra.mrb[20].mxu1 %v5449_v57  ;;  %v583_v7 = vrot.slane %v582_v58, 4  ;;  %v2977_v10 = vsel %vm7643_vm5, %v5722_v55, %v2976_v24  ;;  %v2978_v11 = vrot.slane %v2976_v24, 4  ;;  %v599_v12 = vshll.u32 %v7754_v48, 16  ;;  %6680 = vmatpush3.bf16.msra.mxu0 %v7133_v30 }
  0x76   : > { %v578_v19 = vsel %vm7397_vm2, %v573_v6, %v577_v43  ;;  %v592_v13 = vrot.slane %v590_v41, 4  ;;  %v595_v28 = vrot.slane %v593_v1, 5  ;;  %v603_v8 = vshrl.u32 %v7754_v48, 16  ;;  %6681 = vmatprep.subr.bf16.mxu0 %v7137_v56  ;;  %v272_v43 = vld [vmem:[%s7365_s14 + $0xb0] sm:$0x1] }
  0x77   : > { %v588_v36 = vsel %vm7397_vm2, %v583_v7, %v587_v59  ;;  %v2980_v62 = vsel %vm7643_vm5, %v2978_v11, %v2979_v63  ;;  %v601_v18 = vrot.slane %v599_v12, 5  ;;  %v609_v26 = vshll.u32 %v271_v61, 16  ;;  %v7802_v41 = vld [vmem:[%s7365_s14 + $0xb4] sm:$0xf]  ;;  %v7807_v12 = vld [vmem:[%s7365_s14 + $0xb8] sm:$0xf] }
  0x78   : > { %v5450_v30 = vcombine.low %v578_v19, %v588_v36  ;;  %v5754_v34 = vcombine.low %v2977_v10, %v2980_v62  ;;  %v596_v33 = vor.u32 %v595_v28, %v592_v13  ;;  %v605_v46 = vrot.slane %v603_v8, 4  ;;  %v273_v19 = vld [vmem:[%s7365_s14 + $0xbc] sm:$0x1] }
  0x79   : > { %v611_v38 = vrot.slane %v609_v26, 5  ;;  %v5723_v39 = vrot.slane %v5707_v15, 9  ;;  %v2983_v23 = vrot.slane %v7550_v14, 5  ;;  %v2986_v42 = vrot.slane %v7556_v22, 5  ;;  %6682 = vmatpush3.bf16.msra.mxu0 %v7137_v56  ;;  %v7149_v13 = vld [vmem:[%s9181_s1 + $0x1b8] sm:$0xff]  }
  0x7a   : > { %6425 = vmatprep.mubr.bf16.mxu1 %v5450_v30  ;;  %6649 = vmatprep.mubr.bf16.mxu0 %v5754_v34  ;;  %v597_v44 = vrot.slane %v596_v33, 4  ;;  %v606_v49 = vor.u32 %v605_v46, %v601_v18  ;;  %v614_v50 = vshrl.u32 %v7779_v27, 16  ;;  %v617_v52 = vshll.u32 %v7779_v27, 16  ;;  %v5709_v30 = vld [vmem:[%s7365_s14 + $0x60] sm:$0xe] }
  0x7b   : > { %v2984_v14 = vsel %vm7643_vm5, %v5723_v39, %v2983_v23  ;;  %v2985_v22 = vrot.slane %v2983_v23, 4  ;;  %v623_v51 = vshll.u32 %v7782_v29, 16  ;;  %v627_v55 = vshrl.u32 %v7782_v29, 16  ;;  %6683 = vmatprep.subr.bf16.mxu0 %v7141_v32  ;;  %v5639_v39 = vld [vmem:[%s7365_s14 + $0x70] sm:$0xf] }
  0x7c   : > { %v602_v56 = vsel %vm7397_vm2, %v597_v44, %v601_v18  ;;  %v607_v57 = vrot.slane %v606_v49, 4  ;;  %v616_v58 = vrot.slane %v614_v50, 4  ;;  %v619_v59 = vrot.slane %v617_v52, 5  ;;  %v7829_v44 = vld [vmem:[%s9181_s1 + $0x1c0] sm:$0xff]  }
  0x7d   : > { %v2987_v24 = vsel %vm7643_vm5, %v2985_v22, %v2986_v42  ;;  %v625_v61 = vrot.slane %v623_v51, 5  ;;  %v629_v6 = vrot.slane %v627_v55, 4  ;;  %v633_v63 = vshll.u32 %v272_v43, 16  ;;  %6684 = vmatpush3.bf16.msra.mxu0 %v7141_v32  ;;  %v5710_v43 = vld [vmem:[%s7365_s14 + $0x6c] sm:$0xe] }
  0x7e   : > { %v612_v1 = vsel %vm7397_vm2, %v607_v57, %v611_v38  ;;  %v5755_v7 = vcombine.low %v2984_v14, %v2987_v24  ;;  %v620_v10 = vor.u32 %v619_v59, %v616_v58  ;;  %v5724_v11 = vrot.slane %v5708_v53, 9  ;;  %6685 = vmatprep.subr.bf16.mxu0 %v7145_v45  ;;  %v5640_v55 = vld [vmem:[%s7365_s14 + $0x74] sm:$0x1]  ;;  %v5711_v24 = vld [vmem:[%s7365_s14 + $0x78] sm:$0xe] }
  0x7f   : > { %v5451_v28 = vcombine.low %v602_v56, %v612_v1  ;;  %v630_v8 = vor.u32 %v629_v6, %v625_v61  ;;  %v635_v15 = vrot.slane %v633_v63, 5  ;;  %v2990_v32 = vrot.slane %v7581_v0, 5 }
  0x80   : > { %6650 = vmatmul.mubr.bf16.gmra.mrb[8].mxu0 %v5755_v7  ;;  %v621_v36 = vrot.slane %v620_v10, 4  ;;  %v2993_v62 = vrot.slane %v7593_v20, 5  ;;  %v638_v18 = vshrl.u32 %v7802_v41, 16  ;;  %v641_v26 = vshll.u32 %v7802_v41, 16 }
  0x81   : > { %6426 = vmatmul.mubr.bf16.gmra.mrb[24].mxu1 %v5451_v28  ;;  %v631_v34 = vrot.slane %v630_v8, 4  ;;  %v2991_v33 = vsel %vm7643_vm5, %v5724_v11, %v2990_v32  ;;  %v2992_v46 = vrot.slane %v2990_v32, 4  ;;  %v647_v38 = vshll.u32 %v7807_v12, 16  ;;  %6686 = vmatpush3.bf16.msra.mxu0 %v7145_v45  ;;  %v7842_v11 = vld [vmem:[%s7365_s14 + $0x7c] sm:$0xf] }
  0x82   : > { %v626_v0 = vsel %vm7397_vm2, %v621_v36, %v625_v61  ;;  %v640_v20 = vrot.slane %v638_v18, 4  ;;  %v643_v23 = vrot.slane %v641_v26, 5  ;;  %v651_v42 = vshrl.u32 %v7807_v12, 16  ;;  %6687 = vmatprep.subr.bf16.mxu0 %v7149_v13  ;;  %v7218_v36 = vld [vmem:[%s7365_s14] sm:$0xf] }
  0x83   : > { %v636_v49 = vsel %vm7397_vm2, %v631_v34, %v635_v15  ;;  %v2994_v50 = vsel %vm7643_vm5, %v2992_v46, %v2993_v62  ;;  %v649_v52 = vrot.slane %v647_v38, 5  ;;  %v657_v53 = vshll.u32 %v273_v19, 16  ;;  %v5645_v15 = vld [vmem:[%s7365_s14 + $0x88] sm:$0xf]  ;;  %v7857_v62 = vld [vmem:[%s7365_s14 + $0x4] sm:$0xf] }
  0x84   : > { %v5452_v45 = vcombine.low %v626_v0, %v636_v49  ;;  %v5756_v14 = vcombine.low %v2991_v33, %v2994_v50  ;;  %v644_v22 = vor.u32 %v643_v23, %v640_v20  ;;  %v653_v51 = vrot.slane %v651_v42, 4  ;;  %v5646_v26 = vld [vmem:[%s7365_s14 + $0x8c] sm:$0x1]  ;;  %v5649_v23 = vld [vmem:[%s7365_s14 + $0x98] sm:$0x1] }
  0x85   : > { %v659_v56 = vrot.slane %v657_v53, 5  ;;  %v5725_v57 = vrot.slane %v5709_v30, 9  ;;  %v2997_v58 = vrot.slane %v7608_v60, 5  ;;  %v3000_v59 = vrot.slane %v7617_v17, 5  ;;  %6688 = vmatpush3.bf16.msra.mxu0 %v7149_v13  ;;  %v7845_v17 = vld [vmem:[%s7365_s14 + $0x80] sm:$0x1] }
  0x86   : > { %6429 = vmatprep.mubr.bf16.mxu1 %v5452_v45  ;;  %6653 = vmatprep.mubr.bf16.mxu0 %v5756_v14  ;;  %v645_v61 = vrot.slane %v644_v22, 4  ;;  %v654_v6 = vor.u32 %v653_v51, %v649_v52  ;;  %v5726_v63 = vrot.slane %v5710_v43, 9  ;;  %v3004_v1 = vrot.slane %v5639_v39, 5  ;;  %v5712_v30 = vld [vmem:[%s7365_s14 + $0x84] sm:$0xe] }
  0x87   : > { %v2998_v7 = vsel %vm7643_vm5, %v5725_v57, %v2997_v58  ;;  %v2999_v10 = vrot.slane %v2997_v58, 4  ;;  %v3007_v60 = vrot.slane %v5640_v55, 5  ;;  %6721 = vmatprep.subr.bf16.mxu0 %v7829_v44  ;;  %v5462_v18 = vcombine.low %v7218_v36, %v7857_v62  ;;  %v5648_v39 = vld [vmem:[%s7365_s14 + $0x94] sm:$0xf]  ;;  %v5713_v42 = vld [vmem:[%s7365_s14 + $0x90] sm:$0xe] }
  0x88   : > { %v650_v19 = vsel %vm7397_vm2, %v645_v61, %v649_v52  ;;  %v655_v13 = vrot.slane %v654_v6, 4  ;;  %v3005_v28 = vsel %vm7643_vm5, %v5726_v63, %v3004_v1  ;;  %v3006_v8 = vrot.slane %v3004_v1, 4  ;;  %v5714_v50 = vld [vmem:[%s7365_s14 + $0x9c] sm:$0xe]  ;;  %v5651_v14 = vld [vmem:[%s7365_s14 + $0xa0] sm:$0xf] }
  0x89   : > { %v3001_v32 = vsel %vm7643_vm5, %v2999_v10, %v3000_v59  ;;  %v5727_v38 = vrot.slane %v5711_v24, 9  ;;  %v3011_v43 = vrot.slane %v7842_v11, 5  ;;  %v3014_v49 = vrot.slane %v7845_v17, 5  ;;  %v5652_v22 = vld [vmem:[%s7365_s14 + $0xa4] sm:$0x1] }
  0x8a   : > { %v660_v34 = vsel %vm7397_vm2, %v655_v13, %v659_v56  ;;  %v5757_v33 = vcombine.low %v2998_v7, %v3001_v32  ;;  %v3008_v46 = vsel %vm7643_vm5, %v3006_v8, %v3007_v60  ;;  %v5728_v52 = vrot.slane %v5712_v30, 9  ;;  %v5654_v59 = vld [vmem:[%s7365_s14 + $0xac] sm:$0xf]  ;;  %v7881_v61 = vld [vmem:[%s7365_s14 + $0x10] sm:$0xf] }
  0x8b   : > { %v5453_v0 = vcombine.low %v650_v19, %v660_v34  ;;  %v5758_v20 = vcombine.low %v3005_v28, %v3008_v46  ;;  %v3018_v53 = vrot.slane %v5645_v15, 5  ;;  %v3021_v45 = vrot.slane %v5646_v26, 5  ;;  %v7220_v24 = vld [vmem:[%s7365_s14 + $0xc] sm:$0xf]  ;;  %v7222_v8 = vld [vmem:[%s7365_s14 + $0x18] sm:$0xf] }
  0x8c   : > { %6654 = vmatmul.mubr.bf16.gmra.mrb[12].mxu0 %v5757_v33  ;;  %v3012_v51 = vsel %vm7643_vm5, %v5727_v38, %v3011_v43  ;;  %v3013_v55 = vrot.slane %v3011_v43, 4  ;;  %v3025_v58 = vrot.slane %v5648_v39, 5  ;;  %v5463_v6 = vcombine.low %v7220_v24, %v7881_v61  ;;  %v7140_v19 = vld [vmem:[%s9181_s1 + $0x88] sm:$0xff]   ;;  %v7893_v15 = vld [vmem:[%s7365_s14 + $0x1c] sm:$0xf] }
  0x8d   : > { %6430 = vmatmul.mubr.bf16.gmra.mrb[28].mxu1 %v5453_v0  ;;  %6657 = vmatprep.mubr.bf16.mxu0 %v5758_v20  ;;  %v3019_v56 = vsel %vm7643_vm5, %v5728_v52, %v3018_v53  ;;  %v3020_v57 = vrot.slane %v3018_v53, 4  ;;  %v5729_v1 = vrot.slane %v5713_v42, 9  ;;  %v3028_v7 = vrot.slane %v5649_v23, 5  ;;  %v5655_v30 = vld [vmem:[%s7365_s14 + $0xb0] sm:$0x1] }
  0x8e   : > { %6449 = vmatprep.mubr.bf16.mxu1 %v5462_v18  ;;  %v3015_v63 = vsel %vm7643_vm5, %v3013_v55, %v3014_v49  ;;  %v3027_v13 = vrot.slane %v3025_v58, 4  ;;  %v5730_v28 = vrot.slane %v5714_v50, 9  ;;  %v5464_v32 = vcombine.low %v7222_v8, %v7893_v15  ;;  %v5715_v34 = vld [vmem:[%s7365_s14 + $0xa8] sm:$0xe]  ;;  %v5657_v33 = vld [vmem:[%s7365_s14 + $0xb8] sm:$0xf] }
  0x8f   : > { %v5759_v10 = vcombine.low %v3012_v51, %v3015_v63  ;;  %v3022_v60 = vsel %vm7643_vm5, %v3020_v57, %v3021_v45  ;;  %v3032_v18 = vrot.slane %v5651_v14, 5  ;;  %v3035_v26 = vrot.slane %v5652_v22, 5  ;;  %v5658_v20 = vld [vmem:[%s7365_s14 + $0xbc] sm:$0x1]  ;;  %v5716_v23 = vld [vmem:[%s7365_s14 + $0xb4] sm:$0xe] }
  0x90   : > { %v5760_v36 = vcombine.low %v3019_v56, %v3022_v60  ;;  %v3039_v38 = vrot.slane %v5654_v59, 5  ;;  %v3026_v39 = vsel %vm7643_vm5, %v5729_v1, %v3025_v58  ;;  %v3029_v0 = vsel %vm7643_vm5, %v3027_v13, %v3028_v7  ;;  %v7144_v50 = vld [vmem:[%s9181_s1 + $0x90] sm:$0xff]   ;;  %v5660_v53 = vld [vmem:[%s7365_s14 + $0xc4] sm:$0xf]  ;;  %v7916_v51 = vld [vmem:[%s7365_s14 + $0x28] sm:$0xf] }
  0x91   : > { %v3034_v46 = vrot.slane %v3032_v18, 4  ;;  %v3033_v42 = vsel %vm7643_vm5, %v5730_v28, %v3032_v18  ;;  %v3046_v49 = vrot.slane %v5657_v33, 5  ;;  %v5731_v52 = vrot.slane %v5715_v34, 9  ;;  %v7224_v22 = vld [vmem:[%s7365_s14 + $0x24] sm:$0xf]  ;;  %v7148_v1 = vld [vmem:[%s9181_s1 + $0x98] sm:$0xff]  }
  0x92   : > { %v5761_v45 = vcombine.low %v3026_v39, %v3029_v0  ;;  %v3041_v14 = vrot.slane %v3039_v38, 4  ;;  %v5465_v55 = vcombine.low %v7224_v22, %v7916_v51  ;;  %v7226_v57 = vld [vmem:[%s7365_s14 + $0x30] sm:$0xf]  ;;  %v7921_v58 = vld [vmem:[%s7365_s14 + $0x34] sm:$0xf]  ;;  %v5732_v24 = vrot.slane %v5716_v23, 9 }
  0x93   : > { %v3036_v43 = vsel %vm7643_vm5, %v3034_v46, %v3035_v26  ;;  %v5466_v59 = vcombine.low %v7226_v57, %v7921_v58  ;;  %v3049_v63 = vrot.slane %v5658_v20, 5  ;;  %v5717_v7 = vld [vmem:[%s7365_s14 + $0xc0] sm:$0xe]  ;;  %v3040_v60 = vsel %vm7643_vm5, %v5731_v52, %v3039_v38  ;;  %v5661_v8 = vld [vmem:[%s7365_s14 + $0xc8] sm:$0x1]  ;;  %v7151_v22 = vld [vmem:[%s7365_s14 + $0x18] sm:$0xff]  }
  0x94   : > { %6658 = vmatmul.mubr.bf16.gmra.mrb[16].mxu0 %v5759_v10  ;;  %v5762_v56 = vcombine.low %v3033_v42, %v3036_v43  ;;  %v3053_v10 = vrot.slane %v5660_v53, 5  ;;  %v3047_v13 = vsel %vm7643_vm5, %v5732_v24, %v3046_v49  ;;  %v5733_v18 = vrot.slane %v5717_v7, 9  ;;  %v7228_v26 = vld [vmem:[%s7365_s14 + $0x3c] sm:$0xf]  ;;  %v7230_v39 = vld [vmem:[%s7365_s14 + $0x48] sm:$0xf] }
  0x95   : > { %6450 = vmatmul.mubr.bf16.vlgmr.msra.gmra.mrb[0].mxu1 %v5463_v6  ;;  %6661 = vmatprep.mubr.bf16.mxu0 %v5760_v36  ;;  %v3048_v6 = vrot.slane %v3046_v49, 4  ;;  %v3056_v38 = vrot.slane %v5661_v8, 5  ;;  %v7947_v0 = vld [vmem:[%s7365_s14 + $0x4c] sm:$0xf]  ;;  %v7165_v49 = vld [vmem:[%s9181_s1 + $0xb0] sm:$0xff]   ;;  %v2406_v52 = vshrl.u32 %v7842_v11, 16 }
  0x96   : > { %6482 = vmatpush3.bf16.msra.mxu1 %v7567_v4  ;;  %6453 = vmatprep.mubr.bf16.mxu1 %v5464_v32  ;;  %v3042_v4 = vrot.slane %v5655_v30, 5  ;;  %v7153_v32 = vld [vmem:[%s9181_s1 + $0xa0] sm:$0xff]   ;;  %v3055_v46 = vrot.slane %v3053_v10, 4  ;;  %v5468_v20 = vcombine.low %v7230_v39, %v7947_v0  ;;  %v7159_v23 = vld [vmem:[%s9181_s1 + $0xa8] sm:$0xff]   ;;  %v3054_v42 = vsel %vm7643_vm5, %v5733_v18, %v3053_v10  ;;  %v7157_v18 = vld [vmem:[%s7365_s14 + $0x30] sm:$0xff]  }
  0x97   : > { %6483 = vmatprep.subr.bf16.mxu1 %v7140_v19  ;;  %v3050_v28 = vsel %vm7643_vm5, %v3048_v6, %v3049_v63  ;;  %v7942_v30 = vld [vmem:[%s7365_s14 + $0x40] sm:$0xf]  ;;  %v7975_v57 = vrot.slane %v2406_v52, 4  ;;  %v7154_v6 = vld [vmem:[%s7365_s14 + $0x24] sm:$0xff]   ;;  %v1316_v7 = vrot.slane %v7881_v61, 5  ;;  %v2412_v8 = vshll.u32 %v7845_v17, 16 }
  0x98   : > { %v5467_v34 = vcombine.low %v7228_v26, %v7942_v30  ;;  %v5764_v33 = vcombine.low %v3047_v13, %v3050_v28  ;;  %v3057_v43 = vsel %vm7643_vm5, %v3055_v46, %v3056_v38  ;;  %v1256_v63 = vld [vmem:[%s7365_s14] sm:$0xe]  ;;  %v1257_v10 = vld [vmem:[%s7365_s14 + $0xc] sm:$0xe]  ;;  %v1323_v13 = vrot.slane %v7893_v15, 5 }
  0x99   : > { %v5765_v53 = vcombine.low %v3054_v42, %v3057_v43  ;;  %v1259_v61 = vld [vmem:[%s7365_s14 + $0x24] sm:$0xe]  ;;  %v5473_v15 = vcombine.low %v7695_v16, %v7703_v40  ;;  %v5474_v26 = vcombine.low %v7724_v2, %v7727_v3  ;;  %v5486_v17 = vrot.slane %v1256_v63, 9  ;;  %v7236_v38 = vld [vmem:[%s7365_s14 + $0x20] sm:$0x1]  ;;  %v7166_v2 = vld [vmem:[%s7365_s14 + $0x54] sm:$0xff]  }
  0x9a   : > { %6484 = vmatpush3.bf16.msra.mxu1 %v7140_v19  ;;  %v3043_v19 = vsel %vm7643_vm5, %v3041_v14, %v3042_v4  ;;  %v7964_v14 = vld [vmem:[%s7365_s14 + $0x58] sm:$0xf]  ;;  %v1325_v46 = vrot.slane %v1323_v13, 4  ;;  %v1326_v39 = vrot.slane %v7236_v38, 5  ;;  %v7237_v43 = vld [vmem:[%s7365_s14 + $0x2c] sm:$0x1] }
  0x9b   : > { %6485 = vmatprep.subr.bf16.mxu1 %v7144_v50  ;;  %v5763_v36 = vcombine.low %v3040_v60, %v3043_v19  ;;  %v7990_v60 = vld [vmem:[%s9181_s1 + $0xc0] sm:$0xff]   ;;  %v1258_v19 = vld [vmem:[%s7365_s14 + $0x18] sm:$0xe]  ;;  %v7240_v38 = vld [vmem:[%s7365_s14 + $0x50] sm:$0x1]  ;;  %v1358_v16 = vrot.slane %v7964_v14, 5 }
  0x9c   : > { %6662 = vmatmul.mubr.bf16.gmra.mrb[20].mxu0 %v5761_v45  ;;  %v7232_v45 = vld [vmem:[%s7365_s14 + $0x54] sm:$0xf]  ;;  %v8113_v40 = vld [vmem:[%s7365_s14 + $0x64] sm:$0xf] }
  0x9d   : > { %6454 = vmatmul.mubr.bf16.gmra.mrb[4].mxu1 %v5465_v55  ;;  %6665 = vmatprep.mubr.bf16.mxu0 %v5762_v56  ;;  %v5469_v4 = vcombine.low %v7232_v45, %v7964_v14  ;;  %v5470_v55 = vcombine.low %v7621_v25, %v7624_v35  ;;  %v7171_v56 = vld [vmem:[%s9181_s1 + $0xb8] sm:$0xff]   ;;  %v7235_v25 = vld [vmem:[%s7365_s14 + $0x14] sm:$0x1]  ;;  %v7169_v3 = vld [vmem:[%s7365_s14 + $0x60] sm:$0xff]  }
  0x9e   : > { %6457 = vmatprep.mubr.bf16.mxu1 %v5466_v59  ;;  %6486 = vmatpush3.bf16.msra.mxu1 %v7144_v50  ;;  %v2402_v50 = vshll.u32 %v7842_v11, 16  ;;  %v7978_v59 = vld [vmem:[%s7365_s14 + $0x8] sm:$0x1]  ;;  %v1319_v35 = vrot.slane %v7235_v25, 5 }
  0x9f   : > { %6487 = vmatprep.subr.bf16.mxu1 %v7148_v1  ;;  %v1312_v24 = vrot.slane %v7978_v59, 5 }
  0xa0   : > { %v7973_v11 = vrot.slane %v2402_v50, 5 }
  0xa2   : > { %6488 = vmatpush3.bf16.msra.mxu1 %v7148_v1  ;;  %v1309_v1 = vrot.slane %v7857_v62, 5  ;;  %v5471_v62 = vcombine.low %v7639_v5, %v7651_v21  ;;  %v5487_v21 = vrot.slane %v1257_v10, 9  ;;  %v5846_v10 = vld [vmem:[%s7365_s14 + $0x18] sm:$0xf] }
  0xa3   : > { %6489 = vmatprep.subr.bf16.mxu1 %v7153_v32 }
  0xa4   : > { %6666 = vmatmul.mubr.bf16.gmra.mrb[24].mxu0 %v5763_v36  ;;  %v5472_v36 = vcombine.low %v7662_v47, %v7673_v54  ;;  %v1311_v5 = vrot.slane %v1309_v1, 4  ;;  %v7161_v47 = vld [vmem:[%s9181_s1 + $0x1c8] sm:$0xff]   ;;  %v5488_v54 = vrot.slane %v1258_v19, 9  ;;  %v8033_v59 = vsel %vm7643_vm5, %v5486_v17, %v1309_v1  ;;  %v5847_v19 = vld [vmem:[%s7365_s14 + $0x1c] sm:$0xf] }
  0xa5   : > { %6458 = vmatmul.mubr.bf16.gmra.mrb[8].mxu1 %v5467_v34  ;;  %6669 = vmatprep.mubr.bf16.mxu0 %v5764_v33  ;;  %v1337_v34 = vrot.slane %v7921_v58, 5  ;;  %v1318_v33 = vrot.slane %v1316_v7, 4  ;;  %v5489_v58 = vrot.slane %v1259_v61, 9  ;;  %v1351_v1 = vrot.slane %v7947_v0, 5  ;;  %v7163_v0 = vld [vmem:[%s7365_s14 + $0x48] sm:$0xff]  }
  0xa6   : > { %6461 = vmatprep.mubr.bf16.mxu1 %v5468_v20  ;;  %6490 = vmatpush3.bf16.msra.mxu1 %v7153_v32  ;;  %v1330_v32 = vrot.slane %v7916_v51, 5  ;;  %v1260_v51 = vld [vmem:[%s7365_s14 + $0x30] sm:$0xe]  ;;  %v5475_v20 = vcombine.low %v7745_v31, %v7754_v48  ;;  %v8041_v25 = vsel %vm7643_vm5, %v1311_v5, %v1312_v24  ;;  %v8049_v63 = vsel %vm7643_vm5, %v5488_v54, %v1323_v13  ;;  %v1262_v13 = vld [vmem:[%s7365_s14 + $0x48] sm:$0xe] }
  0xa7   : > { %6491 = vmatprep.subr.bf16.mxu1 %v7159_v23  ;;  %v5490_v50 = vrot.slane %v1260_v51, 9  ;;  %v1339_v52 = vrot.slane %v1337_v34, 4  ;;  %v3816_v5 = vshrl.u32 %v5846_v10, 16  ;;  %v3829_v51 = vshrl.u32 %v5847_v19, 16  ;;  %v7172_v48 = vld [vmem:[%s7365_s14 + $0x6c] sm:$0xff]  }
  0xa8   : > { %v1332_v42 = vrot.slane %v1330_v32, 4  ;;  %v8061_v24 = vsel %vm7643_vm5, %v5489_v58, %v1330_v32  ;;  %v7239_v32 = vld [vmem:[%s7365_s14 + $0x44] sm:$0x1]  ;;  %v5492_v54 = vrot.slane %v1262_v13, 9  ;;  %v5850_v13 = vld [vmem:[%s7365_s14 + $0x28] sm:$0xf] }
  0xa9   : > { %v8071_v61 = vsel %vm7643_vm5, %v5490_v50, %v1337_v34  ;;  %v1347_v17 = vrot.slane %v7239_v32, 5  ;;  %v5848_v50 = vld [vmem:[%s7365_s14 + $0x20] sm:$0x1]  ;;  %v1264_v32 = vld [vmem:[%s7365_s14 + $0x60] sm:$0xe] }
  0xaa   : > { %6492 = vmatpush3.bf16.msra.mxu1 %v7159_v23  ;;  %v5476_v23 = vcombine.low %v7779_v27, %v7782_v29 }
  0xab   : > { %6493 = vmatprep.subr.bf16.mxu1 %v7165_v49 }
  0xac   : > { %6670 = vmatmul.mubr.bf16.gmra.mrb[28].mxu0 %v5765_v53  ;;  %v7238_v53 = vld [vmem:[%s7365_s14 + $0x38] sm:$0x1] }
  0xad   : > { %6462 = vmatmul.mubr.bf16.gmra.mrb[12].mxu1 %v5469_v4  ;;  %6689 = vmatprep.mubr.bf16.mxu0 %v7151_v22  ;;  %v1340_v45 = vrot.slane %v7238_v53, 5  ;;  %v1261_v4 = vld [vmem:[%s7365_s14 + $0x3c] sm:$0xe]  ;;  %v1344_v22 = vrot.slane %v7942_v30, 5  ;;  %v8037_v30 = vsel %vm7643_vm5, %v5487_v21, %v1316_v7  ;;  %v3819_v21 = vshll.u32 %v5846_v10, 16  ;;  %v7177_v53 = vld [vmem:[%s9181_s1 + $0x1e0] sm:$0xff]  }
  0xae   : > { %6465 = vmatprep.mubr.bf16.mxu1 %v5470_v55  ;;  %6494 = vmatpush3.bf16.msra.mxu1 %v7165_v49  ;;  %v1333_v49 = vrot.slane %v7237_v43, 5  ;;  %v8024_v55 = vrot.slane %v2412_v8, 5  ;;  %v7160_v7 = vld [vmem:[%s7365_s14 + $0x3c] sm:$0xff]   ;;  %v8057_v8 = vsel %vm7643_vm5, %v1325_v46, %v1326_v39  ;;  %v1353_v46 = vrot.slane %v1351_v1, 4  ;;  %v5852_v43 = vld [vmem:[%s7365_s14 + $0x30] sm:$0xf] }
  0xaf   : > { %6495 = vmatprep.subr.bf16.mxu1 %v7171_v56  ;;  %v1354_v39 = vrot.slane %v7240_v38, 5  ;;  %v3818_v10 = vrot.slane %v3816_v5, 4 }
  0xb0   : > { %9203 = vst [vmem:[#allocation2_spill] sm:$0xff] %v8024_v55 }
  0xb2   : > { %6496 = vmatpush3.bf16.msra.mxu1 %v7171_v56  ;;  %v7167_v56 = vld [vmem:[%s9181_s1 + $0x1d0] sm:$0xff]  }
  0xb3   : > { %6529 = vmatprep.subr.bf16.mxu1 %v7990_v60 }
  0xb4   : > { %6690 = vmatmul.mubr.bf16.vlgmr.msra.gmra.mrb[0].mxu0 %v7154_v6  ;;  %v8045_v6 = vsel %vm7643_vm5, %v1318_v33, %v1319_v35  ;;  %v8065_v35 = vsel %vm7643_vm5, %v1332_v42, %v1333_v49  ;;  %v3825_v33 = vshll.u32 %v5847_v19, 16  ;;  %v3821_v19 = vrot.slane %v3819_v21, 5  ;;  %v1265_v21 = vld [vmem:[%s7365_s14 + $0x6c] sm:$0xe] }
  0xb5   : > { %6466 = vmatmul.mubr.bf16.gmra.mrb[16].mxu1 %v5471_v62  ;;  %6722 = vmatpush3.bf16.msra.mxu0 %v7829_v44  ;;  %v5491_v62 = vrot.slane %v1261_v4, 9  ;;  %v5495_v58 = vrot.slane %v1265_v21, 9 }
  0xb6   : > { %6469 = vmatprep.mubr.bf16.mxu1 %v5472_v36  ;;  %6693 = vmatprep.mubr.bf16.mxu0 %v7157_v18  ;;  %v8075_v36 = vsel %vm7643_vm5, %v1339_v52, %v1340_v45  ;;  %v1346_v18 = vrot.slane %v1344_v22, 4  ;;  %v5849_v52 = vld [vmem:[%s7365_s14 + $0x24] sm:$0xf]  ;;  %v3853_v45 = vshrl.u32 %v5850_v13, 16 }
  0xb7   : > { %6723 = vmatprep.subr.bf16.mxu0 %v7161_v47  ;;  %v8092_v49 = vsel %vm7643_vm5, %v5491_v62, %v1344_v22  ;;  %v8109_v22 = vld [vmem:[%s7365_s14 + $0x54] sm:$0xe]  ;;  %v3831_v62 = vrot.slane %v3829_v51, 4  ;;  %v3840_v38 = vshrl.u32 %v5849_v52, 16  ;;  %v3843_v28 = vshll.u32 %v5849_v52, 16 }
  0xb8   : > { %v8106_v4 = vsel %vm7643_vm5, %v1346_v18, %v1347_v17  ;;  %v3835_v17 = vshll.u32 %v5848_v50, 16  ;;  %v5493_v5 = vrot.slane %v8109_v22, 9  ;;  %v7181_v50 = vld [vmem:[%s9181_s1 + $0x1e8] sm:$0xff]   ;;  %v1360_v52 = vrot.slane %v1358_v16, 4 }
  0xb9   : > { %6724 = vmatpush3.bf16.msra.mxu0 %v7161_v47  ;;  %v7173_v47 = vld [vmem:[%s9181_s1 + $0x1d8] sm:$0xff]   ;;  %v3822_v22 = vor.u32 %v3821_v19, %v3818_v10  ;;  %v3842_v34 = vrot.slane %v3840_v38, 4  ;;  %v3845_v44 = vrot.slane %v3843_v28, 5  ;;  %v7245_v10 = vld [vmem:[%s7365_s14 + $0x74] sm:$0x1]  ;;  %v3855_v28 = vrot.slane %v3853_v45, 4 }
  0xba   : > { %6725 = vmatprep.subr.bf16.mxu0 %v7167_v56  ;;  %v8147_v42 = vrot.slane %v3835_v17, 5  ;;  %v1375_v19 = vrot.slane %v7245_v10, 5  ;;  %v3864_v38 = vshrl.u32 %v5852_v43, 16  ;;  %v8172_v27 = vsel %vm7643_vm5, %v5493_v5, %v1358_v16 }
  0xbb   : > { %v3823_v21 = vrot.slane %v3822_v22, 4 }
  0xbc   : > { %6694 = vmatmul.mubr.bf16.gmra.mrb[4].mxu0 %v7160_v7  ;;  %v8119_v7 = vrot.slane %v3825_v33, 5  ;;  %v7243_v33 = vld [vmem:[%s7365_s14 + $0x70] sm:$0xf] }
  0xbd   : > { %6470 = vmatmul.mubr.bf16.gmra.mrb[20].mxu1 %v5473_v15  ;;  %6697 = vmatprep.mubr.bf16.mxu0 %v7163_v0  ;;  %v1365_v15 = vrot.slane %v8113_v40, 5  ;;  %v7242_v0 = vld [vmem:[%s7365_s14 + $0x5c] sm:$0x1]  ;;  %v1372_v51 = vrot.slane %v7243_v33, 5 }
  0xbe   : > { %6473 = vmatprep.mubr.bf16.mxu1 %v5474_v26  ;;  %6726 = vmatpush3.bf16.msra.mxu0 %v7167_v56  ;;  %v1361_v18 = vrot.slane %v7242_v0, 5  ;;  %v8128_v26 = vsel %vm7643_vm5, %v5492_v54, %v1351_v1  ;;  %v8132_v56 = vsel %vm7643_vm5, %v1353_v46, %v1354_v39  ;;  %v7244_v1 = vld [vmem:[%s7365_s14 + $0x68] sm:$0x1]  ;;  %v3849_v0 = vshll.u32 %v5850_v13, 16  ;;  %v7189_v40 = vld [vmem:[%s9181_s1 + $0x1f8] sm:$0xff]  }
  0xbf   : > { %6727 = vmatprep.subr.bf16.mxu0 %v7173_v47  ;;  %v1368_v54 = vrot.slane %v7244_v1, 5  ;;  %v5494_v46 = vrot.slane %v1264_v32, 9  ;;  %v1367_v39 = vrot.slane %v1365_v15, 4  ;;  %v3832_v33 = vor.u32 %v3831_v62, %v8119_v7  ;;  %v5853_v1 = vld [vmem:[%s7365_s14 + $0x34] sm:$0xf] }
  0xc0   : > { %v1374_v32 = vrot.slane %v1372_v51, 4  ;;  %v5851_v62 = vld [vmem:[%s7365_s14 + $0x2c] sm:$0x1]  ;;  %v8159_v17 = vrot.slane %v3849_v0, 5  ;;  %v3873_v13 = vshll.u32 %v5853_v1, 16  ;;  %v3877_v31 = vshrl.u32 %v5853_v1, 16 }
  0xc1   : > { %v3833_v10 = vrot.slane %v3832_v33, 4  ;;  %v8176_v29 = vsel %vm7643_vm5, %v1360_v52, %v1361_v18  ;;  %v8183_v45 = vsel %vm7643_vm5, %v5494_v46, %v1365_v15  ;;  %v8187_v14 = vsel %vm7643_vm5, %v1367_v39, %v1368_v54  ;;  %v1266_v18 = vld [vmem:[%s7365_s14 + $0x78] sm:$0xe] }
  0xc2   : > { %6728 = vmatpush3.bf16.msra.mxu0 %v7173_v47  ;;  %v8191_v16 = vsel %vm7643_vm5, %v5495_v58, %v1372_v51  ;;  %v8201_v15 = vsel %vm7643_vm5, %v1374_v32, %v1375_v19  ;;  %v3856_v5 = vor.u32 %v3855_v28, %v8159_v17  ;;  %v3866_v52 = vrot.slane %v3864_v38, 4  ;;  %v5855_v58 = vld [vmem:[%s7365_s14 + $0x3c] sm:$0xf]  ;;  %v5856_v51 = vld [vmem:[%s7365_s14 + $0x40] sm:$0xf] }
  0xc3   : > { %6729 = vmatprep.subr.bf16.mxu0 %v7177_v53  ;;  %v3828_v0 = vsel %vm7397_vm2, %v3823_v21, %v8119_v7  ;;  %v3838_v46 = vsel %vm7397_vm2, %v3833_v10, %v8147_v42  ;;  %v8212_v39 = vrot.slane %v3873_v13, 5  ;;  %v3879_v22 = vrot.slane %v3877_v31, 4  ;;  %v7247_v19 = vld [vmem:[%s7365_s14 + $0x80] sm:$0x1]  ;;  %v8371_v47 = vld [vmem:[%s7365_s14 + $0x68] sm:$0x1] }
  0xc4   : > { %6698 = vmatmul.mubr.bf16.gmra.mrb[8].mxu0 %v7166_v2  ;;  %v3867_v2 = vshll.u32 %v5852_v43, 16  ;;  %v3859_v43 = vshll.u32 %v5851_v62, 16  ;;  %v5496_v32 = vrot.slane %v1266_v18, 9  ;;  %v1267_v62 = vld [vmem:[%s7365_s14 + $0x84] sm:$0xe]  ;;  %v3888_v28 = vshrl.u32 %v5855_v58, 16 }
  0xc5   : > { %6474 = vmatmul.mubr.bf16.gmra.mrb[24].mxu1 %v5475_v20  ;;  %6701 = vmatprep.mubr.bf16.mxu0 %v7169_v3  ;;  %v7185_v20 = vld [vmem:[%s9181_s1 + $0x1f0] sm:$0xff]   ;;  %v7246_v3 = vld [vmem:[%s7365_s14 + $0x7c] sm:$0xf]  ;;  %v3891_v7 = vshll.u32 %v5855_v58, 16  ;;  %v3897_v38 = vshll.u32 %v5856_v51, 16  ;;  %v9204_v42 = vcombine.low %v7802_v41, %v7807_v12  ;;  %v8223_v13 = vrot.slane %v3856_v5, 4 }
  0xc6   : > { %6477 = vmatprep.mubr.bf16.mxu1 %v5476_v23  ;;  %6730 = vmatpush3.bf16.msra.mxu0 %v7177_v53  ;;  %v3846_v23 = vor.u32 %v3845_v44, %v3842_v34  ;;  %v7174_v53 = vld [vmem:[%s7365_s14 + $0x78] sm:$0xff]   ;;  %v1379_v44 = vrot.slane %v7246_v3, 5  ;;  %v3869_v54 = vrot.slane %v3867_v2, 5  ;;  %v8216_v1 = vrot.slane %v3859_v43, 5  ;;  %v8228_v21 = vld [vmem:[%s9181_s1 + $0x200] sm:$0xff]   ;;  %9212 = vst [vmem:[#allocation5_spill] sm:$0xff] %v8371_v47 }
  0xc7   : > { %6731 = vmatprep.subr.bf16.mxu0 %v7181_v50  ;;  %v5854_v34 = vld [vmem:[%s7365_s14 + $0x38] sm:$0x1]  ;;  %v3901_v2 = vshrl.u32 %v5856_v51, 16  ;;  %v7176_v43 = vld [vmem:[%s7365_s14 + $0x84] sm:$0xff]   ;;  %v3880_v12 = vor.u32 %v3879_v22, %v8212_v39  ;;  %v3893_v58 = vrot.slane %v3891_v7, 5  ;;  %v8250_v51 = vrot.slane %v3897_v38, 5 }
  0xc8   : > { %v8214_v33 = vrot.slane %v3846_v23, 4  ;;  %v1381_v10 = vrot.slane %v1379_v44, 4  ;;  %v3870_v31 = vor.u32 %v3869_v54, %v3866_v52  ;;  %v9205_v23 = vcombine.low %v8033_v59, %v8041_v25  ;;  %v7248_v18 = vld [vmem:[%s7365_s14 + $0x88] sm:$0xf]  ;;  %v5857_v5 = vld [vmem:[%s7365_s14 + $0x44] sm:$0x1] }
  0xc9   : > { %v1386_v3 = vrot.slane %v7248_v18, 5  ;;  %v8241_v59 = vcombine.low %v3828_v0, %v3838_v46  ;;  %v5858_v52 = vld [vmem:[%s7365_s14 + $0x48] sm:$0xf]  ;;  %v3890_v54 = vrot.slane %v3888_v28, 4  ;;  %v3903_v22 = vrot.slane %v3901_v2, 4 }
  0xca   : > { %6732 = vmatpush3.bf16.msra.mxu0 %v7181_v50  ;;  %v1382_v50 = vrot.slane %v7247_v19, 5  ;;  %v7178_v19 = vld [vmem:[%s7365_s14 + $0x90] sm:$0xff]   ;;  %v3852_v0 = vsel %vm7397_vm2, %v8214_v33, %v8159_v17  ;;  %v3871_v46 = vrot.slane %v3870_v31, 4  ;;  %v3862_v28 = vsel %vm7397_vm2, %v8223_v13, %v8216_v1  ;;  %v8272_v33 = vld [vmem:[%s7365_s14 + $0x58] sm:$0xf]  ;;  %v7179_v31 = vld [vmem:[%s9181_s1 + $0xc8] sm:$0xff]  }
  0xcb   : > { %6733 = vmatprep.subr.bf16.mxu0 %v7185_v20  ;;  %v3881_v38 = vrot.slane %v3880_v12, 4  ;;  %v1388_v2 = vrot.slane %v1386_v3, 4  ;;  %v5861_v17 = vld [vmem:[%s7365_s14 + $0x54] sm:$0xf]  ;;  %v3907_v1 = vshll.u32 %v5857_v5, 16  ;;  %v3912_v13 = vshrl.u32 %v5858_v52, 16 }
  0xcc   : > { %6702 = vmatmul.mubr.bf16.gmra.mrb[12].mxu0 %v7172_v48  ;;  %v3883_v48 = vshll.u32 %v5854_v34, 16  ;;  %v8268_v7 = vsel %vm7643_vm5, %v1381_v10, %v1382_v50  ;;  %v3915_v50 = vshll.u32 %v5858_v52, 16  ;;  %v3894_v10 = vor.u32 %v3893_v58, %v3890_v54  ;;  %v7180_v54 = vld [vmem:[%s7365_s14 + $0x9c] sm:$0xff]   ;;  %v7254_v41 = vld [vmem:[%s7365_s14 + $0xac] sm:$0xf] }
  0xcd   : > { %6478 = vmatmul.mubr.bf16.gmra.mrb[28].mxu1 %v9204_v42  ;;  %6705 = vmatprep.mubr.bf16.mxu0 %v7174_v53  ;;  %v5497_v53 = vrot.slane %v1267_v62, 9  ;;  %v7249_v42 = vld [vmem:[%s7365_s14 + $0x8c] sm:$0x1]  ;;  %v3945_v5 = vshll.u32 %v8272_v33, 16  ;;  %v9207_v52 = vcombine.low %v8049_v63, %v8057_v8  ;;  %v8308_v63 = vld [vmem:[%s7365_s14 + $0x50] sm:$0x1] }
  0xce   : > { %6497 = vmatprep.mubr.bf16.mxu1 %v9205_v23  ;;  %6734 = vmatpush3.bf16.msra.mxu0 %v7185_v20  ;;  %v8247_v20 = vsel %vm7643_vm5, %v5496_v32, %v1379_v44  ;;  %v3885_v62 = vrot.slane %v3883_v48, 5  ;;  %v1389_v23 = vrot.slane %v7249_v42, 5  ;;  %v1268_v44 = vld [vmem:[%s7365_s14 + $0x90] sm:$0xe]  ;;  %v8260_v32 = vld [vmem:[%s7365_s14 + $0x4c] sm:$0xf]  ;;  %v3904_v48 = vor.u32 %v3903_v22, %v8250_v51 }
  0xcf   : > { %6735 = vmatprep.subr.bf16.mxu0 %v7189_v40  ;;  %v3921_v12 = vshll.u32 %v8260_v32, 16  ;;  %v3925_v18 = vshrl.u32 %v8260_v32, 16  ;;  %v9206_v42 = vcombine.low %v8037_v30, %v8045_v6  ;;  %v7183_v30 = vld [vmem:[%s9181_s1 + $0xd0] sm:$0xff]   ;;  %v3876_v6 = vsel %vm7397_vm2, %v3871_v46, %v8212_v39  ;;  %v7182_v8 = vld [vmem:[%s7365_s14 + $0xa8] sm:$0xff]   ;;  %v8315_v39 = vld [vmem:[%s7365_s14 + $0x5c] sm:$0x1] }
  0xd0   : > { %v3886_v58 = vsel %vm7397_vm2, %v3881_v38, %v3885_v62  ;;  %v5498_v22 = vrot.slane %v1268_v44, 9  ;;  %v3917_v25 = vrot.slane %v3915_v50, 5  ;;  %9208 = vst [vmem:[#allocation3_spill] sm:$0xff] %v8315_v39  ;;  %v3895_v46 = vrot.slane %v3894_v10, 4 }
  0xd1   : > { %v3905_v62 = vrot.slane %v3904_v48, 4  ;;  %v8317_v38 = vrot.slane %v3921_v12, 5  ;;  %v8319_v34 = vrot.slane %v3945_v5, 5  ;;  %v8324_v50 = vcombine.low %v3852_v0, %v3862_v28  ;;  %v5864_v28 = vld [vmem:[%s7365_s14 + $0x60] sm:$0xf] }
  0xd2   : > { %6736 = vmatpush3.bf16.msra.mxu0 %v7189_v40  ;;  %v8280_v40 = vsel %vm7643_vm5, %v5497_v53, %v1386_v3  ;;  %v3936_v53 = vshrl.u32 %v5861_v17, 16  ;;  %v3939_v3 = vshll.u32 %v5861_v17, 16  ;;  %v7250_v17 = vld [vmem:[%s7365_s14 + $0x94] sm:$0xf]  ;;  %v8328_v48 = vcombine.low %v3876_v6, %v3886_v58 }
  0xd3   : > { %6769 = vmatprep.subr.bf16.mxu0 %v8228_v21  ;;  %v3931_v0 = vshll.u32 %v8308_v63, 16  ;;  %v3900_v6 = vsel %vm7397_vm2, %v3895_v46, %v8250_v51  ;;  %v9211_v46 = vcombine.low %v8071_v61, %v8075_v36 }
  0xd4   : > { %6706 = vmatmul.mubr.bf16.gmra.mrb[16].mxu0 %v7176_v43  ;;  %v3949_v43 = vshrl.u32 %v8272_v33, 16  ;;  %v3938_v44 = vrot.slane %v3936_v53, 4  ;;  %v7251_v53 = vld [vmem:[%s7365_s14 + $0x98] sm:$0x1] }
  0xd5   : > { %6498 = vmatmul.mubr.bf16.vlgmr.msra.gmra.mrb[0].mxu1 %v9206_v42  ;;  %6709 = vmatprep.mubr.bf16.mxu0 %v7178_v19  ;;  %v8311_v19 = vrot.slane %v3907_v1, 5  ;;  %v1393_v42 = vrot.slane %v7250_v17, 5  ;;  %v7252_v17 = vld [vmem:[%s7365_s14 + $0xa0] sm:$0xf]  ;;  %v3933_v36 = vrot.slane %v3931_v0, 5 }
  0xd6   : > { %6530 = vmatpush3.bf16.msra.mxu1 %v7990_v60  ;;  %6501 = vmatprep.mubr.bf16.mxu1 %v9207_v52  ;;  %v8305_v60 = vsel %vm7643_vm5, %v1388_v2, %v1389_v23  ;;  %v3914_v52 = vrot.slane %v3912_v13, 4  ;;  %v3927_v23 = vrot.slane %v3925_v18, 4  ;;  %v3941_v2 = vrot.slane %v3939_v3, 5  ;;  %v7187_v13 = vld [vmem:[%s9181_s1 + $0xd8] sm:$0xff]  }
  0xd7   : > { %6531 = vmatprep.subr.bf16.mxu1 %v7179_v31  ;;  %v3951_v1 = vrot.slane %v3949_v43, 4  ;;  %v1269_v18 = vld [vmem:[%s7365_s14 + $0x9c] sm:$0xe]  ;;  %v1396_v3 = vrot.slane %v7251_v53, 5  ;;  %v8341_v43 = vld [vmem:[%s7365_s14 + $0x64] sm:$0xf] }
  0xd8   : > { %v3918_v5 = vor.u32 %v3917_v25, %v3914_v52  ;;  %9209 = vst [vmem:[#allocation4_spill] sm:$0xff] %v8341_v43  ;;  %v3928_v58 = vor.u32 %v3927_v23, %v8317_v38  ;;  %v1400_v12 = vrot.slane %v7252_v17, 5  ;;  %v9210_v25 = vcombine.low %v8061_v24, %v8065_v35  ;;  %v7184_v23 = vld [vmem:[%s7365_s14 + $0xb4] sm:$0xff]   ;;  %v7190_v24 = vld [vmem:[%s9181_s1 + $0xe0] sm:$0xff]   ;;  %v5867_v17 = vld [vmem:[%s7365_s14 + $0x6c] sm:$0xf] }
  0xd9   : > { %v1395_v52 = vrot.slane %v1393_v42, 4  ;;  %v3942_v53 = vor.u32 %v3941_v2, %v3938_v44  ;;  %v3952_v51 = vor.u32 %v3951_v1, %v8319_v34  ;;  %v3960_v35 = vshrl.u32 %v5864_v28, 16  ;;  %v7253_v2 = vld [vmem:[%s7365_s14 + $0xa4] sm:$0x1] }
  0xda   : > { %6532 = vmatpush3.bf16.msra.mxu1 %v7179_v31  ;;  %v8335_v31 = vsel %vm7643_vm5, %v5498_v22, %v1393_v42  ;;  %v3955_v22 = vshll.u32 %v8315_v39, 16  ;;  %v3973_v42 = vshrl.u32 %v8341_v43, 16  ;;  %v3919_v61 = vrot.slane %v3918_v5, 4  ;;  %v8510_v39 = vld [vmem:[%s7365_s14 + $0x98] sm:$0x1] }
  0xdb   : > { %6533 = vmatprep.subr.bf16.mxu1 %v7183_v30  ;;  %v5499_v44 = vrot.slane %v1269_v18, 9  ;;  %v1403_v1 = vrot.slane %v7253_v2, 5  ;;  %v3943_v5 = vrot.slane %v3942_v53, 4  ;;  %v3953_v18 = vrot.slane %v3952_v51, 4  ;;  %9225 = vst [vmem:[#allocation14_spill] sm:$0xff] %v8510_v39 }
  0xdc   : > { %6710 = vmatmul.mubr.bf16.gmra.mrb[20].mxu0 %v7180_v54  ;;  %v3910_v54 = vsel %vm7397_vm2, %v3905_v62, %v8311_v19  ;;  %v3969_v19 = vshll.u32 %v8341_v43, 16  ;;  %v7186_v62 = vld [vmem:[%s7365_s14 + $0xc0] sm:$0xff]   ;;  %v3957_v10 = vrot.slane %v3955_v22, 5  ;;  %v8377_v43 = vsel %vm7643_vm5, %v1395_v52, %v1396_v3 }
  0xdd   : > { %6502 = vmatmul.mubr.bf16.gmra.mrb[4].mxu1 %v9210_v25  ;;  %6713 = vmatprep.mubr.bf16.mxu0 %v7182_v8  ;;  %v3963_v8 = vshll.u32 %v5864_v28, 16  ;;  %v3929_v25 = vrot.slane %v3928_v58, 4  ;;  %v1407_v28 = vrot.slane %v7254_v41, 5  ;;  %v8373_v55 = vcombine.low %v3900_v6, %v3910_v54  ;;  %v7192_v41 = vld [vmem:[%s9181_s1 + $0xe8] sm:$0xff]  }
  0xde   : > { %6505 = vmatprep.mubr.bf16.mxu1 %v9211_v46  ;;  %6534 = vmatpush3.bf16.msra.mxu1 %v7183_v30  ;;  %v1270_v30 = vld [vmem:[%s7365_s14 + $0xa8] sm:$0xe]  ;;  %v1402_v46 = vrot.slane %v1400_v12, 4  ;;  %v3962_v0 = vrot.slane %v3960_v35, 4  ;;  %v8379_v58 = vrot.slane %v3969_v19, 5  ;;  %v3975_v22 = vrot.slane %v3973_v42, 4 }
  0xdf   : > { %6535 = vmatprep.subr.bf16.mxu1 %v7187_v13  ;;  %v3965_v2 = vrot.slane %v3963_v8, 5  ;;  %v3924_v3 = vsel %vm7397_vm2, %v3919_v61, %v8317_v38  ;;  %v8389_v6 = vsel %vm7643_vm5, %v5499_v44, %v1400_v12  ;;  %v3984_v54 = vshrl.u32 %v5867_v17, 16  ;;  %v7255_v38 = vld [vmem:[%s7365_s14 + $0xb0] sm:$0x1]  ;;  %v1271_v19 = vld [vmem:[%s7365_s14 + $0xb4] sm:$0xe] }
  0xe0   : > { %v3987_v52 = vshll.u32 %v5867_v17, 16  ;;  %v3934_v53 = vsel %vm7397_vm2, %v3929_v25, %v3933_v36  ;;  %v8398_v51 = vsel %vm7643_vm5, %v1402_v46, %v1403_v1  ;;  %v5500_v35 = vrot.slane %v1270_v30, 9  ;;  %v8420_v30 = vld [vmem:[%s7365_s14 + $0x74] sm:$0x1]  ;;  %v7256_v25 = vld [vmem:[%s7365_s14 + $0xb8] sm:$0xf] }
  0xe1   : > { %v1410_v8 = vrot.slane %v7255_v38, 5  ;;  %v9214_v12 = vcombine.low %v8092_v49, %v8106_v4  ;;  %v3948_v42 = vsel %vm7397_vm2, %v3943_v5, %v8319_v34  ;;  %v3958_v61 = vsel %vm7397_vm2, %v3953_v18, %v3957_v10  ;;  %v7188_v4 = vld [vmem:[%s7365_s14 + $0xcc] sm:$0xff]   ;;  %9216 = vst [vmem:[#allocation7_spill] sm:$0xff] %v8420_v30  ;;  %v5873_v38 = vld [vmem:[%s7365_s14 + $0x84] sm:$0xf] }
  0xe2   : > { %6536 = vmatpush3.bf16.msra.mxu1 %v7187_v13  ;;  %v8392_v13 = vld [vmem:[%s7365_s14 + $0x70] sm:$0xf]  ;;  %v1409_v36 = vrot.slane %v1407_v28, 4  ;;  %v3979_v44 = vshll.u32 %v8371_v47, 16  ;;  %v9215_v49 = vcombine.low %v8128_v26, %v8132_v56  ;;  %v3976_v1 = vor.u32 %v3975_v22, %v8379_v58  ;;  %v8437_v22 = vld [vmem:[%s7365_s14 + $0x7c] sm:$0xf] }
  0xe3   : > { %6537 = vmatprep.subr.bf16.mxu1 %v7190_v24  ;;  %9213 = vst [vmem:[#allocation6_spill] sm:$0xff] %v8392_v13  ;;  %v3993_v34 = vshll.u32 %v8392_v13, 16  ;;  %v3997_v10 = vshrl.u32 %v8392_v13, 16  ;;  %v5501_v17 = vrot.slane %v1271_v19, 9  ;;  %v1414_v46 = vrot.slane %v7256_v25, 5  ;;  %9217 = vst [vmem:[#allocation8_spill] sm:$0xff] %v8437_v22 }
  0xe4   : > { %6714 = vmatmul.mubr.bf16.gmra.mrb[24].mxu0 %v7184_v23  ;;  %v7194_v23 = vld [vmem:[%s9181_s1 + $0xf0] sm:$0xff]   ;;  %v3986_v26 = vrot.slane %v3984_v54, 4  ;;  %v3989_v56 = vrot.slane %v3987_v52, 5  ;;  %v8428_v18 = vcombine.low %v3924_v3, %v3934_v53  ;;  %v8440_v19 = vcombine.low %v3948_v42, %v3958_v61  ;;  %v7257_v3 = vld [vmem:[%s7365_s14 + $0xbc] sm:$0x1] }
  0xe5   : > { %6506 = vmatmul.mubr.bf16.gmra.mrb[8].mxu1 %v9214_v12  ;;  %6717 = vmatprep.mubr.bf16.mxu0 %v7186_v62  ;;  %v3966_v62 = vor.u32 %v3965_v2, %v3962_v0  ;;  %v8434_v2 = vsel %vm7643_vm5, %v5500_v35, %v1407_v28  ;;  %v8444_v54 = vsel %vm7643_vm5, %v1409_v36, %v1410_v8  ;;  %v8446_v52 = vrot.slane %v3979_v44, 5  ;;  %v7196_v12 = vld [vmem:[%s9181_s1 + $0xf8] sm:$0xff]   ;;  %v8453_v28 = vld [vmem:[%s7365_s14 + $0x88] sm:$0xf] }
  0xe6   : > { %6509 = vmatprep.mubr.bf16.mxu1 %v9215_v49  ;;  %6538 = vmatpush3.bf16.msra.mxu1 %v7190_v24  ;;  %v5870_v24 = vld [vmem:[%s7365_s14 + $0x78] sm:$0xf]  ;;  %v1417_v53 = vrot.slane %v7257_v3, 5  ;;  %9218 = vst [vmem:[#allocation9_spill] sm:$0xff] %v8453_v28  ;;  %v8457_v42 = vrot.slane %v3976_v1, 4  ;;  %v8459_v61 = vrot.slane %v3993_v34, 5  ;;  %v8463_v36 = vsel %vm7643_vm5, %v5501_v17, %v1414_v46 }
  0xe7   : > { %6539 = vmatprep.subr.bf16.mxu1 %v7192_v41  ;;  %v8455_v35 = vrot.slane %v3966_v62, 4  ;;  %v3999_v8 = vrot.slane %v3997_v10, 4  ;;  %v1416_v44 = vrot.slane %v1414_v46, 4  ;;  %v3990_v49 = vor.u32 %v3989_v56, %v3986_v26  ;;  %v5876_v3 = vld [vmem:[%s7365_s14 + $0x90] sm:$0xf] }
  0xe8   : > { %v4003_v25 = vshll.u32 %v8420_v30, 16  ;;  %v4011_v0 = vshll.u32 %v5870_v24, 16  ;;  %v4017_v62 = vshll.u32 %v8437_v22, 16  ;;  %v4021_v1 = vshrl.u32 %v8437_v22, 16  ;;  %v8470_v34 = vld [vmem:[%s7365_s14 + $0x94] sm:$0xf] }
  0xe9   : > { %9219 = vst [vmem:[#allocation10_spill] sm:$0xff] %v8470_v34  ;;  %v9220_v10 = vcombine.low %v8172_v27, %v8176_v29  ;;  %v4032_v17 = vshrl.u32 %v5873_v38, 16  ;;  %v4035_v46 = vshll.u32 %v5873_v38, 16  ;;  %v4045_v26 = vshrl.u32 %v8453_v28, 16  ;;  %v5879_v38 = vld [vmem:[%s7365_s14 + $0x9c] sm:$0xf] }
  0xea   : > { %6540 = vmatpush3.bf16.msra.mxu1 %v7192_v41  ;;  %v4008_v41 = vshrl.u32 %v5870_v24, 16  ;;  %v9221_v56 = vcombine.low %v8183_v45, %v8187_v14  ;;  %v4000_v29 = vor.u32 %v3999_v8, %v8459_v61  ;;  %v4059_v24 = vshll.u32 %v5876_v3, 16  ;;  %v8492_v45 = vld [vmem:[%s7365_s14 + $0x80] sm:$0x1] }
  0xeb   : > { %6541 = vmatprep.subr.bf16.mxu1 %v7194_v23  ;;  %v8489_v5 = vrot.slane %v4003_v25, 5  ;;  %9222 = vst [vmem:[#allocation11_spill] sm:$0xff] %v8492_v45  ;;  %v4065_v14 = vshll.u32 %v8470_v34, 16  ;;  %v4013_v27 = vrot.slane %v4011_v0, 5  ;;  %v4023_v8 = vrot.slane %v4021_v1, 4 }
  0xec   : > { %6718 = vmatmul.mubr.bf16.gmra.mrb[28].mxu0 %v7188_v4  ;;  %v4041_v4 = vshll.u32 %v8453_v28, 16  ;;  %v8496_v28 = vrot.slane %v4017_v62, 5  ;;  %v8502_v22 = vld [vmem:[%s7365_s14 + $0xa0] sm:$0xf]  ;;  %v4034_v25 = vrot.slane %v4032_v17, 4  ;;  %v4037_v30 = vrot.slane %v4035_v46, 5 }
  0xed   : > { %6510 = vmatmul.mubr.bf16.gmra.mrb[12].mxu1 %v9220_v10  ;;  %6737 = vmatprep.mubr.bf16.mxu0 %v8241_v59  ;;  %v4056_v59 = vshrl.u32 %v5876_v3, 16  ;;  %v8487_v10 = vrot.slane %v3990_v49, 4  ;;  %v8499_v3 = vld [vmem:[%s7365_s14 + $0x8c] sm:$0x1]  ;;  %9224 = vst [vmem:[#allocation13_spill] sm:$0xff] %v8502_v22  ;;  %v4047_v47 = vrot.slane %v4045_v26, 4  ;;  %v8519_v62 = vsel %vm7643_vm5, %v1416_v44, %v1417_v53 }
  0xee   : > { %6513 = vmatprep.mubr.bf16.mxu1 %v9221_v56  ;;  %6542 = vmatpush3.bf16.msra.mxu1 %v7194_v23  ;;  %v4069_v23 = vshrl.u32 %v8470_v34, 16  ;;  %v4010_v56 = vrot.slane %v4008_v41, 4  ;;  %9223 = vst [vmem:[#allocation12_spill] sm:$0xff] %v8499_v3  ;;  %v7193_v49 = vld [vmem:[%s9181_s1 + $0x208] sm:$0xff]   ;;  %v8507_v13 = vrot.slane %v4041_v4, 5  ;;  %v4061_v34 = vrot.slane %v4059_v24, 5 }
  0xef   : > { %6543 = vmatprep.subr.bf16.mxu1 %v7196_v12  ;;  %v5882_v41 = vld [vmem:[%s7365_s14 + $0xa8] sm:$0xf]  ;;  %v4058_v1 = vrot.slane %v4056_v59, 4  ;;  %v8524_v17 = vld [vmem:[%s9181_s1 + $0x100] sm:$0xff]   ;;  %v8527_v46 = vrot.slane %v4065_v14, 5  ;;  %v4080_v26 = vshrl.u32 %v5879_v38, 16  ;;  %v9227_v24 = vcombine.low %v8191_v16, %v8201_v15 }
  0xf0   : > { %9226 = vst [vmem:[#allocation15_spill] sm:$0xff] %v8524_v17  ;;  %v4071_v4 = vrot.slane %v4069_v23, 4  ;;  %v4083_v0 = vshll.u32 %v5879_v38, 16  ;;  %v8530_v53 = vrot.slane %v4000_v29, 4  ;;  %v4089_v44 = vshll.u32 %v8502_v22, 16  ;;  %v7195_v16 = vld [vmem:[%s9181_s1 + $0x210] sm:$0xff]  }
  0xf1   : > { %v4093_v59 = vshrl.u32 %v8502_v22, 16  ;;  %v4014_v14 = vor.u32 %v4013_v27, %v4010_v56  ;;  %v4024_v38 = vor.u32 %v4023_v8, %v8496_v28  ;;  %v4038_v23 = vor.u32 %v4037_v30, %v4034_v25  ;;  %v8542_v29 = vld [vmem:[%s7365_s14 + $0xac] sm:$0xf]  ;;  %v8555_v25 = vld [vmem:[%s7365_s14 + $0xa4] sm:$0x1] }
  0xf2   : > { %6544 = vmatpush3.bf16.msra.mxu1 %v7196_v12  ;;  %v4027_v12 = vshll.u32 %v8492_v45, 16  ;;  %9228 = vst [vmem:[#allocation16_spill] sm:$0xff] %v8542_v29  ;;  %v4048_v15 = vor.u32 %v4047_v47, %v8507_v13  ;;  %v4104_v27 = vshrl.u32 %v5882_v41, 16  ;;  %v4107_v30 = vshll.u32 %v5882_v41, 16 }
  0xf3   : > { %6817 = vmatprep.subr.bf16.mxu1 %v8524_v17  ;;  %v9229_v17 = vcombine.low %v8247_v20, %v8268_v7  ;;  %v4062_v56 = vor.u32 %v4061_v34, %v4058_v1  ;;  %v4072_v8 = vor.u32 %v4071_v4, %v8527_v46  ;;  %v4082_v20 = vrot.slane %v4080_v26, 4 }
  0xf4   : > { %6738 = vmatmul.mubr.bf16.vlgmr.msra.gmra.mrb[0].mxu0 %v8324_v50  ;;  %v4051_v50 = vshll.u32 %v8499_v3, 16  ;;  %v4085_v7 = vrot.slane %v4083_v0, 5  ;;  %v4117_v22 = vshrl.u32 %v8542_v29, 16  ;;  %v4015_v47 = vrot.slane %v4014_v14, 4  ;;  %v7197_v0 = vld [vmem:[%s9181_s1 + $0x218] sm:$0xff]  }
  0xf5   : > { %6514 = vmatmul.mubr.bf16.gmra.mrb[16].mxu1 %v9227_v24  ;;  %6770 = vmatpush3.bf16.msra.mxu0 %v8228_v21  ;;  %v4075_v21 = vshll.u32 %v8510_v39, 16  ;;  %v4113_v24 = vshll.u32 %v8542_v29, 16  ;;  %v4025_v39 = vrot.slane %v4024_v38, 4  ;;  %v4029_v3 = vrot.slane %v4027_v12, 5 }
  0xf6   : > { %6517 = vmatprep.mubr.bf16.mxu1 %v9229_v17  ;;  %6741 = vmatprep.mubr.bf16.mxu0 %v8328_v48  ;;  %v8557_v17 = vrot.slane %v4089_v44, 5  ;;  %v4095_v48 = vrot.slane %v4093_v59, 4  ;;  %v4053_v41 = vrot.slane %v4051_v50, 5  ;;  %v4039_v34 = vrot.slane %v4038_v23, 4 }
  0xf7   : > { %6771 = vmatprep.subr.bf16.mxu0 %v7193_v49  ;;  %v4049_v1 = vrot.slane %v4048_v15, 4  ;;  %v4106_v4 = vrot.slane %v4104_v27, 4  ;;  %v4109_v45 = vrot.slane %v4107_v30, 5  ;;  %v4063_v26 = vrot.slane %v4062_v56, 4  ;;  %v8623_v27 = vld [vmem:[%s7365_s14 + $0xbc] sm:$0x1] }
  0xf8   : > { %v4077_v44 = vrot.slane %v4075_v21, 5  ;;  %v4086_v59 = vor.u32 %v4085_v7, %v4082_v20  ;;  %v4099_v29 = vshll.u32 %v8555_v25, 16  ;;  %v4096_v12 = vor.u32 %v4095_v48, %v8557_v17  ;;  %v8590_v21 = vld [vmem:[%s7365_s14 + $0xb0] sm:$0x1] }
  0xf9   : > { %6772 = vmatpush3.bf16.msra.mxu0 %v7193_v49  ;;  %v4073_v49 = vrot.slane %v4072_v8, 4  ;;  %v8567_v14 = vrot.slane %v4113_v24, 5  ;;  %v4119_v38 = vrot.slane %v4117_v22, 4  ;;  %v9230_v23 = vor.u32 %v7975_v57, %v7973_v11 }
  0xfa   : > { %6773 = vmatprep.subr.bf16.mxu0 %v7195_v16  ;;  %v9231_v15 = vcombine.low %v8280_v40, %v8305_v60  ;;  %v4006_v22 = vsel %vm7397_vm2, %v8530_v53, %v8489_v5  ;;  %v4020_v57 = vsel %vm7397_vm2, %v4015_v47, %v8496_v28  ;;  %v9232_v40 = vcombine.low %v8335_v31, %v8377_v43  ;;  %v7200_v31 = vld [vmem:[%s9181_s1 + $0x220] sm:$0xff]  }
  0xfb   : > { %v8572_v50 = vrot.slane %v9230_v23, 4  ;;  %v4030_v60 = vsel %vm7397_vm2, %v4025_v39, %v4029_v3  ;;  %v4110_v5 = vor.u32 %v4109_v45, %v4106_v4  ;;  %v4054_v28 = vsel %vm7397_vm2, %v4049_v1, %v4053_v41  ;;  %v5938_v41 = vld [vmem:[%s7365_s14 + $0x48] sm:$0xe] }
  0xfc   : > { %6742 = vmatmul.mubr.bf16.gmra.mrb[4].mxu0 %v8373_v55  ;;  %v3996_v55 = vsel %vm7397_vm2, %v8487_v10, %v8459_v61  ;;  %v5885_v61 = vld [vmem:[%s7365_s14 + $0xb4] sm:$0xf]  ;;  %v8602_v10 = vld [vmem:[%s7365_s14 + $0xb8] sm:$0xf]  ;;  %v4068_v39 = vsel %vm7397_vm2, %v4063_v26, %v8527_v46  ;;  %v8612_v43 = vrot.slane %v4086_v59, 4  ;;  %v8614_v3 = vrot.slane %v4099_v29, 5 }
  0xfd   : > { %6518 = vmatmul.mubr.bf16.gmra.mrb[20].mxu1 %v9231_v15  ;;  %6745 = vmatprep.mubr.bf16.mxu0 %v8428_v18  ;;  %v4044_v18 = vsel %vm7397_vm2, %v4039_v34, %v8507_v13  ;;  %v4078_v13 = vsel %vm7397_vm2, %v4073_v49, %v4077_v44  ;;  %v8618_v45 = vrot.slane %v4096_v12, 4  ;;  %v4120_v53 = vor.u32 %v4119_v38, %v8567_v14  ;;  %v5939_v26 = vld [vmem:[%s7365_s14 + $0x54] sm:$0xe] }
  0xfe   : > { %6521 = vmatprep.mubr.bf16.mxu1 %v9232_v40  ;;  %6774 = vmatpush3.bf16.msra.mxu0 %v7195_v16  ;;  %v4123_v16 = vshll.u32 %v8590_v21, 16  ;;  %v9233_v46 = vsel %vm7397_vm2, %v8457_v42, %v8446_v52  ;;  %v9234_v29 = vsel %vm7397_vm2, %v8455_v35, %v8379_v58  ;;  %v4128_v56 = vshrl.u32 %v5885_v61, 16 }
  0xff   : > { %6775 = vmatprep.subr.bf16.mxu0 %v7197_v0  ;;  %v5916_v30 = vcombine.low %v9234_v29, %v9233_v46  ;;  %v4131_v8 = vshll.u32 %v5885_v61, 16  ;;  %v4137_v20 = vshll.u32 %v8602_v10, 16  ;;  %v5532_v7 = vcombine.low %v8434_v2, %v8444_v54  ;;  %v7203_v2 = vld [vmem:[%s9181_s1 + $0x228] sm:$0xff]   ;;  %v5888_v54 = vld [vmem:[%s7365_s14 + $0xc0] sm:$0xf]  ;;  %v9238_v29 = vld [vmem:[#allocation5_spill] sm:$0xff] }
 0x100   : > { %v5533_v48 = vcombine.low %v8463_v36, %v8519_v62  ;;  %v5917_v24 = vcombine.low %v3996_v55, %v4006_v22  ;;  %v8640_v52 = vrot.slane %v4110_v5, 4  ;;  %v5918_v42 = vcombine.low %v4020_v57, %v4030_v60 }
 0x101   : > { %v8642_v58 = vcombine.low %v4044_v18, %v4054_v28  ;;  %v8644_v35 = vcombine.low %v4068_v39, %v4078_v13  ;;  %v4092_v47 = vsel %vm7397_vm2, %v8612_v43, %v8557_v17  ;;  %v4102_v34 = vsel %vm7397_vm2, %v8618_v45, %v8614_v3  ;;  %v5941_v28 = vld [vmem:[%s7365_s14 + $0x6c] sm:$0xe] }
 0x102   : > { %6776 = vmatpush3.bf16.msra.mxu0 %v7197_v0  ;;  %v8660_v1 = vrot.slane %v4120_v53, 4  ;;  %v8662_v4 = vrot.slane %v4123_v16, 5  ;;  %v4141_v0 = vshrl.u32 %v8602_v10, 16  ;;  %v9235_v44 = vcombine.low %v8389_v6, %v8398_v51  ;;  %v7206_v6 = vld [vmem:[%s9181_s1 + $0x230] sm:$0xff]   ;;  %v8684_v51 = vld [vmem:[%s7365_s14 + $0xc4] sm:$0xf] }
 0x103   : > { %6777 = vmatprep.subr.bf16.mxu0 %v7200_v31  ;;  %v8669_v59 = vrot.slane %v4128_v56, 4  ;;  %v8673_v49 = vrot.slane %v4137_v20, 5  ;;  %v4147_v12 = vshll.u32 %v8623_v27, 16  ;;  %v4116_v38 = vsel %vm7397_vm2, %v8640_v52, %v8567_v14  ;;  %v5940_v14 = vld [vmem:[%s7365_s14 + $0x60] sm:$0xe]  ;;  %v9236_v39 = vld [vmem:[#allocation3_spill] sm:$0xff] }
 0x104   : > { %6746 = vmatmul.mubr.bf16.gmra.mrb[8].mxu0 %v8440_v19  ;;  %v8671_v19 = vrot.slane %v4131_v8, 5  ;;  %v4152_v23 = vshrl.u32 %v5888_v54, 16  ;;  %v5954_v15 = vrot.slane %v5938_v41, 9  ;;  %v4615_v55 = vrot.slane %v8260_v32, 5  ;;  %v7198_v13 = vld [vmem:[%s7365_s14 + $0xc] sm:$0xff]   ;;  %v7209_v56 = vld [vmem:[%s9181_s1 + $0x238] sm:$0xff]  }
 0x105   : > { %6522 = vmatmul.mubr.bf16.gmra.mrb[24].mxu1 %v9235_v44  ;;  %6749 = vmatprep.mubr.bf16.mxu0 %v5916_v30  ;;  %v4155_v22 = vshll.u32 %v5888_v54, 16  ;;  %v4618_v57 = vrot.slane %v8308_v63, 5  ;;  %v5955_v40 = vrot.slane %v5939_v26, 9  ;;  %v4622_v60 = vrot.slane %v8272_v33, 5  ;;  %v9237_v16 = vld [vmem:[#allocation4_spill] sm:$0xff]  ;;  %v9239_v52 = vld [vmem:[#allocation6_spill] sm:$0xff] }
 0x106   : > { %6525 = vmatprep.mubr.bf16.mxu1 %v5532_v7  ;;  %6778 = vmatpush3.bf16.msra.mxu0 %v7200_v31  ;;  %v4126_v18 = vsel %vm7397_vm2, %v8660_v1, %v8662_v4  ;;  %v8694_v5 = vrot.slane %v4141_v0, 4  ;;  %v8698_v61 = vsel %vm7643_vm5, %v5954_v15, %v4615_v55  ;;  %v4617_v32 = vrot.slane %v4615_v55, 4  ;;  %v9240_v4 = vld [vmem:[#allocation7_spill] sm:$0xff] }
 0x107   : > { %6779 = vmatprep.subr.bf16.mxu0 %v7203_v2  ;;  %v4161_v31 = vshll.u32 %v8684_v51, 16  ;;  %v8704_v63 = vsel %vm7643_vm5, %v5955_v40, %v4622_v60  ;;  %v4624_v33 = vrot.slane %v4622_v60, 4  ;;  %v4625_v3 = vrot.slane %v9236_v39, 5  ;;  %v8735_v26 = vld [vmem:[%s7365_s14 + $0xc8] sm:$0x1]  ;;  %v7199_v40 = vld [vmem:[%s7365_s14 + $0x18] sm:$0xff]  }
 0x108   : > { %v8710_v45 = vsel %vm7643_vm5, %v4617_v32, %v4618_v57  ;;  %v5956_v53 = vrot.slane %v5940_v14, 9  ;;  %v4629_v46 = vrot.slane %v9237_v16, 5  ;;  %v4632_v30 = vrot.slane %v9238_v29, 5  ;;  %v7201_v39 = vld [vmem:[%s7365_s14 + $0x24] sm:$0xff]  }
 0x109   : > { %v5986_v8 = vcombine.low %v8698_v61, %v8710_v45  ;;  %v8721_v20 = vsel %vm7643_vm5, %v4624_v33, %v4625_v3  ;;  %v5957_v7 = vrot.slane %v5941_v28, 9  ;;  %v4639_v0 = vrot.slane %v9240_v4, 5  ;;  %v9242_v28 = vld [vmem:[#allocation11_spill] sm:$0xff]  ;;  %v5647_v61 = vld [vmem:[%s7365_s14 + $0x90] sm:$0xf] }
 0x10a   : > { %6780 = vmatpush3.bf16.msra.mxu0 %v7203_v2  ;;  %v4636_v2 = vrot.slane %v9239_v52, 5  ;;  %v5987_v54 = vcombine.low %v8704_v63, %v8721_v20  ;;  %v8728_v41 = vsel %vm7643_vm5, %v5956_v53, %v4629_v46  ;;  %v4631_v1 = vrot.slane %v4629_v46, 4  ;;  %v9243_v53 = vld [vmem:[#allocation2_spill] sm:$0xff]  ;;  %v7215_v45 = vld [vmem:[%s7365_s14 + $0xa8] sm:$0xff]  }
 0x10b   : > { %6781 = vmatprep.subr.bf16.mxu0 %v7206_v6  ;;  %v8737_v44 = vrot.slane %v4152_v23, 4  ;;  %v8750_v36 = vcombine.low %v4092_v47, %v4102_v34  ;;  %v4134_v62 = vor.u32 %v8671_v19, %v8669_v59  ;;  %v5942_v23 = vld [vmem:[%s7365_s14 + $0x78] sm:$0xe]  ;;  %v8762_v57 = vrot.slane %v4147_v12, 5  ;;  %v5891_v12 = vld [vmem:[%s7365_s14 + $0xcc] sm:$0xf] }
 0x10c   : > { %6750 = vmatmul.mubr.bf16.gmra.mrb[12].mxu0 %v5917_v24  ;;  %v8739_v24 = vrot.slane %v4155_v22, 5  ;;  %v8743_v15 = vsel %vm7643_vm5, %v5957_v7, %v4636_v2  ;;  %v4638_v55 = vrot.slane %v4636_v2, 4  ;;  %v8760_v22 = vcombine.low %v4116_v38, %v4126_v18  ;;  %v5641_v47 = vld [vmem:[%s7365_s14 + $0x78] sm:$0xf]  ;;  %v9241_v18 = vld [vmem:[#allocation8_spill] sm:$0xff] }
 0x10d   : > { %6526 = vmatmul.mubr.bf16.gmra.mrb[28].mxu1 %v5533_v48  ;;  %6753 = vmatprep.mubr.bf16.mxu0 %v5918_v42  ;;  %v4165_v48 = vshrl.u32 %v8684_v51, 16  ;;  %v8757_v42 = vsel %vm7643_vm5, %v4631_v1, %v4632_v30  ;;  %v4144_v34 = vor.u32 %v8694_v5, %v8673_v49  ;;  %v8773_v59 = vrot.slane %v4161_v31, 5  ;;  %v8787_v31 = vld [vmem:[%s7365_s14 + $0xd0] sm:$0xf]  ;;  %v9244_v1 = vld [vmem:[#allocation9_spill] sm:$0xff] }
 0x10e   : > { %6545 = vmatprep.mubr.bf16.mxu1 %v7198_v13  ;;  %6782 = vmatpush3.bf16.msra.mxu0 %v7206_v6  ;;  %v5988_v17 = vcombine.low %v8728_v41, %v8757_v42  ;;  %v8768_v43 = vsel %vm7643_vm5, %v4638_v55, %v4639_v0  ;;  %v4171_v19 = vshll.u32 %v8735_v26, 16  ;;  %v5943_v6 = vld [vmem:[%s7365_s14 + $0x84] sm:$0xe]  ;;  %v4158_v60 = vor.u32 %v8739_v24, %v8737_v44  ;;  %v9245_v24 = vld [vmem:[#allocation12_spill] sm:$0xff]  ;;  %v7279_v63 = vld [vmem:[%s7365_s14 + $0x8c] sm:$0x1] }
 0x10f   : > { %6783 = vmatprep.subr.bf16.mxu0 %v7209_v56  ;;  %v5989_v38 = vcombine.low %v8743_v15, %v8768_v43  ;;  %v5958_v14 = vrot.slane %v5942_v23, 9  ;;  %v4643_v32 = vrot.slane %v9241_v18, 5  ;;  %v4646_v33 = vrot.slane %v9242_v28, 5 }
 0x110   : > { %v4167_v5 = vrot.slane %v4165_v48, 4  ;;  %v2393_v3 = vshrl.u32 %v5641_v47, 16  ;;  %v2396_v13 = vshll.u32 %v5641_v47, 16  ;;  %v2415_v16 = vsel %vm7397_vm2, %v8572_v50, %v9243_v53 }
 0x111   : > { %v4176_v46 = vshrl.u32 %v5891_v12, 16  ;;  %v8795_v29 = vsel %vm7643_vm5, %v5958_v14, %v4643_v32  ;;  %v4645_v30 = vrot.slane %v4643_v32, 4  ;;  %v5959_v7 = vrot.slane %v5943_v6, 9  ;;  %v7259_v6 = vld [vmem:[%s9181_s1 + $0x108] sm:$0xff]  }
 0x112   : > { %6784 = vmatpush3.bf16.msra.mxu0 %v7209_v56  ;;  %v4179_v52 = vshll.u32 %v5891_v12, 16  ;;  %v2395_v2 = vrot.slane %v2393_v3, 4  ;;  %v2398_v56 = vrot.slane %v2396_v13, 5  ;;  %v4650_v4 = vrot.slane %v9244_v1, 5  ;;  %v5944_v12 = vld [vmem:[%s7365_s14 + $0x90] sm:$0xe] }
 0x113   : > { %v4185_v50 = vshll.u32 %v8787_v31, 16  ;;  %v4189_v0 = vshrl.u32 %v8787_v31, 16  ;;  %v8804_v44 = vsel %vm7643_vm5, %v4645_v30, %v4646_v33  ;;  %v4653_v55 = vrot.slane %v9245_v24, 5  ;;  %v7202_v3 = vld [vmem:[%s7365_s14 + $0x30] sm:$0xff]  }
 0x114   : > { %6754 = vmatmul.mubr.bf16.gmra.mrb[16].mxu0 %v8642_v58  ;;  %v9246_v58 = vld [vmem:[#allocation15_spill] sm:$0xff]  ;;  %v4168_v48 = vor.u32 %v4167_v5, %v8773_v59  ;;  %v2399_v23 = vor.u32 %v2398_v56, %v2395_v2  ;;  %v4652_v47 = vrot.slane %v4650_v4, 4  ;;  %v4145_v14 = vrot.slane %v4144_v34, 4  ;;  %v8825_v13 = vld [vmem:[%s7365_s14 + $0xd4] sm:$0x1]  ;;  %v9247_v2 = vld [vmem:[#allocation10_spill] sm:$0xff] }
 0x115   : > { %6546 = vmatmul.mubr.bf16.vlgmr.msra.gmra.mrb[0].mxu1 %v7199_v40  ;;  %6757 = vmatprep.mubr.bf16.mxu0 %v8644_v35  ;;  %v5990_v35 = vcombine.low %v8795_v29, %v8804_v44  ;;  %v4135_v40 = vrot.slane %v4134_v62, 4  ;;  %v4173_v18 = vrot.slane %v4171_v19, 5  ;;  %v8817_v32 = vsel %vm7643_vm5, %v5959_v7, %v4650_v4  ;;  %v7204_v19 = vld [vmem:[%s7365_s14 + $0x3c] sm:$0xff]   ;;  %v7260_v1 = vld [vmem:[%s9181_s1 + $0x110] sm:$0xff]  }
 0x116   : > { %6825 = vmatpush3.bf16.msra.mxu1 %v9246_v58  ;;  %6549 = vmatprep.mubr.bf16.mxu1 %v7201_v39  ;;  %v4178_v28 = vrot.slane %v4176_v46, 4  ;;  %v4181_v33 = vrot.slane %v4179_v52, 5  ;;  %v2400_v39 = vrot.slane %v2399_v23, 4  ;;  %v8821_v5 = vsel %vm7643_vm5, %v4652_v47, %v4653_v55  ;;  %v7261_v47 = vld [vmem:[%s7365_s14 + $0x1c] sm:$0xf] }
 0x117   : > { %6818 = vmatprep.subr.bf16.mxu1 %v7259_v6  ;;  %v8827_v53 = vrot.slane %v4185_v50, 5  ;;  %v4191_v30 = vrot.slane %v4189_v0, 4  ;;  %v5991_v62 = vcombine.low %v8817_v32, %v8821_v5  ;;  %v5960_v34 = vrot.slane %v5944_v12, 9 }
 0x118   : > { %v4159_v7 = vrot.slane %v4158_v60, 4  ;;  %v4169_v46 = vrot.slane %v4168_v48, 4  ;;  %v2405_v52 = vsel %vm7397_vm2, %v2400_v39, %v7973_v11  ;;  %v4657_v56 = vrot.slane %v9247_v2, 5  ;;  %v9248_v11 = vld [vmem:[#allocation14_spill] sm:$0xff]  ;;  %v7205_v39 = vld [vmem:[%s7365_s14 + $0x48] sm:$0xff]  }
 0x119   : > { %v4140_v4 = vsel %vm7397_vm2, %v4135_v40, %v8673_v49  ;;  %v4150_v60 = vsel %vm7397_vm2, %v4145_v14, %v8762_v57  ;;  %v8845_v50 = vcombine.low %v2405_v52, %v2415_v16  ;;  %v4660_v0 = vrot.slane %v9248_v11, 5  ;;  %v5934_v57 = vld [vmem:[%s7365_s14 + $0x18] sm:$0xe]  ;;  %v5945_v16 = vld [vmem:[%s7365_s14 + $0x9c] sm:$0xe] }
 0x11a   : > { %6826 = vmatpush3.bf16.msra.mxu1 %v7259_v6  ;;  %v4182_v24 = vor.u32 %v4181_v33, %v4178_v28  ;;  %v4195_v55 = vshll.u32 %v8825_v13, 16  ;;  %v8852_v58 = vsel %vm7643_vm5, %v5960_v34, %v4657_v56  ;;  %v4659_v48 = vrot.slane %v4657_v56, 4  ;;  %v7262_v40 = vld [vmem:[%s9181_s1 + $0x118] sm:$0xff]   ;;  %v7263_v2 = vld [vmem:[%s7365_s14 + $0x20] sm:$0x1] }
 0x11b   : > { %6819 = vmatprep.subr.bf16.mxu1 %v7260_v1  ;;  %v4192_v49 = vor.u32 %v4191_v30, %v8827_v53  ;;  %v4174_v23 = vsel %vm7397_vm2, %v4169_v46, %v4173_v18  ;;  %v4587_v12 = vrot.slane %v7261_v47, 5  ;;  %v5923_v6 = vcombine.low %v4140_v4, %v4150_v60  ;;  %v9249_v34 = vld [vmem:[#allocation13_spill] sm:$0xff]  ;;  %v5946_v11 = vld [vmem:[%s7365_s14 + $0xa8] sm:$0xe] }
 0x11c   : > { %6758 = vmatmul.mubr.bf16.gmra.mrb[20].mxu0 %v8750_v36  ;;  %v4164_v36 = vsel %vm7397_vm2, %v4159_v7, %v8773_v59  ;;  %v4183_v14 = vrot.slane %v4182_v24, 4  ;;  %v4197_v28 = vrot.slane %v4195_v55, 5  ;;  %v5950_v18 = vrot.slane %v5934_v57, 9  ;;  %v7207_v46 = vld [vmem:[%s7365_s14 + $0x54] sm:$0xff]   ;;  %v5935_v55 = vld [vmem:[%s7365_s14 + $0x24] sm:$0xe] }
 0x11d   : > { %6550 = vmatmul.mubr.bf16.gmra.mrb[4].mxu1 %v7202_v3  ;;  %6761 = vmatprep.mubr.bf16.mxu0 %v8760_v22  ;;  %v8866_v22 = vsel %vm7643_vm5, %v4659_v48, %v4660_v0  ;;  %v5961_v33 = vrot.slane %v5945_v16, 9  ;;  %v5924_v3 = vcombine.low %v4164_v36, %v4174_v23  ;;  %v4193_v30 = vrot.slane %v4192_v49, 4  ;;  %v7265_v48 = vld [vmem:[%s7365_s14 + $0x28] sm:$0xf]  ;;  %v7266_v36 = vld [vmem:[%s7365_s14 + $0x34] sm:$0xf] }
 0x11e   : > { %6553 = vmatprep.mubr.bf16.mxu1 %v7204_v19  ;;  %6827 = vmatpush3.bf16.msra.mxu1 %v7260_v1  ;;  %v5992_v59 = vcombine.low %v8852_v58, %v8866_v22  ;;  %v4664_v19 = vrot.slane %v9249_v34, 5  ;;  %v4667_v7 = vrot.slane %v8555_v25, 5  ;;  %v4589_v52 = vrot.slane %v4587_v12, 4  ;;  %v7264_v1 = vld [vmem:[%s9181_s1 + $0x120] sm:$0xff]  }
 0x11f   : > { %6820 = vmatprep.subr.bf16.mxu1 %v7262_v40  ;;  %v4590_v56 = vrot.slane %v7263_v2, 5  ;;  %v4588_v25 = vsel %vm7643_vm5, %v5950_v18, %v4587_v12  ;;  %v4188_v0 = vsel %vm7397_vm2, %v4183_v14, %v8827_v53  ;;  %v4198_v24 = vsel %vm7397_vm2, %v4193_v30, %v4197_v28  ;;  %v5936_v12 = vld [vmem:[%s7365_s14 + $0x30] sm:$0xe]  ;;  %v7208_v30 = vld [vmem:[%s7365_s14 + $0x60] sm:$0xff]  }
 0x120   : > { %v8883_v4 = vsel %vm7643_vm5, %v5961_v33, %v4664_v19  ;;  %v4666_v60 = vrot.slane %v4664_v19, 4  ;;  %v4594_v49 = vrot.slane %v7265_v48, 5  ;;  %v4601_v23 = vrot.slane %v7266_v36, 5  ;;  %v7268_v33 = vld [vmem:[%s7365_s14 + $0x2c] sm:$0x1] }
 0x121   : > { %v4591_v16 = vsel %vm7643_vm5, %v4589_v52, %v4590_v56  ;;  %v5962_v47 = vrot.slane %v5946_v11, 9  ;;  %v5925_v28 = vcombine.low %v4188_v0, %v4198_v24  ;;  %v5951_v18 = vrot.slane %v5935_v55, 9  ;;  %v7210_v52 = vld [vmem:[%s7365_s14 + $0x6c] sm:$0xff]   ;;  %v5947_v11 = vld [vmem:[%s7365_s14 + $0xb4] sm:$0xe] }
 0x122   : > { %6828 = vmatpush3.bf16.msra.mxu1 %v7262_v40  ;;  %v8897_v57 = vsel %vm7643_vm5, %v4666_v60, %v4667_v7  ;;  %v9250_v40 = vld [vmem:[#allocation16_spill] sm:$0xff]  ;;  %v5982_v34 = vcombine.low %v4588_v25, %v4591_v16  ;;  %v4596_v19 = vrot.slane %v4594_v49, 4  ;;  %v5952_v2 = vrot.slane %v5936_v12, 9  ;;  %v5937_v0 = vld [vmem:[%s7365_s14 + $0x3c] sm:$0xe] }
 0x123   : > { %6821 = vmatprep.subr.bf16.mxu1 %v7264_v1  ;;  %v5993_v53 = vcombine.low %v8883_v4, %v8897_v57  ;;  %v4671_v14 = vrot.slane %v9250_v40, 5  ;;  %v4603_v56 = vrot.slane %v4601_v23, 4  ;;  %v7270_v24 = vld [vmem:[%s7365_s14 + $0x40] sm:$0xf]  ;;  %v4595_v48 = vsel %vm7643_vm5, %v5951_v18, %v4594_v49  ;;  %v7272_v18 = vld [vmem:[%s7365_s14 + $0x44] sm:$0x1] }
 0x124   : > { %6762 = vmatmul.mubr.bf16.gmra.mrb[24].mxu0 %v5923_v6  ;;  %v7267_v6 = vld [vmem:[%s9181_s1 + $0x128] sm:$0xff]   ;;  %v4608_v55 = vrot.slane %v7270_v24, 5  ;;  %v4678_v12 = vrot.slane %v8602_v10, 5  ;;  %v4602_v49 = vsel %vm7643_vm5, %v5952_v2, %v4601_v23  ;;  %v7273_v10 = vld [vmem:[%s9181_s1 + $0x138] sm:$0xff]   ;;  %v5948_v23 = vld [vmem:[%s7365_s14 + $0xc0] sm:$0xe] }
 0x125   : > { %6554 = vmatmul.mubr.bf16.gmra.mrb[8].mxu1 %v7205_v39  ;;  %6765 = vmatprep.mubr.bf16.mxu0 %v5924_v3  ;;  %v4597_v39 = vrot.slane %v7268_v33, 5  ;;  %v4674_v3 = vrot.slane %v8590_v21, 5  ;;  %v8914_v7 = vsel %vm7643_vm5, %v5962_v47, %v4671_v14  ;;  %v7271_v21 = vld [vmem:[%s9181_s1 + $0x130] sm:$0xff]   ;;  %v5963_v47 = vrot.slane %v5947_v11, 9 }
 0x126   : > { %6557 = vmatprep.mubr.bf16.mxu1 %v7207_v46  ;;  %6829 = vmatpush3.bf16.msra.mxu1 %v7264_v1  ;;  %v4673_v46 = vrot.slane %v4671_v14, 4  ;;  %v7269_v1 = vld [vmem:[%s7365_s14 + $0x38] sm:$0x1]  ;;  %v5953_v14 = vrot.slane %v5937_v0, 9  ;;  %v4611_v33 = vrot.slane %v7272_v18, 5  ;;  %v4685_v11 = vrot.slane %v8684_v51, 5 }
 0x127   : > { %6822 = vmatprep.subr.bf16.mxu1 %v7267_v6  ;;  %v4604_v60 = vrot.slane %v7269_v1, 5  ;;  %v4598_v36 = vsel %vm7643_vm5, %v4596_v19, %v4597_v39  ;;  %v4680_v39 = vrot.slane %v4678_v12, 4  ;;  %v5638_v19 = vld [vmem:[%s7365_s14 + $0x6c] sm:$0xf]  ;;  %v7213_v18 = vld [vmem:[%s7365_s14 + $0x90] sm:$0xff]   ;;  %v2436_v20 = vshll.u32 %v7279_v63, 16 }
 0x128   : > { %v8926_v25 = vsel %vm7643_vm5, %v4673_v46, %v4674_v3  ;;  %v5983_v3 = vcombine.low %v4595_v48, %v4598_v36  ;;  %v4609_v1 = vsel %vm7643_vm5, %v5953_v14, %v4608_v55  ;;  %v2369_v0 = vshrl.u32 %v5638_v19, 16  ;;  %v5949_v51 = vld [vmem:[%s7365_s14 + $0xcc] sm:$0xe] }
 0x129   : > { %v5994_v16 = vcombine.low %v8914_v7, %v8926_v25  ;;  %v4605_v40 = vsel %vm7643_vm5, %v4603_v56, %v4604_v60  ;;  %v5964_v56 = vrot.slane %v5948_v23, 9  ;;  %v2372_v24 = vshll.u32 %v5638_v19, 16 }
 0x12a   : > { %6830 = vmatpush3.bf16.msra.mxu1 %v7267_v6  ;;  %v4681_v6 = vrot.slane %v8623_v27, 5  ;;  %v8946_v27 = vsel %vm7643_vm5, %v5963_v47, %v4678_v12  ;;  %v4688_v36 = vrot.slane %v8735_v26, 5  ;;  %v4687_v12 = vrot.slane %v4685_v11, 4 }
 0x12b   : > { %6823 = vmatprep.subr.bf16.mxu1 %v7271_v21  ;;  %v2374_v26 = vrot.slane %v2372_v24, 5  ;;  %v4695_v23 = vrot.slane %v8825_v13, 5 }
 0x12c   : > { %6766 = vmatmul.mubr.bf16.gmra.mrb[28].mxu0 %v5925_v28  ;;  %v4610_v28 = vrot.slane %v4608_v55, 4  ;;  %v8953_v46 = vsel %vm7643_vm5, %v4680_v39, %v4681_v6  ;;  %v8967_v55 = vsel %vm7643_vm5, %v5964_v56, %v4685_v11  ;;  %v4692_v39 = vrot.slane %v8787_v31, 5  ;;  %v7275_v56 = vld [vmem:[%s7365_s14 + $0x74] sm:$0x1] }
 0x12d   : > { %6558 = vmatmul.mubr.bf16.gmra.mrb[12].mxu1 %v7208_v30  ;;  %6785 = vmatprep.mubr.bf16.mxu0 %v5982_v34  ;;  %v7211_v30 = vld [vmem:[%s7365_s14 + $0x78] sm:$0xff]   ;;  %v5984_v34 = vcombine.low %v4602_v49, %v4605_v40  ;;  %v5995_v2 = vcombine.low %v8946_v27, %v8953_v46  ;;  %v8972_v49 = vsel %vm7643_vm5, %v4687_v12, %v4688_v36  ;;  %v2371_v40 = vrot.slane %v2369_v0, 4  ;;  %v7276_v0 = vld [vmem:[%s7365_s14 + $0x88] sm:$0xf] }
 0x12e   : > { %6561 = vmatprep.mubr.bf16.mxu1 %v7210_v52  ;;  %6831 = vmatpush3.bf16.msra.mxu1 %v7271_v21  ;;  %v7212_v52 = vld [vmem:[%s7365_s14 + $0x84] sm:$0xff]   ;;  %v4612_v60 = vsel %vm7643_vm5, %v4610_v28, %v4611_v33  ;;  %v7274_v21 = vld [vmem:[%s7365_s14 + $0x70] sm:$0xf]  ;;  %v5996_v28 = vcombine.low %v8967_v55, %v8972_v49  ;;  %v4694_v19 = vrot.slane %v4692_v39, 4  ;;  %v2426_v24 = vshll.u32 %v7276_v0, 16 }
 0x12f   : > { %6824 = vmatprep.subr.bf16.mxu1 %v7273_v10  ;;  %v2378_v48 = vshll.u32 %v7274_v21, 16  ;;  %v2382_v47 = vshrl.u32 %v7274_v21, 16  ;;  %v5985_v6 = vcombine.low %v4609_v1, %v4612_v60  ;;  %v2388_v1 = vshll.u32 %v7275_v56, 16 }
 0x130   : > { %v8994_v11 = vsel %vm7643_vm5, %v4694_v19, %v4695_v23  ;;  %v2430_v21 = vshrl.u32 %v7276_v0, 16  ;;  %v7278_v19 = vld [vmem:[%s7365_s14 + $0xa0] sm:$0xf] }
 0x131   : > { %v8974_v14 = vrot.slane %v2378_v48, 5  ;;  %v2384_v33 = vrot.slane %v2382_v47, 4  ;;  %v2478_v56 = vshrl.u32 %v7278_v19, 16 }
 0x132   : > { %6832 = vmatpush3.bf16.msra.mxu1 %v7273_v10  ;;  %v5965_v10 = vrot.slane %v5949_v51, 9 }
 0x133   : > { %v2385_v31 = vor.u32 %v2384_v33, %v8974_v14  ;;  %v2444_v33 = vshll.u32 %v5647_v61, 16 }
 0x134   : > { %6786 = vmatmul.mubr.bf16.vlgmr.msra.gmra.mrb[0].mxu0 %v5983_v3  ;;  %v7214_v3 = vld [vmem:[%s7365_s14 + $0x9c] sm:$0xff]  }
 0x135   : > { %6562 = vmatmul.mubr.bf16.gmra.mrb[16].mxu1 %v7211_v30  ;;  %6789 = vmatprep.mubr.bf16.mxu0 %v5984_v34  ;;  %v5644_v30 = vld [vmem:[%s7365_s14 + $0x84] sm:$0xf]  ;;  %v8985_v34 = vsel %vm7643_vm5, %v5965_v10, %v4692_v39  ;;  %v2386_v47 = vrot.slane %v2385_v31, 4  ;;  %v7277_v10 = vld [vmem:[%s7365_s14 + $0x94] sm:$0xf]  ;;  %v2446_v0 = vrot.slane %v2444_v33, 5 }
 0x136   : > { %6565 = vmatprep.mubr.bf16.mxu1 %v7212_v52  ;;  %v2375_v52 = vor.u32 %v2374_v26, %v2371_v40  ;;  %v2417_v13 = vshrl.u32 %v5644_v30, 16  ;;  %v2420_v60 = vshll.u32 %v5644_v30, 16  ;;  %v5997_v48 = vcombine.low %v8985_v34, %v8994_v11 }
 0x137   : > { %v9003_v40 = vrot.slane %v2426_v24, 5  ;;  %v2432_v26 = vrot.slane %v2430_v21, 4  ;;  %v2450_v39 = vshll.u32 %v7277_v10, 16  ;;  %v2454_v23 = vshrl.u32 %v7277_v10, 16  ;;  %v7281_v10 = vld [vmem:[%s7365_s14 + $0xa4] sm:$0x1] }
 0x138   : > { %v2376_v36 = vrot.slane %v2375_v52, 4  ;;  %v2419_v12 = vrot.slane %v2417_v13, 4  ;;  %v2422_v51 = vrot.slane %v2420_v60, 5  ;;  %v2474_v52 = vshll.u32 %v7278_v19, 16  ;;  %v7282_v19 = vld [vmem:[%s7365_s14 + $0xac] sm:$0xf] }
 0x139   : > { %v2433_v13 = vor.u32 %v2432_v26, %v9003_v40  ;;  %v9020_v41 = vrot.slane %v2450_v39, 5  ;;  %v2456_v42 = vrot.slane %v2454_v23, 4  ;;  %v2480_v21 = vrot.slane %v2478_v56, 4  ;;  %v5656_v23 = vld [vmem:[%s7365_s14 + $0xb4] sm:$0xf] }
 0x13a   : > { %v2484_v39 = vshll.u32 %v7281_v10, 16  ;;  %v2502_v15 = vshrl.u32 %v7282_v19, 16  ;;  %v2516_v63 = vshll.u32 %v5656_v23, 16 }
 0x13b   : > { %v2457_v26 = vor.u32 %v2456_v42, %v9020_v41 }
 0x13c   : > { %6790 = vmatmul.mubr.bf16.gmra.mrb[4].mxu0 %v5985_v6  ;;  %v5650_v6 = vld [vmem:[%s7365_s14 + $0x9c] sm:$0xf] }
 0x13d   : > { %6566 = vmatmul.mubr.bf16.gmra.mrb[20].mxu1 %v7213_v18  ;;  %6793 = vmatprep.mubr.bf16.mxu0 %v5986_v8  ;;  %v2390_v8 = vrot.slane %v2388_v1, 5  ;;  %v2441_v18 = vshrl.u32 %v5647_v61, 16  ;;  %v2468_v30 = vshll.u32 %v5650_v6, 16  ;;  %v2381_v1 = vsel %vm7397_vm2, %v2376_v36, %v8974_v14  ;;  %v7217_v61 = vld [vmem:[%s7365_s14 + $0xc0] sm:$0xff]  }
 0x13e   : > { %6569 = vmatprep.mubr.bf16.mxu1 %v7214_v3  ;;  %v2465_v3 = vshrl.u32 %v5650_v6, 16  ;;  %v9022_v14 = vrot.slane %v2474_v52, 5  ;;  %v2498_v52 = vshll.u32 %v7282_v19, 16 }
 0x13f   : > { %v2391_v31 = vsel %vm7397_vm2, %v2386_v47, %v2390_v8  ;;  %v2443_v60 = vrot.slane %v2441_v18, 4  ;;  %v2470_v24 = vrot.slane %v2468_v30, 5  ;;  %v2438_v8 = vrot.slane %v2436_v20, 5  ;;  %v7283_v20 = vld [vmem:[%s7365_s14 + $0xb8] sm:$0xf] }
 0x140   : > { %v2434_v47 = vrot.slane %v2433_v13, 4  ;;  %v2481_v33 = vor.u32 %v2480_v21, %v9022_v14  ;;  %v2522_v29 = vshll.u32 %v7283_v20, 16  ;;  %v2526_v44 = vshrl.u32 %v7283_v20, 16 }
 0x142   : > { %v2482_v13 = vrot.slane %v2481_v33, 4 }
 0x144   : > { %6794 = vmatmul.mubr.bf16.gmra.mrb[8].mxu0 %v5987_v54  ;;  %v2423_v54 = vor.u32 %v2422_v51, %v2419_v12  ;;  %v2447_v12 = vor.u32 %v2446_v0, %v2443_v60  ;;  %v7280_v51 = vld [vmem:[%s7365_s14 + $0x98] sm:$0x1]  ;;  %v2486_v60 = vrot.slane %v2484_v39, 5 }
 0x145   : > { %6570 = vmatmul.mubr.bf16.gmra.mrb[24].mxu1 %v7215_v45  ;;  %6797 = vmatprep.mubr.bf16.mxu0 %v5988_v17  ;;  %v2467_v17 = vrot.slane %v2465_v3, 4  ;;  %v5686_v45 = vcombine.low %v2381_v1, %v2391_v31  ;;  %v2460_v6 = vshll.u32 %v7280_v51, 16  ;;  %v2513_v31 = vshrl.u32 %v5656_v23, 16 }
 0x146   : > { %6573 = vmatprep.mubr.bf16.mxu1 %v7216_v9  ;;  %v2424_v36 = vrot.slane %v2423_v54, 4  ;;  %v5653_v9 = vld [vmem:[%s7365_s14 + $0xa8] sm:$0xf]  ;;  %v2448_v56 = vrot.slane %v2447_v12, 4  ;;  %v2487_v32 = vsel %vm7397_vm2, %v2482_v13, %v2486_v60 }
 0x147   : > { %v2471_v18 = vor.u32 %v2470_v24, %v2467_v17  ;;  %v2489_v3 = vshrl.u32 %v5653_v9, 16  ;;  %v2492_v30 = vshll.u32 %v5653_v9, 16  ;;  %v2462_v1 = vrot.slane %v2460_v6, 5 }
 0x148   : > { %v2429_v43 = vsel %vm7397_vm2, %v2424_v36, %v9003_v40  ;;  %v2500_v17 = vrot.slane %v2498_v52, 5  ;;  %v2504_v24 = vrot.slane %v2502_v15, 4  ;;  %v2515_v21 = vrot.slane %v2513_v31, 4  ;;  %v5659_v36 = vld [vmem:[%s7365_s14 + $0xc0] sm:$0xf] }
 0x149   : > { %v2472_v54 = vrot.slane %v2471_v18, 4  ;;  %v2491_v0 = vrot.slane %v2489_v3, 4  ;;  %v2494_v42 = vrot.slane %v2492_v30, 5  ;;  %v2537_v9 = vshrl.u32 %v5659_v36, 16  ;;  %v7285_v18 = vld [vmem:[%s7365_s14 + $0xc4] sm:$0xf] }
 0x14a   : > { %v2546_v33 = vshll.u32 %v7285_v18, 16 }
 0x14b   : > { %v2477_v51 = vsel %vm7397_vm2, %v2472_v54, %v9022_v14  ;;  %v2495_v5 = vor.u32 %v2494_v42, %v2491_v0  ;;  %v2550_v14 = vshrl.u32 %v7285_v18, 16  ;;  %v2539_v19 = vrot.slane %v2537_v9, 4 }
 0x14c   : > { %6798 = vmatmul.mubr.bf16.gmra.mrb[12].mxu0 %v5989_v38  ;;  %v2439_v38 = vsel %vm7397_vm2, %v2434_v47, %v2438_v8  ;;  %v2528_v8 = vrot.slane %v2526_v44, 4  ;;  %v2453_v47 = vsel %vm7397_vm2, %v2448_v56, %v9020_v41  ;;  %v7284_v41 = vld [vmem:[%s7365_s14 + $0xb0] sm:$0x1]  ;;  %v5690_v58 = vcombine.low %v2477_v51, %v2487_v32  ;;  %v7287_v44 = vld [vmem:[%s7365_s14 + $0xc8] sm:$0x1] }
 0x14d   : > { %6574 = vmatmul.mubr.bf16.gmra.mrb[28].mxu1 %v7217_v61  ;;  %6801 = vmatprep.mubr.bf16.mxu0 %v5990_v35  ;;  %v2458_v35 = vrot.slane %v2457_v26, 4  ;;  %v5688_v40 = vcombine.low %v2429_v43, %v2439_v38  ;;  %v2518_v61 = vrot.slane %v2516_v63, 5  ;;  %v2508_v6 = vshll.u32 %v7284_v41, 16 }
 0x14e   : > { %6609 = vmatprep.mubr.bf16.mxu1 %v5686_v45  ;;  %v2524_v45 = vrot.slane %v2522_v29, 5  ;;  %v2540_v26 = vshll.u32 %v5659_v36, 16  ;;  %v2496_v22 = vrot.slane %v2495_v5, 4  ;;  %v2548_v15 = vrot.slane %v2546_v33, 5  ;;  %v9110_v36 = vld [vmem:[%s9182_s2] ss:$0 sm:$0xff] }
 0x14f   : > { %v2463_v12 = vsel %vm7397_vm2, %v2458_v35, %v2462_v1  ;;  %v2519_v10 = vor.u32 %v2518_v61, %v2515_v21  ;;  %v2510_v30 = vrot.slane %v2508_v6, 5  ;;  %v2552_v43 = vrot.slane %v2550_v14, 4 }
 0x150   : > { %v2529_v39 = vor.u32 %v2528_v8, %v2524_v45  ;;  %v5689_v3 = vcombine.low %v2453_v47, %v2463_v12  ;;  %v2542_v52 = vrot.slane %v2540_v26, 5  ;;  %v2501_v31 = vsel %vm7397_vm2, %v2496_v22, %v2500_v17 }
 0x151   : > { %v2520_v38 = vrot.slane %v2519_v10, 4  ;;  %v2553_v29 = vor.u32 %v2552_v43, %v2548_v15  ;;  %v2556_v35 = vshll.u32 %v7287_v44, 16 }
 0x152   : > { %v2530_v56 = vrot.slane %v2529_v39, 4  ;;  %v2543_v20 = vor.u32 %v2542_v52, %v2539_v19 }
 0x153   : > { %v2525_v4 = vsel %vm7397_vm2, %v2520_v38, %v2524_v45  ;;  %v2558_v54 = vrot.slane %v2556_v35, 5 }
 0x154   : > { %6802 = vmatmul.mubr.bf16.gmra.mrb[16].mxu0 %v5991_v62  ;;  %v2505_v62 = vor.u32 %v2504_v24, %v2500_v17  ;;  %v2544_v25 = vrot.slane %v2543_v20, 4 }
 0x155   : > { %6610 = vmatmul.mubr.bf16.vlgmr.msra.gmra.mrb[16].mxu1 %v8845_v50  ;;  %6805 = vmatprep.mubr.bf16.mxu0 %v5992_v59  ;;  %v7286_v50 = vld [vmem:[%s7365_s14 + $0xbc] sm:$0x1] }
 0x156   : > { %6613 = vmatprep.mubr.bf16.mxu1 %v5688_v40  ;;  %v2532_v23 = vshll.u32 %v7286_v50, 16  ;;  %v2506_v59 = vrot.slane %v2505_v62, 4  ;;  %v2549_v13 = vsel %vm7397_vm2, %v2544_v25, %v2548_v15 }
 0x158   : > { %v2534_v1 = vrot.slane %v2532_v23, 5  ;;  %v2511_v63 = vsel %vm7397_vm2, %v2506_v59, %v2510_v30 }
 0x15a   : > { %v2535_v57 = vsel %vm7397_vm2, %v2530_v56, %v2534_v1 }
 0x15b   : > { %v5692_v7 = vcombine.low %v2525_v4, %v2535_v57 }
 0x15c   : > { %6806 = vmatmul.mubr.bf16.gmra.mrb[20].mxu0 %v5993_v53  ;;  %v5691_v53 = vcombine.low %v2501_v31, %v2511_v63 }
 0x15d   : > { %6614 = vmatmul.mubr.bf16.gmra.mrb[20].mxu1 %v5689_v3  ;;  %6809 = vmatprep.mubr.bf16.mxu0 %v5994_v16  ;;  %v2554_v16 = vrot.slane %v2553_v29, 4 }
 0x15e   : > { %6617 = vmatprep.mubr.bf16.mxu1 %v5690_v58 }
 0x15f   : > { %v2559_v60 = vsel %vm7397_vm2, %v2554_v16, %v2558_v54 }
 0x160   : > { %v5693_v0 = vcombine.low %v2549_v13, %v2559_v60 }
 0x164   : > { %6810 = vmatmul.mubr.bf16.gmra.mrb[24].mxu0 %v5995_v2 }
 0x165   : > { %6618 = vmatmul.mubr.bf16.gmra.mrb[24].mxu1 %v5691_v53  ;;  %6813 = vmatprep.mubr.bf16.mxu0 %v5996_v28 }
 0x166   : > { %6621 = vmatprep.mubr.bf16.mxu1 %v5692_v7 }
 0x16c   : > { %6814 = vmatmul.mubr.bf16.gmra.mrb[28].mxu0 %v5997_v48 }
 0x16d   : > { %6622 = vmatmul.mubr.bf16.gmra.mrb[28].mxu1 %v5693_v0 }
 0x1e8   : > { %v6547_v27 = vpop.f32.mrb[0].mxu1 }
 0x1e9   : > { %v1969_v46 = vpop.f32.mrb[1].mxu1 }
 0x1ea   : > { %v6548_v2 = vpop.f32.mrb[2].mxu1 }
 0x1eb   : > { %v1972_v42 = vpop.f32.mrb[3].mxu1 }
 0x1f0   : > { %v6551_v17 = vpop.f32.mrb[4].mxu1 }
 0x1f1   : > { %v1985_v55 = vpop.f32.mrb[5].mxu1 }
 0x1f2   : > { %v6552_v49 = vpop.f32.mrb[6].mxu1 }
 0x1f3   : > { %v1988_v28 = vpop.f32.mrb[7].mxu1 }
 0x1f8   : > { %v6555_v24 = vpop.f32.mrb[8].mxu1 }
 0x1f9   : > { %v9093_v40 = vpop.f32.mrb[9].mxu1 }
 0x1fa   : > { %v9095_v37 = vpop.f32.mrb[10].mxu1 }
 0x1fb   : > { %v9097_v21 = vpop.f32.mrb[11].mxu1 }
 0x200   : > { %v9099_v61 = vpop.f32.mrb[12].mxu1 }
 0x201   : > { %v9101_v34 = vpop.f32.mrb[13].mxu1 }
 0x202   : > { %v9103_v11 = vpop.f32.mrb[14].mxu1 }
 0x203   : > { %v9105_v48 = vpop.f32.mrb[15].mxu1 }
 0x207   : > { %v6787_v45 = vpop.f32.mrb[0].mxu0 }
 0x208   : > { %v6833_v8 = vadd.f32 %v6787_v45, %v6547_v27  ;;  %v4860_v47 = vpop.f32.mrb[1].mxu0 }
 0x209   : > { %v6834_v12 = vadd.f32 %v4860_v47, %v1969_v46  ;;  %v6788_v51 = vpop.f32.mrb[2].mxu0 }
 0x20a   : > { %v6835_v32 = vadd.f32 %v6788_v51, %v6548_v2  ;;  %v4863_v5 = vpop.f32.mrb[3].mxu0  ;;  %v5028_v6 = vadd.f32 %v6833_v8, %v9110_v36 }
 0x20b   : > { %v5026_v62 = vadd.f32 %v6834_v12, %v9110_v36  ;;  %v6836_v41 = vadd.f32 %v4863_v5, %v1972_v42 }
 0x20c   : > { %v5029_v9 = vadd.f32 %v6835_v32, %v9110_v36  ;;  %v5257_v58 = vmul.f32 %v5028_v6, %v5028_v6 }
 0x20d   : > { %v5027_v26 = vadd.f32 %v6836_v41, %v9110_v36  ;;  %v5255_v33 = vmul.f32 %v5026_v62, %v5026_v62 }
 0x20e   : > { %v6082_v18 = vpack.c.bf16 %v5029_v9, %v5028_v6  ;;  %v5258_v52 = vmul.f32 %v5029_v9, %v5029_v9 }
 0x20f   : > { %v6077_v14 = vpack.c.bf16 %v5027_v26, %v5026_v62  ;;  %v5218_v10 = vadd.f32 %v5027_v26, %v5026_v62  ;;  %v5256_v39 = vmul.f32 %v5027_v26, %v5027_v26  ;;  %v6791_v50 = vpop.f32.mrb[4].mxu0 }
 0x210   : > { %6154 = vst [vmem:[%s9119_s23 + $0x8] sm:$0xff] %v6082_v18   ;;  %v6837_v23 = vadd.f32 %v6791_v50, %v6551_v17  ;;  %v4876_v3 = vpop.f32.mrb[5].mxu0 }
 0x211   : > { %6078 = vst [vmem:[%s9119_s23] sm:$0xff] %v6077_v14   ;;  %v5219_v22 = vadd.f32 %v5218_v10, %v5028_v6  ;;  %v5287_v59 = vadd.f32 %v5256_v39, %v5255_v33  ;;  %v6838_v30 = vadd.f32 %v4876_v3, %v1985_v55  ;;  %v6792_v19 = vpop.f32.mrb[6].mxu0 }
 0x212   : > { %v6839_v15 = vadd.f32 %v6792_v19, %v6552_v49  ;;  %v4879_v43 = vpop.f32.mrb[7].mxu0  ;;  %v5032_v63 = vadd.f32 %v6837_v23, %v9110_v36 }
 0x213   : > { %v5288_v38 = vadd.f32 %v5287_v59, %v5257_v58  ;;  %v5030_v56 = vadd.f32 %v6838_v30, %v9110_v36  ;;  %v5220_v1 = vadd.f32 %v5219_v22, %v5029_v9  ;;  %v6840_v31 = vadd.f32 %v4879_v43, %v1988_v28 }
 0x214   : > { %v5033_v20 = vadd.f32 %v6839_v15, %v9110_v36  ;;  %v5261_v0 = vmul.f32 %v5032_v63, %v5032_v63 }
 0x215   : > { %v5221_v29 = vadd.f32 %v5220_v1, %v5030_v56  ;;  %v5259_v44 = vmul.f32 %v5030_v56, %v5030_v56  ;;  %v5289_v35 = vadd.f32 %v5288_v38, %v5258_v52  ;;  %v5031_v4 = vadd.f32 %v6840_v31, %v9110_v36 }
 0x216   : > { %v6092_v57 = vpack.c.bf16 %v5033_v20, %v5032_v63  ;;  %v5262_v17 = vmul.f32 %v5033_v20, %v5033_v20 }
 0x217   : > { %v5290_v53 = vadd.f32 %v5289_v35, %v5259_v44  ;;  %v6087_v7 = vpack.c.bf16 %v5031_v4, %v5030_v56  ;;  %v5222_v25 = vadd.f32 %v5221_v29, %v5031_v4  ;;  %v5260_v16 = vmul.f32 %v5031_v4, %v5031_v4  ;;  %v6795_v54 = vpop.f32.mrb[8].mxu0 }
 0x218   : > { %6156 = vst [vmem:[%s9119_s23 + $0x18] sm:$0xff] %v6092_v57   ;;  %v6841_v13 = vadd.f32 %v6795_v54, %v6555_v24  ;;  %v4892_v60 = vpop.f32.mrb[9].mxu0 }
 0x219   : > { %6155 = vst [vmem:[%s9119_s23 + $0x10] sm:$0xff] %v6087_v7   ;;  %v5223_v27 = vadd.f32 %v5222_v25, %v5032_v63  ;;  %v5291_v46 = vadd.f32 %v5290_v53, %v5260_v16  ;;  %v6842_v2 = vadd.f32 %v4892_v60, %v9093_v40  ;;  %v6796_v42 = vpop.f32.mrb[10].mxu0 }
 0x21a   : > { %v6843_v55 = vadd.f32 %v6796_v42, %v9095_v37  ;;  %v4895_v49 = vpop.f32.mrb[11].mxu0  ;;  %v5036_v24 = vadd.f32 %v6841_v13, %v9110_v36 }
 0x21b   : > { %v5292_v28 = vadd.f32 %v5291_v46, %v5261_v0  ;;  %v5034_v45 = vadd.f32 %v6842_v2, %v9110_v36  ;;  %v5224_v8 = vadd.f32 %v5223_v27, %v5033_v20  ;;  %v6844_v47 = vadd.f32 %v4895_v49, %v9097_v21 }
 0x21c   : > { %v5037_v12 = vadd.f32 %v6843_v55, %v9110_v36  ;;  %v5265_v33 = vmul.f32 %v5036_v24, %v5036_v24 }
 0x21d   : > { %v5225_v51 = vadd.f32 %v5224_v8, %v5034_v45  ;;  %v5263_v32 = vmul.f32 %v5034_v45, %v5034_v45  ;;  %v5293_v40 = vadd.f32 %v5292_v28, %v5262_v17  ;;  %v5035_v5 = vadd.f32 %v6844_v47, %v9110_v36 }
 0x21e   : > { %v6102_v62 = vpack.c.bf16 %v5037_v12, %v5036_v24  ;;  %v5266_v23 = vmul.f32 %v5037_v12, %v5037_v12 }
 0x21f   : > { %v5294_v37 = vadd.f32 %v5293_v40, %v5263_v32  ;;  %v6097_v41 = vpack.c.bf16 %v5035_v5, %v5034_v45  ;;  %v5226_v6 = vadd.f32 %v5225_v51, %v5035_v5  ;;  %v5264_v9 = vmul.f32 %v5035_v5, %v5035_v5  ;;  %v6799_v26 = vpop.f32.mrb[12].mxu0 }
 0x220   : > { %6158 = vst [vmem:[%s9119_s23 + $0x28] sm:$0xff] %v6102_v62   ;;  %v6845_v18 = vadd.f32 %v6799_v26, %v9099_v61  ;;  %v4908_v21 = vpop.f32.mrb[13].mxu0 }
 0x221   : > { %6157 = vst [vmem:[%s9119_s23 + $0x20] sm:$0xff] %v6097_v41   ;;  %v5227_v14 = vadd.f32 %v5226_v6, %v5036_v24  ;;  %v5295_v10 = vadd.f32 %v5294_v37, %v5264_v9  ;;  %v6846_v39 = vadd.f32 %v4908_v21, %v9101_v34  ;;  %v6800_v50 = vpop.f32.mrb[14].mxu0 }
 0x222   : > { %v6847_v3 = vadd.f32 %v6800_v50, %v9103_v11  ;;  %v4911_v58 = vpop.f32.mrb[15].mxu0  ;;  %v5040_v61 = vadd.f32 %v6845_v18, %v9110_v36 }
 0x223   : > { %v5296_v22 = vadd.f32 %v5295_v10, %v5265_v33  ;;  %v5038_v59 = vadd.f32 %v6846_v39, %v9110_v36  ;;  %v5228_v30 = vadd.f32 %v5227_v14, %v5037_v12  ;;  %v6848_v19 = vadd.f32 %v4911_v58, %v9105_v48 }
 0x224   : > { %v5041_v52 = vadd.f32 %v6847_v3, %v9110_v36  ;;  %v5269_v48 = vmul.f32 %v5040_v61, %v5040_v61 }
 0x225   : > { %v5229_v15 = vadd.f32 %v5228_v30, %v5038_v59  ;;  %v5267_v43 = vmul.f32 %v5038_v59, %v5038_v59  ;;  %v5297_v34 = vadd.f32 %v5296_v22, %v5266_v23  ;;  %v5039_v38 = vadd.f32 %v6848_v19, %v9110_v36 }
 0x226   : > { %v6112_v56 = vpack.c.bf16 %v5041_v52, %v5040_v61  ;;  %v5270_v13 = vmul.f32 %v5041_v52, %v5041_v52 }
 0x227   : > { %v5298_v11 = vadd.f32 %v5297_v34, %v5267_v43  ;;  %v6107_v1 = vpack.c.bf16 %v5039_v38, %v5038_v59  ;;  %v5230_v31 = vadd.f32 %v5229_v15, %v5039_v38  ;;  %v5268_v63 = vmul.f32 %v5039_v38, %v5039_v38  ;;  %v6803_v20 = vpop.f32.mrb[16].mxu0 }
 0x228   : > { %6160 = vst [vmem:[%s9119_s23 + $0x38] sm:$0xff] %v6112_v56   ;;  %v6611_v29 = vpop.f32.mrb[16].mxu1  ;;  %v4924_v44 = vpop.f32.mrb[17].mxu0 }
 0x229   : > { %6159 = vst [vmem:[%s9119_s23 + $0x30] sm:$0xff] %v6107_v1   ;;  %v5231_v35 = vadd.f32 %v5230_v31, %v5040_v61  ;;  %v5299_v4 = vadd.f32 %v5298_v11, %v5268_v63  ;;  %v6849_v57 = vadd.f32 %v6803_v20, %v6611_v29  ;;  %v2787_v53 = vpop.f32.mrb[17].mxu1  ;;  %v6804_v7 = vpop.f32.mrb[18].mxu0 }
 0x22a   : > { %v6850_v25 = vadd.f32 %v4924_v44, %v2787_v53  ;;  %v6612_v16 = vpop.f32.mrb[18].mxu1  ;;  %v4927_v54 = vpop.f32.mrb[19].mxu0 }
 0x22b   : > { %v5300_v60 = vadd.f32 %v5299_v4, %v5269_v48  ;;  %v5232_v0 = vadd.f32 %v5231_v35, %v5041_v52  ;;  %v6851_v27 = vadd.f32 %v6804_v7, %v6612_v16  ;;  %v2790_v46 = vpop.f32.mrb[19].mxu1  ;;  %v5044_v17 = vadd.f32 %v6849_v57, %v9110_v36 }
 0x22c   : > { %v5042_v2 = vadd.f32 %v6850_v25, %v9110_v36  ;;  %v6852_v42 = vadd.f32 %v4927_v54, %v2790_v46 }
 0x22d   : > { %v5301_v55 = vadd.f32 %v5300_v60, %v5270_v13  ;;  %v5045_v49 = vadd.f32 %v6851_v27, %v9110_v36  ;;  %v5273_v9 = vmul.f32 %v5044_v17, %v5044_v17 }
 0x22e   : > { %v5233_v28 = vadd.f32 %v5232_v0, %v5042_v2  ;;  %v5271_v45 = vmul.f32 %v5042_v2, %v5042_v2  ;;  %v5043_v8 = vadd.f32 %v6852_v42, %v9110_v36 }
 0x22f   : > { %v6122_v47 = vpack.c.bf16 %v5045_v49, %v5044_v17  ;;  %v6807_v24 = vpop.f32.mrb[20].mxu0  ;;  %v5274_v10 = vmul.f32 %v5045_v49, %v5045_v49 }
 0x230   : > { %v5302_v12 = vadd.f32 %v5301_v55, %v5271_v45  ;;  %v6117_v51 = vpack.c.bf16 %v5043_v8, %v5042_v2  ;;  %v5234_v32 = vadd.f32 %v5233_v28, %v5043_v8  ;;  %v5272_v40 = vmul.f32 %v5043_v8, %v5043_v8  ;;  %v6615_v5 = vpop.f32.mrb[20].mxu1  ;;  %v4940_v62 = vpop.f32.mrb[21].mxu0 }
 0x231   : > { %6162 = vst [vmem:[%s9119_s23 + $0x48] sm:$0xff] %v6122_v47   ;;  %v6853_v37 = vadd.f32 %v6807_v24, %v6615_v5  ;;  %v2803_v41 = vpop.f32.mrb[21].mxu1  ;;  %v6808_v6 = vpop.f32.mrb[22].mxu0 }
 0x232   : > { %6161 = vst [vmem:[%s9119_s23 + $0x40] sm:$0xff] %v6117_v51   ;;  %v5235_v26 = vadd.f32 %v5234_v32, %v5044_v17  ;;  %v5303_v18 = vadd.f32 %v5302_v12, %v5272_v40  ;;  %v6854_v21 = vadd.f32 %v4940_v62, %v2803_v41  ;;  %v6616_v33 = vpop.f32.mrb[22].mxu1  ;;  %v4943_v14 = vpop.f32.mrb[23].mxu0 }
 0x233   : > { %v6855_v39 = vadd.f32 %v6808_v6, %v6616_v33  ;;  %v2806_v50 = vpop.f32.mrb[23].mxu1  ;;  %v5048_v59 = vadd.f32 %v6853_v37, %v9110_v36 }
 0x234   : > { %v5304_v23 = vadd.f32 %v5303_v18, %v5273_v9  ;;  %v5046_v3 = vadd.f32 %v6854_v21, %v9110_v36  ;;  %v5236_v58 = vadd.f32 %v5235_v26, %v5045_v49  ;;  %v6856_v22 = vadd.f32 %v4943_v14, %v2806_v50 }
 0x235   : > { %v5049_v30 = vadd.f32 %v6855_v39, %v9110_v36  ;;  %v5277_v48 = vmul.f32 %v5048_v59, %v5048_v59 }
 0x236   : > { %v5237_v19 = vadd.f32 %v5236_v58, %v5046_v3  ;;  %v5275_v61 = vmul.f32 %v5046_v3, %v5046_v3  ;;  %v5305_v52 = vadd.f32 %v5304_v23, %v5274_v10  ;;  %v5047_v15 = vadd.f32 %v6856_v22, %v9110_v36 }
 0x237   : > { %v6132_v43 = vpack.c.bf16 %v5049_v30, %v5048_v59  ;;  %v6811_v34 = vpop.f32.mrb[24].mxu0  ;;  %v5278_v25 = vmul.f32 %v5049_v30, %v5049_v30 }
 0x238   : > { %v5306_v38 = vadd.f32 %v5305_v52, %v5275_v61  ;;  %v6127_v56 = vpack.c.bf16 %v5047_v15, %v5046_v3  ;;  %v5238_v11 = vadd.f32 %v5237_v19, %v5047_v15  ;;  %v5276_v1 = vmul.f32 %v5047_v15, %v5047_v15  ;;  %v6619_v31 = vpop.f32.mrb[24].mxu1  ;;  %v4956_v63 = vpop.f32.mrb[25].mxu0 }
 0x239   : > { %6164 = vst [vmem:[%s9119_s23 + $0x58] sm:$0xff] %v6132_v43   ;;  %v6857_v20 = vadd.f32 %v6811_v34, %v6619_v31  ;;  %v2819_v29 = vpop.f32.mrb[25].mxu1  ;;  %v6812_v44 = vpop.f32.mrb[26].mxu0 }
 0x23a   : > { %6163 = vst [vmem:[%s9119_s23 + $0x50] sm:$0xff] %v6127_v56   ;;  %v5239_v35 = vadd.f32 %v5238_v11, %v5048_v59  ;;  %v5307_v4 = vadd.f32 %v5306_v38, %v5276_v1  ;;  %v6858_v57 = vadd.f32 %v4956_v63, %v2819_v29  ;;  %v6620_v53 = vpop.f32.mrb[26].mxu1  ;;  %v4959_v7 = vpop.f32.mrb[27].mxu0 }
 0x23b   : > { %v6859_v16 = vadd.f32 %v6812_v44, %v6620_v53  ;;  %v2822_v54 = vpop.f32.mrb[27].mxu1  ;;  %v5052_v46 = vadd.f32 %v6857_v20, %v9110_v36 }
 0x23c   : > { %v5308_v13 = vadd.f32 %v5307_v4, %v5277_v48  ;;  %v5050_v60 = vadd.f32 %v6858_v57, %v9110_v36  ;;  %v5240_v0 = vadd.f32 %v5239_v35, %v5049_v30  ;;  %v6860_v27 = vadd.f32 %v4959_v7, %v2822_v54 }
 0x23d   : > { %v5053_v2 = vadd.f32 %v6859_v16, %v9110_v36  ;;  %v5281_v37 = vmul.f32 %v5052_v46, %v5052_v46 }
 0x23e   : > { %v5241_v42 = vadd.f32 %v5240_v0, %v5050_v60  ;;  %v5279_v17 = vmul.f32 %v5050_v60, %v5050_v60  ;;  %v5309_v55 = vadd.f32 %v5308_v13, %v5278_v25  ;;  %v5051_v49 = vadd.f32 %v6860_v27, %v9110_v36 }
 0x23f   : > { %v6142_v28 = vpack.c.bf16 %v5053_v2, %v5052_v46  ;;  %v6815_v45 = vpop.f32.mrb[28].mxu0  ;;  %v5282_v21 = vmul.f32 %v5053_v2, %v5053_v2 }
 0x240   : > { %v5310_v8 = vadd.f32 %v5309_v55, %v5279_v17  ;;  %v6137_v47 = vpack.c.bf16 %v5051_v49, %v5050_v60  ;;  %v5242_v24 = vadd.f32 %v5241_v42, %v5051_v49  ;;  %v5280_v12 = vmul.f32 %v5051_v49, %v5051_v49  ;;  %v6623_v51 = vpop.f32.mrb[28].mxu1  ;;  %v4972_v32 = vpop.f32.mrb[29].mxu0 }
 0x241   : > { %6166 = vst [vmem:[%s9119_s23 + $0x68] sm:$0xff] %v6142_v28   ;;  %v6861_v40 = vadd.f32 %v6815_v45, %v6623_v51  ;;  %v2835_v5 = vpop.f32.mrb[29].mxu1  ;;  %v6816_v62 = vpop.f32.mrb[30].mxu0 }
 0x242   : > { %6165 = vst [vmem:[%s9119_s23 + $0x60] sm:$0xff] %v6137_v47   ;;  %v5243_v41 = vadd.f32 %v5242_v24, %v5052_v46  ;;  %v5311_v6 = vadd.f32 %v5310_v8, %v5280_v12  ;;  %v6862_v9 = vadd.f32 %v4972_v32, %v2835_v5  ;;  %v6624_v26 = vpop.f32.mrb[30].mxu1  ;;  %v4975_v18 = vpop.f32.mrb[31].mxu0 }
 0x243   : > { %v6863_v33 = vadd.f32 %v6816_v62, %v6624_v26  ;;  %v2838_v14 = vpop.f32.mrb[31].mxu1  ;;  %v5056_v3 = vadd.f32 %v6861_v40, %v9110_v36 }
 0x244   : > { %v5312_v10 = vadd.f32 %v5311_v6, %v5281_v37  ;;  %v5054_v39 = vadd.f32 %v6862_v9, %v9110_v36  ;;  %v5244_v50 = vadd.f32 %v5243_v41, %v5053_v2  ;;  %v6864_v23 = vadd.f32 %v4975_v18, %v2838_v14 }
 0x245   : > { %v5057_v58 = vadd.f32 %v6863_v33, %v9110_v36  ;;  %v5285_v38 = vmul.f32 %v5056_v3, %v5056_v3 }
 0x246   : > { %v5245_v22 = vadd.f32 %v5244_v50, %v5054_v39  ;;  %v5283_v59 = vmul.f32 %v5054_v39, %v5054_v39  ;;  %v5313_v30 = vadd.f32 %v5312_v10, %v5282_v21  ;;  %v5055_v19 = vadd.f32 %v6864_v23, %v9110_v36 }
 0x247   : > { %v6152_v61 = vpack.c.bf16 %v5057_v58, %v5056_v3  ;;  %v5286_v1 = vmul.f32 %v5057_v58, %v5057_v58 }
 0x248   : > { %v5314_v52 = vadd.f32 %v5313_v30, %v5283_v59  ;;  %v6147_v15 = vpack.c.bf16 %v5055_v19, %v5054_v39  ;;  %v5246_v43 = vadd.f32 %v5245_v22, %v5055_v19  ;;  %v5284_v34 = vmul.f32 %v5055_v19, %v5055_v19 }
 0x249   : > { %6168 = vst [vmem:[%s9119_s23 + $0x78] sm:$0xff] %v6152_v61  }
 0x24a   : > { %6167 = vst [vmem:[%s9119_s23 + $0x70] sm:$0xff] %v6147_v15   ;;  %v5247_v56 = vadd.f32 %v5246_v43, %v5056_v3  ;;  %v5315_v11 = vadd.f32 %v5314_v52, %v5284_v34 }
 0x24c   : > { %v5248_v31 = vadd.f32 %v5247_v56, %v5057_v58  ;;  %v5316_v63 = vadd.f32 %v5315_v11, %v5285_v38 }
 0x24e   : > { %v5249_v20 = vrot.slane %v5248_v31, 4  ;;  %v5317_v29 = vadd.f32 %v5316_v63, %v5286_v1 }
 0x250   : > { %v5250_v44 = vadd.f32 %v5249_v20, %v5248_v31  ;;  %v5318_v48 = vrot.slane %v5317_v29, 4 }
 0x252   : > { %v5251_v35 = vrot.slane %v5250_v44, 2  ;;  %v5319_v36 = vadd.f32 %v5318_v48, %v5317_v29 }
 0x254   : > { %v5252_v4 = vadd.f32 %v5251_v35, %v5250_v44  ;;  %v5320_v57 = vrot.slane %v5319_v36, 2 }
 0x256   : > { %v5253_v53 = vrot.slane %v5252_v4, 1  ;;  %v5321_v7 = vadd.f32 %v5320_v57, %v5319_v36 }
 0x258   : > { %v5322_v25 = vrot.slane %v5321_v7, 1  ;;  %v5254_v16 = vadd.f32 %v5253_v53, %v5252_v4 }
 0x25a   : > { %v5323_v54 = vadd.f32 %v5322_v25, %v5321_v7 }
 0x25c   : > { %v5325_v13 = vsel %vm5324_vm6, %v5254_v16, %v5323_v54 }
 0x25d   : > { %5326 = vst [vmem:[%s208_s27] sm:$0x3] %v5325_v13 }
 0x25e PF: > { %s15_s15 = sadd.s32 1, %s7294_s15  }
 0x25f   : > { %p12_p4 = scmp.ge.s32.totalorder %s15_s15, 4  }
 0x261   :  { %14 = sbr.rel (!%p12_p4) target bundleno = 1 (0x1), region = 84 }

// kernel: generator_forward.13
= control target key start
LH: loop header
LB: loop body
LE: loop exit
PB: predicated region body
PF: predicated region fallthrough
CT: control target
= control target key end

     0   :  { %s6946_s12 = smov 0   ;;  %s8808_s0 = inlined_call_operand.vmem [shape: bf16[2,18,18,128], index: 0, kind: input, shape index: {}]   ;;  %s8809_s1 = inlined_call_operand.vmem [shape: bf16[9,128,128], index: 1, kind: input, shape index: {}]   ;;  %s8810_s2 = inlined_call_operand.vmem [shape: f32[1,128], index: 2, kind: input, shape index: {}]   ;;  %s8811_s3 = inlined_call_operand.vmem [shape: f32[2,16,16,128], index: 3, kind: output, shape index: {}]  }
   0x1 LB: > { %s5139_s13 = sadd.s32 4294967295, %s6924_s12   ;;  %p5143_p0 = scmp.ge.s32.totalorder %s6924_s12, 1  ;;  %s6924_s12 = sphi %s6946_s12, %s13_s12  }
   0x2   : > { %p137_p1 = scmp.lt.s32.totalorder %s6924_s12, 3 }
   0x4   : > { %p138_p2 = pnand %p5143_p0, %p137_p1 }
   0x6   : > { %141 = sbr.rel (%p138_p2) target bundleno = 597 (0x255), region = 32 }
   0xd   : > { %v6664_v0 = vld [vmem:[%s8809_s1 + $0x40] sm:$0xff]   ;;  %p161_p3 = scmp.lt.s32.totalorder %s5139_s13, 1  ;;  %v6666_v2 = vld [vmem:[%s8809_s1 + $0x48] sm:$0xff]   ;;  %v6668_v4 = vld [vmem:[%s8809_s1 + $0x50] sm:$0xff]   ;;  %vm236_vm0 = vsmask.f32 3328 }
   0xe   : > { %v6665_v1 = vld [vmem:[%s8809_s1 + $0x100] sm:$0xff]   ;;  %5951 = vmatprep.subr.bf16.mxu1 %v6664_v0  ;;  %v6667_v3 = vld [vmem:[%s8809_s1 + $0x108] sm:$0xff]   ;;  %v6669_v5 = vld [vmem:[%s8809_s1 + $0x110] sm:$0xff]   ;;  %vm237_vm1 = vsmask.f32 7440  ;;  %vm1266_vm3 = vcmask 1042432  }
   0xf   : > { %6143 = vmatprep.subr.bf16.mxu0 %v6665_v1  ;;  %5952 = vmatpush3.bf16.msra.mxu1 %v6664_v0  ;;  %s8879_s13 = smov (!%p161_p3, %s5139_s13), 1  ;;  %v6670_v6 = vld [vmem:[%s8809_s1 + $0x58] sm:$0xff]   ;;  %v6672_v8 = vld [vmem:[%s8809_s1 + $0x60] sm:$0xff]   ;;  %v6674_v10 = vld [vmem:[%s8809_s1 + $0x68] sm:$0xff]   ;;  %vm1267_vm4 = vcmask 1046532  }
  0x10   : > { %6144 = vmatpush3.bf16.msra.mxu0 %v6665_v1  ;;  %5953 = vmatprep.subr.bf16.mxu1 %v6666_v2  ;;  %v6671_v7 = vld [vmem:[%s8809_s1 + $0x118] sm:$0xff]   ;;  %s6655_s30 = smul.u32 216, %s8879_s13  ;;  %v6673_v9 = vld [vmem:[%s8809_s1 + $0x120] sm:$0xff]   ;;  %v6675_v11 = vld [vmem:[%s8809_s1 + $0x128] sm:$0xff]   ;;  %s5734_s7 = sshll.u32 %s8879_s13, 8 }
  0x11   : > { %6145 = vmatprep.subr.bf16.mxu0 %v6667_v3  ;;  %v6676_v25 = vld [vmem:[%s8809_s1 + $0x70] sm:$0xff]   ;;  %v6678_v36 = vld [vmem:[%s8809_s1 + $0x78] sm:$0xff]   ;;  %vm7022_vm2 = vmor %vm236_vm0, %vm237_vm1  ;;  %s8741_s11 = scalar_lea.vmem %s8811_s3, %s5734_s7 }
  0x12   : > { %s6990_s10 = scalar_lea.vmem %s8808_s0, %s6655_s30  ;;  %v6677_v30 = vld [vmem:[%s8809_s1 + $0x130] sm:$0xff]   ;;  %v6679_v51 = vld [vmem:[%s8809_s1 + $0x138] sm:$0xff]   ;;  %vm7268_vm5 = vmor %vm1266_vm3, %vm1267_vm4 }
  0x13   : > { %5954 = vmatpush3.bf16.msra.mxu1 %v6666_v2  ;;  %v172_v12 = vld [vmem:[%s6990_s10] sm:$0xf]  ;;  %v173_v13 = vld [vmem:[%s6990_s10 + $0x4] sm:$0xf]  ;;  %v220_v14 = vld [vmem:[%s6990_s10 + $0x8] sm:$0x1] }
  0x14   : > { %6146 = vmatpush3.bf16.msra.mxu0 %v6667_v3  ;;  %5955 = vmatprep.subr.bf16.mxu1 %v6668_v4  ;;  %v240_v15 = vshrl.u32 %v172_v12, 16  ;;  %v243_v16 = vshll.u32 %v172_v12, 16  ;;  %v249_v17 = vshll.u32 %v173_v13, 16  ;;  %v253_v18 = vshrl.u32 %v173_v13, 16  ;;  %v5339_v20 = vld [vmem:[%s6990_s10 + $0xc] sm:$0xf] }
  0x15   : > { %6147 = vmatprep.subr.bf16.mxu0 %v6669_v5  ;;  %v259_v19 = vshll.u32 %v220_v14, 16  ;;  %v7003_v23 = vld [vmem:[%s6990_s10 + $0x10] sm:$0xf]  ;;  %v7006_v24 = vld [vmem:[%s6990_s10 + $0x14] sm:$0x1]  ;;  %v2139_v29 = vshrl.u32 %v5339_v20, 16 }
  0x16   : > { %v242_v21 = vrot.slane %v240_v15, 4  ;;  %v245_v22 = vrot.slane %v243_v16, 5  ;;  %v251_v26 = vrot.slane %v249_v17, 5  ;;  %v255_v27 = vrot.slane %v253_v18, 4  ;;  %v174_v35 = vld [vmem:[%s6990_s10 + $0xc] sm:$0xf] }
  0x17   : > { %5956 = vmatpush3.bf16.msra.mxu1 %v6668_v4  ;;  %v261_v28 = vrot.slane %v259_v19, 5  ;;  %v2142_v32 = vshll.u32 %v5339_v20, 16  ;;  %v2148_v33 = vshll.u32 %v7003_v23, 16  ;;  %v2152_v34 = vshrl.u32 %v7003_v23, 16  ;;  %v175_v42 = vld [vmem:[%s6990_s10 + $0x10] sm:$0xf] }
  0x18   : > { %6148 = vmatpush3.bf16.msra.mxu0 %v6669_v5  ;;  %5957 = vmatprep.subr.bf16.mxu1 %v6670_v6  ;;  %v246_v31 = vor.u32 %v245_v22, %v242_v21  ;;  %v256_v38 = vor.u32 %v255_v27, %v251_v26  ;;  %v2141_v39 = vrot.slane %v2139_v29, 4  ;;  %v2158_v40 = vshll.u32 %v7006_v24, 16  ;;  %v221_v55 = vld [vmem:[%s6990_s10 + $0x14] sm:$0x1]  ;;  %v5342_v57 = vld [vmem:[%s6990_s10 + $0x18] sm:$0xf] }
  0x19   : > { %6149 = vmatprep.subr.bf16.mxu0 %v6671_v7  ;;  %v2913_v41 = vrot.slane %v7006_v24, 5  ;;  %v2144_v44 = vrot.slane %v2142_v32, 5  ;;  %v2150_v45 = vrot.slane %v2148_v33, 5  ;;  %v2154_v46 = vrot.slane %v2152_v34, 4  ;;  %v7039_v62 = vld [vmem:[%s6990_s10 + $0x1c] sm:$0xf] }
  0x1a   : > { %v247_v43 = vrot.slane %v246_v31, 4  ;;  %v257_v47 = vrot.slane %v256_v38, 4  ;;  %v2160_v48 = vrot.slane %v2158_v40, 5  ;;  %v264_v49 = vshrl.u32 %v174_v35, 16  ;;  %v6680_v3 = vld [vmem:[%s8809_s1] sm:$0xff]  }
  0x1b   : > { %5958 = vmatpush3.bf16.msra.mxu1 %v6670_v6  ;;  %v267_v50 = vshll.u32 %v174_v35, 16  ;;  %v2145_v53 = vor.u32 %v2144_v44, %v2141_v39  ;;  %v2155_v54 = vor.u32 %v2154_v46, %v2150_v45  ;;  %v273_v56 = vshll.u32 %v175_v42, 16  ;;  %v7047_v4 = vld [vmem:[%s8809_s1 + $0x140] sm:$0xff]   ;;  %v176_v21 = vld [vmem:[%s6990_s10 + $0x18] sm:$0xf]  ;;  %v6683_v46 = vld [vmem:[%s8809_s1 + $0x8] sm:$0xff]  }
  0x1c   : > { %6150 = vmatpush3.bf16.msra.mxu0 %v6671_v7  ;;  %5959 = vmatprep.subr.bf16.mxu1 %v6672_v8  ;;  %v252_v52 = vsel %vm7022_vm2, %v247_v43, %v251_v26  ;;  %v262_v58 = vsel %vm7022_vm2, %v257_v47, %v261_v28  ;;  %v266_v59 = vrot.slane %v264_v49, 4  ;;  %v277_v61 = vshrl.u32 %v175_v42, 16  ;;  %v177_v28 = vld [vmem:[%s6990_s10 + $0x1c] sm:$0xf]  ;;  %v222_v33 = vld [vmem:[%s6990_s10 + $0x20] sm:$0x1] }
  0x1d   : > { %6151 = vmatprep.subr.bf16.mxu0 %v6673_v9  ;;  %v269_v60 = vrot.slane %v267_v50, 5  ;;  %v5163_v63 = vcombine.low %v252_v52, %v262_v58  ;;  %v2146_v0 = vrot.slane %v2145_v53, 4  ;;  %v2156_v1 = vrot.slane %v2155_v54, 4  ;;  %v5345_v39 = vld [vmem:[%s6990_s10 + $0x24] sm:$0xf] }
  0x1e   : > { %v275_v2 = vrot.slane %v273_v56, 5  ;;  %v279_v6 = vrot.slane %v277_v61, 4  ;;  %v283_v7 = vshll.u32 %v221_v55, 16  ;;  %v2166_v12 = vshll.u32 %v5342_v57, 16  ;;  %v178_v52 = vld [vmem:[%s6990_s10 + $0x24] sm:$0xf] }
  0x1f   : > { %5960 = vmatpush3.bf16.msra.mxu1 %v6672_v8  ;;  %v270_v5 = vor.u32 %v269_v60, %v266_v59  ;;  %v7050_v8 = vld [vmem:[%s6990_s10 + $0x20] sm:$0x1]  ;;  %5967 = vmatprep.mubr.bf16.mxu1 %v5163_v63  ;;  %v2172_v19 = vshll.u32 %v7039_v62, 16  ;;  %v2176_v20 = vshrl.u32 %v7039_v62, 16  ;;  %v2917_v27 = vrot.slane %v7039_v62, 5  ;;  %v6682_v63 = vld [vmem:[%s8809_s1 + $0x148] sm:$0xff]  }
  0x20   : > { %6152 = vmatpush3.bf16.msra.mxu0 %v6673_v9  ;;  %5961 = vmatprep.subr.bf16.mxu1 %v6674_v10  ;;  %v2151_v9 = vsel %vm7022_vm2, %v2146_v0, %v2150_v45  ;;  %v280_v15 = vor.u32 %v279_v6, %v275_v2  ;;  %v285_v16 = vrot.slane %v283_v7, 5  ;;  %v2168_v18 = vrot.slane %v2166_v12, 5  ;;  %v7075_v45 = vld [vmem:[%s6990_s10 + $0x28] sm:$0xf] }
  0x21   : > { %6153 = vmatprep.subr.bf16.mxu0 %v6675_v11  ;;  %v271_v14 = vrot.slane %v270_v5, 4  ;;  %v2182_v26 = vshll.u32 %v7050_v8, 16  ;;  %v2178_v31 = vrot.slane %v2176_v20, 4  ;;  %v2920_v32 = vrot.slane %v7050_v8, 5  ;;  %v179_v5 = vld [vmem:[%s6990_s10 + $0x28] sm:$0xf] }
  0x22   : > { %v288_v38 = vshrl.u32 %v176_v21, 16  ;;  %v291_v44 = vshll.u32 %v176_v21, 16  ;;  %v301_v49 = vshrl.u32 %v177_v28, 16  ;;  %v307_v50 = vshll.u32 %v222_v33, 16  ;;  %v7106_v33 = vld [vmem:[%s6990_s10 + $0x34] sm:$0xf] }
  0x23   : > { %5962 = vmatpush3.bf16.msra.mxu1 %v6674_v10  ;;  %v2161_v10 = vsel %vm7022_vm2, %v2156_v1, %v2160_v48  ;;  %v276_v22 = vsel %vm7022_vm2, %v271_v14, %v275_v2  ;;  %v2184_v35 = vrot.slane %v2182_v26, 5  ;;  %v297_v48 = vshll.u32 %v177_v28, 16 }
  0x24   : > { %6154 = vmatpush3.bf16.msra.mxu0 %v6675_v11  ;;  %5963 = vmatprep.subr.bf16.mxu1 %v6676_v25  ;;  %v2163_v11 = vshrl.u32 %v5342_v57, 16  ;;  %v5403_v13 = vcombine.low %v2151_v9, %v2161_v10  ;;  %v290_v47 = vrot.slane %v288_v38, 4  ;;  %v293_v55 = vrot.slane %v291_v44, 5 }
  0x25   : > { %6155 = vmatprep.subr.bf16.mxu0 %v6677_v30  ;;  %v2187_v56 = vshrl.u32 %v5345_v39, 16  ;;  %v299_v57 = vrot.slane %v297_v48, 5  ;;  %v303_v58 = vrot.slane %v301_v49, 4  ;;  %v309_v59 = vrot.slane %v307_v50, 5  ;;  %v6685_v48 = vld [vmem:[%s8809_s1 + $0x158] sm:$0xff]  }
  0x26   : > { %v2165_v17 = vrot.slane %v2163_v11, 4  ;;  %6159 = vmatprep.mubr.bf16.mxu0 %v5403_v13  ;;  %v2190_v60 = vshll.u32 %v5345_v39, 16  ;;  %v294_v0 = vor.u32 %v293_v55, %v290_v47  ;;  %v2196_v2 = vshll.u32 %v7075_v45, 16  ;;  %v223_v11 = vld [vmem:[%s6990_s10 + $0x2c] sm:$0x1] }
  0x27   : > { %5964 = vmatpush3.bf16.msra.mxu1 %v6676_v25  ;;  %v281_v25 = vrot.slane %v280_v15, 4  ;;  %v2189_v1 = vrot.slane %v2187_v56, 4  ;;  %v304_v7 = vor.u32 %v303_v58, %v299_v57  ;;  %v2200_v10 = vshrl.u32 %v7075_v45, 16 }
  0x28   : > { %6156 = vmatpush3.bf16.msra.mxu0 %v6677_v30  ;;  %5965 = vmatprep.subr.bf16.mxu1 %v6678_v36  ;;  %v2169_v29 = vor.u32 %v2168_v18, %v2165_v17  ;;  %v2174_v30 = vrot.slane %v2172_v19, 5  ;;  %v2192_v9 = vrot.slane %v2190_v60, 5  ;;  %v295_v12 = vrot.slane %v294_v0, 4  ;;  %v6692_v60 = vld [vmem:[%s8809_s1 + $0x20] sm:$0xff]  }
  0x29   : > { %6157 = vmatprep.subr.bf16.mxu0 %v6679_v51  ;;  %v286_v34 = vsel %vm7022_vm2, %v281_v25, %v285_v16  ;;  %v2198_v13 = vrot.slane %v2196_v2, 5  ;;  %v312_v15 = vshrl.u32 %v178_v52, 16  ;;  %v5348_v16 = vld [vmem:[%s6990_s10 + $0x30] sm:$0xf]  ;;  %v305_v17 = vrot.slane %v304_v7, 4 }
  0x2a   : > { %v5164_v40 = vcombine.low %v276_v22, %v286_v34  ;;  %v2170_v42 = vrot.slane %v2169_v29, 4  ;;  %v2179_v43 = vor.u32 %v2178_v31, %v2174_v30  ;;  %v2193_v18 = vor.u32 %v2192_v9, %v2189_v1  ;;  %v6689_v34 = vld [vmem:[%s8809_s1 + $0x18] sm:$0xff]  }
  0x2b   : > { %5966 = vmatpush3.bf16.msra.mxu1 %v6678_v36  ;;  %v7071_v36 = vrot.slane %v2917_v27, 4  ;;  %v2202_v19 = vrot.slane %v2200_v10, 4  ;;  %v315_v20 = vshll.u32 %v178_v52, 16  ;;  %v300_v21 = vsel %vm7022_vm2, %v295_v12, %v299_v57  ;;  %v224_v2 = vld [vmem:[%s6990_s10 + $0x38] sm:$0x1] }
  0x2c   : > { %6158 = vmatpush3.bf16.msra.mxu0 %v6679_v51  ;;  %5999 = vmatprep.subr.bf16.mxu1 %v6680_v3  ;;  %v7081_v51 = vld [vmem:[%s6990_s10 + $0x2c] sm:$0x1]  ;;  %v2175_v53 = vsel %vm7022_vm2, %v2170_v42, %v2174_v30  ;;  %v2180_v54 = vrot.slane %v2179_v43, 4  ;;  %v314_v25 = vrot.slane %v312_v15, 4  ;;  %v321_v26 = vshll.u32 %v179_v5, 16 }
  0x2d   : > { %6191 = vmatprep.subr.bf16.mxu0 %v7047_v4  ;;  %v2206_v14 = vshll.u32 %v7081_v51, 16  ;;  %v310_v28 = vsel %vm7022_vm2, %v305_v17, %v309_v59  ;;  %v2194_v29 = vrot.slane %v2193_v18, 4  ;;  %v2203_v30 = vor.u32 %v2202_v19, %v2198_v13  ;;  %v181_v59 = vld [vmem:[%s6990_s10 + $0x34] sm:$0xf]  ;;  %v5351_v9 = vld [vmem:[%s6990_s10 + $0x3c] sm:$0xf] }
  0x2e   : > { %5968 = vmatmul.mubr.bf16.vlgmr.msra.gmra.mrb[0].mxu1 %v5164_v40  ;;  %v2185_v61 = vsel %vm7022_vm2, %v2180_v54, %v2184_v35  ;;  %v317_v31 = vrot.slane %v315_v20, 5  ;;  %v5165_v35 = vcombine.low %v300_v21, %v310_v28  ;;  %v323_v38 = vrot.slane %v321_v26, 5  ;;  %v180_v54 = vld [vmem:[%s6990_s10 + $0x30] sm:$0xf]  ;;  %v7140_v19 = vld [vmem:[%s6990_s10 + $0x40] sm:$0xf] }
  0x2f   : > { %6000 = vmatpush3.bf16.msra.mxu1 %v6680_v3  ;;  %v6686_v3 = vld [vmem:[%s8809_s1 + $0x10] sm:$0xff]   ;;  %v5404_v6 = vcombine.low %v2175_v53, %v2185_v61  ;;  %v2208_v22 = vrot.slane %v2206_v14, 5  ;;  %v325_v39 = vshrl.u32 %v179_v5, 16  ;;  %v331_v40 = vshll.u32 %v223_v11, 16  ;;  %v6694_v14 = vld [vmem:[%s8809_s1 + $0x28] sm:$0xff]   ;;  %v6687_v20 = vld [vmem:[%s8809_s1 + $0x160] sm:$0xff]  }
  0x30   : > { %6001 = vmatprep.subr.bf16.mxu1 %v6683_v46  ;;  %v2199_v42 = vsel %vm7022_vm2, %v2194_v29, %v2198_v13  ;;  %v2204_v43 = vrot.slane %v2203_v30, 4  ;;  %v318_v44 = vor.u32 %v317_v31, %v314_v25  ;;  %v2211_v47 = vshrl.u32 %v5348_v16, 16  ;;  %5971 = vmatprep.mubr.bf16.mxu1 %v5165_v35  ;;  %v7148_v28 = vld [vmem:[%s6990_s10 + $0x44] sm:$0x1]  ;;  %v6696_v35 = vld [vmem:[%s8809_s1 + $0x30] sm:$0xff]  }
  0x31   : > { %6160 = vmatmul.mubr.bf16.vlgmr.msra.gmra.mrb[0].mxu0 %v5404_v6  ;;  %v327_v49 = vrot.slane %v325_v39, 4  ;;  %v333_v50 = vrot.slane %v331_v40, 5  ;;  %v2214_v52 = vshll.u32 %v5348_v16, 16  ;;  %v2220_v53 = vshll.u32 %v7106_v33, 16 }
  0x32   : > { %6192 = vmatpush3.bf16.msra.mxu0 %v7047_v4  ;;  %v6684_v4 = vld [vmem:[%s8809_s1 + $0x150] sm:$0xff]   ;;  %v2209_v55 = vsel %vm7022_vm2, %v2204_v43, %v2208_v22  ;;  %v319_v56 = vrot.slane %v318_v44, 4  ;;  %v2213_v57 = vrot.slane %v2211_v47, 4  ;;  %v2224_v58 = vshrl.u32 %v7106_v33, 16 }
  0x33   : > { %6002 = vmatpush3.bf16.msra.mxu1 %v6683_v46  ;;  %6193 = vmatprep.subr.bf16.mxu0 %v6682_v63  ;;  %v7117_v46 = vld [vmem:[%s6990_s10 + $0x38] sm:$0x1]  ;;  %v5405_v61 = vcombine.low %v2199_v42, %v2209_v55  ;;  %v2216_v0 = vrot.slane %v2214_v52, 5  ;;  %v2222_v1 = vrot.slane %v2220_v53, 5  ;;  %v336_v7 = vshrl.u32 %v180_v54, 16 }
  0x34   : > { %6003 = vmatprep.subr.bf16.mxu1 %v6686_v3  ;;  %v324_v5 = vsel %vm7022_vm2, %v319_v56, %v323_v38  ;;  %v2230_v6 = vshll.u32 %v7117_v46, 16  ;;  %v339_v12 = vshll.u32 %v180_v54, 16  ;;  %v345_v13 = vshll.u32 %v181_v59, 16  ;;  %v183_v55 = vld [vmem:[%s6990_s10 + $0x40] sm:$0xf] }
  0x35   : > { %6163 = vmatprep.mubr.bf16.mxu0 %v5405_v61  ;;  %v2217_v11 = vor.u32 %v2216_v0, %v2213_v57  ;;  %v338_v17 = vrot.slane %v336_v7, 4  ;;  %v349_v18 = vshrl.u32 %v181_v59, 16  ;;  %v2235_v40 = vshrl.u32 %v5351_v9, 16 }
  0x36   : > { %6194 = vmatpush3.bf16.msra.mxu0 %v6682_v63  ;;  %v328_v63 = vor.u32 %v327_v49, %v323_v38  ;;  %v2232_v16 = vrot.slane %v2230_v6, 5  ;;  %v341_v25 = vrot.slane %v339_v12, 5  ;;  %v347_v26 = vrot.slane %v345_v13, 5 }
  0x37   : > { %6004 = vmatpush3.bf16.msra.mxu1 %v6686_v3  ;;  %6195 = vmatprep.subr.bf16.mxu0 %v6684_v4  ;;  %v2226_v3 = vrot.slane %v2224_v58, 4  ;;  %v2218_v22 = vrot.slane %v2217_v11, 4  ;;  %v351_v31 = vrot.slane %v349_v18, 4  ;;  %v2238_v42 = vshll.u32 %v5351_v9, 16  ;;  %v5354_v9 = vld [vmem:[%s6990_s10 + $0x48] sm:$0xf] }
  0x38   : > { %6005 = vmatprep.subr.bf16.mxu1 %v6689_v34  ;;  %v329_v10 = vrot.slane %v328_v63, 4  ;;  %v342_v39 = vor.u32 %v341_v25, %v338_v17  ;;  %v2244_v49 = vshll.u32 %v7140_v19, 16  ;;  %v2237_v53 = vrot.slane %v2235_v40, 4  ;;  %v225_v63 = vld [vmem:[%s6990_s10 + $0x44] sm:$0x1] }
  0x39   : > { %v2227_v15 = vor.u32 %v2226_v3, %v2222_v1  ;;  %v2223_v38 = vsel %vm7022_vm2, %v2218_v22, %v2222_v1  ;;  %v352_v44 = vor.u32 %v351_v31, %v347_v26  ;;  %v2240_v54 = vrot.slane %v2238_v42, 5  ;;  %v7181_v22 = vld [vmem:[%s6990_s10 + $0x50] sm:$0x1]  ;;  %v6691_v31 = vld [vmem:[%s8809_s1 + $0x178] sm:$0xff]  }
  0x3a   : > { %6196 = vmatpush3.bf16.msra.mxu0 %v6684_v4  ;;  %v334_v21 = vsel %vm7022_vm2, %v329_v10, %v333_v50  ;;  %v355_v4 = vshll.u32 %v224_v2, 16  ;;  %v343_v52 = vrot.slane %v342_v39, 4  ;;  %v2246_v57 = vrot.slane %v2244_v49, 5  ;;  %v6698_v2 = vld [vmem:[%s8809_s1 + $0x38] sm:$0xff]  }
  0x3b   : > { %6006 = vmatpush3.bf16.msra.mxu1 %v6689_v34  ;;  %6197 = vmatprep.subr.bf16.mxu0 %v6685_v48  ;;  %v5166_v29 = vcombine.low %v324_v5, %v334_v21  ;;  %v2228_v30 = vrot.slane %v2227_v15, 4  ;;  %v182_v34 = vld [vmem:[%s6990_s10 + $0x3c] sm:$0xf]  ;;  %v353_v56 = vrot.slane %v352_v44, 4  ;;  %v2248_v58 = vshrl.u32 %v7140_v19, 16  ;;  %v6690_v15 = vld [vmem:[%s8809_s1 + $0x170] sm:$0xff]  }
  0x3c   : > { %6007 = vmatprep.subr.bf16.mxu1 %v6692_v60  ;;  %v357_v47 = vrot.slane %v355_v4, 5  ;;  %v2254_v59 = vshll.u32 %v7148_v28, 16  ;;  %v2241_v61 = vor.u32 %v2240_v54, %v2237_v53  ;;  %v360_v0 = vshrl.u32 %v182_v34, 16  ;;  %v7192_v4 = vld [vmem:[%s8809_s1 + $0x80] sm:$0xff]   ;;  %v185_v53 = vld [vmem:[%s6990_s10 + $0x4c] sm:$0xf] }
  0x3d   : > { %5972 = vmatmul.mubr.bf16.gmra.mrb[4].mxu1 %v5166_v29  ;;  %v2233_v43 = vsel %vm7022_vm2, %v2228_v30, %v2232_v16  ;;  %v363_v1 = vshll.u32 %v182_v34, 16  ;;  %v2250_v3 = vrot.slane %v2248_v58, 4  ;;  %v369_v7 = vshll.u32 %v183_v55, 16  ;;  %v184_v30 = vld [vmem:[%s6990_s10 + $0x48] sm:$0xf] }
  0x3e   : > { %6198 = vmatpush3.bf16.msra.mxu0 %v6685_v48  ;;  %v5406_v50 = vcombine.low %v2223_v38, %v2233_v43  ;;  %v6688_v48 = vld [vmem:[%s8809_s1 + $0x168] sm:$0xff]   ;;  %v358_v5 = vsel %vm7022_vm2, %v353_v56, %v357_v47  ;;  %v2256_v6 = vrot.slane %v2254_v59, 5  ;;  %v2242_v11 = vrot.slane %v2241_v61, 4  ;;  %v226_v54 = vld [vmem:[%s6990_s10 + $0x50] sm:$0x1] }
  0x3f   : > { %6008 = vmatpush3.bf16.msra.mxu1 %v6692_v60  ;;  %6199 = vmatprep.subr.bf16.mxu0 %v6687_v20  ;;  %v348_v60 = vsel %vm7022_vm2, %v343_v52, %v347_v26  ;;  %v362_v12 = vrot.slane %v360_v0, 4  ;;  %v365_v13 = vrot.slane %v363_v1, 5  ;;  %v2251_v16 = vor.u32 %v2250_v3, %v2246_v57  ;;  %v5357_v58 = vld [vmem:[%s6990_s10 + $0x54] sm:$0xf]  ;;  %v7206_v0 = vld [vmem:[%s6990_s10 + $0x58] sm:$0xf] }
  0x40   : > { %6009 = vmatprep.subr.bf16.mxu1 %v6694_v14  ;;  %6164 = vmatmul.mubr.bf16.gmra.mrb[4].mxu0 %v5406_v50  ;;  %v5167_v10 = vcombine.low %v348_v60, %v358_v5  ;;  %v371_v17 = vrot.slane %v369_v7, 5  ;;  %v373_v18 = vshrl.u32 %v183_v55, 16  ;;  %v379_v21 = vshll.u32 %v225_v63, 16 }
  0x41   : > { %v366_v25 = vor.u32 %v365_v13, %v362_v12  ;;  %v2259_v26 = vshrl.u32 %v5354_v9, 16  ;;  %v2262_v29 = vshll.u32 %v5354_v9, 16  ;;  %v2252_v34 = vrot.slane %v2251_v16, 4 }
  0x42   : > { %6200 = vmatpush3.bf16.msra.mxu0 %v6687_v20  ;;  %5975 = vmatprep.mubr.bf16.mxu1 %v5167_v10  ;;  %v2247_v20 = vsel %vm7022_vm2, %v2242_v11, %v2246_v57  ;;  %v381_v38 = vrot.slane %v379_v21, 5  ;;  %v2278_v52 = vshll.u32 %v7181_v22, 16  ;;  %v384_v61 = vshrl.u32 %v184_v30, 16 }
  0x43   : > { %6010 = vmatpush3.bf16.msra.mxu1 %v6694_v14  ;;  %v7175_v14 = vld [vmem:[%s6990_s10 + $0x4c] sm:$0xf]  ;;  %6201 = vmatprep.subr.bf16.mxu0 %v6688_v48  ;;  %v367_v40 = vrot.slane %v366_v25, 4  ;;  %v2261_v42 = vrot.slane %v2259_v26, 4  ;;  %v2264_v43 = vrot.slane %v2262_v29, 5  ;;  %v2257_v47 = vsel %vm7022_vm2, %v2252_v34, %v2256_v6  ;;  %v7211_v6 = vld [vmem:[%s8809_s1 + $0x180] sm:$0xff]  }
  0x44   : > { %6011 = vmatprep.subr.bf16.mxu1 %v6696_v35  ;;  %v2268_v39 = vshll.u32 %v7175_v14, 16  ;;  %v2272_v44 = vshrl.u32 %v7175_v14, 16  ;;  %v5407_v55 = vcombine.low %v2247_v20, %v2257_v47  ;;  %v2280_v60 = vrot.slane %v2278_v52, 5  ;;  %v7218_v20 = vld [vmem:[%s6990_s10 + $0x5c] sm:$0x1] }
  0x45   : > { %v2265_v56 = vor.u32 %v2264_v43, %v2261_v42  ;;  %v387_v63 = vshll.u32 %v184_v30, 16  ;;  %v397_v3 = vshrl.u32 %v185_v53, 16  ;;  %v386_v9 = vrot.slane %v384_v61, 4  ;;  %v187_v43 = vld [vmem:[%s6990_s10 + $0x58] sm:$0xf] }
  0x46   : > { %6202 = vmatpush3.bf16.msra.mxu0 %v6688_v48  ;;  %v2270_v50 = vrot.slane %v2268_v39, 5  ;;  %v372_v48 = vsel %vm7022_vm2, %v367_v40, %v371_v17  ;;  %v2274_v57 = vrot.slane %v2272_v44, 4  ;;  %6167 = vmatprep.mubr.bf16.mxu0 %v5407_v55  ;;  %v403_v11 = vshll.u32 %v226_v54, 16  ;;  %v5360_v52 = vld [vmem:[%s6990_s10 + $0x60] sm:$0xf] }
  0x47   : > { %6012 = vmatpush3.bf16.msra.mxu1 %v6696_v35  ;;  %v375_v35 = vrot.slane %v373_v18, 4  ;;  %6203 = vmatprep.subr.bf16.mxu0 %v6690_v15  ;;  %v2266_v1 = vrot.slane %v2265_v56, 4  ;;  %v389_v10 = vrot.slane %v387_v63, 5  ;;  %v399_v18 = vrot.slane %v397_v3, 4 }
  0x48   : > { %6013 = vmatprep.subr.bf16.mxu1 %v6698_v2  ;;  %v2275_v5 = vor.u32 %v2274_v57, %v2270_v50  ;;  %v405_v21 = vrot.slane %v403_v11, 5  ;;  %v2283_v25 = vshrl.u32 %v5357_v58, 16  ;;  %v2286_v29 = vshll.u32 %v5357_v58, 16 }
  0x49   : > { %v376_v49 = vor.u32 %v375_v35, %v371_v17  ;;  %v2271_v13 = vsel %vm7022_vm2, %v2266_v1, %v2270_v50  ;;  %v390_v17 = vor.u32 %v389_v10, %v386_v9  ;;  %v2292_v30 = vshll.u32 %v7206_v0, 16  ;;  %v186_v35 = vld [vmem:[%s6990_s10 + $0x54] sm:$0xf]  ;;  %v227_v50 = vld [vmem:[%s6990_s10 + $0x5c] sm:$0x1] }
  0x4a   : > { %6204 = vmatpush3.bf16.msra.mxu0 %v6690_v15  ;;  %v2276_v15 = vrot.slane %v2275_v5, 4  ;;  %v2296_v34 = vshrl.u32 %v7206_v0, 16  ;;  %v2285_v42 = vrot.slane %v2283_v25, 4  ;;  %v408_v55 = vshrl.u32 %v186_v35, 16  ;;  %v7246_v25 = vld [vmem:[%s6990_s10 + $0x60] sm:$0xf] }
  0x4b   : > { %6014 = vmatpush3.bf16.msra.mxu1 %v6698_v2  ;;  %v377_v59 = vrot.slane %v376_v49, 4  ;;  %v393_v2 = vshll.u32 %v185_v53, 16  ;;  %6205 = vmatprep.subr.bf16.mxu0 %v6691_v31  ;;  %v391_v39 = vrot.slane %v390_v17, 4  ;;  %v2294_v44 = vrot.slane %v2292_v30, 5  ;;  %v7242_v17 = vld [vmem:[%s6990_s10 + $0x68] sm:$0x1] }
  0x4c   : > { %6047 = vmatprep.subr.bf16.mxu1 %v7192_v4  ;;  %v2281_v26 = vsel %vm7022_vm2, %v2276_v15, %v2280_v60  ;;  %v2298_v47 = vrot.slane %v2296_v34, 4  ;;  %v2302_v49 = vshll.u32 %v7218_v20, 16  ;;  %v7233_v60 = vld [vmem:[%s6990_s10 + $0x64] sm:$0xf]  ;;  %v410_v63 = vrot.slane %v408_v55, 4 }
  0x4d   : > { %v382_v7 = vsel %vm7022_vm2, %v377_v59, %v381_v38  ;;  %v395_v16 = vrot.slane %v393_v2, 5  ;;  %v5408_v38 = vcombine.low %v2271_v13, %v2281_v26  ;;  %v417_v59 = vshll.u32 %v187_v43, 16 }
  0x4e   : > { %v5168_v12 = vcombine.low %v372_v48, %v382_v7  ;;  %6206 = vmatpush3.bf16.msra.mxu0 %v6691_v31  ;;  %v2288_v31 = vrot.slane %v2286_v29, 5  ;;  %v411_v48 = vshll.u32 %v186_v35, 16  ;;  %v2299_v57 = vor.u32 %v2298_v47, %v2294_v44  ;;  %v7249_v35 = vld [vmem:[%s6990_s10 + $0x64] sm:$0xf] }
  0x4f   : > { %6239 = vmatprep.subr.bf16.mxu0 %v7211_v6  ;;  %v400_v40 = vor.u32 %v399_v18, %v395_v16  ;;  %6168 = vmatmul.mubr.bf16.gmra.mrb[8].mxu0 %v5408_v38  ;;  %v396_v53 = vsel %vm7022_vm2, %v391_v39, %v395_v16  ;;  %v2304_v58 = vrot.slane %v2302_v49, 5  ;;  %v421_v5 = vshrl.u32 %v187_v43, 16  ;;  %v228_v43 = vld [vmem:[%s6990_s10 + $0x68] sm:$0x1] }
  0x50   : > { %5976 = vmatmul.mubr.bf16.gmra.mrb[8].mxu1 %v5168_v12  ;;  %v2289_v56 = vor.u32 %v2288_v31, %v2285_v42  ;;  %v413_v1 = vrot.slane %v411_v48, 5  ;;  %v2300_v7 = vrot.slane %v2299_v57, 4  ;;  %v419_v9 = vrot.slane %v417_v59, 5 }
  0x51   : > { %v401_v54 = vrot.slane %v400_v40, 4  ;;  %v423_v11 = vrot.slane %v421_v5, 4  ;;  %v427_v12 = vshll.u32 %v227_v50, 16  ;;  %v2307_v13 = vshrl.u32 %v5360_v52, 16  ;;  %v5427_v50 = vld [vmem:[%s6990_s10 + $0xc] sm:$0xe] }
  0x52   : > { %v2290_v3 = vrot.slane %v2289_v56, 4  ;;  %v414_v10 = vor.u32 %v413_v1, %v410_v63  ;;  %v2305_v16 = vsel %vm7022_vm2, %v2300_v7, %v2304_v58  ;;  %v2310_v18 = vshll.u32 %v5360_v52, 16  ;;  %v7264_v5 = vld [vmem:[%s6990_s10 + $0x6c] sm:$0xf] }
  0x53   : > { %v406_v61 = vsel %vm7022_vm2, %v401_v54, %v405_v21  ;;  %v2316_v21 = vshll.u32 %v7233_v60, 16  ;;  %v424_v30 = vor.u32 %v423_v11, %v419_v9  ;;  %v429_v34 = vrot.slane %v427_v12, 5 }
  0x54   : > { %v5169_v2 = vcombine.low %v396_v53, %v406_v61  ;;  %v2295_v15 = vsel %vm7022_vm2, %v2290_v3, %v2294_v44  ;;  %v415_v29 = vrot.slane %v414_v10, 4  ;;  %v2309_v38 = vrot.slane %v2307_v13, 4 }
  0x55   : > { %v5409_v26 = vcombine.low %v2295_v15, %v2305_v16  ;;  %v2312_v39 = vrot.slane %v2310_v18, 5  ;;  %v2318_v40 = vrot.slane %v2316_v21, 5  ;;  %v2320_v42 = vshrl.u32 %v7233_v60, 16  ;;  %v7276_v21 = vld [vmem:[%s6990_s10 + $0x70] sm:$0xf] }
  0x56   : > { %5979 = vmatprep.mubr.bf16.mxu1 %v5169_v2  ;;  %v420_v31 = vsel %vm7022_vm2, %v415_v29, %v419_v9  ;;  %v425_v44 = vrot.slane %v424_v30, 4  ;;  %v2326_v47 = vshll.u32 %v7242_v17, 16  ;;  %v432_v49 = vshrl.u32 %v7246_v25, 16  ;;  %v6782_v9 = vld [vmem:[%s6990_s10 + $0xb4] sm:$0xff]  }
  0x57   : > { %6171 = vmatprep.mubr.bf16.mxu0 %v5409_v26  ;;  %v2313_v52 = vor.u32 %v2312_v39, %v2309_v38  ;;  %v2322_v53 = vrot.slane %v2320_v42, 4  ;;  %v435_v54 = vshll.u32 %v7246_v25, 16  ;;  %v441_v55 = vshll.u32 %v7249_v35, 16 }
  0x58   : > { %v430_v48 = vsel %vm7022_vm2, %v425_v44, %v429_v34  ;;  %v2328_v56 = vrot.slane %v2326_v47, 5  ;;  %v434_v57 = vrot.slane %v432_v49, 4  ;;  %v445_v58 = vshrl.u32 %v7249_v35, 16  ;;  %v7287_v47 = vld [vmem:[%s6990_s10 + $0x78] sm:$0xf] }
  0x59   : > { %v5170_v59 = vcombine.low %v420_v31, %v430_v48  ;;  %v2314_v61 = vrot.slane %v2313_v52, 4  ;;  %v2323_v63 = vor.u32 %v2322_v53, %v2318_v40  ;;  %v437_v1 = vrot.slane %v435_v54, 5  ;;  %v7298_v54 = vld [vmem:[%s6990_s10 + $0x7c] sm:$0xf] }
  0x5a   : > { %v443_v2 = vrot.slane %v441_v55, 5  ;;  %v447_v3 = vrot.slane %v445_v58, 4  ;;  %v451_v7 = vshll.u32 %v228_v43, 16  ;;  %v5443_v10 = vrot.slane %v5427_v50, 9  ;;  %v230_v58 = vld [vmem:[%s6990_s10 + $0x80] sm:$0x1] }
  0x5b   : > { %5980 = vmatmul.mubr.bf16.gmra.mrb[12].mxu1 %v5170_v59  ;;  %v2319_v11 = vsel %vm7022_vm2, %v2314_v61, %v2318_v40  ;;  %v2324_v12 = vrot.slane %v2323_v63, 4  ;;  %v438_v13 = vor.u32 %v437_v1, %v434_v57  ;;  %v2910_v15 = vrot.slane %v7003_v23, 5  ;;  %v229_v40 = vld [vmem:[%s6990_s10 + $0x74] sm:$0x1]  ;;  %v5428_v23 = vld [vmem:[%s6990_s10 + $0x18] sm:$0xe] }
  0x5c   : > { %v448_v16 = vor.u32 %v447_v3, %v443_v2  ;;  %v453_v18 = vrot.slane %v451_v7, 5  ;;  %v456_v26 = vshrl.u32 %v7264_v5, 16  ;;  %v459_v29 = vshll.u32 %v7264_v5, 16 }
  0x5d   : > { %v2329_v30 = vsel %vm7022_vm2, %v2324_v12, %v2328_v56  ;;  %v439_v34 = vrot.slane %v438_v13, 4  ;;  %v2911_v38 = vsel %vm7268_vm5, %v5443_v10, %v2910_v15  ;;  %v2912_v39 = vrot.slane %v2910_v15, 4  ;;  %v5429_v13 = vld [vmem:[%s6990_s10 + $0x24] sm:$0xe] }
  0x5e   : > { %v5410_v42 = vcombine.low %v2319_v11, %v2329_v30  ;;  %v449_v43 = vrot.slane %v448_v16, 4  ;;  %v458_v31 = vrot.slane %v456_v26, 4  ;;  %v461_v44 = vrot.slane %v459_v29, 5  ;;  %v7320_v16 = vld [vmem:[%s6990_s10 + $0x84] sm:$0xf]  ;;  %v6695_v29 = vld [vmem:[%s8809_s1 + $0x188] sm:$0xff]  }
  0x5f   : > { %v444_v49 = vsel %vm7022_vm2, %v439_v34, %v443_v2  ;;  %v2914_v50 = vsel %vm7268_vm5, %v2912_v39, %v2913_v41  ;;  %v465_v52 = vshll.u32 %v7276_v21, 16  ;;  %v469_v53 = vshrl.u32 %v7276_v21, 16 }
  0x60   : > { %6172 = vmatmul.mubr.bf16.gmra.mrb[12].mxu0 %v5410_v42  ;;  %v454_v55 = vsel %vm7022_vm2, %v449_v43, %v453_v18  ;;  %v5475_v48 = vcombine.low %v2911_v38, %v2914_v50  ;;  %v462_v56 = vor.u32 %v461_v44, %v458_v31  ;;  %v475_v57 = vshll.u32 %v229_v40, 16  ;;  %v7328_v40 = vld [vmem:[%s6990_s10 + $0x88] sm:$0xf]  ;;  %v231_v31 = vld [vmem:[%s6990_s10 + $0x8c] sm:$0x1] }
  0x61   : > { %v5171_v59 = vcombine.low %v444_v49, %v454_v55  ;;  %v467_v24 = vrot.slane %v465_v52, 5  ;;  %v471_v61 = vrot.slane %v469_v53, 4  ;;  %v5444_v63 = vrot.slane %v5428_v23, 9 }
  0x62   : > { %6207 = vmatprep.mubr.bf16.mxu0 %v5475_v48  ;;  %v463_v41 = vrot.slane %v462_v56, 4  ;;  %v477_v1 = vrot.slane %v475_v57, 5  ;;  %v2921_v2 = vsel %vm7268_vm5, %v7071_v36, %v2920_v32  ;;  %v480_v3 = vshrl.u32 %v7287_v47, 16 }
  0x63   : > { %5983 = vmatprep.mubr.bf16.mxu1 %v5171_v59  ;;  %v472_v7 = vor.u32 %v471_v61, %v467_v24  ;;  %v2918_v10 = vsel %vm7268_vm5, %v5444_v63, %v2917_v27  ;;  %v483_v11 = vshll.u32 %v7287_v47, 16  ;;  %v489_v12 = vshll.u32 %v7298_v54, 16 }
  0x64   : > { %v468_v8 = vsel %vm7022_vm2, %v463_v41, %v467_v24  ;;  %v5476_v15 = vcombine.low %v2918_v10, %v2921_v2  ;;  %v482_v32 = vrot.slane %v480_v3, 4  ;;  %v493_v36 = vshrl.u32 %v7298_v54, 16  ;;  %v7349_v2 = vld [vmem:[%s6990_s10 + $0x90] sm:$0xf]  ;;  %v7352_v3 = vld [vmem:[%s6990_s10 + $0x94] sm:$0xf] }
  0x65   : > { %v473_v62 = vrot.slane %v472_v7, 4  ;;  %v485_v18 = vrot.slane %v483_v11, 5  ;;  %v491_v26 = vrot.slane %v489_v12, 5  ;;  %v499_v27 = vshll.u32 %v230_v58, 16 }
  0x66   : > { %v495_v30 = vrot.slane %v493_v36, 4  ;;  %v5445_v34 = vrot.slane %v5429_v13, 9  ;;  %v2924_v38 = vrot.slane %v7075_v45, 5  ;;  %v2927_v39 = vrot.slane %v7081_v51, 5  ;;  %v5430_v45 = vld [vmem:[%s6990_s10 + $0x30] sm:$0xe] }
  0x67   : > { %v478_v23 = vsel %vm7022_vm2, %v473_v62, %v477_v1  ;;  %v486_v42 = vor.u32 %v485_v18, %v482_v32  ;;  %v501_v43 = vrot.slane %v499_v27, 5  ;;  %v504_v44 = vshrl.u32 %v7320_v16, 16  ;;  %v232_v62 = vld [vmem:[%s6990_s10 + $0x98] sm:$0x1] }
  0x68   : > { %v5172_v49 = vcombine.low %v468_v8, %v478_v23  ;;  %6208 = vmatmul.mubr.bf16.vlgmr.msra.gmra.mrb[0].mxu0 %v5476_v15  ;;  %v496_v50 = vor.u32 %v495_v30, %v491_v26  ;;  %v2925_v52 = vsel %vm7268_vm5, %v5445_v34, %v2924_v38  ;;  %v2926_v53 = vrot.slane %v2924_v38, 4  ;;  %v6699_v30 = vld [vmem:[%s8809_s1 + $0x198] sm:$0xff]  }
  0x69   : > { %6240 = vmatpush3.bf16.msra.mxu0 %v7211_v6  ;;  %v487_v51 = vrot.slane %v486_v42, 4  ;;  %v506_v55 = vrot.slane %v504_v44, 4  ;;  %v507_v48 = vshll.u32 %v7320_v16, 16  ;;  %v513_v56 = vshll.u32 %v7328_v40, 16  ;;  %v6697_v6 = vld [vmem:[%s8809_s1 + $0x190] sm:$0xff]  }
  0x6a   : > { %5984 = vmatmul.mubr.bf16.gmra.mrb[16].mxu1 %v5172_v49  ;;  %v497_v57 = vrot.slane %v496_v50, 4  ;;  %v2928_v58 = vsel %vm7268_vm5, %v2926_v53, %v2927_v39  ;;  %v517_v59 = vshrl.u32 %v7328_v40, 16  ;;  %v523_v24 = vshll.u32 %v231_v31, 16  ;;  %6241 = vmatprep.subr.bf16.mxu0 %v6695_v29  ;;  %v5431_v38 = vld [vmem:[%s6990_s10 + $0x3c] sm:$0xe] }
  0x6b   : > { %v492_v61 = vsel %vm7022_vm2, %v487_v51, %v491_v26  ;;  %v5477_v63 = vcombine.low %v2925_v52, %v2928_v58  ;;  %v509_v41 = vrot.slane %v507_v48, 5  ;;  %v515_v1 = vrot.slane %v513_v56, 5  ;;  %v7370_v31 = vld [vmem:[%s6990_s10 + $0x9c] sm:$0xf]  ;;  %v7379_v48 = vld [vmem:[%s6990_s10 + $0xa0] sm:$0xf] }
  0x6c   : > { %v502_v7 = vsel %vm7022_vm2, %v497_v57, %v501_v43  ;;  %v519_v10 = vrot.slane %v517_v59, 4  ;;  %v525_v11 = vrot.slane %v523_v24, 5  ;;  %v5446_v12 = vrot.slane %v5430_v45, 9  ;;  %v6703_v56 = vld [vmem:[%s8809_s1 + $0x1a0] sm:$0xff]  }
  0x6d   : > { %v5173_v13 = vcombine.low %v492_v61, %v502_v7  ;;  %6211 = vmatprep.mubr.bf16.mxu0 %v5477_v63  ;;  %v510_v8 = vor.u32 %v509_v41, %v506_v55  ;;  %v2931_v15 = vrot.slane %v7106_v33, 5  ;;  %v2934_v32 = vrot.slane %v7117_v46, 5  ;;  %6242 = vmatpush3.bf16.msra.mxu0 %v6695_v29  ;;  %v233_v61 = vld [vmem:[%s6990_s10 + $0xa4] sm:$0x1] }
  0x6e   : > { %v520_v36 = vor.u32 %v519_v10, %v515_v1  ;;  %v528_v18 = vshrl.u32 %v7349_v2, 16  ;;  %v531_v26 = vshll.u32 %v7349_v2, 16  ;;  %v537_v27 = vshll.u32 %v7352_v3, 16  ;;  %6243 = vmatprep.subr.bf16.mxu0 %v6697_v6 }
  0x6f   : > { %5987 = vmatprep.mubr.bf16.mxu1 %v5173_v13  ;;  %v511_v34 = vrot.slane %v510_v8, 4  ;;  %v2932_v33 = vsel %vm7268_vm5, %v5446_v12, %v2931_v15  ;;  %v2933_v46 = vrot.slane %v2931_v15, 4  ;;  %v541_v29 = vshrl.u32 %v7352_v3, 16  ;;  %v5432_v15 = vld [vmem:[%s6990_s10 + $0x48] sm:$0xe] }
  0x70   : > { %v521_v39 = vrot.slane %v520_v36, 4  ;;  %v530_v23 = vrot.slane %v528_v18, 4  ;;  %v533_v42 = vrot.slane %v531_v26, 5  ;;  %v539_v43 = vrot.slane %v537_v27, 5  ;;  %v7404_v27 = vld [vmem:[%s6990_s10 + $0xa8] sm:$0xf] }
  0x71   : > { %v516_v44 = vsel %vm7022_vm2, %v511_v34, %v515_v1  ;;  %v2935_v49 = vsel %vm7268_vm5, %v2933_v46, %v2934_v32  ;;  %v543_v50 = vrot.slane %v541_v29, 4  ;;  %v547_v52 = vshll.u32 %v232_v62, 16  ;;  %6244 = vmatpush3.bf16.msra.mxu0 %v6697_v6  ;;  %v6707_v32 = vld [vmem:[%s8809_s1 + $0x1a8] sm:$0xff]  }
  0x72   : > { %v526_v53 = vsel %vm7022_vm2, %v521_v39, %v525_v11  ;;  %v5478_v45 = vcombine.low %v2932_v33, %v2935_v49  ;;  %v534_v51 = vor.u32 %v533_v42, %v530_v23  ;;  %v5447_v55 = vrot.slane %v5431_v38, 9  ;;  %6245 = vmatprep.subr.bf16.mxu0 %v6699_v30  ;;  %v7407_v29 = vld [vmem:[%s6990_s10 + $0xac] sm:$0xf] }
  0x73   : > { %v5174_v57 = vcombine.low %v516_v44, %v526_v53  ;;  %v544_v58 = vor.u32 %v543_v50, %v539_v43  ;;  %v549_v59 = vrot.slane %v547_v52, 5  ;;  %v2938_v24 = vrot.slane %v7140_v19, 5  ;;  %v5433_v53 = vld [vmem:[%s6990_s10 + $0x54] sm:$0xe] }
  0x74   : > { %6212 = vmatmul.mubr.bf16.gmra.mrb[4].mxu0 %v5478_v45  ;;  %v535_v6 = vrot.slane %v534_v51, 4  ;;  %v2941_v63 = vrot.slane %v7148_v28, 5  ;;  %v552_v41 = vshrl.u32 %v7370_v31, 16  ;;  %v555_v1 = vshll.u32 %v7370_v31, 16  ;;  %v6711_v45 = vld [vmem:[%s8809_s1 + $0x1b0] sm:$0xff]  }
  0x75   : > { %5988 = vmatmul.mubr.bf16.gmra.mrb[20].mxu1 %v5174_v57  ;;  %v545_v7 = vrot.slane %v544_v58, 4  ;;  %v2939_v10 = vsel %vm7268_vm5, %v5447_v55, %v2938_v24  ;;  %v2940_v11 = vrot.slane %v2938_v24, 4  ;;  %v561_v12 = vshll.u32 %v7379_v48, 16  ;;  %6246 = vmatpush3.bf16.msra.mxu0 %v6699_v30 }
  0x76   : > { %v540_v19 = vsel %vm7022_vm2, %v535_v6, %v539_v43  ;;  %v554_v13 = vrot.slane %v552_v41, 4  ;;  %v557_v28 = vrot.slane %v555_v1, 5  ;;  %v565_v8 = vshrl.u32 %v7379_v48, 16  ;;  %6247 = vmatprep.subr.bf16.mxu0 %v6703_v56  ;;  %v234_v43 = vld [vmem:[%s6990_s10 + $0xb0] sm:$0x1] }
  0x77   : > { %v550_v36 = vsel %vm7022_vm2, %v545_v7, %v549_v59  ;;  %v2942_v62 = vsel %vm7268_vm5, %v2940_v11, %v2941_v63  ;;  %v563_v18 = vrot.slane %v561_v12, 5  ;;  %v571_v26 = vshll.u32 %v233_v61, 16  ;;  %v7427_v41 = vld [vmem:[%s6990_s10 + $0xb4] sm:$0xf]  ;;  %v7432_v12 = vld [vmem:[%s6990_s10 + $0xb8] sm:$0xf] }
  0x78   : > { %v5175_v30 = vcombine.low %v540_v19, %v550_v36  ;;  %v5479_v34 = vcombine.low %v2939_v10, %v2942_v62  ;;  %v558_v33 = vor.u32 %v557_v28, %v554_v13  ;;  %v567_v46 = vrot.slane %v565_v8, 4  ;;  %v235_v19 = vld [vmem:[%s6990_s10 + $0xbc] sm:$0x1] }
  0x79   : > { %v573_v38 = vrot.slane %v571_v26, 5  ;;  %v5448_v39 = vrot.slane %v5432_v15, 9  ;;  %v2945_v23 = vrot.slane %v7175_v14, 5  ;;  %v2948_v42 = vrot.slane %v7181_v22, 5  ;;  %6248 = vmatpush3.bf16.msra.mxu0 %v6703_v56  ;;  %v6715_v13 = vld [vmem:[%s8809_s1 + $0x1b8] sm:$0xff]  }
  0x7a   : > { %5991 = vmatprep.mubr.bf16.mxu1 %v5175_v30  ;;  %6215 = vmatprep.mubr.bf16.mxu0 %v5479_v34  ;;  %v559_v44 = vrot.slane %v558_v33, 4  ;;  %v568_v49 = vor.u32 %v567_v46, %v563_v18  ;;  %v576_v50 = vshrl.u32 %v7404_v27, 16  ;;  %v579_v52 = vshll.u32 %v7404_v27, 16  ;;  %v5434_v30 = vld [vmem:[%s6990_s10 + $0x60] sm:$0xe] }
  0x7b   : > { %v2946_v14 = vsel %vm7268_vm5, %v5448_v39, %v2945_v23  ;;  %v2947_v22 = vrot.slane %v2945_v23, 4  ;;  %v585_v51 = vshll.u32 %v7407_v29, 16  ;;  %v589_v55 = vshrl.u32 %v7407_v29, 16  ;;  %6249 = vmatprep.subr.bf16.mxu0 %v6707_v32  ;;  %v5364_v39 = vld [vmem:[%s6990_s10 + $0x70] sm:$0xf] }
  0x7c   : > { %v564_v56 = vsel %vm7022_vm2, %v559_v44, %v563_v18  ;;  %v569_v57 = vrot.slane %v568_v49, 4  ;;  %v578_v58 = vrot.slane %v576_v50, 4  ;;  %v581_v59 = vrot.slane %v579_v52, 5  ;;  %v7454_v44 = vld [vmem:[%s8809_s1 + $0x1c0] sm:$0xff]  }
  0x7d   : > { %v2949_v24 = vsel %vm7268_vm5, %v2947_v22, %v2948_v42  ;;  %v587_v61 = vrot.slane %v585_v51, 5  ;;  %v591_v6 = vrot.slane %v589_v55, 4  ;;  %v595_v63 = vshll.u32 %v234_v43, 16  ;;  %6250 = vmatpush3.bf16.msra.mxu0 %v6707_v32  ;;  %v5435_v43 = vld [vmem:[%s6990_s10 + $0x6c] sm:$0xe] }
  0x7e   : > { %v574_v1 = vsel %vm7022_vm2, %v569_v57, %v573_v38  ;;  %v5480_v7 = vcombine.low %v2946_v14, %v2949_v24  ;;  %v582_v10 = vor.u32 %v581_v59, %v578_v58  ;;  %v5449_v11 = vrot.slane %v5433_v53, 9  ;;  %6251 = vmatprep.subr.bf16.mxu0 %v6711_v45  ;;  %v5365_v55 = vld [vmem:[%s6990_s10 + $0x74] sm:$0x1]  ;;  %v5436_v24 = vld [vmem:[%s6990_s10 + $0x78] sm:$0xe] }
  0x7f   : > { %v5176_v28 = vcombine.low %v564_v56, %v574_v1  ;;  %v592_v8 = vor.u32 %v591_v6, %v587_v61  ;;  %v597_v15 = vrot.slane %v595_v63, 5  ;;  %v2952_v32 = vrot.slane %v7206_v0, 5 }
  0x80   : > { %6216 = vmatmul.mubr.bf16.gmra.mrb[8].mxu0 %v5480_v7  ;;  %v583_v36 = vrot.slane %v582_v10, 4  ;;  %v2955_v62 = vrot.slane %v7218_v20, 5  ;;  %v600_v18 = vshrl.u32 %v7427_v41, 16  ;;  %v603_v26 = vshll.u32 %v7427_v41, 16 }
  0x81   : > { %5992 = vmatmul.mubr.bf16.gmra.mrb[24].mxu1 %v5176_v28  ;;  %v593_v34 = vrot.slane %v592_v8, 4  ;;  %v2953_v33 = vsel %vm7268_vm5, %v5449_v11, %v2952_v32  ;;  %v2954_v46 = vrot.slane %v2952_v32, 4  ;;  %v609_v38 = vshll.u32 %v7432_v12, 16  ;;  %6252 = vmatpush3.bf16.msra.mxu0 %v6711_v45  ;;  %v7467_v11 = vld [vmem:[%s6990_s10 + $0x7c] sm:$0xf] }
  0x82   : > { %v588_v0 = vsel %vm7022_vm2, %v583_v36, %v587_v61  ;;  %v602_v20 = vrot.slane %v600_v18, 4  ;;  %v605_v23 = vrot.slane %v603_v26, 5  ;;  %v613_v42 = vshrl.u32 %v7432_v12, 16  ;;  %6253 = vmatprep.subr.bf16.mxu0 %v6715_v13  ;;  %v6848_v36 = vld [vmem:[%s6990_s10] sm:$0xf] }
  0x83   : > { %v598_v49 = vsel %vm7022_vm2, %v593_v34, %v597_v15  ;;  %v2956_v50 = vsel %vm7268_vm5, %v2954_v46, %v2955_v62  ;;  %v611_v52 = vrot.slane %v609_v38, 5  ;;  %v619_v53 = vshll.u32 %v235_v19, 16  ;;  %v5370_v15 = vld [vmem:[%s6990_s10 + $0x88] sm:$0xf]  ;;  %v7482_v62 = vld [vmem:[%s6990_s10 + $0x4] sm:$0xf] }
  0x84   : > { %v5177_v45 = vcombine.low %v588_v0, %v598_v49  ;;  %v5481_v14 = vcombine.low %v2953_v33, %v2956_v50  ;;  %v606_v22 = vor.u32 %v605_v23, %v602_v20  ;;  %v615_v51 = vrot.slane %v613_v42, 4  ;;  %v5371_v26 = vld [vmem:[%s6990_s10 + $0x8c] sm:$0x1]  ;;  %v5374_v23 = vld [vmem:[%s6990_s10 + $0x98] sm:$0x1] }
  0x85   : > { %v621_v56 = vrot.slane %v619_v53, 5  ;;  %v5450_v57 = vrot.slane %v5434_v30, 9  ;;  %v2959_v58 = vrot.slane %v7233_v60, 5  ;;  %v2962_v59 = vrot.slane %v7242_v17, 5  ;;  %6254 = vmatpush3.bf16.msra.mxu0 %v6715_v13  ;;  %v7470_v17 = vld [vmem:[%s6990_s10 + $0x80] sm:$0x1] }
  0x86   : > { %5995 = vmatprep.mubr.bf16.mxu1 %v5177_v45  ;;  %6219 = vmatprep.mubr.bf16.mxu0 %v5481_v14  ;;  %v607_v61 = vrot.slane %v606_v22, 4  ;;  %v616_v6 = vor.u32 %v615_v51, %v611_v52  ;;  %v5451_v63 = vrot.slane %v5435_v43, 9  ;;  %v2966_v1 = vrot.slane %v5364_v39, 5  ;;  %v5437_v30 = vld [vmem:[%s6990_s10 + $0x84] sm:$0xe] }
  0x87   : > { %v2960_v7 = vsel %vm7268_vm5, %v5450_v57, %v2959_v58  ;;  %v2961_v10 = vrot.slane %v2959_v58, 4  ;;  %v2969_v60 = vrot.slane %v5365_v55, 5  ;;  %6287 = vmatprep.subr.bf16.mxu0 %v7454_v44  ;;  %v5187_v18 = vcombine.low %v6848_v36, %v7482_v62  ;;  %v5373_v39 = vld [vmem:[%s6990_s10 + $0x94] sm:$0xf]  ;;  %v5438_v42 = vld [vmem:[%s6990_s10 + $0x90] sm:$0xe] }
  0x88   : > { %v612_v19 = vsel %vm7022_vm2, %v607_v61, %v611_v52  ;;  %v617_v13 = vrot.slane %v616_v6, 4  ;;  %v2967_v28 = vsel %vm7268_vm5, %v5451_v63, %v2966_v1  ;;  %v2968_v8 = vrot.slane %v2966_v1, 4  ;;  %v5439_v50 = vld [vmem:[%s6990_s10 + $0x9c] sm:$0xe]  ;;  %v5376_v14 = vld [vmem:[%s6990_s10 + $0xa0] sm:$0xf] }
  0x89   : > { %v2963_v32 = vsel %vm7268_vm5, %v2961_v10, %v2962_v59  ;;  %v5452_v38 = vrot.slane %v5436_v24, 9  ;;  %v2973_v43 = vrot.slane %v7467_v11, 5  ;;  %v2976_v49 = vrot.slane %v7470_v17, 5  ;;  %v5377_v22 = vld [vmem:[%s6990_s10 + $0xa4] sm:$0x1] }
  0x8a   : > { %v622_v34 = vsel %vm7022_vm2, %v617_v13, %v621_v56  ;;  %v5482_v33 = vcombine.low %v2960_v7, %v2963_v32  ;;  %v2970_v46 = vsel %vm7268_vm5, %v2968_v8, %v2969_v60  ;;  %v5453_v52 = vrot.slane %v5437_v30, 9  ;;  %v5379_v59 = vld [vmem:[%s6990_s10 + $0xac] sm:$0xf]  ;;  %v7506_v61 = vld [vmem:[%s6990_s10 + $0x10] sm:$0xf] }
  0x8b   : > { %v5178_v0 = vcombine.low %v612_v19, %v622_v34  ;;  %v5483_v20 = vcombine.low %v2967_v28, %v2970_v46  ;;  %v2980_v53 = vrot.slane %v5370_v15, 5  ;;  %v2983_v45 = vrot.slane %v5371_v26, 5  ;;  %v6850_v24 = vld [vmem:[%s6990_s10 + $0xc] sm:$0xf]  ;;  %v6852_v8 = vld [vmem:[%s6990_s10 + $0x18] sm:$0xf] }
  0x8c   : > { %6220 = vmatmul.mubr.bf16.gmra.mrb[12].mxu0 %v5482_v33  ;;  %v2974_v51 = vsel %vm7268_vm5, %v5452_v38, %v2973_v43  ;;  %v2975_v55 = vrot.slane %v2973_v43, 4  ;;  %v2987_v58 = vrot.slane %v5373_v39, 5  ;;  %v5188_v6 = vcombine.low %v6850_v24, %v7506_v61  ;;  %v6706_v19 = vld [vmem:[%s8809_s1 + $0x88] sm:$0xff]   ;;  %v7518_v15 = vld [vmem:[%s6990_s10 + $0x1c] sm:$0xf] }
  0x8d   : > { %5996 = vmatmul.mubr.bf16.gmra.mrb[28].mxu1 %v5178_v0  ;;  %6223 = vmatprep.mubr.bf16.mxu0 %v5483_v20  ;;  %v2981_v56 = vsel %vm7268_vm5, %v5453_v52, %v2980_v53  ;;  %v2982_v57 = vrot.slane %v2980_v53, 4  ;;  %v5454_v1 = vrot.slane %v5438_v42, 9  ;;  %v2990_v7 = vrot.slane %v5374_v23, 5  ;;  %v5380_v30 = vld [vmem:[%s6990_s10 + $0xb0] sm:$0x1] }
  0x8e   : > { %6015 = vmatprep.mubr.bf16.mxu1 %v5187_v18  ;;  %v2977_v63 = vsel %vm7268_vm5, %v2975_v55, %v2976_v49  ;;  %v2989_v13 = vrot.slane %v2987_v58, 4  ;;  %v5455_v28 = vrot.slane %v5439_v50, 9  ;;  %v5189_v32 = vcombine.low %v6852_v8, %v7518_v15  ;;  %v5440_v34 = vld [vmem:[%s6990_s10 + $0xa8] sm:$0xe]  ;;  %v5382_v33 = vld [vmem:[%s6990_s10 + $0xb8] sm:$0xf] }
  0x8f   : > { %v5484_v10 = vcombine.low %v2974_v51, %v2977_v63  ;;  %v2984_v60 = vsel %vm7268_vm5, %v2982_v57, %v2983_v45  ;;  %v2994_v18 = vrot.slane %v5376_v14, 5  ;;  %v2997_v26 = vrot.slane %v5377_v22, 5  ;;  %v5383_v20 = vld [vmem:[%s6990_s10 + $0xbc] sm:$0x1]  ;;  %v5441_v23 = vld [vmem:[%s6990_s10 + $0xb4] sm:$0xe] }
  0x90   : > { %v5485_v36 = vcombine.low %v2981_v56, %v2984_v60  ;;  %v3001_v38 = vrot.slane %v5379_v59, 5  ;;  %v2988_v39 = vsel %vm7268_vm5, %v5454_v1, %v2987_v58  ;;  %v2991_v0 = vsel %vm7268_vm5, %v2989_v13, %v2990_v7  ;;  %v6710_v50 = vld [vmem:[%s8809_s1 + $0x90] sm:$0xff]   ;;  %v5385_v53 = vld [vmem:[%s6990_s10 + $0xc4] sm:$0xf]  ;;  %v7541_v51 = vld [vmem:[%s6990_s10 + $0x28] sm:$0xf] }
  0x91   : > { %v2996_v46 = vrot.slane %v2994_v18, 4  ;;  %v2995_v42 = vsel %vm7268_vm5, %v5455_v28, %v2994_v18  ;;  %v3008_v49 = vrot.slane %v5382_v33, 5  ;;  %v5456_v52 = vrot.slane %v5440_v34, 9  ;;  %v6854_v22 = vld [vmem:[%s6990_s10 + $0x24] sm:$0xf]  ;;  %v6714_v1 = vld [vmem:[%s8809_s1 + $0x98] sm:$0xff]  }
  0x92   : > { %v5486_v45 = vcombine.low %v2988_v39, %v2991_v0  ;;  %v3003_v14 = vrot.slane %v3001_v38, 4  ;;  %v5190_v55 = vcombine.low %v6854_v22, %v7541_v51  ;;  %v6856_v57 = vld [vmem:[%s6990_s10 + $0x30] sm:$0xf]  ;;  %v7546_v58 = vld [vmem:[%s6990_s10 + $0x34] sm:$0xf]  ;;  %v5457_v24 = vrot.slane %v5441_v23, 9 }
  0x93   : > { %v2998_v43 = vsel %vm7268_vm5, %v2996_v46, %v2997_v26  ;;  %v5191_v59 = vcombine.low %v6856_v57, %v7546_v58  ;;  %v3011_v63 = vrot.slane %v5383_v20, 5  ;;  %v5442_v7 = vld [vmem:[%s6990_s10 + $0xc0] sm:$0xe]  ;;  %v3002_v60 = vsel %vm7268_vm5, %v5456_v52, %v3001_v38  ;;  %v5386_v8 = vld [vmem:[%s6990_s10 + $0xc8] sm:$0x1]  ;;  %v6717_v22 = vld [vmem:[%s6990_s10 + $0x18] sm:$0xff]  }
  0x94   : > { %6224 = vmatmul.mubr.bf16.gmra.mrb[16].mxu0 %v5484_v10  ;;  %v5487_v56 = vcombine.low %v2995_v42, %v2998_v43  ;;  %v3015_v10 = vrot.slane %v5385_v53, 5  ;;  %v3009_v13 = vsel %vm7268_vm5, %v5457_v24, %v3008_v49  ;;  %v5458_v18 = vrot.slane %v5442_v7, 9  ;;  %v6858_v26 = vld [vmem:[%s6990_s10 + $0x3c] sm:$0xf]  ;;  %v6860_v39 = vld [vmem:[%s6990_s10 + $0x48] sm:$0xf] }
  0x95   : > { %6016 = vmatmul.mubr.bf16.vlgmr.msra.gmra.mrb[0].mxu1 %v5188_v6  ;;  %6227 = vmatprep.mubr.bf16.mxu0 %v5485_v36  ;;  %v3010_v6 = vrot.slane %v3008_v49, 4  ;;  %v3018_v38 = vrot.slane %v5386_v8, 5  ;;  %v7572_v0 = vld [vmem:[%s6990_s10 + $0x4c] sm:$0xf]  ;;  %v6731_v49 = vld [vmem:[%s8809_s1 + $0xb0] sm:$0xff]   ;;  %v2368_v52 = vshrl.u32 %v7467_v11, 16 }
  0x96   : > { %6048 = vmatpush3.bf16.msra.mxu1 %v7192_v4  ;;  %6019 = vmatprep.mubr.bf16.mxu1 %v5189_v32  ;;  %v3004_v4 = vrot.slane %v5380_v30, 5  ;;  %v6719_v32 = vld [vmem:[%s8809_s1 + $0xa0] sm:$0xff]   ;;  %v3017_v46 = vrot.slane %v3015_v10, 4  ;;  %v5193_v20 = vcombine.low %v6860_v39, %v7572_v0  ;;  %v6725_v23 = vld [vmem:[%s8809_s1 + $0xa8] sm:$0xff]   ;;  %v3016_v42 = vsel %vm7268_vm5, %v5458_v18, %v3015_v10  ;;  %v6723_v18 = vld [vmem:[%s6990_s10 + $0x30] sm:$0xff]  }
  0x97   : > { %6049 = vmatprep.subr.bf16.mxu1 %v6706_v19  ;;  %v3012_v28 = vsel %vm7268_vm5, %v3010_v6, %v3011_v63  ;;  %v7567_v30 = vld [vmem:[%s6990_s10 + $0x40] sm:$0xf]  ;;  %v7600_v57 = vrot.slane %v2368_v52, 4  ;;  %v6720_v6 = vld [vmem:[%s6990_s10 + $0x24] sm:$0xff]   ;;  %v1278_v7 = vrot.slane %v7506_v61, 5  ;;  %v2374_v8 = vshll.u32 %v7470_v17, 16 }
  0x98   : > { %v5192_v34 = vcombine.low %v6858_v26, %v7567_v30  ;;  %v5489_v33 = vcombine.low %v3009_v13, %v3012_v28  ;;  %v3019_v43 = vsel %vm7268_vm5, %v3017_v46, %v3018_v38  ;;  %v1218_v63 = vld [vmem:[%s6990_s10] sm:$0xe]  ;;  %v1219_v10 = vld [vmem:[%s6990_s10 + $0xc] sm:$0xe]  ;;  %v1285_v13 = vrot.slane %v7518_v15, 5 }
  0x99   : > { %v5490_v53 = vcombine.low %v3016_v42, %v3019_v43  ;;  %v1221_v61 = vld [vmem:[%s6990_s10 + $0x24] sm:$0xe]  ;;  %v5198_v15 = vcombine.low %v7320_v16, %v7328_v40  ;;  %v5199_v26 = vcombine.low %v7349_v2, %v7352_v3  ;;  %v5211_v17 = vrot.slane %v1218_v63, 9  ;;  %v6866_v38 = vld [vmem:[%s6990_s10 + $0x20] sm:$0x1]  ;;  %v6732_v2 = vld [vmem:[%s6990_s10 + $0x54] sm:$0xff]  }
  0x9a   : > { %6050 = vmatpush3.bf16.msra.mxu1 %v6706_v19  ;;  %v3005_v19 = vsel %vm7268_vm5, %v3003_v14, %v3004_v4  ;;  %v7589_v14 = vld [vmem:[%s6990_s10 + $0x58] sm:$0xf]  ;;  %v1287_v46 = vrot.slane %v1285_v13, 4  ;;  %v1288_v39 = vrot.slane %v6866_v38, 5  ;;  %v6867_v43 = vld [vmem:[%s6990_s10 + $0x2c] sm:$0x1] }
  0x9b   : > { %6051 = vmatprep.subr.bf16.mxu1 %v6710_v50  ;;  %v5488_v36 = vcombine.low %v3002_v60, %v3005_v19  ;;  %v7615_v60 = vld [vmem:[%s8809_s1 + $0xc0] sm:$0xff]   ;;  %v1220_v19 = vld [vmem:[%s6990_s10 + $0x18] sm:$0xe]  ;;  %v6870_v38 = vld [vmem:[%s6990_s10 + $0x50] sm:$0x1]  ;;  %v1320_v16 = vrot.slane %v7589_v14, 5 }
  0x9c   : > { %6228 = vmatmul.mubr.bf16.gmra.mrb[20].mxu0 %v5486_v45  ;;  %v6862_v45 = vld [vmem:[%s6990_s10 + $0x54] sm:$0xf]  ;;  %v7738_v40 = vld [vmem:[%s6990_s10 + $0x64] sm:$0xf] }
  0x9d   : > { %6020 = vmatmul.mubr.bf16.gmra.mrb[4].mxu1 %v5190_v55  ;;  %6231 = vmatprep.mubr.bf16.mxu0 %v5487_v56  ;;  %v5194_v4 = vcombine.low %v6862_v45, %v7589_v14  ;;  %v5195_v55 = vcombine.low %v7246_v25, %v7249_v35  ;;  %v6737_v56 = vld [vmem:[%s8809_s1 + $0xb8] sm:$0xff]   ;;  %v6865_v25 = vld [vmem:[%s6990_s10 + $0x14] sm:$0x1]  ;;  %v6735_v3 = vld [vmem:[%s6990_s10 + $0x60] sm:$0xff]  }
  0x9e   : > { %6023 = vmatprep.mubr.bf16.mxu1 %v5191_v59  ;;  %6052 = vmatpush3.bf16.msra.mxu1 %v6710_v50  ;;  %v2364_v50 = vshll.u32 %v7467_v11, 16  ;;  %v7603_v59 = vld [vmem:[%s6990_s10 + $0x8] sm:$0x1]  ;;  %v1281_v35 = vrot.slane %v6865_v25, 5 }
  0x9f   : > { %6053 = vmatprep.subr.bf16.mxu1 %v6714_v1  ;;  %v1274_v24 = vrot.slane %v7603_v59, 5 }
  0xa0   : > { %v7598_v11 = vrot.slane %v2364_v50, 5 }
  0xa2   : > { %6054 = vmatpush3.bf16.msra.mxu1 %v6714_v1  ;;  %v1271_v1 = vrot.slane %v7482_v62, 5  ;;  %v5196_v62 = vcombine.low %v7264_v5, %v7276_v21  ;;  %v5212_v21 = vrot.slane %v1219_v10, 9  ;;  %v5571_v10 = vld [vmem:[%s6990_s10 + $0x18] sm:$0xf] }
  0xa3   : > { %6055 = vmatprep.subr.bf16.mxu1 %v6719_v32 }
  0xa4   : > { %6232 = vmatmul.mubr.bf16.gmra.mrb[24].mxu0 %v5488_v36  ;;  %v5197_v36 = vcombine.low %v7287_v47, %v7298_v54  ;;  %v1273_v5 = vrot.slane %v1271_v1, 4  ;;  %v6727_v47 = vld [vmem:[%s8809_s1 + $0x1c8] sm:$0xff]   ;;  %v5213_v54 = vrot.slane %v1220_v19, 9  ;;  %v7658_v59 = vsel %vm7268_vm5, %v5211_v17, %v1271_v1  ;;  %v5572_v19 = vld [vmem:[%s6990_s10 + $0x1c] sm:$0xf] }
  0xa5   : > { %6024 = vmatmul.mubr.bf16.gmra.mrb[8].mxu1 %v5192_v34  ;;  %6235 = vmatprep.mubr.bf16.mxu0 %v5489_v33  ;;  %v1299_v34 = vrot.slane %v7546_v58, 5  ;;  %v1280_v33 = vrot.slane %v1278_v7, 4  ;;  %v5214_v58 = vrot.slane %v1221_v61, 9  ;;  %v1313_v1 = vrot.slane %v7572_v0, 5  ;;  %v6729_v0 = vld [vmem:[%s6990_s10 + $0x48] sm:$0xff]  }
  0xa6   : > { %6027 = vmatprep.mubr.bf16.mxu1 %v5193_v20  ;;  %6056 = vmatpush3.bf16.msra.mxu1 %v6719_v32  ;;  %v1292_v32 = vrot.slane %v7541_v51, 5  ;;  %v1222_v51 = vld [vmem:[%s6990_s10 + $0x30] sm:$0xe]  ;;  %v5200_v20 = vcombine.low %v7370_v31, %v7379_v48  ;;  %v7666_v25 = vsel %vm7268_vm5, %v1273_v5, %v1274_v24  ;;  %v7674_v63 = vsel %vm7268_vm5, %v5213_v54, %v1285_v13  ;;  %v1224_v13 = vld [vmem:[%s6990_s10 + $0x48] sm:$0xe] }
  0xa7   : > { %6057 = vmatprep.subr.bf16.mxu1 %v6725_v23  ;;  %v5215_v50 = vrot.slane %v1222_v51, 9  ;;  %v1301_v52 = vrot.slane %v1299_v34, 4  ;;  %v3778_v5 = vshrl.u32 %v5571_v10, 16  ;;  %v3791_v51 = vshrl.u32 %v5572_v19, 16  ;;  %v6738_v48 = vld [vmem:[%s6990_s10 + $0x6c] sm:$0xff]  }
  0xa8   : > { %v1294_v42 = vrot.slane %v1292_v32, 4  ;;  %v7686_v24 = vsel %vm7268_vm5, %v5214_v58, %v1292_v32  ;;  %v6869_v32 = vld [vmem:[%s6990_s10 + $0x44] sm:$0x1]  ;;  %v5217_v54 = vrot.slane %v1224_v13, 9  ;;  %v5575_v13 = vld [vmem:[%s6990_s10 + $0x28] sm:$0xf] }
  0xa9   : > { %v7696_v61 = vsel %vm7268_vm5, %v5215_v50, %v1299_v34  ;;  %v1309_v17 = vrot.slane %v6869_v32, 5  ;;  %v5573_v50 = vld [vmem:[%s6990_s10 + $0x20] sm:$0x1]  ;;  %v1226_v32 = vld [vmem:[%s6990_s10 + $0x60] sm:$0xe] }
  0xaa   : > { %6058 = vmatpush3.bf16.msra.mxu1 %v6725_v23  ;;  %v5201_v23 = vcombine.low %v7404_v27, %v7407_v29 }
  0xab   : > { %6059 = vmatprep.subr.bf16.mxu1 %v6731_v49 }
  0xac   : > { %6236 = vmatmul.mubr.bf16.gmra.mrb[28].mxu0 %v5490_v53  ;;  %v6868_v53 = vld [vmem:[%s6990_s10 + $0x38] sm:$0x1] }
  0xad   : > { %6028 = vmatmul.mubr.bf16.gmra.mrb[12].mxu1 %v5194_v4  ;;  %6255 = vmatprep.mubr.bf16.mxu0 %v6717_v22  ;;  %v1302_v45 = vrot.slane %v6868_v53, 5  ;;  %v1223_v4 = vld [vmem:[%s6990_s10 + $0x3c] sm:$0xe]  ;;  %v1306_v22 = vrot.slane %v7567_v30, 5  ;;  %v7662_v30 = vsel %vm7268_vm5, %v5212_v21, %v1278_v7  ;;  %v3781_v21 = vshll.u32 %v5571_v10, 16  ;;  %v6743_v53 = vld [vmem:[%s8809_s1 + $0x1e0] sm:$0xff]  }
  0xae   : > { %6031 = vmatprep.mubr.bf16.mxu1 %v5195_v55  ;;  %6060 = vmatpush3.bf16.msra.mxu1 %v6731_v49  ;;  %v1295_v49 = vrot.slane %v6867_v43, 5  ;;  %v7649_v55 = vrot.slane %v2374_v8, 5  ;;  %v6726_v7 = vld [vmem:[%s6990_s10 + $0x3c] sm:$0xff]   ;;  %v7682_v8 = vsel %vm7268_vm5, %v1287_v46, %v1288_v39  ;;  %v1315_v46 = vrot.slane %v1313_v1, 4  ;;  %v5577_v43 = vld [vmem:[%s6990_s10 + $0x30] sm:$0xf] }
  0xaf   : > { %6061 = vmatprep.subr.bf16.mxu1 %v6737_v56  ;;  %v1316_v39 = vrot.slane %v6870_v38, 5  ;;  %v3780_v10 = vrot.slane %v3778_v5, 4 }
  0xb0   : > { %8830 = vst [vmem:[#allocation2_spill] sm:$0xff] %v7649_v55 }
  0xb2   : > { %6062 = vmatpush3.bf16.msra.mxu1 %v6737_v56  ;;  %v6733_v56 = vld [vmem:[%s8809_s1 + $0x1d0] sm:$0xff]  }
  0xb3   : > { %6095 = vmatprep.subr.bf16.mxu1 %v7615_v60 }
  0xb4   : > { %6256 = vmatmul.mubr.bf16.vlgmr.msra.gmra.mrb[0].mxu0 %v6720_v6  ;;  %v7670_v6 = vsel %vm7268_vm5, %v1280_v33, %v1281_v35  ;;  %v7690_v35 = vsel %vm7268_vm5, %v1294_v42, %v1295_v49  ;;  %v3787_v33 = vshll.u32 %v5572_v19, 16  ;;  %v3783_v19 = vrot.slane %v3781_v21, 5  ;;  %v1227_v21 = vld [vmem:[%s6990_s10 + $0x6c] sm:$0xe] }
  0xb5   : > { %6032 = vmatmul.mubr.bf16.gmra.mrb[16].mxu1 %v5196_v62  ;;  %6288 = vmatpush3.bf16.msra.mxu0 %v7454_v44  ;;  %v5216_v62 = vrot.slane %v1223_v4, 9  ;;  %v5220_v58 = vrot.slane %v1227_v21, 9 }
  0xb6   : > { %6035 = vmatprep.mubr.bf16.mxu1 %v5197_v36  ;;  %6259 = vmatprep.mubr.bf16.mxu0 %v6723_v18  ;;  %v7700_v36 = vsel %vm7268_vm5, %v1301_v52, %v1302_v45  ;;  %v1308_v18 = vrot.slane %v1306_v22, 4  ;;  %v5574_v52 = vld [vmem:[%s6990_s10 + $0x24] sm:$0xf]  ;;  %v3815_v45 = vshrl.u32 %v5575_v13, 16 }
  0xb7   : > { %6289 = vmatprep.subr.bf16.mxu0 %v6727_v47  ;;  %v7717_v49 = vsel %vm7268_vm5, %v5216_v62, %v1306_v22  ;;  %v7734_v22 = vld [vmem:[%s6990_s10 + $0x54] sm:$0xe]  ;;  %v3793_v62 = vrot.slane %v3791_v51, 4  ;;  %v3802_v38 = vshrl.u32 %v5574_v52, 16  ;;  %v3805_v28 = vshll.u32 %v5574_v52, 16 }
  0xb8   : > { %v7731_v4 = vsel %vm7268_vm5, %v1308_v18, %v1309_v17  ;;  %v3797_v17 = vshll.u32 %v5573_v50, 16  ;;  %v5218_v5 = vrot.slane %v7734_v22, 9  ;;  %v6747_v50 = vld [vmem:[%s8809_s1 + $0x1e8] sm:$0xff]   ;;  %v1322_v52 = vrot.slane %v1320_v16, 4 }
  0xb9   : > { %6290 = vmatpush3.bf16.msra.mxu0 %v6727_v47  ;;  %v6739_v47 = vld [vmem:[%s8809_s1 + $0x1d8] sm:$0xff]   ;;  %v3784_v22 = vor.u32 %v3783_v19, %v3780_v10  ;;  %v3804_v34 = vrot.slane %v3802_v38, 4  ;;  %v3807_v44 = vrot.slane %v3805_v28, 5  ;;  %v6875_v10 = vld [vmem:[%s6990_s10 + $0x74] sm:$0x1]  ;;  %v3817_v28 = vrot.slane %v3815_v45, 4 }
  0xba   : > { %6291 = vmatprep.subr.bf16.mxu0 %v6733_v56  ;;  %v7772_v42 = vrot.slane %v3797_v17, 5  ;;  %v1337_v19 = vrot.slane %v6875_v10, 5  ;;  %v3826_v38 = vshrl.u32 %v5577_v43, 16  ;;  %v7797_v27 = vsel %vm7268_vm5, %v5218_v5, %v1320_v16 }
  0xbb   : > { %v3785_v21 = vrot.slane %v3784_v22, 4 }
  0xbc   : > { %6260 = vmatmul.mubr.bf16.gmra.mrb[4].mxu0 %v6726_v7  ;;  %v7744_v7 = vrot.slane %v3787_v33, 5  ;;  %v6873_v33 = vld [vmem:[%s6990_s10 + $0x70] sm:$0xf] }
  0xbd   : > { %6036 = vmatmul.mubr.bf16.gmra.mrb[20].mxu1 %v5198_v15  ;;  %6263 = vmatprep.mubr.bf16.mxu0 %v6729_v0  ;;  %v1327_v15 = vrot.slane %v7738_v40, 5  ;;  %v6872_v0 = vld [vmem:[%s6990_s10 + $0x5c] sm:$0x1]  ;;  %v1334_v51 = vrot.slane %v6873_v33, 5 }
  0xbe   : > { %6039 = vmatprep.mubr.bf16.mxu1 %v5199_v26  ;;  %6292 = vmatpush3.bf16.msra.mxu0 %v6733_v56  ;;  %v1323_v18 = vrot.slane %v6872_v0, 5  ;;  %v7753_v26 = vsel %vm7268_vm5, %v5217_v54, %v1313_v1  ;;  %v7757_v56 = vsel %vm7268_vm5, %v1315_v46, %v1316_v39  ;;  %v6874_v1 = vld [vmem:[%s6990_s10 + $0x68] sm:$0x1]  ;;  %v3811_v0 = vshll.u32 %v5575_v13, 16  ;;  %v6755_v40 = vld [vmem:[%s8809_s1 + $0x1f8] sm:$0xff]  }
  0xbf   : > { %6293 = vmatprep.subr.bf16.mxu0 %v6739_v47  ;;  %v1330_v54 = vrot.slane %v6874_v1, 5  ;;  %v5219_v46 = vrot.slane %v1226_v32, 9  ;;  %v1329_v39 = vrot.slane %v1327_v15, 4  ;;  %v3794_v33 = vor.u32 %v3793_v62, %v7744_v7  ;;  %v5578_v1 = vld [vmem:[%s6990_s10 + $0x34] sm:$0xf] }
  0xc0   : > { %v1336_v32 = vrot.slane %v1334_v51, 4  ;;  %v5576_v62 = vld [vmem:[%s6990_s10 + $0x2c] sm:$0x1]  ;;  %v7784_v17 = vrot.slane %v3811_v0, 5  ;;  %v3835_v13 = vshll.u32 %v5578_v1, 16  ;;  %v3839_v31 = vshrl.u32 %v5578_v1, 16 }
  0xc1   : > { %v3795_v10 = vrot.slane %v3794_v33, 4  ;;  %v7801_v29 = vsel %vm7268_vm5, %v1322_v52, %v1323_v18  ;;  %v7808_v45 = vsel %vm7268_vm5, %v5219_v46, %v1327_v15  ;;  %v7812_v14 = vsel %vm7268_vm5, %v1329_v39, %v1330_v54  ;;  %v1228_v18 = vld [vmem:[%s6990_s10 + $0x78] sm:$0xe] }
  0xc2   : > { %6294 = vmatpush3.bf16.msra.mxu0 %v6739_v47  ;;  %v7816_v16 = vsel %vm7268_vm5, %v5220_v58, %v1334_v51  ;;  %v7826_v15 = vsel %vm7268_vm5, %v1336_v32, %v1337_v19  ;;  %v3818_v5 = vor.u32 %v3817_v28, %v7784_v17  ;;  %v3828_v52 = vrot.slane %v3826_v38, 4  ;;  %v5580_v58 = vld [vmem:[%s6990_s10 + $0x3c] sm:$0xf]  ;;  %v5581_v51 = vld [vmem:[%s6990_s10 + $0x40] sm:$0xf] }
  0xc3   : > { %6295 = vmatprep.subr.bf16.mxu0 %v6743_v53  ;;  %v3790_v0 = vsel %vm7022_vm2, %v3785_v21, %v7744_v7  ;;  %v3800_v46 = vsel %vm7022_vm2, %v3795_v10, %v7772_v42  ;;  %v7837_v39 = vrot.slane %v3835_v13, 5  ;;  %v3841_v22 = vrot.slane %v3839_v31, 4  ;;  %v6877_v19 = vld [vmem:[%s6990_s10 + $0x80] sm:$0x1]  ;;  %v7996_v47 = vld [vmem:[%s6990_s10 + $0x68] sm:$0x1] }
  0xc4   : > { %6264 = vmatmul.mubr.bf16.gmra.mrb[8].mxu0 %v6732_v2  ;;  %v3829_v2 = vshll.u32 %v5577_v43, 16  ;;  %v3821_v43 = vshll.u32 %v5576_v62, 16  ;;  %v5221_v32 = vrot.slane %v1228_v18, 9  ;;  %v1229_v62 = vld [vmem:[%s6990_s10 + $0x84] sm:$0xe]  ;;  %v3850_v28 = vshrl.u32 %v5580_v58, 16 }
  0xc5   : > { %6040 = vmatmul.mubr.bf16.gmra.mrb[24].mxu1 %v5200_v20  ;;  %6267 = vmatprep.mubr.bf16.mxu0 %v6735_v3  ;;  %v6751_v20 = vld [vmem:[%s8809_s1 + $0x1f0] sm:$0xff]   ;;  %v6876_v3 = vld [vmem:[%s6990_s10 + $0x7c] sm:$0xf]  ;;  %v3853_v7 = vshll.u32 %v5580_v58, 16  ;;  %v3859_v38 = vshll.u32 %v5581_v51, 16  ;;  %v8831_v42 = vcombine.low %v7427_v41, %v7432_v12  ;;  %v7848_v13 = vrot.slane %v3818_v5, 4 }
  0xc6   : > { %6043 = vmatprep.mubr.bf16.mxu1 %v5201_v23  ;;  %6296 = vmatpush3.bf16.msra.mxu0 %v6743_v53  ;;  %v3808_v23 = vor.u32 %v3807_v44, %v3804_v34  ;;  %v6740_v53 = vld [vmem:[%s6990_s10 + $0x78] sm:$0xff]   ;;  %v1341_v44 = vrot.slane %v6876_v3, 5  ;;  %v3831_v54 = vrot.slane %v3829_v2, 5  ;;  %v7841_v1 = vrot.slane %v3821_v43, 5  ;;  %v7853_v21 = vld [vmem:[%s8809_s1 + $0x200] sm:$0xff]   ;;  %8839 = vst [vmem:[#allocation5_spill] sm:$0xff] %v7996_v47 }
  0xc7   : > { %6297 = vmatprep.subr.bf16.mxu0 %v6747_v50  ;;  %v5579_v34 = vld [vmem:[%s6990_s10 + $0x38] sm:$0x1]  ;;  %v3863_v2 = vshrl.u32 %v5581_v51, 16  ;;  %v6742_v43 = vld [vmem:[%s6990_s10 + $0x84] sm:$0xff]   ;;  %v3842_v12 = vor.u32 %v3841_v22, %v7837_v39  ;;  %v3855_v58 = vrot.slane %v3853_v7, 5  ;;  %v7875_v51 = vrot.slane %v3859_v38, 5 }
  0xc8   : > { %v7839_v33 = vrot.slane %v3808_v23, 4  ;;  %v1343_v10 = vrot.slane %v1341_v44, 4  ;;  %v3832_v31 = vor.u32 %v3831_v54, %v3828_v52  ;;  %v8832_v23 = vcombine.low %v7658_v59, %v7666_v25  ;;  %v6878_v18 = vld [vmem:[%s6990_s10 + $0x88] sm:$0xf]  ;;  %v5582_v5 = vld [vmem:[%s6990_s10 + $0x44] sm:$0x1] }
  0xc9   : > { %v1348_v3 = vrot.slane %v6878_v18, 5  ;;  %v7866_v59 = vcombine.low %v3790_v0, %v3800_v46  ;;  %v5583_v52 = vld [vmem:[%s6990_s10 + $0x48] sm:$0xf]  ;;  %v3852_v54 = vrot.slane %v3850_v28, 4  ;;  %v3865_v22 = vrot.slane %v3863_v2, 4 }
  0xca   : > { %6298 = vmatpush3.bf16.msra.mxu0 %v6747_v50  ;;  %v1344_v50 = vrot.slane %v6877_v19, 5  ;;  %v6744_v19 = vld [vmem:[%s6990_s10 + $0x90] sm:$0xff]   ;;  %v3814_v0 = vsel %vm7022_vm2, %v7839_v33, %v7784_v17  ;;  %v3833_v46 = vrot.slane %v3832_v31, 4  ;;  %v3824_v28 = vsel %vm7022_vm2, %v7848_v13, %v7841_v1  ;;  %v7897_v33 = vld [vmem:[%s6990_s10 + $0x58] sm:$0xf]  ;;  %v6745_v31 = vld [vmem:[%s8809_s1 + $0xc8] sm:$0xff]  }
  0xcb   : > { %6299 = vmatprep.subr.bf16.mxu0 %v6751_v20  ;;  %v3843_v38 = vrot.slane %v3842_v12, 4  ;;  %v1350_v2 = vrot.slane %v1348_v3, 4  ;;  %v5586_v17 = vld [vmem:[%s6990_s10 + $0x54] sm:$0xf]  ;;  %v3869_v1 = vshll.u32 %v5582_v5, 16  ;;  %v3874_v13 = vshrl.u32 %v5583_v52, 16 }
  0xcc   : > { %6268 = vmatmul.mubr.bf16.gmra.mrb[12].mxu0 %v6738_v48  ;;  %v3845_v48 = vshll.u32 %v5579_v34, 16  ;;  %v7893_v7 = vsel %vm7268_vm5, %v1343_v10, %v1344_v50  ;;  %v3877_v50 = vshll.u32 %v5583_v52, 16  ;;  %v3856_v10 = vor.u32 %v3855_v58, %v3852_v54  ;;  %v6746_v54 = vld [vmem:[%s6990_s10 + $0x9c] sm:$0xff]   ;;  %v6884_v41 = vld [vmem:[%s6990_s10 + $0xac] sm:$0xf] }
  0xcd   : > { %6044 = vmatmul.mubr.bf16.gmra.mrb[28].mxu1 %v8831_v42  ;;  %6271 = vmatprep.mubr.bf16.mxu0 %v6740_v53  ;;  %v5222_v53 = vrot.slane %v1229_v62, 9  ;;  %v6879_v42 = vld [vmem:[%s6990_s10 + $0x8c] sm:$0x1]  ;;  %v3907_v5 = vshll.u32 %v7897_v33, 16  ;;  %v8834_v52 = vcombine.low %v7674_v63, %v7682_v8  ;;  %v7933_v63 = vld [vmem:[%s6990_s10 + $0x50] sm:$0x1] }
  0xce   : > { %6063 = vmatprep.mubr.bf16.mxu1 %v8832_v23  ;;  %6300 = vmatpush3.bf16.msra.mxu0 %v6751_v20  ;;  %v7872_v20 = vsel %vm7268_vm5, %v5221_v32, %v1341_v44  ;;  %v3847_v62 = vrot.slane %v3845_v48, 5  ;;  %v1351_v23 = vrot.slane %v6879_v42, 5  ;;  %v1230_v44 = vld [vmem:[%s6990_s10 + $0x90] sm:$0xe]  ;;  %v7885_v32 = vld [vmem:[%s6990_s10 + $0x4c] sm:$0xf]  ;;  %v3866_v48 = vor.u32 %v3865_v22, %v7875_v51 }
  0xcf   : > { %6301 = vmatprep.subr.bf16.mxu0 %v6755_v40  ;;  %v3883_v12 = vshll.u32 %v7885_v32, 16  ;;  %v3887_v18 = vshrl.u32 %v7885_v32, 16  ;;  %v8833_v42 = vcombine.low %v7662_v30, %v7670_v6  ;;  %v6749_v30 = vld [vmem:[%s8809_s1 + $0xd0] sm:$0xff]   ;;  %v3838_v6 = vsel %vm7022_vm2, %v3833_v46, %v7837_v39  ;;  %v6748_v8 = vld [vmem:[%s6990_s10 + $0xa8] sm:$0xff]   ;;  %v7940_v39 = vld [vmem:[%s6990_s10 + $0x5c] sm:$0x1] }
  0xd0   : > { %v3848_v58 = vsel %vm7022_vm2, %v3843_v38, %v3847_v62  ;;  %v5223_v22 = vrot.slane %v1230_v44, 9  ;;  %v3879_v25 = vrot.slane %v3877_v50, 5  ;;  %8835 = vst [vmem:[#allocation3_spill] sm:$0xff] %v7940_v39  ;;  %v3857_v46 = vrot.slane %v3856_v10, 4 }
  0xd1   : > { %v3867_v62 = vrot.slane %v3866_v48, 4  ;;  %v7942_v38 = vrot.slane %v3883_v12, 5  ;;  %v7944_v34 = vrot.slane %v3907_v5, 5  ;;  %v7949_v50 = vcombine.low %v3814_v0, %v3824_v28  ;;  %v5589_v28 = vld [vmem:[%s6990_s10 + $0x60] sm:$0xf] }
  0xd2   : > { %6302 = vmatpush3.bf16.msra.mxu0 %v6755_v40  ;;  %v7905_v40 = vsel %vm7268_vm5, %v5222_v53, %v1348_v3  ;;  %v3898_v53 = vshrl.u32 %v5586_v17, 16  ;;  %v3901_v3 = vshll.u32 %v5586_v17, 16  ;;  %v6880_v17 = vld [vmem:[%s6990_s10 + $0x94] sm:$0xf]  ;;  %v7953_v48 = vcombine.low %v3838_v6, %v3848_v58 }
  0xd3   : > { %6335 = vmatprep.subr.bf16.mxu0 %v7853_v21  ;;  %v3893_v0 = vshll.u32 %v7933_v63, 16  ;;  %v3862_v6 = vsel %vm7022_vm2, %v3857_v46, %v7875_v51  ;;  %v8838_v46 = vcombine.low %v7696_v61, %v7700_v36 }
  0xd4   : > { %6272 = vmatmul.mubr.bf16.gmra.mrb[16].mxu0 %v6742_v43  ;;  %v3911_v43 = vshrl.u32 %v7897_v33, 16  ;;  %v3900_v44 = vrot.slane %v3898_v53, 4  ;;  %v6881_v53 = vld [vmem:[%s6990_s10 + $0x98] sm:$0x1] }
  0xd5   : > { %6064 = vmatmul.mubr.bf16.vlgmr.msra.gmra.mrb[0].mxu1 %v8833_v42  ;;  %6275 = vmatprep.mubr.bf16.mxu0 %v6744_v19  ;;  %v7936_v19 = vrot.slane %v3869_v1, 5  ;;  %v1355_v42 = vrot.slane %v6880_v17, 5  ;;  %v6882_v17 = vld [vmem:[%s6990_s10 + $0xa0] sm:$0xf]  ;;  %v3895_v36 = vrot.slane %v3893_v0, 5 }
  0xd6   : > { %6096 = vmatpush3.bf16.msra.mxu1 %v7615_v60  ;;  %6067 = vmatprep.mubr.bf16.mxu1 %v8834_v52  ;;  %v7930_v60 = vsel %vm7268_vm5, %v1350_v2, %v1351_v23  ;;  %v3876_v52 = vrot.slane %v3874_v13, 4  ;;  %v3889_v23 = vrot.slane %v3887_v18, 4  ;;  %v3903_v2 = vrot.slane %v3901_v3, 5  ;;  %v6753_v13 = vld [vmem:[%s8809_s1 + $0xd8] sm:$0xff]  }
  0xd7   : > { %6097 = vmatprep.subr.bf16.mxu1 %v6745_v31  ;;  %v3913_v1 = vrot.slane %v3911_v43, 4  ;;  %v1231_v18 = vld [vmem:[%s6990_s10 + $0x9c] sm:$0xe]  ;;  %v1358_v3 = vrot.slane %v6881_v53, 5  ;;  %v7966_v43 = vld [vmem:[%s6990_s10 + $0x64] sm:$0xf] }
  0xd8   : > { %v3880_v5 = vor.u32 %v3879_v25, %v3876_v52  ;;  %8836 = vst [vmem:[#allocation4_spill] sm:$0xff] %v7966_v43  ;;  %v3890_v58 = vor.u32 %v3889_v23, %v7942_v38  ;;  %v1362_v12 = vrot.slane %v6882_v17, 5  ;;  %v8837_v25 = vcombine.low %v7686_v24, %v7690_v35  ;;  %v6750_v23 = vld [vmem:[%s6990_s10 + $0xb4] sm:$0xff]   ;;  %v6756_v24 = vld [vmem:[%s8809_s1 + $0xe0] sm:$0xff]   ;;  %v5592_v17 = vld [vmem:[%s6990_s10 + $0x6c] sm:$0xf] }
  0xd9   : > { %v1357_v52 = vrot.slane %v1355_v42, 4  ;;  %v3904_v53 = vor.u32 %v3903_v2, %v3900_v44  ;;  %v3914_v51 = vor.u32 %v3913_v1, %v7944_v34  ;;  %v3922_v35 = vshrl.u32 %v5589_v28, 16  ;;  %v6883_v2 = vld [vmem:[%s6990_s10 + $0xa4] sm:$0x1] }
  0xda   : > { %6098 = vmatpush3.bf16.msra.mxu1 %v6745_v31  ;;  %v7960_v31 = vsel %vm7268_vm5, %v5223_v22, %v1355_v42  ;;  %v3917_v22 = vshll.u32 %v7940_v39, 16  ;;  %v3935_v42 = vshrl.u32 %v7966_v43, 16  ;;  %v3881_v61 = vrot.slane %v3880_v5, 4  ;;  %v8135_v39 = vld [vmem:[%s6990_s10 + $0x98] sm:$0x1] }
  0xdb   : > { %6099 = vmatprep.subr.bf16.mxu1 %v6749_v30  ;;  %v5224_v44 = vrot.slane %v1231_v18, 9  ;;  %v1365_v1 = vrot.slane %v6883_v2, 5  ;;  %v3905_v5 = vrot.slane %v3904_v53, 4  ;;  %v3915_v18 = vrot.slane %v3914_v51, 4  ;;  %8852 = vst [vmem:[#allocation14_spill] sm:$0xff] %v8135_v39 }
  0xdc   : > { %6276 = vmatmul.mubr.bf16.gmra.mrb[20].mxu0 %v6746_v54  ;;  %v3872_v54 = vsel %vm7022_vm2, %v3867_v62, %v7936_v19  ;;  %v3931_v19 = vshll.u32 %v7966_v43, 16  ;;  %v6752_v62 = vld [vmem:[%s6990_s10 + $0xc0] sm:$0xff]   ;;  %v3919_v10 = vrot.slane %v3917_v22, 5  ;;  %v8002_v43 = vsel %vm7268_vm5, %v1357_v52, %v1358_v3 }
  0xdd   : > { %6068 = vmatmul.mubr.bf16.gmra.mrb[4].mxu1 %v8837_v25  ;;  %6279 = vmatprep.mubr.bf16.mxu0 %v6748_v8  ;;  %v3925_v8 = vshll.u32 %v5589_v28, 16  ;;  %v3891_v25 = vrot.slane %v3890_v58, 4  ;;  %v1369_v28 = vrot.slane %v6884_v41, 5  ;;  %v7998_v55 = vcombine.low %v3862_v6, %v3872_v54  ;;  %v6758_v41 = vld [vmem:[%s8809_s1 + $0xe8] sm:$0xff]  }
  0xde   : > { %6071 = vmatprep.mubr.bf16.mxu1 %v8838_v46  ;;  %6100 = vmatpush3.bf16.msra.mxu1 %v6749_v30  ;;  %v1232_v30 = vld [vmem:[%s6990_s10 + $0xa8] sm:$0xe]  ;;  %v1364_v46 = vrot.slane %v1362_v12, 4  ;;  %v3924_v0 = vrot.slane %v3922_v35, 4  ;;  %v8004_v58 = vrot.slane %v3931_v19, 5  ;;  %v3937_v22 = vrot.slane %v3935_v42, 4 }
  0xdf   : > { %6101 = vmatprep.subr.bf16.mxu1 %v6753_v13  ;;  %v3927_v2 = vrot.slane %v3925_v8, 5  ;;  %v3886_v3 = vsel %vm7022_vm2, %v3881_v61, %v7942_v38  ;;  %v8014_v6 = vsel %vm7268_vm5, %v5224_v44, %v1362_v12  ;;  %v3946_v54 = vshrl.u32 %v5592_v17, 16  ;;  %v6885_v38 = vld [vmem:[%s6990_s10 + $0xb0] sm:$0x1]  ;;  %v1233_v19 = vld [vmem:[%s6990_s10 + $0xb4] sm:$0xe] }
  0xe0   : > { %v3949_v52 = vshll.u32 %v5592_v17, 16  ;;  %v3896_v53 = vsel %vm7022_vm2, %v3891_v25, %v3895_v36  ;;  %v8023_v51 = vsel %vm7268_vm5, %v1364_v46, %v1365_v1  ;;  %v5225_v35 = vrot.slane %v1232_v30, 9  ;;  %v8045_v30 = vld [vmem:[%s6990_s10 + $0x74] sm:$0x1]  ;;  %v6886_v25 = vld [vmem:[%s6990_s10 + $0xb8] sm:$0xf] }
  0xe1   : > { %v1372_v8 = vrot.slane %v6885_v38, 5  ;;  %v8841_v12 = vcombine.low %v7717_v49, %v7731_v4  ;;  %v3910_v42 = vsel %vm7022_vm2, %v3905_v5, %v7944_v34  ;;  %v3920_v61 = vsel %vm7022_vm2, %v3915_v18, %v3919_v10  ;;  %v6754_v4 = vld [vmem:[%s6990_s10 + $0xcc] sm:$0xff]   ;;  %8843 = vst [vmem:[#allocation7_spill] sm:$0xff] %v8045_v30  ;;  %v5598_v38 = vld [vmem:[%s6990_s10 + $0x84] sm:$0xf] }
  0xe2   : > { %6102 = vmatpush3.bf16.msra.mxu1 %v6753_v13  ;;  %v8017_v13 = vld [vmem:[%s6990_s10 + $0x70] sm:$0xf]  ;;  %v1371_v36 = vrot.slane %v1369_v28, 4  ;;  %v3941_v44 = vshll.u32 %v7996_v47, 16  ;;  %v8842_v49 = vcombine.low %v7753_v26, %v7757_v56  ;;  %v3938_v1 = vor.u32 %v3937_v22, %v8004_v58  ;;  %v8062_v22 = vld [vmem:[%s6990_s10 + $0x7c] sm:$0xf] }
  0xe3   : > { %6103 = vmatprep.subr.bf16.mxu1 %v6756_v24  ;;  %8840 = vst [vmem:[#allocation6_spill] sm:$0xff] %v8017_v13  ;;  %v3955_v34 = vshll.u32 %v8017_v13, 16  ;;  %v3959_v10 = vshrl.u32 %v8017_v13, 16  ;;  %v5226_v17 = vrot.slane %v1233_v19, 9  ;;  %v1376_v46 = vrot.slane %v6886_v25, 5  ;;  %8844 = vst [vmem:[#allocation8_spill] sm:$0xff] %v8062_v22 }
  0xe4   : > { %6280 = vmatmul.mubr.bf16.gmra.mrb[24].mxu0 %v6750_v23  ;;  %v6760_v23 = vld [vmem:[%s8809_s1 + $0xf0] sm:$0xff]   ;;  %v3948_v26 = vrot.slane %v3946_v54, 4  ;;  %v3951_v56 = vrot.slane %v3949_v52, 5  ;;  %v8053_v18 = vcombine.low %v3886_v3, %v3896_v53  ;;  %v8065_v19 = vcombine.low %v3910_v42, %v3920_v61  ;;  %v6887_v3 = vld [vmem:[%s6990_s10 + $0xbc] sm:$0x1] }
  0xe5   : > { %6072 = vmatmul.mubr.bf16.gmra.mrb[8].mxu1 %v8841_v12  ;;  %6283 = vmatprep.mubr.bf16.mxu0 %v6752_v62  ;;  %v3928_v62 = vor.u32 %v3927_v2, %v3924_v0  ;;  %v8059_v2 = vsel %vm7268_vm5, %v5225_v35, %v1369_v28  ;;  %v8069_v54 = vsel %vm7268_vm5, %v1371_v36, %v1372_v8  ;;  %v8071_v52 = vrot.slane %v3941_v44, 5  ;;  %v6762_v12 = vld [vmem:[%s8809_s1 + $0xf8] sm:$0xff]   ;;  %v8078_v28 = vld [vmem:[%s6990_s10 + $0x88] sm:$0xf] }
  0xe6   : > { %6075 = vmatprep.mubr.bf16.mxu1 %v8842_v49  ;;  %6104 = vmatpush3.bf16.msra.mxu1 %v6756_v24  ;;  %v5595_v24 = vld [vmem:[%s6990_s10 + $0x78] sm:$0xf]  ;;  %v1379_v53 = vrot.slane %v6887_v3, 5  ;;  %8845 = vst [vmem:[#allocation9_spill] sm:$0xff] %v8078_v28  ;;  %v8082_v42 = vrot.slane %v3938_v1, 4  ;;  %v8084_v61 = vrot.slane %v3955_v34, 5  ;;  %v8088_v36 = vsel %vm7268_vm5, %v5226_v17, %v1376_v46 }
  0xe7   : > { %6105 = vmatprep.subr.bf16.mxu1 %v6758_v41  ;;  %v8080_v35 = vrot.slane %v3928_v62, 4  ;;  %v3961_v8 = vrot.slane %v3959_v10, 4  ;;  %v1378_v44 = vrot.slane %v1376_v46, 4  ;;  %v3952_v49 = vor.u32 %v3951_v56, %v3948_v26  ;;  %v5601_v3 = vld [vmem:[%s6990_s10 + $0x90] sm:$0xf] }
  0xe8   : > { %v3965_v25 = vshll.u32 %v8045_v30, 16  ;;  %v3973_v0 = vshll.u32 %v5595_v24, 16  ;;  %v3979_v62 = vshll.u32 %v8062_v22, 16  ;;  %v3983_v1 = vshrl.u32 %v8062_v22, 16  ;;  %v8095_v34 = vld [vmem:[%s6990_s10 + $0x94] sm:$0xf] }
  0xe9   : > { %8846 = vst [vmem:[#allocation10_spill] sm:$0xff] %v8095_v34  ;;  %v8847_v10 = vcombine.low %v7797_v27, %v7801_v29  ;;  %v3994_v17 = vshrl.u32 %v5598_v38, 16  ;;  %v3997_v46 = vshll.u32 %v5598_v38, 16  ;;  %v4007_v26 = vshrl.u32 %v8078_v28, 16  ;;  %v5604_v38 = vld [vmem:[%s6990_s10 + $0x9c] sm:$0xf] }
  0xea   : > { %6106 = vmatpush3.bf16.msra.mxu1 %v6758_v41  ;;  %v3970_v41 = vshrl.u32 %v5595_v24, 16  ;;  %v8848_v56 = vcombine.low %v7808_v45, %v7812_v14  ;;  %v3962_v29 = vor.u32 %v3961_v8, %v8084_v61  ;;  %v4021_v24 = vshll.u32 %v5601_v3, 16  ;;  %v8117_v45 = vld [vmem:[%s6990_s10 + $0x80] sm:$0x1] }
  0xeb   : > { %6107 = vmatprep.subr.bf16.mxu1 %v6760_v23  ;;  %v8114_v5 = vrot.slane %v3965_v25, 5  ;;  %8849 = vst [vmem:[#allocation11_spill] sm:$0xff] %v8117_v45  ;;  %v4027_v14 = vshll.u32 %v8095_v34, 16  ;;  %v3975_v27 = vrot.slane %v3973_v0, 5  ;;  %v3985_v8 = vrot.slane %v3983_v1, 4 }
  0xec   : > { %6284 = vmatmul.mubr.bf16.gmra.mrb[28].mxu0 %v6754_v4  ;;  %v4003_v4 = vshll.u32 %v8078_v28, 16  ;;  %v8121_v28 = vrot.slane %v3979_v62, 5  ;;  %v8127_v22 = vld [vmem:[%s6990_s10 + $0xa0] sm:$0xf]  ;;  %v3996_v25 = vrot.slane %v3994_v17, 4  ;;  %v3999_v30 = vrot.slane %v3997_v46, 5 }
  0xed   : > { %6076 = vmatmul.mubr.bf16.gmra.mrb[12].mxu1 %v8847_v10  ;;  %6303 = vmatprep.mubr.bf16.mxu0 %v7866_v59  ;;  %v4018_v59 = vshrl.u32 %v5601_v3, 16  ;;  %v8112_v10 = vrot.slane %v3952_v49, 4  ;;  %v8124_v3 = vld [vmem:[%s6990_s10 + $0x8c] sm:$0x1]  ;;  %8851 = vst [vmem:[#allocation13_spill] sm:$0xff] %v8127_v22  ;;  %v4009_v47 = vrot.slane %v4007_v26, 4  ;;  %v8144_v62 = vsel %vm7268_vm5, %v1378_v44, %v1379_v53 }
  0xee   : > { %6079 = vmatprep.mubr.bf16.mxu1 %v8848_v56  ;;  %6108 = vmatpush3.bf16.msra.mxu1 %v6760_v23  ;;  %v4031_v23 = vshrl.u32 %v8095_v34, 16  ;;  %v3972_v56 = vrot.slane %v3970_v41, 4  ;;  %8850 = vst [vmem:[#allocation12_spill] sm:$0xff] %v8124_v3  ;;  %v6759_v49 = vld [vmem:[%s8809_s1 + $0x208] sm:$0xff]   ;;  %v8132_v13 = vrot.slane %v4003_v4, 5  ;;  %v4023_v34 = vrot.slane %v4021_v24, 5 }
  0xef   : > { %6109 = vmatprep.subr.bf16.mxu1 %v6762_v12  ;;  %v5607_v41 = vld [vmem:[%s6990_s10 + $0xa8] sm:$0xf]  ;;  %v4020_v1 = vrot.slane %v4018_v59, 4  ;;  %v8149_v17 = vld [vmem:[%s8809_s1 + $0x100] sm:$0xff]   ;;  %v8152_v46 = vrot.slane %v4027_v14, 5  ;;  %v4042_v26 = vshrl.u32 %v5604_v38, 16  ;;  %v8854_v24 = vcombine.low %v7816_v16, %v7826_v15 }
  0xf0   : > { %8853 = vst [vmem:[#allocation15_spill] sm:$0xff] %v8149_v17  ;;  %v4033_v4 = vrot.slane %v4031_v23, 4  ;;  %v4045_v0 = vshll.u32 %v5604_v38, 16  ;;  %v8155_v53 = vrot.slane %v3962_v29, 4  ;;  %v4051_v44 = vshll.u32 %v8127_v22, 16  ;;  %v6761_v16 = vld [vmem:[%s8809_s1 + $0x210] sm:$0xff]  }
  0xf1   : > { %v4055_v59 = vshrl.u32 %v8127_v22, 16  ;;  %v3976_v14 = vor.u32 %v3975_v27, %v3972_v56  ;;  %v3986_v38 = vor.u32 %v3985_v8, %v8121_v28  ;;  %v4000_v23 = vor.u32 %v3999_v30, %v3996_v25  ;;  %v8167_v29 = vld [vmem:[%s6990_s10 + $0xac] sm:$0xf]  ;;  %v8180_v25 = vld [vmem:[%s6990_s10 + $0xa4] sm:$0x1] }
  0xf2   : > { %6110 = vmatpush3.bf16.msra.mxu1 %v6762_v12  ;;  %v3989_v12 = vshll.u32 %v8117_v45, 16  ;;  %8855 = vst [vmem:[#allocation16_spill] sm:$0xff] %v8167_v29  ;;  %v4010_v15 = vor.u32 %v4009_v47, %v8132_v13  ;;  %v4066_v27 = vshrl.u32 %v5607_v41, 16  ;;  %v4069_v30 = vshll.u32 %v5607_v41, 16 }
  0xf3   : > { %6383 = vmatprep.subr.bf16.mxu1 %v8149_v17  ;;  %v8856_v17 = vcombine.low %v7872_v20, %v7893_v7  ;;  %v4024_v56 = vor.u32 %v4023_v34, %v4020_v1  ;;  %v4034_v8 = vor.u32 %v4033_v4, %v8152_v46  ;;  %v4044_v20 = vrot.slane %v4042_v26, 4 }
  0xf4   : > { %6304 = vmatmul.mubr.bf16.vlgmr.msra.gmra.mrb[0].mxu0 %v7949_v50  ;;  %v4013_v50 = vshll.u32 %v8124_v3, 16  ;;  %v4047_v7 = vrot.slane %v4045_v0, 5  ;;  %v4079_v22 = vshrl.u32 %v8167_v29, 16  ;;  %v3977_v47 = vrot.slane %v3976_v14, 4  ;;  %v6763_v0 = vld [vmem:[%s8809_s1 + $0x218] sm:$0xff]  }
  0xf5   : > { %6080 = vmatmul.mubr.bf16.gmra.mrb[16].mxu1 %v8854_v24  ;;  %6336 = vmatpush3.bf16.msra.mxu0 %v7853_v21  ;;  %v4037_v21 = vshll.u32 %v8135_v39, 16  ;;  %v4075_v24 = vshll.u32 %v8167_v29, 16  ;;  %v3987_v39 = vrot.slane %v3986_v38, 4  ;;  %v3991_v3 = vrot.slane %v3989_v12, 5 }
  0xf6   : > { %6083 = vmatprep.mubr.bf16.mxu1 %v8856_v17  ;;  %6307 = vmatprep.mubr.bf16.mxu0 %v7953_v48  ;;  %v8182_v17 = vrot.slane %v4051_v44, 5  ;;  %v4057_v48 = vrot.slane %v4055_v59, 4  ;;  %v4015_v41 = vrot.slane %v4013_v50, 5  ;;  %v4001_v34 = vrot.slane %v4000_v23, 4 }
  0xf7   : > { %6337 = vmatprep.subr.bf16.mxu0 %v6759_v49  ;;  %v4011_v1 = vrot.slane %v4010_v15, 4  ;;  %v4068_v4 = vrot.slane %v4066_v27, 4  ;;  %v4071_v45 = vrot.slane %v4069_v30, 5  ;;  %v4025_v26 = vrot.slane %v4024_v56, 4  ;;  %v8248_v27 = vld [vmem:[%s6990_s10 + $0xbc] sm:$0x1] }
  0xf8   : > { %v4039_v44 = vrot.slane %v4037_v21, 5  ;;  %v4048_v59 = vor.u32 %v4047_v7, %v4044_v20  ;;  %v4061_v29 = vshll.u32 %v8180_v25, 16  ;;  %v4058_v12 = vor.u32 %v4057_v48, %v8182_v17  ;;  %v8215_v21 = vld [vmem:[%s6990_s10 + $0xb0] sm:$0x1] }
  0xf9   : > { %6338 = vmatpush3.bf16.msra.mxu0 %v6759_v49  ;;  %v4035_v49 = vrot.slane %v4034_v8, 4  ;;  %v8192_v14 = vrot.slane %v4075_v24, 5  ;;  %v4081_v38 = vrot.slane %v4079_v22, 4  ;;  %v8857_v23 = vor.u32 %v7600_v57, %v7598_v11 }
  0xfa   : > { %6339 = vmatprep.subr.bf16.mxu0 %v6761_v16  ;;  %v8858_v15 = vcombine.low %v7905_v40, %v7930_v60  ;;  %v3968_v22 = vsel %vm7022_vm2, %v8155_v53, %v8114_v5  ;;  %v3982_v57 = vsel %vm7022_vm2, %v3977_v47, %v8121_v28  ;;  %v8859_v40 = vcombine.low %v7960_v31, %v8002_v43  ;;  %v6766_v31 = vld [vmem:[%s8809_s1 + $0x220] sm:$0xff]  }
  0xfb   : > { %v8197_v50 = vrot.slane %v8857_v23, 4  ;;  %v3992_v60 = vsel %vm7022_vm2, %v3987_v39, %v3991_v3  ;;  %v4072_v5 = vor.u32 %v4071_v45, %v4068_v4  ;;  %v4016_v28 = vsel %vm7022_vm2, %v4011_v1, %v4015_v41  ;;  %v5663_v41 = vld [vmem:[%s6990_s10 + $0x48] sm:$0xe] }
  0xfc   : > { %6308 = vmatmul.mubr.bf16.gmra.mrb[4].mxu0 %v7998_v55  ;;  %v3958_v55 = vsel %vm7022_vm2, %v8112_v10, %v8084_v61  ;;  %v5610_v61 = vld [vmem:[%s6990_s10 + $0xb4] sm:$0xf]  ;;  %v8227_v10 = vld [vmem:[%s6990_s10 + $0xb8] sm:$0xf]  ;;  %v4030_v39 = vsel %vm7022_vm2, %v4025_v26, %v8152_v46  ;;  %v8237_v43 = vrot.slane %v4048_v59, 4  ;;  %v8239_v3 = vrot.slane %v4061_v29, 5 }
  0xfd   : > { %6084 = vmatmul.mubr.bf16.gmra.mrb[20].mxu1 %v8858_v15  ;;  %6311 = vmatprep.mubr.bf16.mxu0 %v8053_v18  ;;  %v4006_v18 = vsel %vm7022_vm2, %v4001_v34, %v8132_v13  ;;  %v4040_v13 = vsel %vm7022_vm2, %v4035_v49, %v4039_v44  ;;  %v8243_v45 = vrot.slane %v4058_v12, 4  ;;  %v4082_v53 = vor.u32 %v4081_v38, %v8192_v14  ;;  %v5664_v26 = vld [vmem:[%s6990_s10 + $0x54] sm:$0xe] }
  0xfe   : > { %6087 = vmatprep.mubr.bf16.mxu1 %v8859_v40  ;;  %6340 = vmatpush3.bf16.msra.mxu0 %v6761_v16  ;;  %v4085_v16 = vshll.u32 %v8215_v21, 16  ;;  %v8860_v46 = vsel %vm7022_vm2, %v8082_v42, %v8071_v52  ;;  %v8861_v29 = vsel %vm7022_vm2, %v8080_v35, %v8004_v58  ;;  %v4090_v56 = vshrl.u32 %v5610_v61, 16 }
  0xff   : > { %6341 = vmatprep.subr.bf16.mxu0 %v6763_v0  ;;  %v5641_v30 = vcombine.low %v8861_v29, %v8860_v46  ;;  %v4093_v8 = vshll.u32 %v5610_v61, 16  ;;  %v4099_v20 = vshll.u32 %v8227_v10, 16  ;;  %v5257_v7 = vcombine.low %v8059_v2, %v8069_v54  ;;  %v6769_v2 = vld [vmem:[%s8809_s1 + $0x228] sm:$0xff]   ;;  %v5613_v54 = vld [vmem:[%s6990_s10 + $0xc0] sm:$0xf]  ;;  %v8865_v29 = vld [vmem:[#allocation5_spill] sm:$0xff] }
 0x100   : > { %v5258_v48 = vcombine.low %v8088_v36, %v8144_v62  ;;  %v5642_v24 = vcombine.low %v3958_v55, %v3968_v22  ;;  %v8265_v52 = vrot.slane %v4072_v5, 4  ;;  %v5643_v42 = vcombine.low %v3982_v57, %v3992_v60 }
 0x101   : > { %v8267_v58 = vcombine.low %v4006_v18, %v4016_v28  ;;  %v8269_v35 = vcombine.low %v4030_v39, %v4040_v13  ;;  %v4054_v47 = vsel %vm7022_vm2, %v8237_v43, %v8182_v17  ;;  %v4064_v34 = vsel %vm7022_vm2, %v8243_v45, %v8239_v3  ;;  %v5666_v28 = vld [vmem:[%s6990_s10 + $0x6c] sm:$0xe] }
 0x102   : > { %6342 = vmatpush3.bf16.msra.mxu0 %v6763_v0  ;;  %v8285_v1 = vrot.slane %v4082_v53, 4  ;;  %v8287_v4 = vrot.slane %v4085_v16, 5  ;;  %v4103_v0 = vshrl.u32 %v8227_v10, 16  ;;  %v8862_v44 = vcombine.low %v8014_v6, %v8023_v51  ;;  %v6772_v6 = vld [vmem:[%s8809_s1 + $0x230] sm:$0xff]   ;;  %v8309_v51 = vld [vmem:[%s6990_s10 + $0xc4] sm:$0xf] }
 0x103   : > { %6343 = vmatprep.subr.bf16.mxu0 %v6766_v31  ;;  %v8294_v59 = vrot.slane %v4090_v56, 4  ;;  %v8298_v49 = vrot.slane %v4099_v20, 5  ;;  %v4109_v12 = vshll.u32 %v8248_v27, 16  ;;  %v4078_v38 = vsel %vm7022_vm2, %v8265_v52, %v8192_v14  ;;  %v5665_v14 = vld [vmem:[%s6990_s10 + $0x60] sm:$0xe]  ;;  %v8863_v39 = vld [vmem:[#allocation3_spill] sm:$0xff] }
 0x104   : > { %6312 = vmatmul.mubr.bf16.gmra.mrb[8].mxu0 %v8065_v19  ;;  %v8296_v19 = vrot.slane %v4093_v8, 5  ;;  %v4114_v23 = vshrl.u32 %v5613_v54, 16  ;;  %v5679_v15 = vrot.slane %v5663_v41, 9  ;;  %v4577_v55 = vrot.slane %v7885_v32, 5  ;;  %v6764_v13 = vld [vmem:[%s6990_s10 + $0xc] sm:$0xff]   ;;  %v6775_v56 = vld [vmem:[%s8809_s1 + $0x238] sm:$0xff]  }
 0x105   : > { %6088 = vmatmul.mubr.bf16.gmra.mrb[24].mxu1 %v8862_v44  ;;  %6315 = vmatprep.mubr.bf16.mxu0 %v5641_v30  ;;  %v4117_v22 = vshll.u32 %v5613_v54, 16  ;;  %v4580_v57 = vrot.slane %v7933_v63, 5  ;;  %v5680_v40 = vrot.slane %v5664_v26, 9  ;;  %v4584_v60 = vrot.slane %v7897_v33, 5  ;;  %v8864_v16 = vld [vmem:[#allocation4_spill] sm:$0xff]  ;;  %v8866_v52 = vld [vmem:[#allocation6_spill] sm:$0xff] }
 0x106   : > { %6091 = vmatprep.mubr.bf16.mxu1 %v5257_v7  ;;  %6344 = vmatpush3.bf16.msra.mxu0 %v6766_v31  ;;  %v4088_v18 = vsel %vm7022_vm2, %v8285_v1, %v8287_v4  ;;  %v8319_v5 = vrot.slane %v4103_v0, 4  ;;  %v8323_v61 = vsel %vm7268_vm5, %v5679_v15, %v4577_v55  ;;  %v4579_v32 = vrot.slane %v4577_v55, 4  ;;  %v8867_v4 = vld [vmem:[#allocation7_spill] sm:$0xff] }
 0x107   : > { %6345 = vmatprep.subr.bf16.mxu0 %v6769_v2  ;;  %v4123_v31 = vshll.u32 %v8309_v51, 16  ;;  %v8329_v63 = vsel %vm7268_vm5, %v5680_v40, %v4584_v60  ;;  %v4586_v33 = vrot.slane %v4584_v60, 4  ;;  %v4587_v3 = vrot.slane %v8863_v39, 5  ;;  %v8360_v26 = vld [vmem:[%s6990_s10 + $0xc8] sm:$0x1]  ;;  %v6765_v40 = vld [vmem:[%s6990_s10 + $0x18] sm:$0xff]  }
 0x108   : > { %v8335_v45 = vsel %vm7268_vm5, %v4579_v32, %v4580_v57  ;;  %v5681_v53 = vrot.slane %v5665_v14, 9  ;;  %v4591_v46 = vrot.slane %v8864_v16, 5  ;;  %v4594_v30 = vrot.slane %v8865_v29, 5  ;;  %v6767_v39 = vld [vmem:[%s6990_s10 + $0x24] sm:$0xff]  }
 0x109   : > { %v5711_v8 = vcombine.low %v8323_v61, %v8335_v45  ;;  %v8346_v20 = vsel %vm7268_vm5, %v4586_v33, %v4587_v3  ;;  %v5682_v7 = vrot.slane %v5666_v28, 9  ;;  %v4601_v0 = vrot.slane %v8867_v4, 5  ;;  %v8869_v28 = vld [vmem:[#allocation11_spill] sm:$0xff]  ;;  %v5372_v61 = vld [vmem:[%s6990_s10 + $0x90] sm:$0xf] }
 0x10a   : > { %6346 = vmatpush3.bf16.msra.mxu0 %v6769_v2  ;;  %v4598_v2 = vrot.slane %v8866_v52, 5  ;;  %v5712_v54 = vcombine.low %v8329_v63, %v8346_v20  ;;  %v8353_v41 = vsel %vm7268_vm5, %v5681_v53, %v4591_v46  ;;  %v4593_v1 = vrot.slane %v4591_v46, 4  ;;  %v8870_v53 = vld [vmem:[#allocation2_spill] sm:$0xff]  ;;  %v6781_v45 = vld [vmem:[%s6990_s10 + $0xa8] sm:$0xff]  }
 0x10b   : > { %6347 = vmatprep.subr.bf16.mxu0 %v6772_v6  ;;  %v8362_v44 = vrot.slane %v4114_v23, 4  ;;  %v8375_v36 = vcombine.low %v4054_v47, %v4064_v34  ;;  %v4096_v62 = vor.u32 %v8296_v19, %v8294_v59  ;;  %v5667_v23 = vld [vmem:[%s6990_s10 + $0x78] sm:$0xe]  ;;  %v8387_v57 = vrot.slane %v4109_v12, 5  ;;  %v5616_v12 = vld [vmem:[%s6990_s10 + $0xcc] sm:$0xf] }
 0x10c   : > { %6316 = vmatmul.mubr.bf16.gmra.mrb[12].mxu0 %v5642_v24  ;;  %v8364_v24 = vrot.slane %v4117_v22, 5  ;;  %v8368_v15 = vsel %vm7268_vm5, %v5682_v7, %v4598_v2  ;;  %v4600_v55 = vrot.slane %v4598_v2, 4  ;;  %v8385_v22 = vcombine.low %v4078_v38, %v4088_v18  ;;  %v5366_v47 = vld [vmem:[%s6990_s10 + $0x78] sm:$0xf]  ;;  %v8868_v18 = vld [vmem:[#allocation8_spill] sm:$0xff] }
 0x10d   : > { %6092 = vmatmul.mubr.bf16.gmra.mrb[28].mxu1 %v5258_v48  ;;  %6319 = vmatprep.mubr.bf16.mxu0 %v5643_v42  ;;  %v4127_v48 = vshrl.u32 %v8309_v51, 16  ;;  %v8382_v42 = vsel %vm7268_vm5, %v4593_v1, %v4594_v30  ;;  %v4106_v34 = vor.u32 %v8319_v5, %v8298_v49  ;;  %v8398_v59 = vrot.slane %v4123_v31, 5  ;;  %v8412_v31 = vld [vmem:[%s6990_s10 + $0xd0] sm:$0xf]  ;;  %v8871_v1 = vld [vmem:[#allocation9_spill] sm:$0xff] }
 0x10e   : > { %6111 = vmatprep.mubr.bf16.mxu1 %v6764_v13  ;;  %6348 = vmatpush3.bf16.msra.mxu0 %v6772_v6  ;;  %v5713_v17 = vcombine.low %v8353_v41, %v8382_v42  ;;  %v8393_v43 = vsel %vm7268_vm5, %v4600_v55, %v4601_v0  ;;  %v4133_v19 = vshll.u32 %v8360_v26, 16  ;;  %v5668_v6 = vld [vmem:[%s6990_s10 + $0x84] sm:$0xe]  ;;  %v4120_v60 = vor.u32 %v8364_v24, %v8362_v44  ;;  %v8872_v24 = vld [vmem:[#allocation12_spill] sm:$0xff]  ;;  %v6909_v63 = vld [vmem:[%s6990_s10 + $0x8c] sm:$0x1] }
 0x10f   : > { %6349 = vmatprep.subr.bf16.mxu0 %v6775_v56  ;;  %v5714_v38 = vcombine.low %v8368_v15, %v8393_v43  ;;  %v5683_v14 = vrot.slane %v5667_v23, 9  ;;  %v4605_v32 = vrot.slane %v8868_v18, 5  ;;  %v4608_v33 = vrot.slane %v8869_v28, 5 }
 0x110   : > { %v4129_v5 = vrot.slane %v4127_v48, 4  ;;  %v2355_v3 = vshrl.u32 %v5366_v47, 16  ;;  %v2358_v13 = vshll.u32 %v5366_v47, 16  ;;  %v2377_v16 = vsel %vm7022_vm2, %v8197_v50, %v8870_v53 }
 0x111   : > { %v4138_v46 = vshrl.u32 %v5616_v12, 16  ;;  %v8420_v29 = vsel %vm7268_vm5, %v5683_v14, %v4605_v32  ;;  %v4607_v30 = vrot.slane %v4605_v32, 4  ;;  %v5684_v7 = vrot.slane %v5668_v6, 9  ;;  %v6889_v6 = vld [vmem:[%s8809_s1 + $0x108] sm:$0xff]  }
 0x112   : > { %6350 = vmatpush3.bf16.msra.mxu0 %v6775_v56  ;;  %v4141_v52 = vshll.u32 %v5616_v12, 16  ;;  %v2357_v2 = vrot.slane %v2355_v3, 4  ;;  %v2360_v56 = vrot.slane %v2358_v13, 5  ;;  %v4612_v4 = vrot.slane %v8871_v1, 5  ;;  %v5669_v12 = vld [vmem:[%s6990_s10 + $0x90] sm:$0xe] }
 0x113   : > { %v4147_v50 = vshll.u32 %v8412_v31, 16  ;;  %v4151_v0 = vshrl.u32 %v8412_v31, 16  ;;  %v8429_v44 = vsel %vm7268_vm5, %v4607_v30, %v4608_v33  ;;  %v4615_v55 = vrot.slane %v8872_v24, 5  ;;  %v6768_v3 = vld [vmem:[%s6990_s10 + $0x30] sm:$0xff]  }
 0x114   : > { %6320 = vmatmul.mubr.bf16.gmra.mrb[16].mxu0 %v8267_v58  ;;  %v8873_v58 = vld [vmem:[#allocation15_spill] sm:$0xff]  ;;  %v4130_v48 = vor.u32 %v4129_v5, %v8398_v59  ;;  %v2361_v23 = vor.u32 %v2360_v56, %v2357_v2  ;;  %v4614_v47 = vrot.slane %v4612_v4, 4  ;;  %v4107_v14 = vrot.slane %v4106_v34, 4  ;;  %v8450_v13 = vld [vmem:[%s6990_s10 + $0xd4] sm:$0x1]  ;;  %v8874_v2 = vld [vmem:[#allocation10_spill] sm:$0xff] }
 0x115   : > { %6112 = vmatmul.mubr.bf16.vlgmr.msra.gmra.mrb[0].mxu1 %v6765_v40  ;;  %6323 = vmatprep.mubr.bf16.mxu0 %v8269_v35  ;;  %v5715_v35 = vcombine.low %v8420_v29, %v8429_v44  ;;  %v4097_v40 = vrot.slane %v4096_v62, 4  ;;  %v4135_v18 = vrot.slane %v4133_v19, 5  ;;  %v8442_v32 = vsel %vm7268_vm5, %v5684_v7, %v4612_v4  ;;  %v6770_v19 = vld [vmem:[%s6990_s10 + $0x3c] sm:$0xff]   ;;  %v6890_v1 = vld [vmem:[%s8809_s1 + $0x110] sm:$0xff]  }
 0x116   : > { %6391 = vmatpush3.bf16.msra.mxu1 %v8873_v58  ;;  %6115 = vmatprep.mubr.bf16.mxu1 %v6767_v39  ;;  %v4140_v28 = vrot.slane %v4138_v46, 4  ;;  %v4143_v33 = vrot.slane %v4141_v52, 5  ;;  %v2362_v39 = vrot.slane %v2361_v23, 4  ;;  %v8446_v5 = vsel %vm7268_vm5, %v4614_v47, %v4615_v55  ;;  %v6891_v47 = vld [vmem:[%s6990_s10 + $0x1c] sm:$0xf] }
 0x117   : > { %6384 = vmatprep.subr.bf16.mxu1 %v6889_v6  ;;  %v8452_v53 = vrot.slane %v4147_v50, 5  ;;  %v4153_v30 = vrot.slane %v4151_v0, 4  ;;  %v5716_v62 = vcombine.low %v8442_v32, %v8446_v5  ;;  %v5685_v34 = vrot.slane %v5669_v12, 9 }
 0x118   : > { %v4121_v7 = vrot.slane %v4120_v60, 4  ;;  %v4131_v46 = vrot.slane %v4130_v48, 4  ;;  %v2367_v52 = vsel %vm7022_vm2, %v2362_v39, %v7598_v11  ;;  %v4619_v56 = vrot.slane %v8874_v2, 5  ;;  %v8875_v11 = vld [vmem:[#allocation14_spill] sm:$0xff]  ;;  %v6771_v39 = vld [vmem:[%s6990_s10 + $0x48] sm:$0xff]  }
 0x119   : > { %v4102_v4 = vsel %vm7022_vm2, %v4097_v40, %v8298_v49  ;;  %v4112_v60 = vsel %vm7022_vm2, %v4107_v14, %v8387_v57  ;;  %v8470_v50 = vcombine.low %v2367_v52, %v2377_v16  ;;  %v4622_v0 = vrot.slane %v8875_v11, 5  ;;  %v5659_v57 = vld [vmem:[%s6990_s10 + $0x18] sm:$0xe]  ;;  %v5670_v16 = vld [vmem:[%s6990_s10 + $0x9c] sm:$0xe] }
 0x11a   : > { %6392 = vmatpush3.bf16.msra.mxu1 %v6889_v6  ;;  %v4144_v24 = vor.u32 %v4143_v33, %v4140_v28  ;;  %v4157_v55 = vshll.u32 %v8450_v13, 16  ;;  %v8477_v58 = vsel %vm7268_vm5, %v5685_v34, %v4619_v56  ;;  %v4621_v48 = vrot.slane %v4619_v56, 4  ;;  %v6892_v40 = vld [vmem:[%s8809_s1 + $0x118] sm:$0xff]   ;;  %v6893_v2 = vld [vmem:[%s6990_s10 + $0x20] sm:$0x1] }
 0x11b   : > { %6385 = vmatprep.subr.bf16.mxu1 %v6890_v1  ;;  %v4154_v49 = vor.u32 %v4153_v30, %v8452_v53  ;;  %v4136_v23 = vsel %vm7022_vm2, %v4131_v46, %v4135_v18  ;;  %v4549_v12 = vrot.slane %v6891_v47, 5  ;;  %v5648_v6 = vcombine.low %v4102_v4, %v4112_v60  ;;  %v8876_v34 = vld [vmem:[#allocation13_spill] sm:$0xff]  ;;  %v5671_v11 = vld [vmem:[%s6990_s10 + $0xa8] sm:$0xe] }
 0x11c   : > { %6324 = vmatmul.mubr.bf16.gmra.mrb[20].mxu0 %v8375_v36  ;;  %v4126_v36 = vsel %vm7022_vm2, %v4121_v7, %v8398_v59  ;;  %v4145_v14 = vrot.slane %v4144_v24, 4  ;;  %v4159_v28 = vrot.slane %v4157_v55, 5  ;;  %v5675_v18 = vrot.slane %v5659_v57, 9  ;;  %v6773_v46 = vld [vmem:[%s6990_s10 + $0x54] sm:$0xff]   ;;  %v5660_v55 = vld [vmem:[%s6990_s10 + $0x24] sm:$0xe] }
 0x11d   : > { %6116 = vmatmul.mubr.bf16.gmra.mrb[4].mxu1 %v6768_v3  ;;  %6327 = vmatprep.mubr.bf16.mxu0 %v8385_v22  ;;  %v8491_v22 = vsel %vm7268_vm5, %v4621_v48, %v4622_v0  ;;  %v5686_v33 = vrot.slane %v5670_v16, 9  ;;  %v5649_v3 = vcombine.low %v4126_v36, %v4136_v23  ;;  %v4155_v30 = vrot.slane %v4154_v49, 4  ;;  %v6895_v48 = vld [vmem:[%s6990_s10 + $0x28] sm:$0xf]  ;;  %v6896_v36 = vld [vmem:[%s6990_s10 + $0x34] sm:$0xf] }
 0x11e   : > { %6119 = vmatprep.mubr.bf16.mxu1 %v6770_v19  ;;  %6393 = vmatpush3.bf16.msra.mxu1 %v6890_v1  ;;  %v5717_v59 = vcombine.low %v8477_v58, %v8491_v22  ;;  %v4626_v19 = vrot.slane %v8876_v34, 5  ;;  %v4629_v7 = vrot.slane %v8180_v25, 5  ;;  %v4551_v52 = vrot.slane %v4549_v12, 4  ;;  %v6894_v1 = vld [vmem:[%s8809_s1 + $0x120] sm:$0xff]  }
 0x11f   : > { %6386 = vmatprep.subr.bf16.mxu1 %v6892_v40  ;;  %v4552_v56 = vrot.slane %v6893_v2, 5  ;;  %v4550_v25 = vsel %vm7268_vm5, %v5675_v18, %v4549_v12  ;;  %v4150_v0 = vsel %vm7022_vm2, %v4145_v14, %v8452_v53  ;;  %v4160_v24 = vsel %vm7022_vm2, %v4155_v30, %v4159_v28  ;;  %v5661_v12 = vld [vmem:[%s6990_s10 + $0x30] sm:$0xe]  ;;  %v6774_v30 = vld [vmem:[%s6990_s10 + $0x60] sm:$0xff]  }
 0x120   : > { %v8508_v4 = vsel %vm7268_vm5, %v5686_v33, %v4626_v19  ;;  %v4628_v60 = vrot.slane %v4626_v19, 4  ;;  %v4556_v49 = vrot.slane %v6895_v48, 5  ;;  %v4563_v23 = vrot.slane %v6896_v36, 5  ;;  %v6898_v33 = vld [vmem:[%s6990_s10 + $0x2c] sm:$0x1] }
 0x121   : > { %v4553_v16 = vsel %vm7268_vm5, %v4551_v52, %v4552_v56  ;;  %v5687_v47 = vrot.slane %v5671_v11, 9  ;;  %v5650_v28 = vcombine.low %v4150_v0, %v4160_v24  ;;  %v5676_v18 = vrot.slane %v5660_v55, 9  ;;  %v6776_v52 = vld [vmem:[%s6990_s10 + $0x6c] sm:$0xff]   ;;  %v5672_v11 = vld [vmem:[%s6990_s10 + $0xb4] sm:$0xe] }
 0x122   : > { %6394 = vmatpush3.bf16.msra.mxu1 %v6892_v40  ;;  %v8522_v57 = vsel %vm7268_vm5, %v4628_v60, %v4629_v7  ;;  %v8877_v40 = vld [vmem:[#allocation16_spill] sm:$0xff]  ;;  %v5707_v34 = vcombine.low %v4550_v25, %v4553_v16  ;;  %v4558_v19 = vrot.slane %v4556_v49, 4  ;;  %v5677_v2 = vrot.slane %v5661_v12, 9  ;;  %v5662_v0 = vld [vmem:[%s6990_s10 + $0x3c] sm:$0xe] }
 0x123   : > { %6387 = vmatprep.subr.bf16.mxu1 %v6894_v1  ;;  %v5718_v53 = vcombine.low %v8508_v4, %v8522_v57  ;;  %v4633_v14 = vrot.slane %v8877_v40, 5  ;;  %v4565_v56 = vrot.slane %v4563_v23, 4  ;;  %v6900_v24 = vld [vmem:[%s6990_s10 + $0x40] sm:$0xf]  ;;  %v4557_v48 = vsel %vm7268_vm5, %v5676_v18, %v4556_v49  ;;  %v6902_v18 = vld [vmem:[%s6990_s10 + $0x44] sm:$0x1] }
 0x124   : > { %6328 = vmatmul.mubr.bf16.gmra.mrb[24].mxu0 %v5648_v6  ;;  %v6897_v6 = vld [vmem:[%s8809_s1 + $0x128] sm:$0xff]   ;;  %v4570_v55 = vrot.slane %v6900_v24, 5  ;;  %v4640_v12 = vrot.slane %v8227_v10, 5  ;;  %v4564_v49 = vsel %vm7268_vm5, %v5677_v2, %v4563_v23  ;;  %v6903_v10 = vld [vmem:[%s8809_s1 + $0x138] sm:$0xff]   ;;  %v5673_v23 = vld [vmem:[%s6990_s10 + $0xc0] sm:$0xe] }
 0x125   : > { %6120 = vmatmul.mubr.bf16.gmra.mrb[8].mxu1 %v6771_v39  ;;  %6331 = vmatprep.mubr.bf16.mxu0 %v5649_v3  ;;  %v4559_v39 = vrot.slane %v6898_v33, 5  ;;  %v4636_v3 = vrot.slane %v8215_v21, 5  ;;  %v8539_v7 = vsel %vm7268_vm5, %v5687_v47, %v4633_v14  ;;  %v6901_v21 = vld [vmem:[%s8809_s1 + $0x130] sm:$0xff]   ;;  %v5688_v47 = vrot.slane %v5672_v11, 9 }
 0x126   : > { %6123 = vmatprep.mubr.bf16.mxu1 %v6773_v46  ;;  %6395 = vmatpush3.bf16.msra.mxu1 %v6894_v1  ;;  %v4635_v46 = vrot.slane %v4633_v14, 4  ;;  %v6899_v1 = vld [vmem:[%s6990_s10 + $0x38] sm:$0x1]  ;;  %v5678_v14 = vrot.slane %v5662_v0, 9  ;;  %v4573_v33 = vrot.slane %v6902_v18, 5  ;;  %v4647_v11 = vrot.slane %v8309_v51, 5 }
 0x127   : > { %6388 = vmatprep.subr.bf16.mxu1 %v6897_v6  ;;  %v4566_v60 = vrot.slane %v6899_v1, 5  ;;  %v4560_v36 = vsel %vm7268_vm5, %v4558_v19, %v4559_v39  ;;  %v4642_v39 = vrot.slane %v4640_v12, 4  ;;  %v5363_v19 = vld [vmem:[%s6990_s10 + $0x6c] sm:$0xf]  ;;  %v6779_v18 = vld [vmem:[%s6990_s10 + $0x90] sm:$0xff]   ;;  %v2398_v20 = vshll.u32 %v6909_v63, 16 }
 0x128   : > { %v8551_v25 = vsel %vm7268_vm5, %v4635_v46, %v4636_v3  ;;  %v5708_v3 = vcombine.low %v4557_v48, %v4560_v36  ;;  %v4571_v1 = vsel %vm7268_vm5, %v5678_v14, %v4570_v55  ;;  %v2331_v0 = vshrl.u32 %v5363_v19, 16  ;;  %v5674_v51 = vld [vmem:[%s6990_s10 + $0xcc] sm:$0xe] }
 0x129   : > { %v5719_v16 = vcombine.low %v8539_v7, %v8551_v25  ;;  %v4567_v40 = vsel %vm7268_vm5, %v4565_v56, %v4566_v60  ;;  %v5689_v56 = vrot.slane %v5673_v23, 9  ;;  %v2334_v24 = vshll.u32 %v5363_v19, 16 }
 0x12a   : > { %6396 = vmatpush3.bf16.msra.mxu1 %v6897_v6  ;;  %v4643_v6 = vrot.slane %v8248_v27, 5  ;;  %v8571_v27 = vsel %vm7268_vm5, %v5688_v47, %v4640_v12  ;;  %v4650_v36 = vrot.slane %v8360_v26, 5  ;;  %v4649_v12 = vrot.slane %v4647_v11, 4 }
 0x12b   : > { %6389 = vmatprep.subr.bf16.mxu1 %v6901_v21  ;;  %v2336_v26 = vrot.slane %v2334_v24, 5  ;;  %v4657_v23 = vrot.slane %v8450_v13, 5 }
 0x12c   : > { %6332 = vmatmul.mubr.bf16.gmra.mrb[28].mxu0 %v5650_v28  ;;  %v4572_v28 = vrot.slane %v4570_v55, 4  ;;  %v8578_v46 = vsel %vm7268_vm5, %v4642_v39, %v4643_v6  ;;  %v8592_v55 = vsel %vm7268_vm5, %v5689_v56, %v4647_v11  ;;  %v4654_v39 = vrot.slane %v8412_v31, 5  ;;  %v6905_v56 = vld [vmem:[%s6990_s10 + $0x74] sm:$0x1] }
 0x12d   : > { %6124 = vmatmul.mubr.bf16.gmra.mrb[12].mxu1 %v6774_v30  ;;  %6351 = vmatprep.mubr.bf16.mxu0 %v5707_v34  ;;  %v6777_v30 = vld [vmem:[%s6990_s10 + $0x78] sm:$0xff]   ;;  %v5709_v34 = vcombine.low %v4564_v49, %v4567_v40  ;;  %v5720_v2 = vcombine.low %v8571_v27, %v8578_v46  ;;  %v8597_v49 = vsel %vm7268_vm5, %v4649_v12, %v4650_v36  ;;  %v2333_v40 = vrot.slane %v2331_v0, 4  ;;  %v6906_v0 = vld [vmem:[%s6990_s10 + $0x88] sm:$0xf] }
 0x12e   : > { %6127 = vmatprep.mubr.bf16.mxu1 %v6776_v52  ;;  %6397 = vmatpush3.bf16.msra.mxu1 %v6901_v21  ;;  %v6778_v52 = vld [vmem:[%s6990_s10 + $0x84] sm:$0xff]   ;;  %v4574_v60 = vsel %vm7268_vm5, %v4572_v28, %v4573_v33  ;;  %v6904_v21 = vld [vmem:[%s6990_s10 + $0x70] sm:$0xf]  ;;  %v5721_v28 = vcombine.low %v8592_v55, %v8597_v49  ;;  %v4656_v19 = vrot.slane %v4654_v39, 4  ;;  %v2388_v24 = vshll.u32 %v6906_v0, 16 }
 0x12f   : > { %6390 = vmatprep.subr.bf16.mxu1 %v6903_v10  ;;  %v2340_v48 = vshll.u32 %v6904_v21, 16  ;;  %v2344_v47 = vshrl.u32 %v6904_v21, 16  ;;  %v5710_v6 = vcombine.low %v4571_v1, %v4574_v60  ;;  %v2350_v1 = vshll.u32 %v6905_v56, 16 }
 0x130   : > { %v8619_v11 = vsel %vm7268_vm5, %v4656_v19, %v4657_v23  ;;  %v2392_v21 = vshrl.u32 %v6906_v0, 16  ;;  %v6908_v19 = vld [vmem:[%s6990_s10 + $0xa0] sm:$0xf] }
 0x131   : > { %v8599_v14 = vrot.slane %v2340_v48, 5  ;;  %v2346_v33 = vrot.slane %v2344_v47, 4  ;;  %v2440_v56 = vshrl.u32 %v6908_v19, 16 }
 0x132   : > { %6398 = vmatpush3.bf16.msra.mxu1 %v6903_v10  ;;  %v5690_v10 = vrot.slane %v5674_v51, 9 }
 0x133   : > { %v2347_v31 = vor.u32 %v2346_v33, %v8599_v14  ;;  %v2406_v33 = vshll.u32 %v5372_v61, 16 }
 0x134   : > { %6352 = vmatmul.mubr.bf16.vlgmr.msra.gmra.mrb[0].mxu0 %v5708_v3  ;;  %v6780_v3 = vld [vmem:[%s6990_s10 + $0x9c] sm:$0xff]  }
 0x135   : > { %6128 = vmatmul.mubr.bf16.gmra.mrb[16].mxu1 %v6777_v30  ;;  %6355 = vmatprep.mubr.bf16.mxu0 %v5709_v34  ;;  %v5369_v30 = vld [vmem:[%s6990_s10 + $0x84] sm:$0xf]  ;;  %v8610_v34 = vsel %vm7268_vm5, %v5690_v10, %v4654_v39  ;;  %v2348_v47 = vrot.slane %v2347_v31, 4  ;;  %v6907_v10 = vld [vmem:[%s6990_s10 + $0x94] sm:$0xf]  ;;  %v2408_v0 = vrot.slane %v2406_v33, 5 }
 0x136   : > { %6131 = vmatprep.mubr.bf16.mxu1 %v6778_v52  ;;  %v2337_v52 = vor.u32 %v2336_v26, %v2333_v40  ;;  %v2379_v13 = vshrl.u32 %v5369_v30, 16  ;;  %v2382_v60 = vshll.u32 %v5369_v30, 16  ;;  %v5722_v48 = vcombine.low %v8610_v34, %v8619_v11 }
 0x137   : > { %v8628_v40 = vrot.slane %v2388_v24, 5  ;;  %v2394_v26 = vrot.slane %v2392_v21, 4  ;;  %v2412_v39 = vshll.u32 %v6907_v10, 16  ;;  %v2416_v23 = vshrl.u32 %v6907_v10, 16  ;;  %v6911_v10 = vld [vmem:[%s6990_s10 + $0xa4] sm:$0x1] }
 0x138   : > { %v2338_v36 = vrot.slane %v2337_v52, 4  ;;  %v2381_v12 = vrot.slane %v2379_v13, 4  ;;  %v2384_v51 = vrot.slane %v2382_v60, 5  ;;  %v2436_v52 = vshll.u32 %v6908_v19, 16  ;;  %v6912_v19 = vld [vmem:[%s6990_s10 + $0xac] sm:$0xf] }
 0x139   : > { %v2395_v13 = vor.u32 %v2394_v26, %v8628_v40  ;;  %v8645_v41 = vrot.slane %v2412_v39, 5  ;;  %v2418_v42 = vrot.slane %v2416_v23, 4  ;;  %v2442_v21 = vrot.slane %v2440_v56, 4  ;;  %v5381_v23 = vld [vmem:[%s6990_s10 + $0xb4] sm:$0xf] }
 0x13a   : > { %v2446_v39 = vshll.u32 %v6911_v10, 16  ;;  %v2464_v15 = vshrl.u32 %v6912_v19, 16  ;;  %v2478_v63 = vshll.u32 %v5381_v23, 16 }
 0x13b   : > { %v2419_v26 = vor.u32 %v2418_v42, %v8645_v41 }
 0x13c   : > { %6356 = vmatmul.mubr.bf16.gmra.mrb[4].mxu0 %v5710_v6  ;;  %v5375_v6 = vld [vmem:[%s6990_s10 + $0x9c] sm:$0xf] }
 0x13d   : > { %6132 = vmatmul.mubr.bf16.gmra.mrb[20].mxu1 %v6779_v18  ;;  %6359 = vmatprep.mubr.bf16.mxu0 %v5711_v8  ;;  %v2352_v8 = vrot.slane %v2350_v1, 5  ;;  %v2403_v18 = vshrl.u32 %v5372_v61, 16  ;;  %v2430_v30 = vshll.u32 %v5375_v6, 16  ;;  %v2343_v1 = vsel %vm7022_vm2, %v2338_v36, %v8599_v14  ;;  %v6783_v61 = vld [vmem:[%s6990_s10 + $0xc0] sm:$0xff]  }
 0x13e   : > { %6135 = vmatprep.mubr.bf16.mxu1 %v6780_v3  ;;  %v2427_v3 = vshrl.u32 %v5375_v6, 16  ;;  %v8647_v14 = vrot.slane %v2436_v52, 5  ;;  %v2460_v52 = vshll.u32 %v6912_v19, 16 }
 0x13f   : > { %v2353_v31 = vsel %vm7022_vm2, %v2348_v47, %v2352_v8  ;;  %v2405_v60 = vrot.slane %v2403_v18, 4  ;;  %v2432_v24 = vrot.slane %v2430_v30, 5  ;;  %v2400_v8 = vrot.slane %v2398_v20, 5  ;;  %v6913_v20 = vld [vmem:[%s6990_s10 + $0xb8] sm:$0xf] }
 0x140   : > { %v2396_v47 = vrot.slane %v2395_v13, 4  ;;  %v2443_v33 = vor.u32 %v2442_v21, %v8647_v14  ;;  %v2484_v29 = vshll.u32 %v6913_v20, 16  ;;  %v2488_v44 = vshrl.u32 %v6913_v20, 16 }
 0x142   : > { %v2444_v13 = vrot.slane %v2443_v33, 4 }
 0x144   : > { %6360 = vmatmul.mubr.bf16.gmra.mrb[8].mxu0 %v5712_v54  ;;  %v2385_v54 = vor.u32 %v2384_v51, %v2381_v12  ;;  %v2409_v12 = vor.u32 %v2408_v0, %v2405_v60  ;;  %v6910_v51 = vld [vmem:[%s6990_s10 + $0x98] sm:$0x1]  ;;  %v2448_v60 = vrot.slane %v2446_v39, 5 }
 0x145   : > { %6136 = vmatmul.mubr.bf16.gmra.mrb[24].mxu1 %v6781_v45  ;;  %6363 = vmatprep.mubr.bf16.mxu0 %v5713_v17  ;;  %v2429_v17 = vrot.slane %v2427_v3, 4  ;;  %v5411_v45 = vcombine.low %v2343_v1, %v2353_v31  ;;  %v2422_v6 = vshll.u32 %v6910_v51, 16  ;;  %v2475_v31 = vshrl.u32 %v5381_v23, 16 }
 0x146   : > { %6139 = vmatprep.mubr.bf16.mxu1 %v6782_v9  ;;  %v2386_v36 = vrot.slane %v2385_v54, 4  ;;  %v5378_v9 = vld [vmem:[%s6990_s10 + $0xa8] sm:$0xf]  ;;  %v2410_v56 = vrot.slane %v2409_v12, 4  ;;  %v2449_v32 = vsel %vm7022_vm2, %v2444_v13, %v2448_v60 }
 0x147   : > { %v2433_v18 = vor.u32 %v2432_v24, %v2429_v17  ;;  %v2451_v3 = vshrl.u32 %v5378_v9, 16  ;;  %v2454_v30 = vshll.u32 %v5378_v9, 16  ;;  %v2424_v1 = vrot.slane %v2422_v6, 5 }
 0x148   : > { %v2391_v43 = vsel %vm7022_vm2, %v2386_v36, %v8628_v40  ;;  %v2462_v17 = vrot.slane %v2460_v52, 5  ;;  %v2466_v24 = vrot.slane %v2464_v15, 4  ;;  %v2477_v21 = vrot.slane %v2475_v31, 4  ;;  %v5384_v36 = vld [vmem:[%s6990_s10 + $0xc0] sm:$0xf] }
 0x149   : > { %v2434_v54 = vrot.slane %v2433_v18, 4  ;;  %v2453_v0 = vrot.slane %v2451_v3, 4  ;;  %v2456_v42 = vrot.slane %v2454_v30, 5  ;;  %v2499_v9 = vshrl.u32 %v5384_v36, 16  ;;  %v6915_v18 = vld [vmem:[%s6990_s10 + $0xc4] sm:$0xf] }
 0x14a   : > { %v2508_v33 = vshll.u32 %v6915_v18, 16 }
 0x14b   : > { %v2439_v51 = vsel %vm7022_vm2, %v2434_v54, %v8647_v14  ;;  %v2457_v5 = vor.u32 %v2456_v42, %v2453_v0  ;;  %v2512_v14 = vshrl.u32 %v6915_v18, 16  ;;  %v2501_v19 = vrot.slane %v2499_v9, 4 }
 0x14c   : > { %6364 = vmatmul.mubr.bf16.gmra.mrb[12].mxu0 %v5714_v38  ;;  %v2401_v38 = vsel %vm7022_vm2, %v2396_v47, %v2400_v8  ;;  %v2490_v8 = vrot.slane %v2488_v44, 4  ;;  %v2415_v47 = vsel %vm7022_vm2, %v2410_v56, %v8645_v41  ;;  %v6914_v41 = vld [vmem:[%s6990_s10 + $0xb0] sm:$0x1]  ;;  %v5415_v58 = vcombine.low %v2439_v51, %v2449_v32  ;;  %v6917_v44 = vld [vmem:[%s6990_s10 + $0xc8] sm:$0x1] }
 0x14d   : > { %6140 = vmatmul.mubr.bf16.gmra.mrb[28].mxu1 %v6783_v61  ;;  %6367 = vmatprep.mubr.bf16.mxu0 %v5715_v35  ;;  %v2420_v35 = vrot.slane %v2419_v26, 4  ;;  %v5413_v40 = vcombine.low %v2391_v43, %v2401_v38  ;;  %v2480_v61 = vrot.slane %v2478_v63, 5  ;;  %v2470_v6 = vshll.u32 %v6914_v41, 16 }
 0x14e   : > { %6175 = vmatprep.mubr.bf16.mxu1 %v5411_v45  ;;  %v2486_v45 = vrot.slane %v2484_v29, 5  ;;  %v2502_v26 = vshll.u32 %v5384_v36, 16  ;;  %v2458_v22 = vrot.slane %v2457_v5, 4  ;;  %v2510_v15 = vrot.slane %v2508_v33, 5 }
 0x14f   : > { %v2425_v12 = vsel %vm7022_vm2, %v2420_v35, %v2424_v1  ;;  %v2481_v10 = vor.u32 %v2480_v61, %v2477_v21  ;;  %v2472_v30 = vrot.slane %v2470_v6, 5  ;;  %v2514_v43 = vrot.slane %v2512_v14, 4 }
 0x150   : > { %v2491_v39 = vor.u32 %v2490_v8, %v2486_v45  ;;  %v5414_v3 = vcombine.low %v2415_v47, %v2425_v12  ;;  %v2504_v52 = vrot.slane %v2502_v26, 5  ;;  %v2463_v31 = vsel %vm7022_vm2, %v2458_v22, %v2462_v17 }
 0x151   : > { %v2482_v38 = vrot.slane %v2481_v10, 4  ;;  %v2515_v29 = vor.u32 %v2514_v43, %v2510_v15  ;;  %v2518_v35 = vshll.u32 %v6917_v44, 16 }
 0x152   : > { %v2492_v56 = vrot.slane %v2491_v39, 4  ;;  %v2505_v20 = vor.u32 %v2504_v52, %v2501_v19 }
 0x153   : > { %v2487_v4 = vsel %vm7022_vm2, %v2482_v38, %v2486_v45  ;;  %v2520_v54 = vrot.slane %v2518_v35, 5 }
 0x154   : > { %6368 = vmatmul.mubr.bf16.gmra.mrb[16].mxu0 %v5716_v62  ;;  %v2467_v62 = vor.u32 %v2466_v24, %v2462_v17  ;;  %v2506_v25 = vrot.slane %v2505_v20, 4 }
 0x155   : > { %6176 = vmatmul.mubr.bf16.vlgmr.msra.gmra.mrb[16].mxu1 %v8470_v50  ;;  %6371 = vmatprep.mubr.bf16.mxu0 %v5717_v59  ;;  %v6916_v50 = vld [vmem:[%s6990_s10 + $0xbc] sm:$0x1] }
 0x156   : > { %6179 = vmatprep.mubr.bf16.mxu1 %v5413_v40  ;;  %v2494_v23 = vshll.u32 %v6916_v50, 16  ;;  %v2468_v59 = vrot.slane %v2467_v62, 4  ;;  %v2511_v13 = vsel %vm7022_vm2, %v2506_v25, %v2510_v15 }
 0x158   : > { %v2496_v1 = vrot.slane %v2494_v23, 5  ;;  %v2473_v63 = vsel %vm7022_vm2, %v2468_v59, %v2472_v30 }
 0x15a   : > { %v2497_v57 = vsel %vm7022_vm2, %v2492_v56, %v2496_v1 }
 0x15b   : > { %v5417_v7 = vcombine.low %v2487_v4, %v2497_v57 }
 0x15c   : > { %6372 = vmatmul.mubr.bf16.gmra.mrb[20].mxu0 %v5718_v53  ;;  %v5416_v53 = vcombine.low %v2463_v31, %v2473_v63 }
 0x15d   : > { %6180 = vmatmul.mubr.bf16.gmra.mrb[20].mxu1 %v5414_v3  ;;  %6375 = vmatprep.mubr.bf16.mxu0 %v5719_v16  ;;  %v2516_v16 = vrot.slane %v2515_v29, 4 }
 0x15e   : > { %6183 = vmatprep.mubr.bf16.mxu1 %v5415_v58 }
 0x15f   : > { %v2521_v60 = vsel %vm7022_vm2, %v2516_v16, %v2520_v54 }
 0x160   : > { %v5418_v0 = vcombine.low %v2511_v13, %v2521_v60 }
 0x164   : > { %6376 = vmatmul.mubr.bf16.gmra.mrb[24].mxu0 %v5720_v2 }
 0x165   : > { %6184 = vmatmul.mubr.bf16.gmra.mrb[24].mxu1 %v5416_v53  ;;  %6379 = vmatprep.mubr.bf16.mxu0 %v5721_v28 }
 0x166   : > { %6187 = vmatprep.mubr.bf16.mxu1 %v5417_v7 }
 0x16c   : > { %6380 = vmatmul.mubr.bf16.gmra.mrb[28].mxu0 %v5722_v48  ;;  %v8729_v48 = vld [vmem:[%s8810_s2] ss:$0 sm:$0xff] }
 0x16d   : > { %6188 = vmatmul.mubr.bf16.gmra.mrb[28].mxu1 %v5418_v0 }
 0x1e8   : > { %v6113_v27 = vpop.f32.mrb[0].mxu1 }
 0x1e9   : > { %v1931_v46 = vpop.f32.mrb[1].mxu1 }
 0x1ea   : > { %v6114_v2 = vpop.f32.mrb[2].mxu1 }
 0x1eb   : > { %v1934_v42 = vpop.f32.mrb[3].mxu1 }
 0x1f0   : > { %v6117_v17 = vpop.f32.mrb[4].mxu1 }
 0x1f1   : > { %v1947_v55 = vpop.f32.mrb[5].mxu1 }
 0x1f2   : > { %v6118_v49 = vpop.f32.mrb[6].mxu1 }
 0x1f3   : > { %v1950_v28 = vpop.f32.mrb[7].mxu1 }
 0x1f8   : > { %v6121_v24 = vpop.f32.mrb[8].mxu1 }
 0x1f9   : > { %v1963_v40 = vpop.f32.mrb[9].mxu1 }
 0x1fa   : > { %v6122_v21 = vpop.f32.mrb[10].mxu1 }
 0x1fb   : > { %v1966_v61 = vpop.f32.mrb[11].mxu1 }
 0x200   : > { %v8718_v37 = vpop.f32.mrb[12].mxu1 }
 0x201   : > { %v8720_v45 = vpop.f32.mrb[13].mxu1 }
 0x202   : > { %v8722_v8 = vpop.f32.mrb[14].mxu1 }
 0x203   : > { %v8724_v34 = vpop.f32.mrb[15].mxu1 }
 0x207   : > { %v6353_v11 = vpop.f32.mrb[0].mxu0 }
 0x208   : > { %v6399_v36 = vadd.f32 %v6353_v11, %v6113_v27  ;;  %v4822_v47 = vpop.f32.mrb[1].mxu0 }
 0x209   : > { %v6400_v12 = vadd.f32 %v4822_v47, %v1931_v46  ;;  %v6354_v51 = vpop.f32.mrb[2].mxu0 }
 0x20a   : > { %v4990_v32 = vadd.f32 %v6399_v36, %v8729_v48  ;;  %v6401_v5 = vadd.f32 %v6354_v51, %v6114_v2  ;;  %v4825_v62 = vpop.f32.mrb[3].mxu0 }
 0x20b   : > { %v4988_v41 = vadd.f32 %v6400_v12, %v8729_v48  ;;  %v6402_v6 = vadd.f32 %v4825_v62, %v1934_v42 }
 0x20c   : > { %6784 = vtanh.f32 %v4990_v32  ;;  %v4991_v9 = vadd.f32 %v6401_v5, %v8729_v48 }
 0x20d   : > { %6786 = vtanh.f32 %v4988_v41  ;;  %v4989_v26 = vadd.f32 %v6402_v6, %v8729_v48 }
 0x20e   : > { %6788 = vtanh.f32 %v4991_v9 }
 0x20f   : > { %6790 = vtanh.f32 %v4989_v26  ;;  %v6357_v18 = vpop.f32.mrb[4].mxu0 }
 0x210   : > { %v6403_v33 = vadd.f32 %v6357_v18, %v6117_v17  ;;  %v4838_v14 = vpop.f32.mrb[5].mxu0 }
 0x211   : > { %v6404_v10 = vadd.f32 %v4838_v14, %v1947_v55  ;;  %v6358_v39 = vpop.f32.mrb[6].mxu0 }
 0x212   : > { %v4994_v50 = vadd.f32 %v6403_v33, %v8729_v48  ;;  %v6405_v23 = vadd.f32 %v6358_v39, %v6118_v49  ;;  %v4841_v3 = vpop.f32.mrb[7].mxu0 }
 0x213   : > { %v4992_v58 = vadd.f32 %v6404_v10, %v8729_v48  ;;  %v6406_v22 = vadd.f32 %v4841_v3, %v1950_v28 }
 0x214   : > { %6792 = vtanh.f32 %v4994_v50  ;;  %v4995_v59 = vadd.f32 %v6405_v23, %v8729_v48 }
 0x215   : > { %6794 = vtanh.f32 %v4992_v58  ;;  %v4993_v30 = vadd.f32 %v6406_v22, %v8729_v48 }
 0x216   : > { %v6785_v19 = vpop.eup %6784  ;;  %6796 = vtanh.f32 %v4995_v59 }
 0x217   : > { %v6787_v52 = vpop.eup %6786  ;;  %5054 = vst [vmem:[%s8741_s11 + $0x10] sm:$0xff] %v6785_v19  ;;  %6798 = vtanh.f32 %v4993_v30  ;;  %v6361_v15 = vpop.f32.mrb[8].mxu0 }
 0x218   : > { %v6789_v43 = vpop.eup %6788  ;;  %5052 = vst [vmem:[%s8741_s11] sm:$0xff] %v6787_v52  ;;  %v6407_v38 = vadd.f32 %v6361_v15, %v6121_v24  ;;  %v4854_v56 = vpop.f32.mrb[9].mxu0 }
 0x219   : > { %v6791_v1 = vpop.eup %6790  ;;  %5055 = vst [vmem:[%s8741_s11 + $0x18] sm:$0xff] %v6789_v43  ;;  %v6408_v31 = vadd.f32 %v4854_v56, %v1963_v40  ;;  %v6362_v63 = vpop.f32.mrb[10].mxu0 }
 0x21a   : > { %5053 = vst [vmem:[%s8741_s11 + $0x8] sm:$0xff] %v6791_v1  ;;  %v4998_v20 = vadd.f32 %v6407_v38, %v8729_v48  ;;  %v6409_v29 = vadd.f32 %v6362_v63, %v6122_v21  ;;  %v4857_v44 = vpop.f32.mrb[11].mxu0 }
 0x21b   : > { %v4996_v35 = vadd.f32 %v6408_v31, %v8729_v48  ;;  %v6410_v4 = vadd.f32 %v4857_v44, %v1966_v61 }
 0x21c   : > { %6800 = vtanh.f32 %v4998_v20  ;;  %v4999_v57 = vadd.f32 %v6409_v29, %v8729_v48 }
 0x21d   : > { %6802 = vtanh.f32 %v4996_v35  ;;  %v4997_v53 = vadd.f32 %v6410_v4, %v8729_v48 }
 0x21e   : > { %v6793_v7 = vpop.eup %6792  ;;  %6804 = vtanh.f32 %v4999_v57 }
 0x21f   : > { %v6795_v25 = vpop.eup %6794  ;;  %5058 = vst [vmem:[%s8741_s11 + $0x30] sm:$0xff] %v6793_v7  ;;  %6806 = vtanh.f32 %v4997_v53  ;;  %v6365_v16 = vpop.f32.mrb[12].mxu0 }
 0x220   : > { %v6797_v54 = vpop.eup %6796  ;;  %5056 = vst [vmem:[%s8741_s11 + $0x20] sm:$0xff] %v6795_v25  ;;  %v6411_v13 = vadd.f32 %v6365_v16, %v8718_v37  ;;  %v4870_v60 = vpop.f32.mrb[13].mxu0 }
 0x221   : > { %v6799_v0 = vpop.eup %6798  ;;  %5059 = vst [vmem:[%s8741_s11 + $0x38] sm:$0xff] %v6797_v54  ;;  %v6412_v27 = vadd.f32 %v4870_v60, %v8720_v45  ;;  %v6366_v46 = vpop.f32.mrb[14].mxu0 }
 0x222   : > { %5057 = vst [vmem:[%s8741_s11 + $0x28] sm:$0xff] %v6799_v0  ;;  %v5002_v2 = vadd.f32 %v6411_v13, %v8729_v48  ;;  %v6413_v42 = vadd.f32 %v6366_v46, %v8722_v8  ;;  %v4873_v17 = vpop.f32.mrb[15].mxu0 }
 0x223   : > { %v5000_v55 = vadd.f32 %v6412_v27, %v8729_v48  ;;  %v6414_v49 = vadd.f32 %v4873_v17, %v8724_v34 }
 0x224   : > { %6808 = vtanh.f32 %v5002_v2  ;;  %v5003_v28 = vadd.f32 %v6413_v42, %v8729_v48 }
 0x225   : > { %6810 = vtanh.f32 %v5000_v55  ;;  %v5001_v24 = vadd.f32 %v6414_v49, %v8729_v48 }
 0x226   : > { %v6801_v40 = vpop.eup %6800  ;;  %6812 = vtanh.f32 %v5003_v28 }
 0x227   : > { %v6803_v21 = vpop.eup %6802  ;;  %5062 = vst [vmem:[%s8741_s11 + $0x50] sm:$0xff] %v6801_v40  ;;  %6814 = vtanh.f32 %v5001_v24  ;;  %v6369_v61 = vpop.f32.mrb[16].mxu0 }
 0x228   : > { %v6805_v37 = vpop.eup %6804  ;;  %5060 = vst [vmem:[%s8741_s11 + $0x40] sm:$0xff] %v6803_v21  ;;  %v6177_v45 = vpop.f32.mrb[16].mxu1 }
 0x229   : > { %v4886_v8 = vpop.f32.mrb[17].mxu0  ;;  %v6807_v11 = vpop.eup %6806  ;;  %5063 = vst [vmem:[%s8741_s11 + $0x58] sm:$0xff] %v6805_v37  ;;  %v6415_v34 = vadd.f32 %v6369_v61, %v6177_v45 }
 0x22a   : > { %v2749_v36 = vpop.f32.mrb[17].mxu1  ;;  %v6370_v47 = vpop.f32.mrb[18].mxu0  ;;  %5061 = vst [vmem:[%s8741_s11 + $0x48] sm:$0xff] %v6807_v11 }
 0x22b   : > { %v6416_v12 = vadd.f32 %v4886_v8, %v2749_v36  ;;  %v6178_v51 = vpop.f32.mrb[18].mxu1  ;;  %v4889_v32 = vpop.f32.mrb[19].mxu0  ;;  %v5006_v5 = vadd.f32 %v6415_v34, %v8729_v48 }
 0x22c   : > { %v6417_v62 = vadd.f32 %v6370_v47, %v6178_v51  ;;  %v2752_v41 = vpop.f32.mrb[19].mxu1 }
 0x22d   : > { %v5004_v6 = vadd.f32 %v6416_v12, %v8729_v48  ;;  %v6418_v9 = vadd.f32 %v4889_v32, %v2752_v41  ;;  %6816 = vtanh.f32 %v5006_v5 }
 0x22e   : > { %v5007_v26 = vadd.f32 %v6417_v62, %v8729_v48  ;;  %v6809_v18 = vpop.eup %6808 }
 0x22f   : > { %6818 = vtanh.f32 %v5004_v6  ;;  %v5005_v33 = vadd.f32 %v6418_v9, %v8729_v48  ;;  %v6811_v14 = vpop.eup %6810  ;;  %5066 = vst [vmem:[%s8741_s11 + $0x70] sm:$0xff] %v6809_v18  ;;  %v6373_v10 = vpop.f32.mrb[20].mxu0 }
 0x230   : > { %6820 = vtanh.f32 %v5007_v26  ;;  %v6813_v39 = vpop.eup %6812  ;;  %5064 = vst [vmem:[%s8741_s11 + $0x60] sm:$0xff] %v6811_v14  ;;  %v6181_v50 = vpop.f32.mrb[20].mxu1 }
 0x231   : > { %6822 = vtanh.f32 %v5005_v33  ;;  %v4902_v23 = vpop.f32.mrb[21].mxu0  ;;  %v6815_v3 = vpop.eup %6814  ;;  %5067 = vst [vmem:[%s8741_s11 + $0x78] sm:$0xff] %v6813_v39  ;;  %v6419_v58 = vadd.f32 %v6373_v10, %v6181_v50 }
 0x232   : > { %v2765_v22 = vpop.f32.mrb[21].mxu1  ;;  %v6374_v59 = vpop.f32.mrb[22].mxu0  ;;  %5065 = vst [vmem:[%s8741_s11 + $0x68] sm:$0xff] %v6815_v3 }
 0x233   : > { %v6420_v30 = vadd.f32 %v4902_v23, %v2765_v22  ;;  %v6182_v19 = vpop.f32.mrb[22].mxu1  ;;  %v4905_v52 = vpop.f32.mrb[23].mxu0  ;;  %v5010_v15 = vadd.f32 %v6419_v58, %v8729_v48 }
 0x234   : > { %v6421_v43 = vadd.f32 %v6374_v59, %v6182_v19  ;;  %v2768_v38 = vpop.f32.mrb[23].mxu1 }
 0x235   : > { %v5008_v56 = vadd.f32 %v6420_v30, %v8729_v48  ;;  %v6422_v1 = vadd.f32 %v4905_v52, %v2768_v38  ;;  %6824 = vtanh.f32 %v5010_v15 }
 0x236   : > { %v5011_v31 = vadd.f32 %v6421_v43, %v8729_v48 }
 0x237   : > { %6826 = vtanh.f32 %v5008_v56  ;;  %v5009_v63 = vadd.f32 %v6422_v1, %v8729_v48  ;;  %v6817_v20 = vpop.eup %6816  ;;  %v6377_v29 = vpop.f32.mrb[24].mxu0 }
 0x238   : > { %6828 = vtanh.f32 %v5011_v31  ;;  %5070 = vst [vmem:[%s8741_s11 + $0x90] sm:$0xff] %v6817_v20  ;;  %v6185_v35 = vpop.f32.mrb[24].mxu1  ;;  %v4918_v4 = vpop.f32.mrb[25].mxu0 }
 0x239   : > { %v6819_v44 = vpop.eup %6818  ;;  %6830 = vtanh.f32 %v5009_v63  ;;  %v6423_v53 = vadd.f32 %v6377_v29, %v6185_v35  ;;  %v2781_v7 = vpop.f32.mrb[25].mxu1 }
 0x23a   : > { %v6821_v57 = vpop.eup %6820  ;;  %5068 = vst [vmem:[%s8741_s11 + $0x80] sm:$0xff] %v6819_v44  ;;  %v6378_v25 = vpop.f32.mrb[26].mxu0  ;;  %v6424_v54 = vadd.f32 %v4918_v4, %v2781_v7 }
 0x23b   : > { %v6823_v16 = vpop.eup %6822  ;;  %5071 = vst [vmem:[%s8741_s11 + $0x98] sm:$0xff] %v6821_v57  ;;  %v6186_v13 = vpop.f32.mrb[26].mxu1  ;;  %v5014_v0 = vadd.f32 %v6423_v53, %v8729_v48 }
 0x23c   : > { %v4921_v60 = vpop.f32.mrb[27].mxu0  ;;  %5069 = vst [vmem:[%s8741_s11 + $0x88] sm:$0xff] %v6823_v16  ;;  %v6425_v27 = vadd.f32 %v6378_v25, %v6186_v13  ;;  %v2784_v46 = vpop.f32.mrb[27].mxu1  ;;  %v5012_v2 = vadd.f32 %v6424_v54, %v8729_v48 }
 0x23d   : > { %v6426_v42 = vadd.f32 %v4921_v60, %v2784_v46  ;;  %6832 = vtanh.f32 %v5014_v0 }
 0x23e   : > { %v5015_v17 = vadd.f32 %v6425_v27, %v8729_v48  ;;  %6834 = vtanh.f32 %v5012_v2 }
 0x23f   : > { %v5013_v55 = vadd.f32 %v6426_v42, %v8729_v48  ;;  %v6825_v49 = vpop.eup %6824  ;;  %v6381_v28 = vpop.f32.mrb[28].mxu0 }
 0x240   : > { %6836 = vtanh.f32 %v5015_v17  ;;  %5074 = vst [vmem:[%s8741_s11 + $0xb0] sm:$0xff] %v6825_v49  ;;  %v6189_v40 = vpop.f32.mrb[28].mxu1  ;;  %v4934_v21 = vpop.f32.mrb[29].mxu0 }
 0x241   : > { %v6827_v24 = vpop.eup %6826  ;;  %6838 = vtanh.f32 %v5013_v55  ;;  %v6427_v37 = vadd.f32 %v6381_v28, %v6189_v40  ;;  %v2797_v45 = vpop.f32.mrb[29].mxu1 }
 0x242   : > { %v6829_v61 = vpop.eup %6828  ;;  %5072 = vst [vmem:[%s8741_s11 + $0xa0] sm:$0xff] %v6827_v24  ;;  %v6382_v8 = vpop.f32.mrb[30].mxu0  ;;  %v6428_v34 = vadd.f32 %v4934_v21, %v2797_v45 }
 0x243   : > { %v6831_v11 = vpop.eup %6830  ;;  %5075 = vst [vmem:[%s8741_s11 + $0xb8] sm:$0xff] %v6829_v61  ;;  %v6190_v36 = vpop.f32.mrb[30].mxu1  ;;  %v5018_v12 = vadd.f32 %v6427_v37, %v8729_v48 }
 0x244   : > { %v4937_v47 = vpop.f32.mrb[31].mxu0  ;;  %5073 = vst [vmem:[%s8741_s11 + $0xa8] sm:$0xff] %v6831_v11  ;;  %v6429_v51 = vadd.f32 %v6382_v8, %v6190_v36  ;;  %v2800_v32 = vpop.f32.mrb[31].mxu1  ;;  %v5016_v5 = vadd.f32 %v6428_v34, %v8729_v48 }
 0x245   : > { %v6430_v62 = vadd.f32 %v4937_v47, %v2800_v32  ;;  %6840 = vtanh.f32 %v5018_v12 }
 0x246   : > { %v5019_v41 = vadd.f32 %v6429_v51, %v8729_v48  ;;  %6842 = vtanh.f32 %v5016_v5 }
 0x247   : > { %v5017_v6 = vadd.f32 %v6430_v62, %v8729_v48  ;;  %v6833_v9 = vpop.eup %6832 }
 0x248   : > { %6844 = vtanh.f32 %v5019_v41  ;;  %v6835_v26 = vpop.eup %6834  ;;  %5078 = vst [vmem:[%s8741_s11 + $0xd0] sm:$0xff] %v6833_v9 }
 0x249   : > { %6846 = vtanh.f32 %v5017_v6  ;;  %5076 = vst [vmem:[%s8741_s11 + $0xc0] sm:$0xff] %v6835_v26 }
 0x24a   : > { %v6837_v18 = vpop.eup %6836 }
 0x24b   : > { %v6839_v33 = vpop.eup %6838  ;;  %5079 = vst [vmem:[%s8741_s11 + $0xd8] sm:$0xff] %v6837_v18 }
 0x24c   : > { %5077 = vst [vmem:[%s8741_s11 + $0xc8] sm:$0xff] %v6839_v33 }
 0x24f   : > { %v6841_v14 = vpop.eup %6840 }
 0x250   : > { %v6843_v10 = vpop.eup %6842  ;;  %5082 = vst [vmem:[%s8741_s11 + $0xf0] sm:$0xff] %v6841_v14 }
 0x251   : > { %5080 = vst [vmem:[%s8741_s11 + $0xe0] sm:$0xff] %v6843_v10 }
 0x252   : > { %v6845_v39 = vpop.eup %6844 }
 0x253   : > { %v6847_v50 = vpop.eup %6846  ;;  %5083 = vst [vmem:[%s8741_s11 + $0xf8] sm:$0xff] %v6845_v39 }
 0x254   : > { %5081 = vst [vmem:[%s8741_s11 + $0xe8] sm:$0xff] %v6847_v50 }
 0x255 PF: > { %s13_s12 = sadd.s32 1, %s6924_s12  }
 0x256   : > { %p10_p4 = scmp.ge.s32.totalorder %s13_s12, 4  }
 0x258   :  { %12 = sbr.rel (!%p10_p4) target bundleno = 1 (0x1), region = 72 }

</bundles_post_ra>
